<compile_context>
chip_gen: v6e
topology: v6e:2x2x1
jax: 0.10.0
libtpu: 0.0.40
codegen_flags: <defaults>
</compile_context>

<pallas_src>
import functools

import numpy as np

import jax
import jax.numpy as jnp
from jax import lax
from jax.experimental import pallas as pl
from jax.experimental.pallas import tpu as pltpu

BN_EPS = 1e-5


# ---------------------------- Pallas kernel ----------------------------

def _conv_taps_kernel(x_ref, w_ref, b_ref, o_ref, *, offsets, out_cols, relu):
    # x_ref: (1, Cin, Lp)  bf16 -- flattened, radially padded image (one batch)
    # w_ref: (T, Cout, Cin) bf16 -- per-tap weight matrices (BN scale folded in)
    # b_ref: (Cout, 1)      f32  -- folded BN/bias shift
    # o_ref: (1, Cout, out_cols) f32
    acc = None
    for t, off in enumerate(offsets):          # static 9-tap (or 1-tap) loop
        xt = x_ref[0, :, pl.ds(off, out_cols)]                 # (Cin, out_cols)
        y = jnp.dot(w_ref[t], xt, preferred_element_type=jnp.float32)
        acc = y if acc is None else acc + y
    acc = acc + b_ref[...]                     # per-channel shift (broadcast on lanes)
    if relu:
        acc = jnp.maximum(acc, 0.0)
    o_ref[0] = acc.astype(o_ref.dtype)


def conv_taps(xflat, w_taps, shift, out_cols, offsets, relu):
    """Channels-first conv-as-tap-sum: output (N, Cout, out_cols)."""
    N, Cin, Lp = xflat.shape
    T, Cout, Cin2 = w_taps.shape
    assert Cin2 == Cin and T == len(offsets)
    kernel = functools.partial(
        _conv_taps_kernel,
        offsets=tuple(int(o) for o in offsets),
        out_cols=int(out_cols),
        relu=relu,
    )
    return pl.pallas_call(
        kernel,
        out_shape=jax.ShapeDtypeStruct((N, Cout, out_cols), jnp.float32),
        grid=(N,),
        in_specs=[
            pl.BlockSpec((1, Cin, Lp), lambda n: (n, 0, 0)),
            pl.BlockSpec((T, Cout, Cin), lambda n: (0, 0, 0)),   # resident
            pl.BlockSpec((Cout, 1), lambda n: (0, 0)),           # resident
        ],
        out_specs=pl.BlockSpec((1, Cout, out_cols), lambda n: (n, 0, 0)),
        compiler_params=pltpu.CompilerParams(
            dimension_semantics=("parallel",),
            vmem_limit_bytes=32 * 1024 * 1024,
        ),
    )(xflat, w_taps, shift)


# ------------------------------ JAX glue ------------------------------

def radial_pad(x, pad_h=(1, 1), pad_w=(1, 1)):
    """Replicate-pad range (H), circular-pad heading (W). NCHW."""
    ph0, ph1 = pad_h
    pw0, pw1 = pad_w
    if ph0 or ph1:
        parts = []
        if ph0:
            parts.append(jnp.repeat(x[:, :, :1, :], ph0, axis=2))
        parts.append(x)
        if ph1:
            parts.append(jnp.repeat(x[:, :, -1:, :], ph1, axis=2))
        x = jnp.concatenate(parts, axis=2)
    if pw0 or pw1:
        parts = []
        if pw0:
            parts.append(x[:, :, :, -pw0:])
        parts.append(x)
        if pw1:
            parts.append(x[:, :, :, :pw1])
        x = jnp.concatenate(parts, axis=3)
    return x


def _fold_bn(bias, gamma, beta, mean, var):
    scale = gamma / jnp.sqrt(var + BN_EPS)
    shift = (bias - mean) * scale + beta
    return scale, shift


def conv3x3_radial(x, w, scale, shift, relu=True):
    """RadialPad(1) + Conv2d(k=3) + folded BN affine + ReLU; matmuls in Pallas."""
    N, Cin, H, W = x.shape
    Cout = w.shape[-1]
    Wp = W + 2
    out_cols = H * Wp                       # includes 2 junk columns per row
    xp = radial_pad(x, (1, 1), (1, 1))                       # (N,Cin,H+2,W+2)
    xpf = xp.reshape(N, Cin, (H + 2) * Wp)
    xpf = jnp.pad(xpf, ((0, 0), (0, 0), (0, 2)))             # slack for last tap
    xpf = xpf.astype(jnp.bfloat16)                           # bf16 MXU operand
    # weights: (3,3,Cin,Cout) -> (9, Cout, Cin), BN scale folded in, bf16.
    w9 = jnp.transpose(w, (0, 1, 3, 2)).reshape(9, Cout, Cin)
    w9 = (w9 * scale[None, :, None]).astype(jnp.bfloat16)
    b = shift.reshape(Cout, 1).astype(jnp.float32)
    offsets = tuple(dy * Wp + dx for dy in range(3) for dx in range(3))
    y = conv_taps(xpf, w9, b, out_cols, offsets, relu)       # (N, Cout, H*Wp)
    return y.reshape(N, Cout, H, Wp)[:, :, :, :W]            # drop junk columns


def conv1x1(x, w, b):
    """OutConv: 1x1 conv (no BN / ReLU); matmul in Pallas, spatial on lanes."""
    N, Cin, H, W = x.shape
    w2 = w.reshape(Cin, -1)
    Cout = w2.shape[-1]
    xf = x.reshape(N, Cin, H * W).astype(jnp.bfloat16)
    w1 = jnp.transpose(w2, (1, 0)).reshape(1, Cout, Cin).astype(jnp.bfloat16)
    bb = b.reshape(Cout, 1).astype(jnp.float32)
    y = conv_taps(xf, w1, bb, H * W, (0,), relu=False)
    return y.reshape(N, Cout, H, W)


def double_conv(x, p):
    s1, sh1 = _fold_bn(p["b1"], p["g1"], p["beta1"], p["m1"], p["v1"])
    x = conv3x3_radial(x, p["w1"], s1, sh1, relu=True)
    s2, sh2 = _fold_bn(p["b2"], p["g2"], p["beta2"], p["m2"], p["v2"])
    x = conv3x3_radial(x, p["w2"], s2, sh2, relu=True)
    return x


def maxpool2x2(x):
    # nn.MaxPool2d(2): floors odd H/W (VALID window), same as the reference.
    return lax.reduce_window(x, jnp.array(-jnp.inf, x.dtype), lax.max,
                             (1, 1, 2, 2), (1, 1, 2, 2), "VALID")


def _interp_matrix(out_size, in_size):
    """Dense 1-D bilinear (align_corners=True) interpolation matrix (numpy)."""
    A = np.zeros((out_size, in_size), np.float32)
    if in_size == 1 or out_size == 1:
        A[:, 0] = 1.0
        return A
    for o in range(out_size):
        src = o * (in_size - 1) / (out_size - 1)
        i0 = min(max(int(np.floor(src)), 0), in_size - 1)
        i1 = min(i0 + 1, in_size - 1)
        f = src - i0
        A[o, i0] += 1.0 - f
        A[o, i1] += f
    return A


def upsample2x_bilinear_ac(x):
    """Factor-2 bilinear upsample, align_corners=True, via static matrices."""
    N, C, H, W = x.shape
    Ah = jnp.asarray(_interp_matrix(2 * H, H))
    Aw = jnp.asarray(_interp_matrix(2 * W, W))
    y = jnp.einsum("oh,nchw->ncow", Ah, x)
    y = jnp.einsum("pw,ncow->ncop", Aw, y)
    return y


def up_block(x1, x2, p):
    x1u = upsample2x_bilinear_ac(x1)
    dY = x2.shape[2] - x1u.shape[2]
    dX = x2.shape[3] - x1u.shape[3]
    if dY or dX:
        # reference Up uses replicate (H) + circular (W) padding, same as here.
        x1u = radial_pad(x1u, (dY // 2, dY - dY // 2), (dX // 2, dX - dX // 2))
    x = jnp.concatenate([x2, x1u], axis=1)       # torch.cat([x2, x1], dim=1)
    return double_conv(x, p)


def scan_only_net(scans, params):
    x1 = double_conv(scans, params["inc"])
    x2 = double_conv(maxpool2x2(x1), params["down1"])
    x3 = double_conv(maxpool2x2(x2), params["down2"])
    x4 = double_conv(maxpool2x2(x3), params["down3"])
    x5 = double_conv(maxpool2x2(x4), params["down4"])
    x = up_block(x5, x4, params["up1"])
    x = up_block(x, x3, params["up2"])
    x = up_block(x, x2, params["up3"])
    x = up_block(x, x1, params["up4"])
    return conv1x1(x, params["outc_w"], params["outc_b"])


# ------------------------- deterministic params -------------------------

def _init_conv(key, kh, kw, cin, cout):
    kw_, kb_ = jax.random.split(key)
    w = jax.random.normal(kw_, (kh, kw, cin, cout), jnp.float32) / jnp.sqrt(kh * kw * cin)
    b = 0.01 * jax.random.normal(kb_, (cout,), jnp.float32)
    return w, b


def _init_double_conv(key, cin, cout):
    k1, k2 = jax.random.split(key)
    w1, b1 = _init_conv(k1, 3, 3, cin, cout)
    w2, b2 = _init_conv(k2, 3, 3, cout, cout)
    ones = jnp.ones((cout,), jnp.float32)
    zeros = jnp.zeros((cout,), jnp.float32)
    return dict(w1=w1, b1=b1, g1=ones, beta1=zeros, m1=zeros, v1=ones,
                w2=w2, b2=b2, g2=ones, beta2=zeros, m2=zeros, v2=ones)


def init_params(key, n_channels, n_classes, ch):
    keys = jax.random.split(key, 10)
    params = {
        "inc":   _init_double_conv(keys[0], n_channels, ch),
        "down1": _init_double_conv(keys[1], ch, 2 * ch),
        "down2": _init_double_conv(keys[2], 2 * ch, 4 * ch),
        "down3": _init_double_conv(keys[3], 4 * ch, 8 * ch),
        "down4": _init_double_conv(keys[4], 8 * ch, 8 * ch),
        "up1":   _init_double_conv(keys[5], 16 * ch, 4 * ch),
        "up2":   _init_double_conv(keys[6], 8 * ch, 2 * ch),
        "up3":   _init_double_conv(keys[7], 4 * ch, ch),
        "up4":   _init_double_conv(keys[8], 2 * ch, ch),
    }
    ow, ob = _init_conv(keys[9], 1, 1, ch, n_classes)
    params["outc_w"] = ow
    params["outc_b"] = ob
    return params


if __name__ == "__main__":
    key = jax.random.PRNGKey(0)
    k_p, k_x = jax.random.split(key)
    n_channels, n_classes, ch = 4, 3, 8
    N, H, W = 2, 16, 16                      # NCHW input [2, 4, 16, 16]
    params = init_params(k_p, n_channels, n_classes, ch)
    scans = jax.random.normal(k_x, (N, n_channels, H, W), jnp.float32)

    logits = jax.jit(scan_only_net)(scans, params)
    jax.block_until_ready(logits)
    assert logits.shape == (N, n_classes, H, W)
    print("KERNEL_OK")
</pallas_src>

<mosaic_0001>
module attributes {stable_mosaic.version = 11 : i64} {
  func.func @_conv_taps_kernel(%arg0: i32, %arg1: memref<1x4x326xbf16, #tpu.memory_space<vmem>>, %arg2: memref<9x8x4xbf16, #tpu.memory_space<vmem>>, %arg3: memref<8x1xf32, #tpu.memory_space<vmem>>, %arg4: memref<1x8x288xf32, #tpu.memory_space<vmem>>) attributes {dimension_semantics = [#tpu.dimension_semantics<parallel>], iteration_bounds = array<i64: 2>, scalar_prefetch = 0 : i64, scratch_operands = 0 : i64, tpu.core_type = #tpu.core_type<tc>, window_params = [{transform_indices = @transform_0, window_bounds = array<i64: 1, 4, 326>}, {pipeline_mode = #tpu.pipeline_mode<synchronous>, transform_indices = @transform_1, window_bounds = array<i64: 9, 8, 4>}, {pipeline_mode = #tpu.pipeline_mode<synchronous>, transform_indices = @transform_2, window_bounds = array<i64: 8, 1>}, {transform_indices = @transform_3, window_bounds = array<i64: 1, 8, 288>}]} {
    %c0 = arith.constant 0 : index
    %c0_0 = arith.constant 0 : index
    %c0_1 = arith.constant 0 : index
    %0 = vector.load %arg1[%c0, %c0_0, %c0_1] : memref<1x4x326xbf16, #tpu.memory_space<vmem>>, vector<1x4x288xbf16>
    %1 = vector.shape_cast %0 : vector<1x4x288xbf16> to vector<4x288xbf16>
    %c0_2 = arith.constant 0 : index
    %c0_3 = arith.constant 0 : index
    %c0_4 = arith.constant 0 : index
    %2 = vector.load %arg2[%c0_2, %c0_3, %c0_4] : memref<9x8x4xbf16, #tpu.memory_space<vmem>>, vector<1x8x4xbf16>
    %3 = vector.shape_cast %2 : vector<1x8x4xbf16> to vector<8x4xbf16>
    %cst = arith.constant dense<0.000000e+00> : vector<8x288xf32>
    %4 = tpu.matmul %3, %1, %cst {dimension_numbers = #tpu.dot_dimension_numbers<[1], [0], [0], [1], [0, 0, 1, 1], [], []>} : vector<8x4xbf16>, vector<4x288xbf16>, vector<8x288xf32> -> vector<8x288xf32>
    %c0_5 = arith.constant 0 : index
    %c0_6 = arith.constant 0 : index
    %c1 = arith.constant 1 : index
    %5 = vector.load %arg1[%c0_5, %c0_6, %c1] : memref<1x4x326xbf16, #tpu.memory_space<vmem>>, vector<1x4x288xbf16>
    %6 = vector.shape_cast %5 : vector<1x4x288xbf16> to vector<4x288xbf16>
    %c1_7 = arith.constant 1 : index
    %c0_8 = arith.constant 0 : index
    %c0_9 = arith.constant 0 : index
    %7 = vector.load %arg2[%c1_7, %c0_8, %c0_9] : memref<9x8x4xbf16, #tpu.memory_space<vmem>>, vector<1x8x4xbf16>
    %8 = vector.shape_cast %7 : vector<1x8x4xbf16> to vector<8x4xbf16>
    %cst_10 = arith.constant dense<0.000000e+00> : vector<8x288xf32>
    %9 = tpu.matmul %8, %6, %cst_10 {dimension_numbers = #tpu.dot_dimension_numbers<[1], [0], [0], [1], [0, 0, 1, 1], [], []>} : vector<8x4xbf16>, vector<4x288xbf16>, vector<8x288xf32> -> vector<8x288xf32>
    %10 = arith.addf %4, %9 : vector<8x288xf32>
    %c0_11 = arith.constant 0 : index
    %c0_12 = arith.constant 0 : index
    %c2 = arith.constant 2 : index
    %11 = vector.load %arg1[%c0_11, %c0_12, %c2] : memref<1x4x326xbf16, #tpu.memory_space<vmem>>, vector<1x4x288xbf16>
    %12 = vector.shape_cast %11 : vector<1x4x288xbf16> to vector<4x288xbf16>
    %c2_13 = arith.constant 2 : index
    %c0_14 = arith.constant 0 : index
    %c0_15 = arith.constant 0 : index
    %13 = vector.load %arg2[%c2_13, %c0_14, %c0_15] : memref<9x8x4xbf16, #tpu.memory_space<vmem>>, vector<1x8x4xbf16>
    %14 = vector.shape_cast %13 : vector<1x8x4xbf16> to vector<8x4xbf16>
    %cst_16 = arith.constant dense<0.000000e+00> : vector<8x288xf32>
    %15 = tpu.matmul %14, %12, %cst_16 {dimension_numbers = #tpu.dot_dimension_numbers<[1], [0], [0], [1], [0, 0, 1, 1], [], []>} : vector<8x4xbf16>, vector<4x288xbf16>, vector<8x288xf32> -> vector<8x288xf32>
    %16 = arith.addf %10, %15 : vector<8x288xf32>
    %c0_17 = arith.constant 0 : index
    %c0_18 = arith.constant 0 : index
    %c18 = arith.constant 18 : index
    %17 = vector.load %arg1[%c0_17, %c0_18, %c18] : memref<1x4x326xbf16, #tpu.memory_space<vmem>>, vector<1x4x288xbf16>
    %18 = vector.shape_cast %17 : vector<1x4x288xbf16> to vector<4x288xbf16>
    %c3 = arith.constant 3 : index
    %c0_19 = arith.constant 0 : index
    %c0_20 = arith.constant 0 : index
    %19 = vector.load %arg2[%c3, %c0_19, %c0_20] : memref<9x8x4xbf16, #tpu.memory_space<vmem>>, vector<1x8x4xbf16>
    %20 = vector.shape_cast %19 : vector<1x8x4xbf16> to vector<8x4xbf16>
    %cst_21 = arith.constant dense<0.000000e+00> : vector<8x288xf32>
    %21 = tpu.matmul %20, %18, %cst_21 {dimension_numbers = #tpu.dot_dimension_numbers<[1], [0], [0], [1], [0, 0, 1, 1], [], []>} : vector<8x4xbf16>, vector<4x288xbf16>, vector<8x288xf32> -> vector<8x288xf32>
    %22 = arith.addf %16, %21 : vector<8x288xf32>
    %c0_22 = arith.constant 0 : index
    %c0_23 = arith.constant 0 : index
    %c19 = arith.constant 19 : index
    %23 = vector.load %arg1[%c0_22, %c0_23, %c19] : memref<1x4x326xbf16, #tpu.memory_space<vmem>>, vector<1x4x288xbf16>
    %24 = vector.shape_cast %23 : vector<1x4x288xbf16> to vector<4x288xbf16>
    %c4 = arith.constant 4 : index
    %c0_24 = arith.constant 0 : index
    %c0_25 = arith.constant 0 : index
    %25 = vector.load %arg2[%c4, %c0_24, %c0_25] : memref<9x8x4xbf16, #tpu.memory_space<vmem>>, vector<1x8x4xbf16>
    %26 = vector.shape_cast %25 : vector<1x8x4xbf16> to vector<8x4xbf16>
    %cst_26 = arith.constant dense<0.000000e+00> : vector<8x288xf32>
    %27 = tpu.matmul %26, %24, %cst_26 {dimension_numbers = #tpu.dot_dimension_numbers<[1], [0], [0], [1], [0, 0, 1, 1], [], []>} : vector<8x4xbf16>, vector<4x288xbf16>, vector<8x288xf32> -> vector<8x288xf32>
    %28 = arith.addf %22, %27 : vector<8x288xf32>
    %c0_27 = arith.constant 0 : index
    %c0_28 = arith.constant 0 : index
    %c20 = arith.constant 20 : index
    %29 = vector.load %arg1[%c0_27, %c0_28, %c20] : memref<1x4x326xbf16, #tpu.memory_space<vmem>>, vector<1x4x288xbf16>
    %30 = vector.shape_cast %29 : vector<1x4x288xbf16> to vector<4x288xbf16>
    %c5 = arith.constant 5 : index
    %c0_29 = arith.constant 0 : index
    %c0_30 = arith.constant 0 : index
    %31 = vector.load %arg2[%c5, %c0_29, %c0_30] : memref<9x8x4xbf16, #tpu.memory_space<vmem>>, vector<1x8x4xbf16>
    %32 = vector.shape_cast %31 : vector<1x8x4xbf16> to vector<8x4xbf16>
    %cst_31 = arith.constant dense<0.000000e+00> : vector<8x288xf32>
    %33 = tpu.matmul %32, %30, %cst_31 {dimension_numbers = #tpu.dot_dimension_numbers<[1], [0], [0], [1], [0, 0, 1, 1], [], []>} : vector<8x4xbf16>, vector<4x288xbf16>, vector<8x288xf32> -> vector<8x288xf32>
    %34 = arith.addf %28, %33 : vector<8x288xf32>
    %c0_32 = arith.constant 0 : index
    %c0_33 = arith.constant 0 : index
    %c36 = arith.constant 36 : index
    %35 = vector.load %arg1[%c0_32, %c0_33, %c36] : memref<1x4x326xbf16, #tpu.memory_space<vmem>>, vector<1x4x288xbf16>
    %36 = vector.shape_cast %35 : vector<1x4x288xbf16> to vector<4x288xbf16>
    %c6 = arith.constant 6 : index
    %c0_34 = arith.constant 0 : index
    %c0_35 = arith.constant 0 : index
    %37 = vector.load %arg2[%c6, %c0_34, %c0_35] : memref<9x8x4xbf16, #tpu.memory_space<vmem>>, vector<1x8x4xbf16>
    %38 = vector.shape_cast %37 : vector<1x8x4xbf16> to vector<8x4xbf16>
    %cst_36 = arith.constant dense<0.000000e+00> : vector<8x288xf32>
    %39 = tpu.matmul %38, %36, %cst_36 {dimension_numbers = #tpu.dot_dimension_numbers<[1], [0], [0], [1], [0, 0, 1, 1], [], []>} : vector<8x4xbf16>, vector<4x288xbf16>, vector<8x288xf32> -> vector<8x288xf32>
    %40 = arith.addf %34, %39 : vector<8x288xf32>
    %c0_37 = arith.constant 0 : index
    %c0_38 = arith.constant 0 : index
    %c37 = arith.constant 37 : index
    %41 = vector.load %arg1[%c0_37, %c0_38, %c37] : memref<1x4x326xbf16, #tpu.memory_space<vmem>>, vector<1x4x288xbf16>
    %42 = vector.shape_cast %41 : vector<1x4x288xbf16> to vector<4x288xbf16>
    %c7 = arith.constant 7 : index
    %c0_39 = arith.constant 0 : index
    %c0_40 = arith.constant 0 : index
    %43 = vector.load %arg2[%c7, %c0_39, %c0_40] : memref<9x8x4xbf16, #tpu.memory_space<vmem>>, vector<1x8x4xbf16>
    %44 = vector.shape_cast %43 : vector<1x8x4xbf16> to vector<8x4xbf16>
    %cst_41 = arith.constant dense<0.000000e+00> : vector<8x288xf32>
    %45 = tpu.matmul %44, %42, %cst_41 {dimension_numbers = #tpu.dot_dimension_numbers<[1], [0], [0], [1], [0, 0, 1, 1], [], []>} : vector<8x4xbf16>, vector<4x288xbf16>, vector<8x288xf32> -> vector<8x288xf32>
    %46 = arith.addf %40, %45 : vector<8x288xf32>
    %c0_42 = arith.constant 0 : index
    %c0_43 = arith.constant 0 : index
    %c38 = arith.constant 38 : index
    %47 = vector.load %arg1[%c0_42, %c0_43, %c38] : memref<1x4x326xbf16, #tpu.memory_space<vmem>>, vector<1x4x288xbf16>
    %48 = vector.shape_cast %47 : vector<1x4x288xbf16> to vector<4x288xbf16>
    %c8 = arith.constant 8 : index
    %c0_44 = arith.constant 0 : index
    %c0_45 = arith.constant 0 : index
    %49 = vector.load %arg2[%c8, %c0_44, %c0_45] : memref<9x8x4xbf16, #tpu.memory_space<vmem>>, vector<1x8x4xbf16>
    %50 = vector.shape_cast %49 : vector<1x8x4xbf16> to vector<8x4xbf16>
    %cst_46 = arith.constant dense<0.000000e+00> : vector<8x288xf32>
    %51 = tpu.matmul %50, %48, %cst_46 {dimension_numbers = #tpu.dot_dimension_numbers<[1], [0], [0], [1], [0, 0, 1, 1], [], []>} : vector<8x4xbf16>, vector<4x288xbf16>, vector<8x288xf32> -> vector<8x288xf32>
    %52 = arith.addf %46, %51 : vector<8x288xf32>
    %c0_47 = arith.constant 0 : index
    %c0_48 = arith.constant 0 : index
    %53 = vector.load %arg3[%c0_47, %c0_48] : memref<8x1xf32, #tpu.memory_space<vmem>>, vector<8x1xf32>
    %54 = vector.broadcast %53 : vector<8x1xf32> to vector<8x288xf32>
    %55 = arith.addf %52, %54 : vector<8x288xf32>
    %cst_49 = arith.constant 0.000000e+00 : f32
    %56 = vector.broadcast %cst_49 : f32 to vector<8x288xf32>
    %57 = arith.maximumf %55, %56 : vector<8x288xf32>
    %c0_50 = arith.constant 0 : index
    %c0_51 = arith.constant 0 : index
    %c0_52 = arith.constant 0 : index
    %58 = vector.load %arg4[%c0_50, %c0_51, %c0_52] : memref<1x8x288xf32, #tpu.memory_space<vmem>>, vector<1x8x288xf32>
    %59 = vector.shape_cast %58 : vector<1x8x288xf32> to vector<8x288xf32>
    %60 = vector.shape_cast %57 : vector<8x288xf32> to vector<1x8x288xf32>
    tpu.vector_store %arg4[%c0_50, %c0_51, %c0_52], %60 {strides = array<i32>} : memref<1x8x288xf32, #tpu.memory_space<vmem>>, vector<1x8x288xf32>,
    return
  }
  func.func @transform_0(%arg0: i32) -> (i32, i32, i32) {
    %c0_i32 = arith.constant 0 : i32
    %c0_i32_0 = arith.constant 0 : i32
    %c0_i32_1 = arith.constant 0 : i32
    return %arg0, %c0_i32, %c0_i32_0 : i32, i32, i32
  }
  func.func @transform_1(%arg0: i32) -> (i32, i32, i32) {
    %c0_i32 = arith.constant 0 : i32
    %c0_i32_0 = arith.constant 0 : i32
    %c0_i32_1 = arith.constant 0 : i32
    %c0_i32_2 = arith.constant 0 : i32
    return %c0_i32, %c0_i32_0, %c0_i32_1 : i32, i32, i32
  }
  func.func @transform_2(%arg0: i32) -> (i32, i32) {
    %c0_i32 = arith.constant 0 : i32
    %c0_i32_0 = arith.constant 0 : i32
    %c0_i32_1 = arith.constant 0 : i32
    return %c0_i32, %c0_i32_0 : i32, i32
  }
  func.func @transform_3(%arg0: i32) -> (i32, i32, i32) {
    %c0_i32 = arith.constant 0 : i32
    %c0_i32_0 = arith.constant 0 : i32
    %c0_i32_1 = arith.constant 0 : i32
    return %arg0, %c0_i32, %c0_i32_0 : i32, i32, i32
  }
}

module attributes {stable_mosaic.version = 11 : i64} {
  func.func @_conv_taps_kernel(%arg0: i32, %arg1: memref<1x8x326xbf16, #tpu.memory_space<vmem>>, %arg2: memref<9x8x8xbf16, #tpu.memory_space<vmem>>, %arg3: memref<8x1xf32, #tpu.memory_space<vmem>>, %arg4: memref<1x8x288xf32, #tpu.memory_space<vmem>>) attributes {dimension_semantics = [#tpu.dimension_semantics<parallel>], iteration_bounds = array<i64: 2>, scalar_prefetch = 0 : i64, scratch_operands = 0 : i64, tpu.core_type = #tpu.core_type<tc>, window_params = [{transform_indices = @transform_0, window_bounds = array<i64: 1, 8, 326>}, {pipeline_mode = #tpu.pipeline_mode<synchronous>, transform_indices = @transform_1, window_bounds = array<i64: 9, 8, 8>}, {pipeline_mode = #tpu.pipeline_mode<synchronous>, transform_indices = @transform_2, window_bounds = array<i64: 8, 1>}, {transform_indices = @transform_3, window_bounds = array<i64: 1, 8, 288>}]} {
    %c0 = arith.constant 0 : index
    %c0_0 = arith.constant 0 : index
    %c0_1 = arith.constant 0 : index
    %0 = vector.load %arg1[%c0, %c0_0, %c0_1] : memref<1x8x326xbf16, #tpu.memory_space<vmem>>, vector<1x8x288xbf16>
    %1 = vector.shape_cast %0 : vector<1x8x288xbf16> to vector<8x288xbf16>
    %c0_2 = arith.constant 0 : index
    %c0_3 = arith.constant 0 : index
    %c0_4 = arith.constant 0 : index
    %2 = vector.load %arg2[%c0_2, %c0_3, %c0_4] : memref<9x8x8xbf16, #tpu.memory_space<vmem>>, vector<1x8x8xbf16>
    %3 = vector.shape_cast %2 : vector<1x8x8xbf16> to vector<8x8xbf16>
    %cst = arith.constant dense<0.000000e+00> : vector<8x288xf32>
    %4 = tpu.matmul %3, %1, %cst {dimension_numbers = #tpu.dot_dimension_numbers<[1], [0], [0], [1], [0, 0, 1, 1], [], []>} : vector<8x8xbf16>, vector<8x288xbf16>, vector<8x288xf32> -> vector<8x288xf32>
    %c0_5 = arith.constant 0 : index
    %c0_6 = arith.constant 0 : index
    %c1 = arith.constant 1 : index
    %5 = vector.load %arg1[%c0_5, %c0_6, %c1] : memref<1x8x326xbf16, #tpu.memory_space<vmem>>, vector<1x8x288xbf16>
    %6 = vector.shape_cast %5 : vector<1x8x288xbf16> to vector<8x288xbf16>
    %c1_7 = arith.constant 1 : index
    %c0_8 = arith.constant 0 : index
    %c0_9 = arith.constant 0 : index
    %7 = vector.load %arg2[%c1_7, %c0_8, %c0_9] : memref<9x8x8xbf16, #tpu.memory_space<vmem>>, vector<1x8x8xbf16>
    %8 = vector.shape_cast %7 : vector<1x8x8xbf16> to vector<8x8xbf16>
    %cst_10 = arith.constant dense<0.000000e+00> : vector<8x288xf32>
    %9 = tpu.matmul %8, %6, %cst_10 {dimension_numbers = #tpu.dot_dimension_numbers<[1], [0], [0], [1], [0, 0, 1, 1], [], []>} : vector<8x8xbf16>, vector<8x288xbf16>, vector<8x288xf32> -> vector<8x288xf32>
    %10 = arith.addf %4, %9 : vector<8x288xf32>
    %c0_11 = arith.constant 0 : index
    %c0_12 = arith.constant 0 : index
    %c2 = arith.constant 2 : index
    %11 = vector.load %arg1[%c0_11, %c0_12, %c2] : memref<1x8x326xbf16, #tpu.memory_space<vmem>>, vector<1x8x288xbf16>
    %12 = vector.shape_cast %11 : vector<1x8x288xbf16> to vector<8x288xbf16>
    %c2_13 = arith.constant 2 : index
    %c0_14 = arith.constant 0 : index
    %c0_15 = arith.constant 0 : index
    %13 = vector.load %arg2[%c2_13, %c0_14, %c0_15] : memref<9x8x8xbf16, #tpu.memory_space<vmem>>, vector<1x8x8xbf16>
    %14 = vector.shape_cast %13 : vector<1x8x8xbf16> to vector<8x8xbf16>
    %cst_16 = arith.constant dense<0.000000e+00> : vector<8x288xf32>
    %15 = tpu.matmul %14, %12, %cst_16 {dimension_numbers = #tpu.dot_dimension_numbers<[1], [0], [0], [1], [0, 0, 1, 1], [], []>} : vector<8x8xbf16>, vector<8x288xbf16>, vector<8x288xf32> -> vector<8x288xf32>
    %16 = arith.addf %10, %15 : vector<8x288xf32>
    %c0_17 = arith.constant 0 : index
    %c0_18 = arith.constant 0 : index
    %c18 = arith.constant 18 : index
    %17 = vector.load %arg1[%c0_17, %c0_18, %c18] : memref<1x8x326xbf16, #tpu.memory_space<vmem>>, vector<1x8x288xbf16>
    %18 = vector.shape_cast %17 : vector<1x8x288xbf16> to vector<8x288xbf16>
    %c3 = arith.constant 3 : index
    %c0_19 = arith.constant 0 : index
    %c0_20 = arith.constant 0 : index
    %19 = vector.load %arg2[%c3, %c0_19, %c0_20] : memref<9x8x8xbf16, #tpu.memory_space<vmem>>, vector<1x8x8xbf16>
    %20 = vector.shape_cast %19 : vector<1x8x8xbf16> to vector<8x8xbf16>
    %cst_21 = arith.constant dense<0.000000e+00> : vector<8x288xf32>
    %21 = tpu.matmul %20, %18, %cst_21 {dimension_numbers = #tpu.dot_dimension_numbers<[1], [0], [0], [1], [0, 0, 1, 1], [], []>} : vector<8x8xbf16>, vector<8x288xbf16>, vector<8x288xf32> -> vector<8x288xf32>
    %22 = arith.addf %16, %21 : vector<8x288xf32>
    %c0_22 = arith.constant 0 : index
    %c0_23 = arith.constant 0 : index
    %c19 = arith.constant 19 : index
    %23 = vector.load %arg1[%c0_22, %c0_23, %c19] : memref<1x8x326xbf16, #tpu.memory_space<vmem>>, vector<1x8x288xbf16>
    %24 = vector.shape_cast %23 : vector<1x8x288xbf16> to vector<8x288xbf16>
    %c4 = arith.constant 4 : index
    %c0_24 = arith.constant 0 : index
    %c0_25 = arith.constant 0 : index
    %25 = vector.load %arg2[%c4, %c0_24, %c0_25] : memref<9x8x8xbf16, #tpu.memory_space<vmem>>, vector<1x8x8xbf16>
    %26 = vector.shape_cast %25 : vector<1x8x8xbf16> to vector<8x8xbf16>
    %cst_26 = arith.constant dense<0.000000e+00> : vector<8x288xf32>
    %27 = tpu.matmul %26, %24, %cst_26 {dimension_numbers = #tpu.dot_dimension_numbers<[1], [0], [0], [1], [0, 0, 1, 1], [], []>} : vector<8x8xbf16>, vector<8x288xbf16>, vector<8x288xf32> -> vector<8x288xf32>
    %28 = arith.addf %22, %27 : vector<8x288xf32>
    %c0_27 = arith.constant 0 : index
    %c0_28 = arith.constant 0 : index
    %c20 = arith.constant 20 : index
    %29 = vector.load %arg1[%c0_27, %c0_28, %c20] : memref<1x8x326xbf16, #tpu.memory_space<vmem>>, vector<1x8x288xbf16>
    %30 = vector.shape_cast %29 : vector<1x8x288xbf16> to vector<8x288xbf16>
    %c5 = arith.constant 5 : index
    %c0_29 = arith.constant 0 : index
    %c0_30 = arith.constant 0 : index
    %31 = vector.load %arg2[%c5, %c0_29, %c0_30] : memref<9x8x8xbf16, #tpu.memory_space<vmem>>, vector<1x8x8xbf16>
    %32 = vector.shape_cast %31 : vector<1x8x8xbf16> to vector<8x8xbf16>
    %cst_31 = arith.constant dense<0.000000e+00> : vector<8x288xf32>
    %33 = tpu.matmul %32, %30, %cst_31 {dimension_numbers = #tpu.dot_dimension_numbers<[1], [0], [0], [1], [0, 0, 1, 1], [], []>} : vector<8x8xbf16>, vector<8x288xbf16>, vector<8x288xf32> -> vector<8x288xf32>
    %34 = arith.addf %28, %33 : vector<8x288xf32>
    %c0_32 = arith.constant 0 : index
    %c0_33 = arith.constant 0 : index
    %c36 = arith.constant 36 : index
    %35 = vector.load %arg1[%c0_32, %c0_33, %c36] : memref<1x8x326xbf16, #tpu.memory_space<vmem>>, vector<1x8x288xbf16>
    %36 = vector.shape_cast %35 : vector<1x8x288xbf16> to vector<8x288xbf16>
    %c6 = arith.constant 6 : index
    %c0_34 = arith.constant 0 : index
    %c0_35 = arith.constant 0 : index
    %37 = vector.load %arg2[%c6, %c0_34, %c0_35] : memref<9x8x8xbf16, #tpu.memory_space<vmem>>, vector<1x8x8xbf16>
    %38 = vector.shape_cast %37 : vector<1x8x8xbf16> to vector<8x8xbf16>
    %cst_36 = arith.constant dense<0.000000e+00> : vector<8x288xf32>
    %39 = tpu.matmul %38, %36, %cst_36 {dimension_numbers = #tpu.dot_dimension_numbers<[1], [0], [0], [1], [0, 0, 1, 1], [], []>} : vector<8x8xbf16>, vector<8x288xbf16>, vector<8x288xf32> -> vector<8x288xf32>
    %40 = arith.addf %34, %39 : vector<8x288xf32>
    %c0_37 = arith.constant 0 : index
    %c0_38 = arith.constant 0 : index
    %c37 = arith.constant 37 : index
    %41 = vector.load %arg1[%c0_37, %c0_38, %c37] : memref<1x8x326xbf16, #tpu.memory_space<vmem>>, vector<1x8x288xbf16>
    %42 = vector.shape_cast %41 : vector<1x8x288xbf16> to vector<8x288xbf16>
    %c7 = arith.constant 7 : index
    %c0_39 = arith.constant 0 : index
    %c0_40 = arith.constant 0 : index
    %43 = vector.load %arg2[%c7, %c0_39, %c0_40] : memref<9x8x8xbf16, #tpu.memory_space<vmem>>, vector<1x8x8xbf16>
    %44 = vector.shape_cast %43 : vector<1x8x8xbf16> to vector<8x8xbf16>
    %cst_41 = arith.constant dense<0.000000e+00> : vector<8x288xf32>
    %45 = tpu.matmul %44, %42, %cst_41 {dimension_numbers = #tpu.dot_dimension_numbers<[1], [0], [0], [1], [0, 0, 1, 1], [], []>} : vector<8x8xbf16>, vector<8x288xbf16>, vector<8x288xf32> -> vector<8x288xf32>
    %46 = arith.addf %40, %45 : vector<8x288xf32>
    %c0_42 = arith.constant 0 : index
    %c0_43 = arith.constant 0 : index
    %c38 = arith.constant 38 : index
    %47 = vector.load %arg1[%c0_42, %c0_43, %c38] : memref<1x8x326xbf16, #tpu.memory_space<vmem>>, vector<1x8x288xbf16>
    %48 = vector.shape_cast %47 : vector<1x8x288xbf16> to vector<8x288xbf16>
    %c8 = arith.constant 8 : index
    %c0_44 = arith.constant 0 : index
    %c0_45 = arith.constant 0 : index
    %49 = vector.load %arg2[%c8, %c0_44, %c0_45] : memref<9x8x8xbf16, #tpu.memory_space<vmem>>, vector<1x8x8xbf16>
    %50 = vector.shape_cast %49 : vector<1x8x8xbf16> to vector<8x8xbf16>
    %cst_46 = arith.constant dense<0.000000e+00> : vector<8x288xf32>
    %51 = tpu.matmul %50, %48, %cst_46 {dimension_numbers = #tpu.dot_dimension_numbers<[1], [0], [0], [1], [0, 0, 1, 1], [], []>} : vector<8x8xbf16>, vector<8x288xbf16>, vector<8x288xf32> -> vector<8x288xf32>
    %52 = arith.addf %46, %51 : vector<8x288xf32>
    %c0_47 = arith.constant 0 : index
    %c0_48 = arith.constant 0 : index
    %53 = vector.load %arg3[%c0_47, %c0_48] : memref<8x1xf32, #tpu.memory_space<vmem>>, vector<8x1xf32>
    %54 = vector.broadcast %53 : vector<8x1xf32> to vector<8x288xf32>
    %55 = arith.addf %52, %54 : vector<8x288xf32>
    %cst_49 = arith.constant 0.000000e+00 : f32
    %56 = vector.broadcast %cst_49 : f32 to vector<8x288xf32>
    %57 = arith.maximumf %55, %56 : vector<8x288xf32>
    %c0_50 = arith.constant 0 : index
    %c0_51 = arith.constant 0 : index
    %c0_52 = arith.constant 0 : index
    %58 = vector.load %arg4[%c0_50, %c0_51, %c0_52] : memref<1x8x288xf32, #tpu.memory_space<vmem>>, vector<1x8x288xf32>
    %59 = vector.shape_cast %58 : vector<1x8x288xf32> to vector<8x288xf32>
    %60 = vector.shape_cast %57 : vector<8x288xf32> to vector<1x8x288xf32>
    tpu.vector_store %arg4[%c0_50, %c0_51, %c0_52], %60 {strides = array<i32>} : memref<1x8x288xf32, #tpu.memory_space<vmem>>, vector<1x8x288xf32>,
    return
  }
  func.func @transform_0(%arg0: i32) -> (i32, i32, i32) {
    %c0_i32 = arith.constant 0 : i32
    %c0_i32_0 = arith.constant 0 : i32
    %c0_i32_1 = arith.constant 0 : i32
    return %arg0, %c0_i32, %c0_i32_0 : i32, i32, i32
  }
  func.func @transform_1(%arg0: i32) -> (i32, i32, i32) {
    %c0_i32 = arith.constant 0 : i32
    %c0_i32_0 = arith.constant 0 : i32
    %c0_i32_1 = arith.constant 0 : i32
    %c0_i32_2 = arith.constant 0 : i32
    return %c0_i32, %c0_i32_0, %c0_i32_1 : i32, i32, i32
  }
  func.func @transform_2(%arg0: i32) -> (i32, i32) {
    %c0_i32 = arith.constant 0 : i32
    %c0_i32_0 = arith.constant 0 : i32
    %c0_i32_1 = arith.constant 0 : i32
    return %c0_i32, %c0_i32_0 : i32, i32
  }
  func.func @transform_3(%arg0: i32) -> (i32, i32, i32) {
    %c0_i32 = arith.constant 0 : i32
    %c0_i32_0 = arith.constant 0 : i32
    %c0_i32_1 = arith.constant 0 : i32
    return %arg0, %c0_i32, %c0_i32_0 : i32, i32, i32
  }
}

module attributes {stable_mosaic.version = 11 : i64} {
  func.func @_conv_taps_kernel(%arg0: i32, %arg1: memref<1x8x102xbf16, #tpu.memory_space<vmem>>, %arg2: memref<9x16x8xbf16, #tpu.memory_space<vmem>>, %arg3: memref<16x1xf32, #tpu.memory_space<vmem>>, %arg4: memref<1x16x80xf32, #tpu.memory_space<vmem>>) attributes {dimension_semantics = [#tpu.dimension_semantics<parallel>], iteration_bounds = array<i64: 2>, scalar_prefetch = 0 : i64, scratch_operands = 0 : i64, tpu.core_type = #tpu.core_type<tc>, window_params = [{transform_indices = @transform_0, window_bounds = array<i64: 1, 8, 102>}, {pipeline_mode = #tpu.pipeline_mode<synchronous>, transform_indices = @transform_1, window_bounds = array<i64: 9, 16, 8>}, {pipeline_mode = #tpu.pipeline_mode<synchronous>, transform_indices = @transform_2, window_bounds = array<i64: 16, 1>}, {transform_indices = @transform_3, window_bounds = array<i64: 1, 16, 80>}]} {
    %c0 = arith.constant 0 : index
    %c0_0 = arith.constant 0 : index
    %c0_1 = arith.constant 0 : index
    %0 = vector.load %arg1[%c0, %c0_0, %c0_1] : memref<1x8x102xbf16, #tpu.memory_space<vmem>>, vector<1x8x80xbf16>
    %1 = vector.shape_cast %0 : vector<1x8x80xbf16> to vector<8x80xbf16>
    %c0_2 = arith.constant 0 : index
    %c0_3 = arith.constant 0 : index
    %c0_4 = arith.constant 0 : index
    %2 = vector.load %arg2[%c0_2, %c0_3, %c0_4] : memref<9x16x8xbf16, #tpu.memory_space<vmem>>, vector<1x16x8xbf16>
    %3 = vector.shape_cast %2 : vector<1x16x8xbf16> to vector<16x8xbf16>
    %cst = arith.constant dense<0.000000e+00> : vector<16x80xf32>
    %4 = tpu.matmul %3, %1, %cst {dimension_numbers = #tpu.dot_dimension_numbers<[1], [0], [0], [1], [0, 0, 1, 1], [], []>} : vector<16x8xbf16>, vector<8x80xbf16>, vector<16x80xf32> -> vector<16x80xf32>
    %c0_5 = arith.constant 0 : index
    %c0_6 = arith.constant 0 : index
    %c1 = arith.constant 1 : index
    %5 = vector.load %arg1[%c0_5, %c0_6, %c1] : memref<1x8x102xbf16, #tpu.memory_space<vmem>>, vector<1x8x80xbf16>
    %6 = vector.shape_cast %5 : vector<1x8x80xbf16> to vector<8x80xbf16>
    %c1_7 = arith.constant 1 : index
    %c0_8 = arith.constant 0 : index
    %c0_9 = arith.constant 0 : index
    %7 = vector.load %arg2[%c1_7, %c0_8, %c0_9] : memref<9x16x8xbf16, #tpu.memory_space<vmem>>, vector<1x16x8xbf16>
    %8 = vector.shape_cast %7 : vector<1x16x8xbf16> to vector<16x8xbf16>
    %cst_10 = arith.constant dense<0.000000e+00> : vector<16x80xf32>
    %9 = tpu.matmul %8, %6, %cst_10 {dimension_numbers = #tpu.dot_dimension_numbers<[1], [0], [0], [1], [0, 0, 1, 1], [], []>} : vector<16x8xbf16>, vector<8x80xbf16>, vector<16x80xf32> -> vector<16x80xf32>
    %10 = arith.addf %4, %9 : vector<16x80xf32>
    %c0_11 = arith.constant 0 : index
    %c0_12 = arith.constant 0 : index
    %c2 = arith.constant 2 : index
    %11 = vector.load %arg1[%c0_11, %c0_12, %c2] : memref<1x8x102xbf16, #tpu.memory_space<vmem>>, vector<1x8x80xbf16>
    %12 = vector.shape_cast %11 : vector<1x8x80xbf16> to vector<8x80xbf16>
    %c2_13 = arith.constant 2 : index
    %c0_14 = arith.constant 0 : index
    %c0_15 = arith.constant 0 : index
    %13 = vector.load %arg2[%c2_13, %c0_14, %c0_15] : memref<9x16x8xbf16, #tpu.memory_space<vmem>>, vector<1x16x8xbf16>
    %14 = vector.shape_cast %13 : vector<1x16x8xbf16> to vector<16x8xbf16>
    %cst_16 = arith.constant dense<0.000000e+00> : vector<16x80xf32>
    %15 = tpu.matmul %14, %12, %cst_16 {dimension_numbers = #tpu.dot_dimension_numbers<[1], [0], [0], [1], [0, 0, 1, 1], [], []>} : vector<16x8xbf16>, vector<8x80xbf16>, vector<16x80xf32> -> vector<16x80xf32>
    %16 = arith.addf %10, %15 : vector<16x80xf32>
    %c0_17 = arith.constant 0 : index
    %c0_18 = arith.constant 0 : index
    %c10 = arith.constant 10 : index
    %17 = vector.load %arg1[%c0_17, %c0_18, %c10] : memref<1x8x102xbf16, #tpu.memory_space<vmem>>, vector<1x8x80xbf16>
    %18 = vector.shape_cast %17 : vector<1x8x80xbf16> to vector<8x80xbf16>
    %c3 = arith.constant 3 : index
    %c0_19 = arith.constant 0 : index
    %c0_20 = arith.constant 0 : index
    %19 = vector.load %arg2[%c3, %c0_19, %c0_20] : memref<9x16x8xbf16, #tpu.memory_space<vmem>>, vector<1x16x8xbf16>
    %20 = vector.shape_cast %19 : vector<1x16x8xbf16> to vector<16x8xbf16>
    %cst_21 = arith.constant dense<0.000000e+00> : vector<16x80xf32>
    %21 = tpu.matmul %20, %18, %cst_21 {dimension_numbers = #tpu.dot_dimension_numbers<[1], [0], [0], [1], [0, 0, 1, 1], [], []>} : vector<16x8xbf16>, vector<8x80xbf16>, vector<16x80xf32> -> vector<16x80xf32>
    %22 = arith.addf %16, %21 : vector<16x80xf32>
    %c0_22 = arith.constant 0 : index
    %c0_23 = arith.constant 0 : index
    %c11 = arith.constant 11 : index
    %23 = vector.load %arg1[%c0_22, %c0_23, %c11] : memref<1x8x102xbf16, #tpu.memory_space<vmem>>, vector<1x8x80xbf16>
    %24 = vector.shape_cast %23 : vector<1x8x80xbf16> to vector<8x80xbf16>
    %c4 = arith.constant 4 : index
    %c0_24 = arith.constant 0 : index
    %c0_25 = arith.constant 0 : index
    %25 = vector.load %arg2[%c4, %c0_24, %c0_25] : memref<9x16x8xbf16, #tpu.memory_space<vmem>>, vector<1x16x8xbf16>
    %26 = vector.shape_cast %25 : vector<1x16x8xbf16> to vector<16x8xbf16>
    %cst_26 = arith.constant dense<0.000000e+00> : vector<16x80xf32>
    %27 = tpu.matmul %26, %24, %cst_26 {dimension_numbers = #tpu.dot_dimension_numbers<[1], [0], [0], [1], [0, 0, 1, 1], [], []>} : vector<16x8xbf16>, vector<8x80xbf16>, vector<16x80xf32> -> vector<16x80xf32>
    %28 = arith.addf %22, %27 : vector<16x80xf32>
    %c0_27 = arith.constant 0 : index
    %c0_28 = arith.constant 0 : index
    %c12 = arith.constant 12 : index
    %29 = vector.load %arg1[%c0_27, %c0_28, %c12] : memref<1x8x102xbf16, #tpu.memory_space<vmem>>, vector<1x8x80xbf16>
    %30 = vector.shape_cast %29 : vector<1x8x80xbf16> to vector<8x80xbf16>
    %c5 = arith.constant 5 : index
    %c0_29 = arith.constant 0 : index
    %c0_30 = arith.constant 0 : index
    %31 = vector.load %arg2[%c5, %c0_29, %c0_30] : memref<9x16x8xbf16, #tpu.memory_space<vmem>>, vector<1x16x8xbf16>
    %32 = vector.shape_cast %31 : vector<1x16x8xbf16> to vector<16x8xbf16>
    %cst_31 = arith.constant dense<0.000000e+00> : vector<16x80xf32>
    %33 = tpu.matmul %32, %30, %cst_31 {dimension_numbers = #tpu.dot_dimension_numbers<[1], [0], [0], [1], [0, 0, 1, 1], [], []>} : vector<16x8xbf16>, vector<8x80xbf16>, vector<16x80xf32> -> vector<16x80xf32>
    %34 = arith.addf %28, %33 : vector<16x80xf32>
    %c0_32 = arith.constant 0 : index
    %c0_33 = arith.constant 0 : index
    %c20 = arith.constant 20 : index
    %35 = vector.load %arg1[%c0_32, %c0_33, %c20] : memref<1x8x102xbf16, #tpu.memory_space<vmem>>, vector<1x8x80xbf16>
    %36 = vector.shape_cast %35 : vector<1x8x80xbf16> to vector<8x80xbf16>
    %c6 = arith.constant 6 : index
    %c0_34 = arith.constant 0 : index
    %c0_35 = arith.constant 0 : index
    %37 = vector.load %arg2[%c6, %c0_34, %c0_35] : memref<9x16x8xbf16, #tpu.memory_space<vmem>>, vector<1x16x8xbf16>
    %38 = vector.shape_cast %37 : vector<1x16x8xbf16> to vector<16x8xbf16>
    %cst_36 = arith.constant dense<0.000000e+00> : vector<16x80xf32>
    %39 = tpu.matmul %38, %36, %cst_36 {dimension_numbers = #tpu.dot_dimension_numbers<[1], [0], [0], [1], [0, 0, 1, 1], [], []>} : vector<16x8xbf16>, vector<8x80xbf16>, vector<16x80xf32> -> vector<16x80xf32>
    %40 = arith.addf %34, %39 : vector<16x80xf32>
    %c0_37 = arith.constant 0 : index
    %c0_38 = arith.constant 0 : index
    %c21 = arith.constant 21 : index
    %41 = vector.load %arg1[%c0_37, %c0_38, %c21] : memref<1x8x102xbf16, #tpu.memory_space<vmem>>, vector<1x8x80xbf16>
    %42 = vector.shape_cast %41 : vector<1x8x80xbf16> to vector<8x80xbf16>
    %c7 = arith.constant 7 : index
    %c0_39 = arith.constant 0 : index
    %c0_40 = arith.constant 0 : index
    %43 = vector.load %arg2[%c7, %c0_39, %c0_40] : memref<9x16x8xbf16, #tpu.memory_space<vmem>>, vector<1x16x8xbf16>
    %44 = vector.shape_cast %43 : vector<1x16x8xbf16> to vector<16x8xbf16>
    %cst_41 = arith.constant dense<0.000000e+00> : vector<16x80xf32>
    %45 = tpu.matmul %44, %42, %cst_41 {dimension_numbers = #tpu.dot_dimension_numbers<[1], [0], [0], [1], [0, 0, 1, 1], [], []>} : vector<16x8xbf16>, vector<8x80xbf16>, vector<16x80xf32> -> vector<16x80xf32>
    %46 = arith.addf %40, %45 : vector<16x80xf32>
    %c0_42 = arith.constant 0 : index
    %c0_43 = arith.constant 0 : index
    %c22 = arith.constant 22 : index
    %47 = vector.load %arg1[%c0_42, %c0_43, %c22] : memref<1x8x102xbf16, #tpu.memory_space<vmem>>, vector<1x8x80xbf16>
    %48 = vector.shape_cast %47 : vector<1x8x80xbf16> to vector<8x80xbf16>
    %c8 = arith.constant 8 : index
    %c0_44 = arith.constant 0 : index
    %c0_45 = arith.constant 0 : index
    %49 = vector.load %arg2[%c8, %c0_44, %c0_45] : memref<9x16x8xbf16, #tpu.memory_space<vmem>>, vector<1x16x8xbf16>
    %50 = vector.shape_cast %49 : vector<1x16x8xbf16> to vector<16x8xbf16>
    %cst_46 = arith.constant dense<0.000000e+00> : vector<16x80xf32>
    %51 = tpu.matmul %50, %48, %cst_46 {dimension_numbers = #tpu.dot_dimension_numbers<[1], [0], [0], [1], [0, 0, 1, 1], [], []>} : vector<16x8xbf16>, vector<8x80xbf16>, vector<16x80xf32> -> vector<16x80xf32>
    %52 = arith.addf %46, %51 : vector<16x80xf32>
    %c0_47 = arith.constant 0 : index
    %c0_48 = arith.constant 0 : index
    %53 = vector.load %arg3[%c0_47, %c0_48] : memref<16x1xf32, #tpu.memory_space<vmem>>, vector<16x1xf32>
    %54 = vector.broadcast %53 : vector<16x1xf32> to vector<16x80xf32>
    %55 = arith.addf %52, %54 : vector<16x80xf32>
    %cst_49 = arith.constant 0.000000e+00 : f32
    %56 = vector.broadcast %cst_49 : f32 to vector<16x80xf32>
    %57 = arith.maximumf %55, %56 : vector<16x80xf32>
    %c0_50 = arith.constant 0 : index
    %c0_51 = arith.constant 0 : index
    %c0_52 = arith.constant 0 : index
    %58 = vector.load %arg4[%c0_50, %c0_51, %c0_52] : memref<1x16x80xf32, #tpu.memory_space<vmem>>, vector<1x16x80xf32>
    %59 = vector.shape_cast %58 : vector<1x16x80xf32> to vector<16x80xf32>
    %60 = vector.shape_cast %57 : vector<16x80xf32> to vector<1x16x80xf32>
    tpu.vector_store %arg4[%c0_50, %c0_51, %c0_52], %60 {strides = array<i32>} : memref<1x16x80xf32, #tpu.memory_space<vmem>>, vector<1x16x80xf32>,
    return
  }
  func.func @transform_0(%arg0: i32) -> (i32, i32, i32) {
    %c0_i32 = arith.constant 0 : i32
    %c0_i32_0 = arith.constant 0 : i32
    %c0_i32_1 = arith.constant 0 : i32
    return %arg0, %c0_i32, %c0_i32_0 : i32, i32, i32
  }
  func.func @transform_1(%arg0: i32) -> (i32, i32, i32) {
    %c0_i32 = arith.constant 0 : i32
    %c0_i32_0 = arith.constant 0 : i32
    %c0_i32_1 = arith.constant 0 : i32
    %c0_i32_2 = arith.constant 0 : i32
    return %c0_i32, %c0_i32_0, %c0_i32_1 : i32, i32, i32
  }
  func.func @transform_2(%arg0: i32) -> (i32, i32) {
    %c0_i32 = arith.constant 0 : i32
    %c0_i32_0 = arith.constant 0 : i32
    %c0_i32_1 = arith.constant 0 : i32
    return %c0_i32, %c0_i32_0 : i32, i32
  }
  func.func @transform_3(%arg0: i32) -> (i32, i32, i32) {
    %c0_i32 = arith.constant 0 : i32
    %c0_i32_0 = arith.constant 0 : i32
    %c0_i32_1 = arith.constant 0 : i32
    return %arg0, %c0_i32, %c0_i32_0 : i32, i32, i32
  }
}

module attributes {stable_mosaic.version = 11 : i64} {
  func.func @_conv_taps_kernel(%arg0: i32, %arg1: memref<1x16x102xbf16, #tpu.memory_space<vmem>>, %arg2: memref<9x16x16xbf16, #tpu.memory_space<vmem>>, %arg3: memref<16x1xf32, #tpu.memory_space<vmem>>, %arg4: memref<1x16x80xf32, #tpu.memory_space<vmem>>) attributes {dimension_semantics = [#tpu.dimension_semantics<parallel>], iteration_bounds = array<i64: 2>, scalar_prefetch = 0 : i64, scratch_operands = 0 : i64, tpu.core_type = #tpu.core_type<tc>, window_params = [{transform_indices = @transform_0, window_bounds = array<i64: 1, 16, 102>}, {pipeline_mode = #tpu.pipeline_mode<synchronous>, transform_indices = @transform_1, window_bounds = array<i64: 9, 16, 16>}, {pipeline_mode = #tpu.pipeline_mode<synchronous>, transform_indices = @transform_2, window_bounds = array<i64: 16, 1>}, {transform_indices = @transform_3, window_bounds = array<i64: 1, 16, 80>}]} {
    %c0 = arith.constant 0 : index
    %c0_0 = arith.constant 0 : index
    %c0_1 = arith.constant 0 : index
    %0 = vector.load %arg1[%c0, %c0_0, %c0_1] : memref<1x16x102xbf16, #tpu.memory_space<vmem>>, vector<1x16x80xbf16>
    %1 = vector.shape_cast %0 : vector<1x16x80xbf16> to vector<16x80xbf16>
    %c0_2 = arith.constant 0 : index
    %c0_3 = arith.constant 0 : index
    %c0_4 = arith.constant 0 : index
    %2 = vector.load %arg2[%c0_2, %c0_3, %c0_4] : memref<9x16x16xbf16, #tpu.memory_space<vmem>>, vector<1x16x16xbf16>
    %3 = vector.shape_cast %2 : vector<1x16x16xbf16> to vector<16x16xbf16>
    %cst = arith.constant dense<0.000000e+00> : vector<16x80xf32>
    %4 = tpu.matmul %3, %1, %cst {dimension_numbers = #tpu.dot_dimension_numbers<[1], [0], [0], [1], [0, 0, 1, 1], [], []>} : vector<16x16xbf16>, vector<16x80xbf16>, vector<16x80xf32> -> vector<16x80xf32>
    %c0_5 = arith.constant 0 : index
    %c0_6 = arith.constant 0 : index
    %c1 = arith.constant 1 : index
    %5 = vector.load %arg1[%c0_5, %c0_6, %c1] : memref<1x16x102xbf16, #tpu.memory_space<vmem>>, vector<1x16x80xbf16>
    %6 = vector.shape_cast %5 : vector<1x16x80xbf16> to vector<16x80xbf16>
    %c1_7 = arith.constant 1 : index
    %c0_8 = arith.constant 0 : index
    %c0_9 = arith.constant 0 : index
    %7 = vector.load %arg2[%c1_7, %c0_8, %c0_9] : memref<9x16x16xbf16, #tpu.memory_space<vmem>>, vector<1x16x16xbf16>
    %8 = vector.shape_cast %7 : vector<1x16x16xbf16> to vector<16x16xbf16>
    %cst_10 = arith.constant dense<0.000000e+00> : vector<16x80xf32>
    %9 = tpu.matmul %8, %6, %cst_10 {dimension_numbers = #tpu.dot_dimension_numbers<[1], [0], [0], [1], [0, 0, 1, 1], [], []>} : vector<16x16xbf16>, vector<16x80xbf16>, vector<16x80xf32> -> vector<16x80xf32>
    %10 = arith.addf %4, %9 : vector<16x80xf32>
    %c0_11 = arith.constant 0 : index
    %c0_12 = arith.constant 0 : index
    %c2 = arith.constant 2 : index
    %11 = vector.load %arg1[%c0_11, %c0_12, %c2] : memref<1x16x102xbf16, #tpu.memory_space<vmem>>, vector<1x16x80xbf16>
    %12 = vector.shape_cast %11 : vector<1x16x80xbf16> to vector<16x80xbf16>
    %c2_13 = arith.constant 2 : index
    %c0_14 = arith.constant 0 : index
    %c0_15 = arith.constant 0 : index
    %13 = vector.load %arg2[%c2_13, %c0_14, %c0_15] : memref<9x16x16xbf16, #tpu.memory_space<vmem>>, vector<1x16x16xbf16>
    %14 = vector.shape_cast %13 : vector<1x16x16xbf16> to vector<16x16xbf16>
    %cst_16 = arith.constant dense<0.000000e+00> : vector<16x80xf32>
    %15 = tpu.matmul %14, %12, %cst_16 {dimension_numbers = #tpu.dot_dimension_numbers<[1], [0], [0], [1], [0, 0, 1, 1], [], []>} : vector<16x16xbf16>, vector<16x80xbf16>, vector<16x80xf32> -> vector<16x80xf32>
    %16 = arith.addf %10, %15 : vector<16x80xf32>
    %c0_17 = arith.constant 0 : index
    %c0_18 = arith.constant 0 : index
    %c10 = arith.constant 10 : index
    %17 = vector.load %arg1[%c0_17, %c0_18, %c10] : memref<1x16x102xbf16, #tpu.memory_space<vmem>>, vector<1x16x80xbf16>
    %18 = vector.shape_cast %17 : vector<1x16x80xbf16> to vector<16x80xbf16>
    %c3 = arith.constant 3 : index
    %c0_19 = arith.constant 0 : index
    %c0_20 = arith.constant 0 : index
    %19 = vector.load %arg2[%c3, %c0_19, %c0_20] : memref<9x16x16xbf16, #tpu.memory_space<vmem>>, vector<1x16x16xbf16>
    %20 = vector.shape_cast %19 : vector<1x16x16xbf16> to vector<16x16xbf16>
    %cst_21 = arith.constant dense<0.000000e+00> : vector<16x80xf32>
    %21 = tpu.matmul %20, %18, %cst_21 {dimension_numbers = #tpu.dot_dimension_numbers<[1], [0], [0], [1], [0, 0, 1, 1], [], []>} : vector<16x16xbf16>, vector<16x80xbf16>, vector<16x80xf32> -> vector<16x80xf32>
    %22 = arith.addf %16, %21 : vector<16x80xf32>
    %c0_22 = arith.constant 0 : index
    %c0_23 = arith.constant 0 : index
    %c11 = arith.constant 11 : index
    %23 = vector.load %arg1[%c0_22, %c0_23, %c11] : memref<1x16x102xbf16, #tpu.memory_space<vmem>>, vector<1x16x80xbf16>
    %24 = vector.shape_cast %23 : vector<1x16x80xbf16> to vector<16x80xbf16>
    %c4 = arith.constant 4 : index
    %c0_24 = arith.constant 0 : index
    %c0_25 = arith.constant 0 : index
    %25 = vector.load %arg2[%c4, %c0_24, %c0_25] : memref<9x16x16xbf16, #tpu.memory_space<vmem>>, vector<1x16x16xbf16>
    %26 = vector.shape_cast %25 : vector<1x16x16xbf16> to vector<16x16xbf16>
    %cst_26 = arith.constant dense<0.000000e+00> : vector<16x80xf32>
    %27 = tpu.matmul %26, %24, %cst_26 {dimension_numbers = #tpu.dot_dimension_numbers<[1], [0], [0], [1], [0, 0, 1, 1], [], []>} : vector<16x16xbf16>, vector<16x80xbf16>, vector<16x80xf32> -> vector<16x80xf32>
    %28 = arith.addf %22, %27 : vector<16x80xf32>
    %c0_27 = arith.constant 0 : index
    %c0_28 = arith.constant 0 : index
    %c12 = arith.constant 12 : index
    %29 = vector.load %arg1[%c0_27, %c0_28, %c12] : memref<1x16x102xbf16, #tpu.memory_space<vmem>>, vector<1x16x80xbf16>
    %30 = vector.shape_cast %29 : vector<1x16x80xbf16> to vector<16x80xbf16>
    %c5 = arith.constant 5 : index
    %c0_29 = arith.constant 0 : index
    %c0_30 = arith.constant 0 : index
    %31 = vector.load %arg2[%c5, %c0_29, %c0_30] : memref<9x16x16xbf16, #tpu.memory_space<vmem>>, vector<1x16x16xbf16>
    %32 = vector.shape_cast %31 : vector<1x16x16xbf16> to vector<16x16xbf16>
    %cst_31 = arith.constant dense<0.000000e+00> : vector<16x80xf32>
    %33 = tpu.matmul %32, %30, %cst_31 {dimension_numbers = #tpu.dot_dimension_numbers<[1], [0], [0], [1], [0, 0, 1, 1], [], []>} : vector<16x16xbf16>, vector<16x80xbf16>, vector<16x80xf32> -> vector<16x80xf32>
    %34 = arith.addf %28, %33 : vector<16x80xf32>
    %c0_32 = arith.constant 0 : index
    %c0_33 = arith.constant 0 : index
    %c20 = arith.constant 20 : index
    %35 = vector.load %arg1[%c0_32, %c0_33, %c20] : memref<1x16x102xbf16, #tpu.memory_space<vmem>>, vector<1x16x80xbf16>
    %36 = vector.shape_cast %35 : vector<1x16x80xbf16> to vector<16x80xbf16>
    %c6 = arith.constant 6 : index
    %c0_34 = arith.constant 0 : index
    %c0_35 = arith.constant 0 : index
    %37 = vector.load %arg2[%c6, %c0_34, %c0_35] : memref<9x16x16xbf16, #tpu.memory_space<vmem>>, vector<1x16x16xbf16>
    %38 = vector.shape_cast %37 : vector<1x16x16xbf16> to vector<16x16xbf16>
    %cst_36 = arith.constant dense<0.000000e+00> : vector<16x80xf32>
    %39 = tpu.matmul %38, %36, %cst_36 {dimension_numbers = #tpu.dot_dimension_numbers<[1], [0], [0], [1], [0, 0, 1, 1], [], []>} : vector<16x16xbf16>, vector<16x80xbf16>, vector<16x80xf32> -> vector<16x80xf32>
    %40 = arith.addf %34, %39 : vector<16x80xf32>
    %c0_37 = arith.constant 0 : index
    %c0_38 = arith.constant 0 : index
    %c21 = arith.constant 21 : index
    %41 = vector.load %arg1[%c0_37, %c0_38, %c21] : memref<1x16x102xbf16, #tpu.memory_space<vmem>>, vector<1x16x80xbf16>
    %42 = vector.shape_cast %41 : vector<1x16x80xbf16> to vector<16x80xbf16>
    %c7 = arith.constant 7 : index
    %c0_39 = arith.constant 0 : index
    %c0_40 = arith.constant 0 : index
    %43 = vector.load %arg2[%c7, %c0_39, %c0_40] : memref<9x16x16xbf16, #tpu.memory_space<vmem>>, vector<1x16x16xbf16>
    %44 = vector.shape_cast %43 : vector<1x16x16xbf16> to vector<16x16xbf16>
    %cst_41 = arith.constant dense<0.000000e+00> : vector<16x80xf32>
    %45 = tpu.matmul %44, %42, %cst_41 {dimension_numbers = #tpu.dot_dimension_numbers<[1], [0], [0], [1], [0, 0, 1, 1], [], []>} : vector<16x16xbf16>, vector<16x80xbf16>, vector<16x80xf32> -> vector<16x80xf32>
    %46 = arith.addf %40, %45 : vector<16x80xf32>
    %c0_42 = arith.constant 0 : index
    %c0_43 = arith.constant 0 : index
    %c22 = arith.constant 22 : index
    %47 = vector.load %arg1[%c0_42, %c0_43, %c22] : memref<1x16x102xbf16, #tpu.memory_space<vmem>>, vector<1x16x80xbf16>
    %48 = vector.shape_cast %47 : vector<1x16x80xbf16> to vector<16x80xbf16>
    %c8 = arith.constant 8 : index
    %c0_44 = arith.constant 0 : index
    %c0_45 = arith.constant 0 : index
    %49 = vector.load %arg2[%c8, %c0_44, %c0_45] : memref<9x16x16xbf16, #tpu.memory_space<vmem>>, vector<1x16x16xbf16>
    %50 = vector.shape_cast %49 : vector<1x16x16xbf16> to vector<16x16xbf16>
    %cst_46 = arith.constant dense<0.000000e+00> : vector<16x80xf32>
    %51 = tpu.matmul %50, %48, %cst_46 {dimension_numbers = #tpu.dot_dimension_numbers<[1], [0], [0], [1], [0, 0, 1, 1], [], []>} : vector<16x16xbf16>, vector<16x80xbf16>, vector<16x80xf32> -> vector<16x80xf32>
    %52 = arith.addf %46, %51 : vector<16x80xf32>
    %c0_47 = arith.constant 0 : index
    %c0_48 = arith.constant 0 : index
    %53 = vector.load %arg3[%c0_47, %c0_48] : memref<16x1xf32, #tpu.memory_space<vmem>>, vector<16x1xf32>
    %54 = vector.broadcast %53 : vector<16x1xf32> to vector<16x80xf32>
    %55 = arith.addf %52, %54 : vector<16x80xf32>
    %cst_49 = arith.constant 0.000000e+00 : f32
    %56 = vector.broadcast %cst_49 : f32 to vector<16x80xf32>
    %57 = arith.maximumf %55, %56 : vector<16x80xf32>
    %c0_50 = arith.constant 0 : index
    %c0_51 = arith.constant 0 : index
    %c0_52 = arith.constant 0 : index
    %58 = vector.load %arg4[%c0_50, %c0_51, %c0_52] : memref<1x16x80xf32, #tpu.memory_space<vmem>>, vector<1x16x80xf32>
    %59 = vector.shape_cast %58 : vector<1x16x80xf32> to vector<16x80xf32>
    %60 = vector.shape_cast %57 : vector<16x80xf32> to vector<1x16x80xf32>
    tpu.vector_store %arg4[%c0_50, %c0_51, %c0_52], %60 {strides = array<i32>} : memref<1x16x80xf32, #tpu.memory_space<vmem>>, vector<1x16x80xf32>,
    return
  }
  func.func @transform_0(%arg0: i32) -> (i32, i32, i32) {
    %c0_i32 = arith.constant 0 : i32
    %c0_i32_0 = arith.constant 0 : i32
    %c0_i32_1 = arith.constant 0 : i32
    return %arg0, %c0_i32, %c0_i32_0 : i32, i32, i32
  }
  func.func @transform_1(%arg0: i32) -> (i32, i32, i32) {
    %c0_i32 = arith.constant 0 : i32
    %c0_i32_0 = arith.constant 0 : i32
    %c0_i32_1 = arith.constant 0 : i32
    %c0_i32_2 = arith.constant 0 : i32
    return %c0_i32, %c0_i32_0, %c0_i32_1 : i32, i32, i32
  }
  func.func @transform_2(%arg0: i32) -> (i32, i32) {
    %c0_i32 = arith.constant 0 : i32
    %c0_i32_0 = arith.constant 0 : i32
    %c0_i32_1 = arith.constant 0 : i32
    return %c0_i32, %c0_i32_0 : i32, i32
  }
  func.func @transform_3(%arg0: i32) -> (i32, i32, i32) {
    %c0_i32 = arith.constant 0 : i32
    %c0_i32_0 = arith.constant 0 : i32
    %c0_i32_1 = arith.constant 0 : i32
    return %arg0, %c0_i32, %c0_i32_0 : i32, i32, i32
  }
}

module attributes {stable_mosaic.version = 11 : i64} {
  func.func @_conv_taps_kernel(%arg0: i32, %arg1: memref<1x16x38xbf16, #tpu.memory_space<vmem>>, %arg2: memref<9x32x16xbf16, #tpu.memory_space<vmem>>, %arg3: memref<32x1xf32, #tpu.memory_space<vmem>>, %arg4: memref<1x32x24xf32, #tpu.memory_space<vmem>>) attributes {dimension_semantics = [#tpu.dimension_semantics<parallel>], iteration_bounds = array<i64: 2>, scalar_prefetch = 0 : i64, scratch_operands = 0 : i64, tpu.core_type = #tpu.core_type<tc>, window_params = [{transform_indices = @transform_0, window_bounds = array<i64: 1, 16, 38>}, {pipeline_mode = #tpu.pipeline_mode<synchronous>, transform_indices = @transform_1, window_bounds = array<i64: 9, 32, 16>}, {pipeline_mode = #tpu.pipeline_mode<synchronous>, transform_indices = @transform_2, window_bounds = array<i64: 32, 1>}, {transform_indices = @transform_3, window_bounds = array<i64: 1, 32, 24>}]} {
    %c0 = arith.constant 0 : index
    %c0_0 = arith.constant 0 : index
    %c0_1 = arith.constant 0 : index
    %0 = vector.load %arg1[%c0, %c0_0, %c0_1] : memref<1x16x38xbf16, #tpu.memory_space<vmem>>, vector<1x16x24xbf16>
    %1 = vector.shape_cast %0 : vector<1x16x24xbf16> to vector<16x24xbf16>
    %c0_2 = arith.constant 0 : index
    %c0_3 = arith.constant 0 : index
    %c0_4 = arith.constant 0 : index
    %2 = vector.load %arg2[%c0_2, %c0_3, %c0_4] : memref<9x32x16xbf16, #tpu.memory_space<vmem>>, vector<1x32x16xbf16>
    %3 = vector.shape_cast %2 : vector<1x32x16xbf16> to vector<32x16xbf16>
    %cst = arith.constant dense<0.000000e+00> : vector<32x24xf32>
    %4 = tpu.matmul %3, %1, %cst {dimension_numbers = #tpu.dot_dimension_numbers<[1], [0], [0], [1], [0, 0, 1, 1], [], []>} : vector<32x16xbf16>, vector<16x24xbf16>, vector<32x24xf32> -> vector<32x24xf32>
    %c0_5 = arith.constant 0 : index
    %c0_6 = arith.constant 0 : index
    %c1 = arith.constant 1 : index
    %5 = vector.load %arg1[%c0_5, %c0_6, %c1] : memref<1x16x38xbf16, #tpu.memory_space<vmem>>, vector<1x16x24xbf16>
    %6 = vector.shape_cast %5 : vector<1x16x24xbf16> to vector<16x24xbf16>
    %c1_7 = arith.constant 1 : index
    %c0_8 = arith.constant 0 : index
    %c0_9 = arith.constant 0 : index
    %7 = vector.load %arg2[%c1_7, %c0_8, %c0_9] : memref<9x32x16xbf16, #tpu.memory_space<vmem>>, vector<1x32x16xbf16>
    %8 = vector.shape_cast %7 : vector<1x32x16xbf16> to vector<32x16xbf16>
    %cst_10 = arith.constant dense<0.000000e+00> : vector<32x24xf32>
    %9 = tpu.matmul %8, %6, %cst_10 {dimension_numbers = #tpu.dot_dimension_numbers<[1], [0], [0], [1], [0, 0, 1, 1], [], []>} : vector<32x16xbf16>, vector<16x24xbf16>, vector<32x24xf32> -> vector<32x24xf32>
    %10 = arith.addf %4, %9 : vector<32x24xf32>
    %c0_11 = arith.constant 0 : index
    %c0_12 = arith.constant 0 : index
    %c2 = arith.constant 2 : index
    %11 = vector.load %arg1[%c0_11, %c0_12, %c2] : memref<1x16x38xbf16, #tpu.memory_space<vmem>>, vector<1x16x24xbf16>
    %12 = vector.shape_cast %11 : vector<1x16x24xbf16> to vector<16x24xbf16>
    %c2_13 = arith.constant 2 : index
    %c0_14 = arith.constant 0 : index
    %c0_15 = arith.constant 0 : index
    %13 = vector.load %arg2[%c2_13, %c0_14, %c0_15] : memref<9x32x16xbf16, #tpu.memory_space<vmem>>, vector<1x32x16xbf16>
    %14 = vector.shape_cast %13 : vector<1x32x16xbf16> to vector<32x16xbf16>
    %cst_16 = arith.constant dense<0.000000e+00> : vector<32x24xf32>
    %15 = tpu.matmul %14, %12, %cst_16 {dimension_numbers = #tpu.dot_dimension_numbers<[1], [0], [0], [1], [0, 0, 1, 1], [], []>} : vector<32x16xbf16>, vector<16x24xbf16>, vector<32x24xf32> -> vector<32x24xf32>
    %16 = arith.addf %10, %15 : vector<32x24xf32>
    %c0_17 = arith.constant 0 : index
    %c0_18 = arith.constant 0 : index
    %c6 = arith.constant 6 : index
    %17 = vector.load %arg1[%c0_17, %c0_18, %c6] : memref<1x16x38xbf16, #tpu.memory_space<vmem>>, vector<1x16x24xbf16>
    %18 = vector.shape_cast %17 : vector<1x16x24xbf16> to vector<16x24xbf16>
    %c3 = arith.constant 3 : index
    %c0_19 = arith.constant 0 : index
    %c0_20 = arith.constant 0 : index
    %19 = vector.load %arg2[%c3, %c0_19, %c0_20] : memref<9x32x16xbf16, #tpu.memory_space<vmem>>, vector<1x32x16xbf16>
    %20 = vector.shape_cast %19 : vector<1x32x16xbf16> to vector<32x16xbf16>
    %cst_21 = arith.constant dense<0.000000e+00> : vector<32x24xf32>
    %21 = tpu.matmul %20, %18, %cst_21 {dimension_numbers = #tpu.dot_dimension_numbers<[1], [0], [0], [1], [0, 0, 1, 1], [], []>} : vector<32x16xbf16>, vector<16x24xbf16>, vector<32x24xf32> -> vector<32x24xf32>
    %22 = arith.addf %16, %21 : vector<32x24xf32>
    %c0_22 = arith.constant 0 : index
    %c0_23 = arith.constant 0 : index
    %c7 = arith.constant 7 : index
    %23 = vector.load %arg1[%c0_22, %c0_23, %c7] : memref<1x16x38xbf16, #tpu.memory_space<vmem>>, vector<1x16x24xbf16>
    %24 = vector.shape_cast %23 : vector<1x16x24xbf16> to vector<16x24xbf16>
    %c4 = arith.constant 4 : index
    %c0_24 = arith.constant 0 : index
    %c0_25 = arith.constant 0 : index
    %25 = vector.load %arg2[%c4, %c0_24, %c0_25] : memref<9x32x16xbf16, #tpu.memory_space<vmem>>, vector<1x32x16xbf16>
    %26 = vector.shape_cast %25 : vector<1x32x16xbf16> to vector<32x16xbf16>
    %cst_26 = arith.constant dense<0.000000e+00> : vector<32x24xf32>
    %27 = tpu.matmul %26, %24, %cst_26 {dimension_numbers = #tpu.dot_dimension_numbers<[1], [0], [0], [1], [0, 0, 1, 1], [], []>} : vector<32x16xbf16>, vector<16x24xbf16>, vector<32x24xf32> -> vector<32x24xf32>
    %28 = arith.addf %22, %27 : vector<32x24xf32>
    %c0_27 = arith.constant 0 : index
    %c0_28 = arith.constant 0 : index
    %c8 = arith.constant 8 : index
    %29 = vector.load %arg1[%c0_27, %c0_28, %c8] : memref<1x16x38xbf16, #tpu.memory_space<vmem>>, vector<1x16x24xbf16>
    %30 = vector.shape_cast %29 : vector<1x16x24xbf16> to vector<16x24xbf16>
    %c5 = arith.constant 5 : index
    %c0_29 = arith.constant 0 : index
    %c0_30 = arith.constant 0 : index
    %31 = vector.load %arg2[%c5, %c0_29, %c0_30] : memref<9x32x16xbf16, #tpu.memory_space<vmem>>, vector<1x32x16xbf16>
    %32 = vector.shape_cast %31 : vector<1x32x16xbf16> to vector<32x16xbf16>
    %cst_31 = arith.constant dense<0.000000e+00> : vector<32x24xf32>
    %33 = tpu.matmul %32, %30, %cst_31 {dimension_numbers = #tpu.dot_dimension_numbers<[1], [0], [0], [1], [0, 0, 1, 1], [], []>} : vector<32x16xbf16>, vector<16x24xbf16>, vector<32x24xf32> -> vector<32x24xf32>
    %34 = arith.addf %28, %33 : vector<32x24xf32>
    %c0_32 = arith.constant 0 : index
    %c0_33 = arith.constant 0 : index
    %c12 = arith.constant 12 : index
    %35 = vector.load %arg1[%c0_32, %c0_33, %c12] : memref<1x16x38xbf16, #tpu.memory_space<vmem>>, vector<1x16x24xbf16>
    %36 = vector.shape_cast %35 : vector<1x16x24xbf16> to vector<16x24xbf16>
    %c6_34 = arith.constant 6 : index
    %c0_35 = arith.constant 0 : index
    %c0_36 = arith.constant 0 : index
    %37 = vector.load %arg2[%c6_34, %c0_35, %c0_36] : memref<9x32x16xbf16, #tpu.memory_space<vmem>>, vector<1x32x16xbf16>
    %38 = vector.shape_cast %37 : vector<1x32x16xbf16> to vector<32x16xbf16>
    %cst_37 = arith.constant dense<0.000000e+00> : vector<32x24xf32>
    %39 = tpu.matmul %38, %36, %cst_37 {dimension_numbers = #tpu.dot_dimension_numbers<[1], [0], [0], [1], [0, 0, 1, 1], [], []>} : vector<32x16xbf16>, vector<16x24xbf16>, vector<32x24xf32> -> vector<32x24xf32>
    %40 = arith.addf %34, %39 : vector<32x24xf32>
    %c0_38 = arith.constant 0 : index
    %c0_39 = arith.constant 0 : index
    %c13 = arith.constant 13 : index
    %41 = vector.load %arg1[%c0_38, %c0_39, %c13] : memref<1x16x38xbf16, #tpu.memory_space<vmem>>, vector<1x16x24xbf16>
    %42 = vector.shape_cast %41 : vector<1x16x24xbf16> to vector<16x24xbf16>
    %c7_40 = arith.constant 7 : index
    %c0_41 = arith.constant 0 : index
    %c0_42 = arith.constant 0 : index
    %43 = vector.load %arg2[%c7_40, %c0_41, %c0_42] : memref<9x32x16xbf16, #tpu.memory_space<vmem>>, vector<1x32x16xbf16>
    %44 = vector.shape_cast %43 : vector<1x32x16xbf16> to vector<32x16xbf16>
    %cst_43 = arith.constant dense<0.000000e+00> : vector<32x24xf32>
    %45 = tpu.matmul %44, %42, %cst_43 {dimension_numbers = #tpu.dot_dimension_numbers<[1], [0], [0], [1], [0, 0, 1, 1], [], []>} : vector<32x16xbf16>, vector<16x24xbf16>, vector<32x24xf32> -> vector<32x24xf32>
    %46 = arith.addf %40, %45 : vector<32x24xf32>
    %c0_44 = arith.constant 0 : index
    %c0_45 = arith.constant 0 : index
    %c14 = arith.constant 14 : index
    %47 = vector.load %arg1[%c0_44, %c0_45, %c14] : memref<1x16x38xbf16, #tpu.memory_space<vmem>>, vector<1x16x24xbf16>
    %48 = vector.shape_cast %47 : vector<1x16x24xbf16> to vector<16x24xbf16>
    %c8_46 = arith.constant 8 : index
    %c0_47 = arith.constant 0 : index
    %c0_48 = arith.constant 0 : index
    %49 = vector.load %arg2[%c8_46, %c0_47, %c0_48] : memref<9x32x16xbf16, #tpu.memory_space<vmem>>, vector<1x32x16xbf16>
    %50 = vector.shape_cast %49 : vector<1x32x16xbf16> to vector<32x16xbf16>
    %cst_49 = arith.constant dense<0.000000e+00> : vector<32x24xf32>
    %51 = tpu.matmul %50, %48, %cst_49 {dimension_numbers = #tpu.dot_dimension_numbers<[1], [0], [0], [1], [0, 0, 1, 1], [], []>} : vector<32x16xbf16>, vector<16x24xbf16>, vector<32x24xf32> -> vector<32x24xf32>
    %52 = arith.addf %46, %51 : vector<32x24xf32>
    %c0_50 = arith.constant 0 : index
    %c0_51 = arith.constant 0 : index
    %53 = vector.load %arg3[%c0_50, %c0_51] : memref<32x1xf32, #tpu.memory_space<vmem>>, vector<32x1xf32>
    %54 = vector.broadcast %53 : vector<32x1xf32> to vector<32x24xf32>
    %55 = arith.addf %52, %54 : vector<32x24xf32>
    %cst_52 = arith.constant 0.000000e+00 : f32
    %56 = vector.broadcast %cst_52 : f32 to vector<32x24xf32>
    %57 = arith.maximumf %55, %56 : vector<32x24xf32>
    %c0_53 = arith.constant 0 : index
    %c0_54 = arith.constant 0 : index
    %c0_55 = arith.constant 0 : index
    %58 = vector.load %arg4[%c0_53, %c0_54, %c0_55] : memref<1x32x24xf32, #tpu.memory_space<vmem>>, vector<1x32x24xf32>
    %59 = vector.shape_cast %58 : vector<1x32x24xf32> to vector<32x24xf32>
    %60 = vector.shape_cast %57 : vector<32x24xf32> to vector<1x32x24xf32>
    tpu.vector_store %arg4[%c0_53, %c0_54, %c0_55], %60 {strides = array<i32>} : memref<1x32x24xf32, #tpu.memory_space<vmem>>, vector<1x32x24xf32>,
    return
  }
  func.func @transform_0(%arg0: i32) -> (i32, i32, i32) {
    %c0_i32 = arith.constant 0 : i32
    %c0_i32_0 = arith.constant 0 : i32
    %c0_i32_1 = arith.constant 0 : i32
    return %arg0, %c0_i32, %c0_i32_0 : i32, i32, i32
  }
  func.func @transform_1(%arg0: i32) -> (i32, i32, i32) {
    %c0_i32 = arith.constant 0 : i32
    %c0_i32_0 = arith.constant 0 : i32
    %c0_i32_1 = arith.constant 0 : i32
    %c0_i32_2 = arith.constant 0 : i32
    return %c0_i32, %c0_i32_0, %c0_i32_1 : i32, i32, i32
  }
  func.func @transform_2(%arg0: i32) -> (i32, i32) {
    %c0_i32 = arith.constant 0 : i32
    %c0_i32_0 = arith.constant 0 : i32
    %c0_i32_1 = arith.constant 0 : i32
    return %c0_i32, %c0_i32_0 : i32, i32
  }
  func.func @transform_3(%arg0: i32) -> (i32, i32, i32) {
    %c0_i32 = arith.constant 0 : i32
    %c0_i32_0 = arith.constant 0 : i32
    %c0_i32_1 = arith.constant 0 : i32
    return %arg0, %c0_i32, %c0_i32_0 : i32, i32, i32
  }
}

module attributes {stable_mosaic.version = 11 : i64} {
  func.func @_conv_taps_kernel(%arg0: i32, %arg1: memref<1x32x38xbf16, #tpu.memory_space<vmem>>, %arg2: memref<9x32x32xbf16, #tpu.memory_space<vmem>>, %arg3: memref<32x1xf32, #tpu.memory_space<vmem>>, %arg4: memref<1x32x24xf32, #tpu.memory_space<vmem>>) attributes {dimension_semantics = [#tpu.dimension_semantics<parallel>], iteration_bounds = array<i64: 2>, scalar_prefetch = 0 : i64, scratch_operands = 0 : i64, tpu.core_type = #tpu.core_type<tc>, window_params = [{transform_indices = @transform_0, window_bounds = array<i64: 1, 32, 38>}, {pipeline_mode = #tpu.pipeline_mode<synchronous>, transform_indices = @transform_1, window_bounds = array<i64: 9, 32, 32>}, {pipeline_mode = #tpu.pipeline_mode<synchronous>, transform_indices = @transform_2, window_bounds = array<i64: 32, 1>}, {transform_indices = @transform_3, window_bounds = array<i64: 1, 32, 24>}]} {
    %c0 = arith.constant 0 : index
    %c0_0 = arith.constant 0 : index
    %c0_1 = arith.constant 0 : index
    %0 = vector.load %arg1[%c0, %c0_0, %c0_1] : memref<1x32x38xbf16, #tpu.memory_space<vmem>>, vector<1x32x24xbf16>
    %1 = vector.shape_cast %0 : vector<1x32x24xbf16> to vector<32x24xbf16>
    %c0_2 = arith.constant 0 : index
    %c0_3 = arith.constant 0 : index
    %c0_4 = arith.constant 0 : index
    %2 = vector.load %arg2[%c0_2, %c0_3, %c0_4] : memref<9x32x32xbf16, #tpu.memory_space<vmem>>, vector<1x32x32xbf16>
    %3 = vector.shape_cast %2 : vector<1x32x32xbf16> to vector<32x32xbf16>
    %cst = arith.constant dense<0.000000e+00> : vector<32x24xf32>
    %4 = tpu.matmul %3, %1, %cst {dimension_numbers = #tpu.dot_dimension_numbers<[1], [0], [0], [1], [0, 0, 1, 1], [], []>} : vector<32x32xbf16>, vector<32x24xbf16>, vector<32x24xf32> -> vector<32x24xf32>
    %c0_5 = arith.constant 0 : index
    %c0_6 = arith.constant 0 : index
    %c1 = arith.constant 1 : index
    %5 = vector.load %arg1[%c0_5, %c0_6, %c1] : memref<1x32x38xbf16, #tpu.memory_space<vmem>>, vector<1x32x24xbf16>
    %6 = vector.shape_cast %5 : vector<1x32x24xbf16> to vector<32x24xbf16>
    %c1_7 = arith.constant 1 : index
    %c0_8 = arith.constant 0 : index
    %c0_9 = arith.constant 0 : index
    %7 = vector.load %arg2[%c1_7, %c0_8, %c0_9] : memref<9x32x32xbf16, #tpu.memory_space<vmem>>, vector<1x32x32xbf16>
    %8 = vector.shape_cast %7 : vector<1x32x32xbf16> to vector<32x32xbf16>
    %cst_10 = arith.constant dense<0.000000e+00> : vector<32x24xf32>
    %9 = tpu.matmul %8, %6, %cst_10 {dimension_numbers = #tpu.dot_dimension_numbers<[1], [0], [0], [1], [0, 0, 1, 1], [], []>} : vector<32x32xbf16>, vector<32x24xbf16>, vector<32x24xf32> -> vector<32x24xf32>
    %10 = arith.addf %4, %9 : vector<32x24xf32>
    %c0_11 = arith.constant 0 : index
    %c0_12 = arith.constant 0 : index
    %c2 = arith.constant 2 : index
    %11 = vector.load %arg1[%c0_11, %c0_12, %c2] : memref<1x32x38xbf16, #tpu.memory_space<vmem>>, vector<1x32x24xbf16>
    %12 = vector.shape_cast %11 : vector<1x32x24xbf16> to vector<32x24xbf16>
    %c2_13 = arith.constant 2 : index
    %c0_14 = arith.constant 0 : index
    %c0_15 = arith.constant 0 : index
    %13 = vector.load %arg2[%c2_13, %c0_14, %c0_15] : memref<9x32x32xbf16, #tpu.memory_space<vmem>>, vector<1x32x32xbf16>
    %14 = vector.shape_cast %13 : vector<1x32x32xbf16> to vector<32x32xbf16>
    %cst_16 = arith.constant dense<0.000000e+00> : vector<32x24xf32>
    %15 = tpu.matmul %14, %12, %cst_16 {dimension_numbers = #tpu.dot_dimension_numbers<[1], [0], [0], [1], [0, 0, 1, 1], [], []>} : vector<32x32xbf16>, vector<32x24xbf16>, vector<32x24xf32> -> vector<32x24xf32>
    %16 = arith.addf %10, %15 : vector<32x24xf32>
    %c0_17 = arith.constant 0 : index
    %c0_18 = arith.constant 0 : index
    %c6 = arith.constant 6 : index
    %17 = vector.load %arg1[%c0_17, %c0_18, %c6] : memref<1x32x38xbf16, #tpu.memory_space<vmem>>, vector<1x32x24xbf16>
    %18 = vector.shape_cast %17 : vector<1x32x24xbf16> to vector<32x24xbf16>
    %c3 = arith.constant 3 : index
    %c0_19 = arith.constant 0 : index
    %c0_20 = arith.constant 0 : index
    %19 = vector.load %arg2[%c3, %c0_19, %c0_20] : memref<9x32x32xbf16, #tpu.memory_space<vmem>>, vector<1x32x32xbf16>
    %20 = vector.shape_cast %19 : vector<1x32x32xbf16> to vector<32x32xbf16>
    %cst_21 = arith.constant dense<0.000000e+00> : vector<32x24xf32>
    %21 = tpu.matmul %20, %18, %cst_21 {dimension_numbers = #tpu.dot_dimension_numbers<[1], [0], [0], [1], [0, 0, 1, 1], [], []>} : vector<32x32xbf16>, vector<32x24xbf16>, vector<32x24xf32> -> vector<32x24xf32>
    %22 = arith.addf %16, %21 : vector<32x24xf32>
    %c0_22 = arith.constant 0 : index
    %c0_23 = arith.constant 0 : index
    %c7 = arith.constant 7 : index
    %23 = vector.load %arg1[%c0_22, %c0_23, %c7] : memref<1x32x38xbf16, #tpu.memory_space<vmem>>, vector<1x32x24xbf16>
    %24 = vector.shape_cast %23 : vector<1x32x24xbf16> to vector<32x24xbf16>
    %c4 = arith.constant 4 : index
    %c0_24 = arith.constant 0 : index
    %c0_25 = arith.constant 0 : index
    %25 = vector.load %arg2[%c4, %c0_24, %c0_25] : memref<9x32x32xbf16, #tpu.memory_space<vmem>>, vector<1x32x32xbf16>
    %26 = vector.shape_cast %25 : vector<1x32x32xbf16> to vector<32x32xbf16>
    %cst_26 = arith.constant dense<0.000000e+00> : vector<32x24xf32>
    %27 = tpu.matmul %26, %24, %cst_26 {dimension_numbers = #tpu.dot_dimension_numbers<[1], [0], [0], [1], [0, 0, 1, 1], [], []>} : vector<32x32xbf16>, vector<32x24xbf16>, vector<32x24xf32> -> vector<32x24xf32>
    %28 = arith.addf %22, %27 : vector<32x24xf32>
    %c0_27 = arith.constant 0 : index
    %c0_28 = arith.constant 0 : index
    %c8 = arith.constant 8 : index
    %29 = vector.load %arg1[%c0_27, %c0_28, %c8] : memref<1x32x38xbf16, #tpu.memory_space<vmem>>, vector<1x32x24xbf16>
    %30 = vector.shape_cast %29 : vector<1x32x24xbf16> to vector<32x24xbf16>
    %c5 = arith.constant 5 : index
    %c0_29 = arith.constant 0 : index
    %c0_30 = arith.constant 0 : index
    %31 = vector.load %arg2[%c5, %c0_29, %c0_30] : memref<9x32x32xbf16, #tpu.memory_space<vmem>>, vector<1x32x32xbf16>
    %32 = vector.shape_cast %31 : vector<1x32x32xbf16> to vector<32x32xbf16>
    %cst_31 = arith.constant dense<0.000000e+00> : vector<32x24xf32>
    %33 = tpu.matmul %32, %30, %cst_31 {dimension_numbers = #tpu.dot_dimension_numbers<[1], [0], [0], [1], [0, 0, 1, 1], [], []>} : vector<32x32xbf16>, vector<32x24xbf16>, vector<32x24xf32> -> vector<32x24xf32>
    %34 = arith.addf %28, %33 : vector<32x24xf32>
    %c0_32 = arith.constant 0 : index
    %c0_33 = arith.constant 0 : index
    %c12 = arith.constant 12 : index
    %35 = vector.load %arg1[%c0_32, %c0_33, %c12] : memref<1x32x38xbf16, #tpu.memory_space<vmem>>, vector<1x32x24xbf16>
    %36 = vector.shape_cast %35 : vector<1x32x24xbf16> to vector<32x24xbf16>
    %c6_34 = arith.constant 6 : index
    %c0_35 = arith.constant 0 : index
    %c0_36 = arith.constant 0 : index
    %37 = vector.load %arg2[%c6_34, %c0_35, %c0_36] : memref<9x32x32xbf16, #tpu.memory_space<vmem>>, vector<1x32x32xbf16>
    %38 = vector.shape_cast %37 : vector<1x32x32xbf16> to vector<32x32xbf16>
    %cst_37 = arith.constant dense<0.000000e+00> : vector<32x24xf32>
    %39 = tpu.matmul %38, %36, %cst_37 {dimension_numbers = #tpu.dot_dimension_numbers<[1], [0], [0], [1], [0, 0, 1, 1], [], []>} : vector<32x32xbf16>, vector<32x24xbf16>, vector<32x24xf32> -> vector<32x24xf32>
    %40 = arith.addf %34, %39 : vector<32x24xf32>
    %c0_38 = arith.constant 0 : index
    %c0_39 = arith.constant 0 : index
    %c13 = arith.constant 13 : index
    %41 = vector.load %arg1[%c0_38, %c0_39, %c13] : memref<1x32x38xbf16, #tpu.memory_space<vmem>>, vector<1x32x24xbf16>
    %42 = vector.shape_cast %41 : vector<1x32x24xbf16> to vector<32x24xbf16>
    %c7_40 = arith.constant 7 : index
    %c0_41 = arith.constant 0 : index
    %c0_42 = arith.constant 0 : index
    %43 = vector.load %arg2[%c7_40, %c0_41, %c0_42] : memref<9x32x32xbf16, #tpu.memory_space<vmem>>, vector<1x32x32xbf16>
    %44 = vector.shape_cast %43 : vector<1x32x32xbf16> to vector<32x32xbf16>
    %cst_43 = arith.constant dense<0.000000e+00> : vector<32x24xf32>
    %45 = tpu.matmul %44, %42, %cst_43 {dimension_numbers = #tpu.dot_dimension_numbers<[1], [0], [0], [1], [0, 0, 1, 1], [], []>} : vector<32x32xbf16>, vector<32x24xbf16>, vector<32x24xf32> -> vector<32x24xf32>
    %46 = arith.addf %40, %45 : vector<32x24xf32>
    %c0_44 = arith.constant 0 : index
    %c0_45 = arith.constant 0 : index
    %c14 = arith.constant 14 : index
    %47 = vector.load %arg1[%c0_44, %c0_45, %c14] : memref<1x32x38xbf16, #tpu.memory_space<vmem>>, vector<1x32x24xbf16>
    %48 = vector.shape_cast %47 : vector<1x32x24xbf16> to vector<32x24xbf16>
    %c8_46 = arith.constant 8 : index
    %c0_47 = arith.constant 0 : index
    %c0_48 = arith.constant 0 : index
    %49 = vector.load %arg2[%c8_46, %c0_47, %c0_48] : memref<9x32x32xbf16, #tpu.memory_space<vmem>>, vector<1x32x32xbf16>
    %50 = vector.shape_cast %49 : vector<1x32x32xbf16> to vector<32x32xbf16>
    %cst_49 = arith.constant dense<0.000000e+00> : vector<32x24xf32>
    %51 = tpu.matmul %50, %48, %cst_49 {dimension_numbers = #tpu.dot_dimension_numbers<[1], [0], [0], [1], [0, 0, 1, 1], [], []>} : vector<32x32xbf16>, vector<32x24xbf16>, vector<32x24xf32> -> vector<32x24xf32>
    %52 = arith.addf %46, %51 : vector<32x24xf32>
    %c0_50 = arith.constant 0 : index
    %c0_51 = arith.constant 0 : index
    %53 = vector.load %arg3[%c0_50, %c0_51] : memref<32x1xf32, #tpu.memory_space<vmem>>, vector<32x1xf32>
    %54 = vector.broadcast %53 : vector<32x1xf32> to vector<32x24xf32>
    %55 = arith.addf %52, %54 : vector<32x24xf32>
    %cst_52 = arith.constant 0.000000e+00 : f32
    %56 = vector.broadcast %cst_52 : f32 to vector<32x24xf32>
    %57 = arith.maximumf %55, %56 : vector<32x24xf32>
    %c0_53 = arith.constant 0 : index
    %c0_54 = arith.constant 0 : index
    %c0_55 = arith.constant 0 : index
    %58 = vector.load %arg4[%c0_53, %c0_54, %c0_55] : memref<1x32x24xf32, #tpu.memory_space<vmem>>, vector<1x32x24xf32>
    %59 = vector.shape_cast %58 : vector<1x32x24xf32> to vector<32x24xf32>
    %60 = vector.shape_cast %57 : vector<32x24xf32> to vector<1x32x24xf32>
    tpu.vector_store %arg4[%c0_53, %c0_54, %c0_55], %60 {strides = array<i32>} : memref<1x32x24xf32, #tpu.memory_space<vmem>>, vector<1x32x24xf32>,
    return
  }
  func.func @transform_0(%arg0: i32) -> (i32, i32, i32) {
    %c0_i32 = arith.constant 0 : i32
    %c0_i32_0 = arith.constant 0 : i32
    %c0_i32_1 = arith.constant 0 : i32
    return %arg0, %c0_i32, %c0_i32_0 : i32, i32, i32
  }
  func.func @transform_1(%arg0: i32) -> (i32, i32, i32) {
    %c0_i32 = arith.constant 0 : i32
    %c0_i32_0 = arith.constant 0 : i32
    %c0_i32_1 = arith.constant 0 : i32
    %c0_i32_2 = arith.constant 0 : i32
    return %c0_i32, %c0_i32_0, %c0_i32_1 : i32, i32, i32
  }
  func.func @transform_2(%arg0: i32) -> (i32, i32) {
    %c0_i32 = arith.constant 0 : i32
    %c0_i32_0 = arith.constant 0 : i32
    %c0_i32_1 = arith.constant 0 : i32
    return %c0_i32, %c0_i32_0 : i32, i32
  }
  func.func @transform_3(%arg0: i32) -> (i32, i32, i32) {
    %c0_i32 = arith.constant 0 : i32
    %c0_i32_0 = arith.constant 0 : i32
    %c0_i32_1 = arith.constant 0 : i32
    return %arg0, %c0_i32, %c0_i32_0 : i32, i32, i32
  }
}

module attributes {stable_mosaic.version = 11 : i64} {
  func.func @_conv_taps_kernel(%arg0: i32, %arg1: memref<1x32x18xbf16, #tpu.memory_space<vmem>>, %arg2: memref<9x64x32xbf16, #tpu.memory_space<vmem>>, %arg3: memref<64x1xf32, #tpu.memory_space<vmem>>, %arg4: memref<1x64x8xf32, #tpu.memory_space<vmem>>) attributes {dimension_semantics = [#tpu.dimension_semantics<parallel>], iteration_bounds = array<i64: 2>, scalar_prefetch = 0 : i64, scratch_operands = 0 : i64, tpu.core_type = #tpu.core_type<tc>, window_params = [{transform_indices = @transform_0, window_bounds = array<i64: 1, 32, 18>}, {pipeline_mode = #tpu.pipeline_mode<synchronous>, transform_indices = @transform_1, window_bounds = array<i64: 9, 64, 32>}, {pipeline_mode = #tpu.pipeline_mode<synchronous>, transform_indices = @transform_2, window_bounds = array<i64: 64, 1>}, {transform_indices = @transform_3, window_bounds = array<i64: 1, 64, 8>}]} {
    %c0 = arith.constant 0 : index
    %c0_0 = arith.constant 0 : index
    %c0_1 = arith.constant 0 : index
    %0 = vector.load %arg1[%c0, %c0_0, %c0_1] : memref<1x32x18xbf16, #tpu.memory_space<vmem>>, vector<1x32x8xbf16>
    %1 = vector.shape_cast %0 : vector<1x32x8xbf16> to vector<32x8xbf16>
    %c0_2 = arith.constant 0 : index
    %c0_3 = arith.constant 0 : index
    %c0_4 = arith.constant 0 : index
    %2 = vector.load %arg2[%c0_2, %c0_3, %c0_4] : memref<9x64x32xbf16, #tpu.memory_space<vmem>>, vector<1x64x32xbf16>
    %3 = vector.shape_cast %2 : vector<1x64x32xbf16> to vector<64x32xbf16>
    %cst = arith.constant dense<0.000000e+00> : vector<64x8xf32>
    %4 = tpu.matmul %3, %1, %cst {dimension_numbers = #tpu.dot_dimension_numbers<[1], [0], [0], [1], [0, 0, 1, 1], [], []>} : vector<64x32xbf16>, vector<32x8xbf16>, vector<64x8xf32> -> vector<64x8xf32>
    %c0_5 = arith.constant 0 : index
    %c0_6 = arith.constant 0 : index
    %c1 = arith.constant 1 : index
    %5 = vector.load %arg1[%c0_5, %c0_6, %c1] : memref<1x32x18xbf16, #tpu.memory_space<vmem>>, vector<1x32x8xbf16>
    %6 = vector.shape_cast %5 : vector<1x32x8xbf16> to vector<32x8xbf16>
    %c1_7 = arith.constant 1 : index
    %c0_8 = arith.constant 0 : index
    %c0_9 = arith.constant 0 : index
    %7 = vector.load %arg2[%c1_7, %c0_8, %c0_9] : memref<9x64x32xbf16, #tpu.memory_space<vmem>>, vector<1x64x32xbf16>
    %8 = vector.shape_cast %7 : vector<1x64x32xbf16> to vector<64x32xbf16>
    %cst_10 = arith.constant dense<0.000000e+00> : vector<64x8xf32>
    %9 = tpu.matmul %8, %6, %cst_10 {dimension_numbers = #tpu.dot_dimension_numbers<[1], [0], [0], [1], [0, 0, 1, 1], [], []>} : vector<64x32xbf16>, vector<32x8xbf16>, vector<64x8xf32> -> vector<64x8xf32>
    %10 = arith.addf %4, %9 : vector<64x8xf32>
    %c0_11 = arith.constant 0 : index
    %c0_12 = arith.constant 0 : index
    %c2 = arith.constant 2 : index
    %11 = vector.load %arg1[%c0_11, %c0_12, %c2] : memref<1x32x18xbf16, #tpu.memory_space<vmem>>, vector<1x32x8xbf16>
    %12 = vector.shape_cast %11 : vector<1x32x8xbf16> to vector<32x8xbf16>
    %c2_13 = arith.constant 2 : index
    %c0_14 = arith.constant 0 : index
    %c0_15 = arith.constant 0 : index
    %13 = vector.load %arg2[%c2_13, %c0_14, %c0_15] : memref<9x64x32xbf16, #tpu.memory_space<vmem>>, vector<1x64x32xbf16>
    %14 = vector.shape_cast %13 : vector<1x64x32xbf16> to vector<64x32xbf16>
    %cst_16 = arith.constant dense<0.000000e+00> : vector<64x8xf32>
    %15 = tpu.matmul %14, %12, %cst_16 {dimension_numbers = #tpu.dot_dimension_numbers<[1], [0], [0], [1], [0, 0, 1, 1], [], []>} : vector<64x32xbf16>, vector<32x8xbf16>, vector<64x8xf32> -> vector<64x8xf32>
    %16 = arith.addf %10, %15 : vector<64x8xf32>
    %c0_17 = arith.constant 0 : index
    %c0_18 = arith.constant 0 : index
    %c4 = arith.constant 4 : index
    %17 = vector.load %arg1[%c0_17, %c0_18, %c4] : memref<1x32x18xbf16, #tpu.memory_space<vmem>>, vector<1x32x8xbf16>
    %18 = vector.shape_cast %17 : vector<1x32x8xbf16> to vector<32x8xbf16>
    %c3 = arith.constant 3 : index
    %c0_19 = arith.constant 0 : index
    %c0_20 = arith.constant 0 : index
    %19 = vector.load %arg2[%c3, %c0_19, %c0_20] : memref<9x64x32xbf16, #tpu.memory_space<vmem>>, vector<1x64x32xbf16>
    %20 = vector.shape_cast %19 : vector<1x64x32xbf16> to vector<64x32xbf16>
    %cst_21 = arith.constant dense<0.000000e+00> : vector<64x8xf32>
    %21 = tpu.matmul %20, %18, %cst_21 {dimension_numbers = #tpu.dot_dimension_numbers<[1], [0], [0], [1], [0, 0, 1, 1], [], []>} : vector<64x32xbf16>, vector<32x8xbf16>, vector<64x8xf32> -> vector<64x8xf32>
    %22 = arith.addf %16, %21 : vector<64x8xf32>
    %c0_22 = arith.constant 0 : index
    %c0_23 = arith.constant 0 : index
    %c5 = arith.constant 5 : index
    %23 = vector.load %arg1[%c0_22, %c0_23, %c5] : memref<1x32x18xbf16, #tpu.memory_space<vmem>>, vector<1x32x8xbf16>
    %24 = vector.shape_cast %23 : vector<1x32x8xbf16> to vector<32x8xbf16>
    %c4_24 = arith.constant 4 : index
    %c0_25 = arith.constant 0 : index
    %c0_26 = arith.constant 0 : index
    %25 = vector.load %arg2[%c4_24, %c0_25, %c0_26] : memref<9x64x32xbf16, #tpu.memory_space<vmem>>, vector<1x64x32xbf16>
    %26 = vector.shape_cast %25 : vector<1x64x32xbf16> to vector<64x32xbf16>
    %cst_27 = arith.constant dense<0.000000e+00> : vector<64x8xf32>
    %27 = tpu.matmul %26, %24, %cst_27 {dimension_numbers = #tpu.dot_dimension_numbers<[1], [0], [0], [1], [0, 0, 1, 1], [], []>} : vector<64x32xbf16>, vector<32x8xbf16>, vector<64x8xf32> -> vector<64x8xf32>
    %28 = arith.addf %22, %27 : vector<64x8xf32>
    %c0_28 = arith.constant 0 : index
    %c0_29 = arith.constant 0 : index
    %c6 = arith.constant 6 : index
    %29 = vector.load %arg1[%c0_28, %c0_29, %c6] : memref<1x32x18xbf16, #tpu.memory_space<vmem>>, vector<1x32x8xbf16>
    %30 = vector.shape_cast %29 : vector<1x32x8xbf16> to vector<32x8xbf16>
    %c5_30 = arith.constant 5 : index
    %c0_31 = arith.constant 0 : index
    %c0_32 = arith.constant 0 : index
    %31 = vector.load %arg2[%c5_30, %c0_31, %c0_32] : memref<9x64x32xbf16, #tpu.memory_space<vmem>>, vector<1x64x32xbf16>
    %32 = vector.shape_cast %31 : vector<1x64x32xbf16> to vector<64x32xbf16>
    %cst_33 = arith.constant dense<0.000000e+00> : vector<64x8xf32>
    %33 = tpu.matmul %32, %30, %cst_33 {dimension_numbers = #tpu.dot_dimension_numbers<[1], [0], [0], [1], [0, 0, 1, 1], [], []>} : vector<64x32xbf16>, vector<32x8xbf16>, vector<64x8xf32> -> vector<64x8xf32>
    %34 = arith.addf %28, %33 : vector<64x8xf32>
    %c0_34 = arith.constant 0 : index
    %c0_35 = arith.constant 0 : index
    %c8 = arith.constant 8 : index
    %35 = vector.load %arg1[%c0_34, %c0_35, %c8] : memref<1x32x18xbf16, #tpu.memory_space<vmem>>, vector<1x32x8xbf16>
    %36 = vector.shape_cast %35 : vector<1x32x8xbf16> to vector<32x8xbf16>
    %c6_36 = arith.constant 6 : index
    %c0_37 = arith.constant 0 : index
    %c0_38 = arith.constant 0 : index
    %37 = vector.load %arg2[%c6_36, %c0_37, %c0_38] : memref<9x64x32xbf16, #tpu.memory_space<vmem>>, vector<1x64x32xbf16>
    %38 = vector.shape_cast %37 : vector<1x64x32xbf16> to vector<64x32xbf16>
    %cst_39 = arith.constant dense<0.000000e+00> : vector<64x8xf32>
    %39 = tpu.matmul %38, %36, %cst_39 {dimension_numbers = #tpu.dot_dimension_numbers<[1], [0], [0], [1], [0, 0, 1, 1], [], []>} : vector<64x32xbf16>, vector<32x8xbf16>, vector<64x8xf32> -> vector<64x8xf32>
    %40 = arith.addf %34, %39 : vector<64x8xf32>
    %c0_40 = arith.constant 0 : index
    %c0_41 = arith.constant 0 : index
    %c9 = arith.constant 9 : index
    %41 = vector.load %arg1[%c0_40, %c0_41, %c9] : memref<1x32x18xbf16, #tpu.memory_space<vmem>>, vector<1x32x8xbf16>
    %42 = vector.shape_cast %41 : vector<1x32x8xbf16> to vector<32x8xbf16>
    %c7 = arith.constant 7 : index
    %c0_42 = arith.constant 0 : index
    %c0_43 = arith.constant 0 : index
    %43 = vector.load %arg2[%c7, %c0_42, %c0_43] : memref<9x64x32xbf16, #tpu.memory_space<vmem>>, vector<1x64x32xbf16>
    %44 = vector.shape_cast %43 : vector<1x64x32xbf16> to vector<64x32xbf16>
    %cst_44 = arith.constant dense<0.000000e+00> : vector<64x8xf32>
    %45 = tpu.matmul %44, %42, %cst_44 {dimension_numbers = #tpu.dot_dimension_numbers<[1], [0], [0], [1], [0, 0, 1, 1], [], []>} : vector<64x32xbf16>, vector<32x8xbf16>, vector<64x8xf32> -> vector<64x8xf32>
    %46 = arith.addf %40, %45 : vector<64x8xf32>
    %c0_45 = arith.constant 0 : index
    %c0_46 = arith.constant 0 : index
    %c10 = arith.constant 10 : index
    %47 = vector.load %arg1[%c0_45, %c0_46, %c10] : memref<1x32x18xbf16, #tpu.memory_space<vmem>>, vector<1x32x8xbf16>
    %48 = vector.shape_cast %47 : vector<1x32x8xbf16> to vector<32x8xbf16>
    %c8_47 = arith.constant 8 : index
    %c0_48 = arith.constant 0 : index
    %c0_49 = arith.constant 0 : index
    %49 = vector.load %arg2[%c8_47, %c0_48, %c0_49] : memref<9x64x32xbf16, #tpu.memory_space<vmem>>, vector<1x64x32xbf16>
    %50 = vector.shape_cast %49 : vector<1x64x32xbf16> to vector<64x32xbf16>
    %cst_50 = arith.constant dense<0.000000e+00> : vector<64x8xf32>
    %51 = tpu.matmul %50, %48, %cst_50 {dimension_numbers = #tpu.dot_dimension_numbers<[1], [0], [0], [1], [0, 0, 1, 1], [], []>} : vector<64x32xbf16>, vector<32x8xbf16>, vector<64x8xf32> -> vector<64x8xf32>
    %52 = arith.addf %46, %51 : vector<64x8xf32>
    %c0_51 = arith.constant 0 : index
    %c0_52 = arith.constant 0 : index
    %53 = vector.load %arg3[%c0_51, %c0_52] : memref<64x1xf32, #tpu.memory_space<vmem>>, vector<64x1xf32>
    %54 = vector.broadcast %53 : vector<64x1xf32> to vector<64x8xf32>
    %55 = arith.addf %52, %54 : vector<64x8xf32>
    %cst_53 = arith.constant 0.000000e+00 : f32
    %56 = vector.broadcast %cst_53 : f32 to vector<64x8xf32>
    %57 = arith.maximumf %55, %56 : vector<64x8xf32>
    %c0_54 = arith.constant 0 : index
    %c0_55 = arith.constant 0 : index
    %c0_56 = arith.constant 0 : index
    %58 = vector.load %arg4[%c0_54, %c0_55, %c0_56] : memref<1x64x8xf32, #tpu.memory_space<vmem>>, vector<1x64x8xf32>
    %59 = vector.shape_cast %58 : vector<1x64x8xf32> to vector<64x8xf32>
    %60 = vector.shape_cast %57 : vector<64x8xf32> to vector<1x64x8xf32>
    tpu.vector_store %arg4[%c0_54, %c0_55, %c0_56], %60 {strides = array<i32>} : memref<1x64x8xf32, #tpu.memory_space<vmem>>, vector<1x64x8xf32>,
    return
  }
  func.func @transform_0(%arg0: i32) -> (i32, i32, i32) {
    %c0_i32 = arith.constant 0 : i32
    %c0_i32_0 = arith.constant 0 : i32
    %c0_i32_1 = arith.constant 0 : i32
    return %arg0, %c0_i32, %c0_i32_0 : i32, i32, i32
  }
  func.func @transform_1(%arg0: i32) -> (i32, i32, i32) {
    %c0_i32 = arith.constant 0 : i32
    %c0_i32_0 = arith.constant 0 : i32
    %c0_i32_1 = arith.constant 0 : i32
    %c0_i32_2 = arith.constant 0 : i32
    return %c0_i32, %c0_i32_0, %c0_i32_1 : i32, i32, i32
  }
  func.func @transform_2(%arg0: i32) -> (i32, i32) {
    %c0_i32 = arith.constant 0 : i32
    %c0_i32_0 = arith.constant 0 : i32
    %c0_i32_1 = arith.constant 0 : i32
    return %c0_i32, %c0_i32_0 : i32, i32
  }
  func.func @transform_3(%arg0: i32) -> (i32, i32, i32) {
    %c0_i32 = arith.constant 0 : i32
    %c0_i32_0 = arith.constant 0 : i32
    %c0_i32_1 = arith.constant 0 : i32
    return %arg0, %c0_i32, %c0_i32_0 : i32, i32, i32
  }
}

module attributes {stable_mosaic.version = 11 : i64} {
  func.func @_conv_taps_kernel(%arg0: i32, %arg1: memref<1x64x18xbf16, #tpu.memory_space<vmem>>, %arg2: memref<9x64x64xbf16, #tpu.memory_space<vmem>>, %arg3: memref<64x1xf32, #tpu.memory_space<vmem>>, %arg4: memref<1x64x8xf32, #tpu.memory_space<vmem>>) attributes {dimension_semantics = [#tpu.dimension_semantics<parallel>], iteration_bounds = array<i64: 2>, scalar_prefetch = 0 : i64, scratch_operands = 0 : i64, tpu.core_type = #tpu.core_type<tc>, window_params = [{transform_indices = @transform_0, window_bounds = array<i64: 1, 64, 18>}, {pipeline_mode = #tpu.pipeline_mode<synchronous>, transform_indices = @transform_1, window_bounds = array<i64: 9, 64, 64>}, {pipeline_mode = #tpu.pipeline_mode<synchronous>, transform_indices = @transform_2, window_bounds = array<i64: 64, 1>}, {transform_indices = @transform_3, window_bounds = array<i64: 1, 64, 8>}]} {
    %c0 = arith.constant 0 : index
    %c0_0 = arith.constant 0 : index
    %c0_1 = arith.constant 0 : index
    %0 = vector.load %arg1[%c0, %c0_0, %c0_1] : memref<1x64x18xbf16, #tpu.memory_space<vmem>>, vector<1x64x8xbf16>
    %1 = vector.shape_cast %0 : vector<1x64x8xbf16> to vector<64x8xbf16>
    %c0_2 = arith.constant 0 : index
    %c0_3 = arith.constant 0 : index
    %c0_4 = arith.constant 0 : index
    %2 = vector.load %arg2[%c0_2, %c0_3, %c0_4] : memref<9x64x64xbf16, #tpu.memory_space<vmem>>, vector<1x64x64xbf16>
    %3 = vector.shape_cast %2 : vector<1x64x64xbf16> to vector<64x64xbf16>
    %cst = arith.constant dense<0.000000e+00> : vector<64x8xf32>
    %4 = tpu.matmul %3, %1, %cst {dimension_numbers = #tpu.dot_dimension_numbers<[1], [0], [0], [1], [0, 0, 1, 1], [], []>} : vector<64x64xbf16>, vector<64x8xbf16>, vector<64x8xf32> -> vector<64x8xf32>
    %c0_5 = arith.constant 0 : index
    %c0_6 = arith.constant 0 : index
    %c1 = arith.constant 1 : index
    %5 = vector.load %arg1[%c0_5, %c0_6, %c1] : memref<1x64x18xbf16, #tpu.memory_space<vmem>>, vector<1x64x8xbf16>
    %6 = vector.shape_cast %5 : vector<1x64x8xbf16> to vector<64x8xbf16>
    %c1_7 = arith.constant 1 : index
    %c0_8 = arith.constant 0 : index
    %c0_9 = arith.constant 0 : index
    %7 = vector.load %arg2[%c1_7, %c0_8, %c0_9] : memref<9x64x64xbf16, #tpu.memory_space<vmem>>, vector<1x64x64xbf16>
    %8 = vector.shape_cast %7 : vector<1x64x64xbf16> to vector<64x64xbf16>
    %cst_10 = arith.constant dense<0.000000e+00> : vector<64x8xf32>
    %9 = tpu.matmul %8, %6, %cst_10 {dimension_numbers = #tpu.dot_dimension_numbers<[1], [0], [0], [1], [0, 0, 1, 1], [], []>} : vector<64x64xbf16>, vector<64x8xbf16>, vector<64x8xf32> -> vector<64x8xf32>
    %10 = arith.addf %4, %9 : vector<64x8xf32>
    %c0_11 = arith.constant 0 : index
    %c0_12 = arith.constant 0 : index
    %c2 = arith.constant 2 : index
    %11 = vector.load %arg1[%c0_11, %c0_12, %c2] : memref<1x64x18xbf16, #tpu.memory_space<vmem>>, vector<1x64x8xbf16>
    %12 = vector.shape_cast %11 : vector<1x64x8xbf16> to vector<64x8xbf16>
    %c2_13 = arith.constant 2 : index
    %c0_14 = arith.constant 0 : index
    %c0_15 = arith.constant 0 : index
    %13 = vector.load %arg2[%c2_13, %c0_14, %c0_15] : memref<9x64x64xbf16, #tpu.memory_space<vmem>>, vector<1x64x64xbf16>
    %14 = vector.shape_cast %13 : vector<1x64x64xbf16> to vector<64x64xbf16>
    %cst_16 = arith.constant dense<0.000000e+00> : vector<64x8xf32>
    %15 = tpu.matmul %14, %12, %cst_16 {dimension_numbers = #tpu.dot_dimension_numbers<[1], [0], [0], [1], [0, 0, 1, 1], [], []>} : vector<64x64xbf16>, vector<64x8xbf16>, vector<64x8xf32> -> vector<64x8xf32>
    %16 = arith.addf %10, %15 : vector<64x8xf32>
    %c0_17 = arith.constant 0 : index
    %c0_18 = arith.constant 0 : index
    %c4 = arith.constant 4 : index
    %17 = vector.load %arg1[%c0_17, %c0_18, %c4] : memref<1x64x18xbf16, #tpu.memory_space<vmem>>, vector<1x64x8xbf16>
    %18 = vector.shape_cast %17 : vector<1x64x8xbf16> to vector<64x8xbf16>
    %c3 = arith.constant 3 : index
    %c0_19 = arith.constant 0 : index
    %c0_20 = arith.constant 0 : index
    %19 = vector.load %arg2[%c3, %c0_19, %c0_20] : memref<9x64x64xbf16, #tpu.memory_space<vmem>>, vector<1x64x64xbf16>
    %20 = vector.shape_cast %19 : vector<1x64x64xbf16> to vector<64x64xbf16>
    %cst_21 = arith.constant dense<0.000000e+00> : vector<64x8xf32>
    %21 = tpu.matmul %20, %18, %cst_21 {dimension_numbers = #tpu.dot_dimension_numbers<[1], [0], [0], [1], [0, 0, 1, 1], [], []>} : vector<64x64xbf16>, vector<64x8xbf16>, vector<64x8xf32> -> vector<64x8xf32>
    %22 = arith.addf %16, %21 : vector<64x8xf32>
    %c0_22 = arith.constant 0 : index
    %c0_23 = arith.constant 0 : index
    %c5 = arith.constant 5 : index
    %23 = vector.load %arg1[%c0_22, %c0_23, %c5] : memref<1x64x18xbf16, #tpu.memory_space<vmem>>, vector<1x64x8xbf16>
    %24 = vector.shape_cast %23 : vector<1x64x8xbf16> to vector<64x8xbf16>
    %c4_24 = arith.constant 4 : index
    %c0_25 = arith.constant 0 : index
    %c0_26 = arith.constant 0 : index
    %25 = vector.load %arg2[%c4_24, %c0_25, %c0_26] : memref<9x64x64xbf16, #tpu.memory_space<vmem>>, vector<1x64x64xbf16>
    %26 = vector.shape_cast %25 : vector<1x64x64xbf16> to vector<64x64xbf16>
    %cst_27 = arith.constant dense<0.000000e+00> : vector<64x8xf32>
    %27 = tpu.matmul %26, %24, %cst_27 {dimension_numbers = #tpu.dot_dimension_numbers<[1], [0], [0], [1], [0, 0, 1, 1], [], []>} : vector<64x64xbf16>, vector<64x8xbf16>, vector<64x8xf32> -> vector<64x8xf32>
    %28 = arith.addf %22, %27 : vector<64x8xf32>
    %c0_28 = arith.constant 0 : index
    %c0_29 = arith.constant 0 : index
    %c6 = arith.constant 6 : index
    %29 = vector.load %arg1[%c0_28, %c0_29, %c6] : memref<1x64x18xbf16, #tpu.memory_space<vmem>>, vector<1x64x8xbf16>
    %30 = vector.shape_cast %29 : vector<1x64x8xbf16> to vector<64x8xbf16>
    %c5_30 = arith.constant 5 : index
    %c0_31 = arith.constant 0 : index
    %c0_32 = arith.constant 0 : index
    %31 = vector.load %arg2[%c5_30, %c0_31, %c0_32] : memref<9x64x64xbf16, #tpu.memory_space<vmem>>, vector<1x64x64xbf16>
    %32 = vector.shape_cast %31 : vector<1x64x64xbf16> to vector<64x64xbf16>
    %cst_33 = arith.constant dense<0.000000e+00> : vector<64x8xf32>
    %33 = tpu.matmul %32, %30, %cst_33 {dimension_numbers = #tpu.dot_dimension_numbers<[1], [0], [0], [1], [0, 0, 1, 1], [], []>} : vector<64x64xbf16>, vector<64x8xbf16>, vector<64x8xf32> -> vector<64x8xf32>
    %34 = arith.addf %28, %33 : vector<64x8xf32>
    %c0_34 = arith.constant 0 : index
    %c0_35 = arith.constant 0 : index
    %c8 = arith.constant 8 : index
    %35 = vector.load %arg1[%c0_34, %c0_35, %c8] : memref<1x64x18xbf16, #tpu.memory_space<vmem>>, vector<1x64x8xbf16>
    %36 = vector.shape_cast %35 : vector<1x64x8xbf16> to vector<64x8xbf16>
    %c6_36 = arith.constant 6 : index
    %c0_37 = arith.constant 0 : index
    %c0_38 = arith.constant 0 : index
    %37 = vector.load %arg2[%c6_36, %c0_37, %c0_38] : memref<9x64x64xbf16, #tpu.memory_space<vmem>>, vector<1x64x64xbf16>
    %38 = vector.shape_cast %37 : vector<1x64x64xbf16> to vector<64x64xbf16>
    %cst_39 = arith.constant dense<0.000000e+00> : vector<64x8xf32>
    %39 = tpu.matmul %38, %36, %cst_39 {dimension_numbers = #tpu.dot_dimension_numbers<[1], [0], [0], [1], [0, 0, 1, 1], [], []>} : vector<64x64xbf16>, vector<64x8xbf16>, vector<64x8xf32> -> vector<64x8xf32>
    %40 = arith.addf %34, %39 : vector<64x8xf32>
    %c0_40 = arith.constant 0 : index
    %c0_41 = arith.constant 0 : index
    %c9 = arith.constant 9 : index
    %41 = vector.load %arg1[%c0_40, %c0_41, %c9] : memref<1x64x18xbf16, #tpu.memory_space<vmem>>, vector<1x64x8xbf16>
    %42 = vector.shape_cast %41 : vector<1x64x8xbf16> to vector<64x8xbf16>
    %c7 = arith.constant 7 : index
    %c0_42 = arith.constant 0 : index
    %c0_43 = arith.constant 0 : index
    %43 = vector.load %arg2[%c7, %c0_42, %c0_43] : memref<9x64x64xbf16, #tpu.memory_space<vmem>>, vector<1x64x64xbf16>
    %44 = vector.shape_cast %43 : vector<1x64x64xbf16> to vector<64x64xbf16>
    %cst_44 = arith.constant dense<0.000000e+00> : vector<64x8xf32>
    %45 = tpu.matmul %44, %42, %cst_44 {dimension_numbers = #tpu.dot_dimension_numbers<[1], [0], [0], [1], [0, 0, 1, 1], [], []>} : vector<64x64xbf16>, vector<64x8xbf16>, vector<64x8xf32> -> vector<64x8xf32>
    %46 = arith.addf %40, %45 : vector<64x8xf32>
    %c0_45 = arith.constant 0 : index
    %c0_46 = arith.constant 0 : index
    %c10 = arith.constant 10 : index
    %47 = vector.load %arg1[%c0_45, %c0_46, %c10] : memref<1x64x18xbf16, #tpu.memory_space<vmem>>, vector<1x64x8xbf16>
    %48 = vector.shape_cast %47 : vector<1x64x8xbf16> to vector<64x8xbf16>
    %c8_47 = arith.constant 8 : index
    %c0_48 = arith.constant 0 : index
    %c0_49 = arith.constant 0 : index
    %49 = vector.load %arg2[%c8_47, %c0_48, %c0_49] : memref<9x64x64xbf16, #tpu.memory_space<vmem>>, vector<1x64x64xbf16>
    %50 = vector.shape_cast %49 : vector<1x64x64xbf16> to vector<64x64xbf16>
    %cst_50 = arith.constant dense<0.000000e+00> : vector<64x8xf32>
    %51 = tpu.matmul %50, %48, %cst_50 {dimension_numbers = #tpu.dot_dimension_numbers<[1], [0], [0], [1], [0, 0, 1, 1], [], []>} : vector<64x64xbf16>, vector<64x8xbf16>, vector<64x8xf32> -> vector<64x8xf32>
    %52 = arith.addf %46, %51 : vector<64x8xf32>
    %c0_51 = arith.constant 0 : index
    %c0_52 = arith.constant 0 : index
    %53 = vector.load %arg3[%c0_51, %c0_52] : memref<64x1xf32, #tpu.memory_space<vmem>>, vector<64x1xf32>
    %54 = vector.broadcast %53 : vector<64x1xf32> to vector<64x8xf32>
    %55 = arith.addf %52, %54 : vector<64x8xf32>
    %cst_53 = arith.constant 0.000000e+00 : f32
    %56 = vector.broadcast %cst_53 : f32 to vector<64x8xf32>
    %57 = arith.maximumf %55, %56 : vector<64x8xf32>
    %c0_54 = arith.constant 0 : index
    %c0_55 = arith.constant 0 : index
    %c0_56 = arith.constant 0 : index
    %58 = vector.load %arg4[%c0_54, %c0_55, %c0_56] : memref<1x64x8xf32, #tpu.memory_space<vmem>>, vector<1x64x8xf32>
    %59 = vector.shape_cast %58 : vector<1x64x8xf32> to vector<64x8xf32>
    %60 = vector.shape_cast %57 : vector<64x8xf32> to vector<1x64x8xf32>
    tpu.vector_store %arg4[%c0_54, %c0_55, %c0_56], %60 {strides = array<i32>} : memref<1x64x8xf32, #tpu.memory_space<vmem>>, vector<1x64x8xf32>,
    return
  }
  func.func @transform_0(%arg0: i32) -> (i32, i32, i32) {
    %c0_i32 = arith.constant 0 : i32
    %c0_i32_0 = arith.constant 0 : i32
    %c0_i32_1 = arith.constant 0 : i32
    return %arg0, %c0_i32, %c0_i32_0 : i32, i32, i32
  }
  func.func @transform_1(%arg0: i32) -> (i32, i32, i32) {
    %c0_i32 = arith.constant 0 : i32
    %c0_i32_0 = arith.constant 0 : i32
    %c0_i32_1 = arith.constant 0 : i32
    %c0_i32_2 = arith.constant 0 : i32
    return %c0_i32, %c0_i32_0, %c0_i32_1 : i32, i32, i32
  }
  func.func @transform_2(%arg0: i32) -> (i32, i32) {
    %c0_i32 = arith.constant 0 : i32
    %c0_i32_0 = arith.constant 0 : i32
    %c0_i32_1 = arith.constant 0 : i32
    return %c0_i32, %c0_i32_0 : i32, i32
  }
  func.func @transform_3(%arg0: i32) -> (i32, i32, i32) {
    %c0_i32 = arith.constant 0 : i32
    %c0_i32_0 = arith.constant 0 : i32
    %c0_i32_1 = arith.constant 0 : i32
    return %arg0, %c0_i32, %c0_i32_0 : i32, i32, i32
  }
}

module attributes {stable_mosaic.version = 11 : i64} {
  func.func @_conv_taps_kernel(%arg0: i32, %arg1: memref<1x64x11xbf16, #tpu.memory_space<vmem>>, %arg2: memref<9x64x64xbf16, #tpu.memory_space<vmem>>, %arg3: memref<64x1xf32, #tpu.memory_space<vmem>>, %arg4: memref<1x64x3xf32, #tpu.memory_space<vmem>>) attributes {dimension_semantics = [#tpu.dimension_semantics<parallel>], iteration_bounds = array<i64: 2>, scalar_prefetch = 0 : i64, scratch_operands = 0 : i64, tpu.core_type = #tpu.core_type<tc>, window_params = [{transform_indices = @transform_0, window_bounds = array<i64: 1, 64, 11>}, {pipeline_mode = #tpu.pipeline_mode<synchronous>, transform_indices = @transform_1, window_bounds = array<i64: 9, 64, 64>}, {pipeline_mode = #tpu.pipeline_mode<synchronous>, transform_indices = @transform_2, window_bounds = array<i64: 64, 1>}, {transform_indices = @transform_3, window_bounds = array<i64: 1, 64, 3>}]} {
    %c0 = arith.constant 0 : index
    %c0_0 = arith.constant 0 : index
    %c0_1 = arith.constant 0 : index
    %0 = vector.load %arg1[%c0, %c0_0, %c0_1] : memref<1x64x11xbf16, #tpu.memory_space<vmem>>, vector<1x64x3xbf16>
    %1 = vector.shape_cast %0 : vector<1x64x3xbf16> to vector<64x3xbf16>
    %c0_2 = arith.constant 0 : index
    %c0_3 = arith.constant 0 : index
    %c0_4 = arith.constant 0 : index
    %2 = vector.load %arg2[%c0_2, %c0_3, %c0_4] : memref<9x64x64xbf16, #tpu.memory_space<vmem>>, vector<1x64x64xbf16>
    %3 = vector.shape_cast %2 : vector<1x64x64xbf16> to vector<64x64xbf16>
    %cst = arith.constant dense<0.000000e+00> : vector<64x3xf32>
    %4 = tpu.matmul %3, %1, %cst {dimension_numbers = #tpu.dot_dimension_numbers<[1], [0], [0], [1], [0, 0, 1, 1], [], []>} : vector<64x64xbf16>, vector<64x3xbf16>, vector<64x3xf32> -> vector<64x3xf32>
    %c0_5 = arith.constant 0 : index
    %c0_6 = arith.constant 0 : index
    %c1 = arith.constant 1 : index
    %5 = vector.load %arg1[%c0_5, %c0_6, %c1] : memref<1x64x11xbf16, #tpu.memory_space<vmem>>, vector<1x64x3xbf16>
    %6 = vector.shape_cast %5 : vector<1x64x3xbf16> to vector<64x3xbf16>
    %c1_7 = arith.constant 1 : index
    %c0_8 = arith.constant 0 : index
    %c0_9 = arith.constant 0 : index
    %7 = vector.load %arg2[%c1_7, %c0_8, %c0_9] : memref<9x64x64xbf16, #tpu.memory_space<vmem>>, vector<1x64x64xbf16>
    %8 = vector.shape_cast %7 : vector<1x64x64xbf16> to vector<64x64xbf16>
    %cst_10 = arith.constant dense<0.000000e+00> : vector<64x3xf32>
    %9 = tpu.matmul %8, %6, %cst_10 {dimension_numbers = #tpu.dot_dimension_numbers<[1], [0], [0], [1], [0, 0, 1, 1], [], []>} : vector<64x64xbf16>, vector<64x3xbf16>, vector<64x3xf32> -> vector<64x3xf32>
    %10 = arith.addf %4, %9 : vector<64x3xf32>
    %c0_11 = arith.constant 0 : index
    %c0_12 = arith.constant 0 : index
    %c2 = arith.constant 2 : index
    %11 = vector.load %arg1[%c0_11, %c0_12, %c2] : memref<1x64x11xbf16, #tpu.memory_space<vmem>>, vector<1x64x3xbf16>
    %12 = vector.shape_cast %11 : vector<1x64x3xbf16> to vector<64x3xbf16>
    %c2_13 = arith.constant 2 : index
    %c0_14 = arith.constant 0 : index
    %c0_15 = arith.constant 0 : index
    %13 = vector.load %arg2[%c2_13, %c0_14, %c0_15] : memref<9x64x64xbf16, #tpu.memory_space<vmem>>, vector<1x64x64xbf16>
    %14 = vector.shape_cast %13 : vector<1x64x64xbf16> to vector<64x64xbf16>
    %cst_16 = arith.constant dense<0.000000e+00> : vector<64x3xf32>
    %15 = tpu.matmul %14, %12, %cst_16 {dimension_numbers = #tpu.dot_dimension_numbers<[1], [0], [0], [1], [0, 0, 1, 1], [], []>} : vector<64x64xbf16>, vector<64x3xbf16>, vector<64x3xf32> -> vector<64x3xf32>
    %16 = arith.addf %10, %15 : vector<64x3xf32>
    %c0_17 = arith.constant 0 : index
    %c0_18 = arith.constant 0 : index
    %c3 = arith.constant 3 : index
    %17 = vector.load %arg1[%c0_17, %c0_18, %c3] : memref<1x64x11xbf16, #tpu.memory_space<vmem>>, vector<1x64x3xbf16>
    %18 = vector.shape_cast %17 : vector<1x64x3xbf16> to vector<64x3xbf16>
    %c3_19 = arith.constant 3 : index
    %c0_20 = arith.constant 0 : index
    %c0_21 = arith.constant 0 : index
    %19 = vector.load %arg2[%c3_19, %c0_20, %c0_21] : memref<9x64x64xbf16, #tpu.memory_space<vmem>>, vector<1x64x64xbf16>
    %20 = vector.shape_cast %19 : vector<1x64x64xbf16> to vector<64x64xbf16>
    %cst_22 = arith.constant dense<0.000000e+00> : vector<64x3xf32>
    %21 = tpu.matmul %20, %18, %cst_22 {dimension_numbers = #tpu.dot_dimension_numbers<[1], [0], [0], [1], [0, 0, 1, 1], [], []>} : vector<64x64xbf16>, vector<64x3xbf16>, vector<64x3xf32> -> vector<64x3xf32>
    %22 = arith.addf %16, %21 : vector<64x3xf32>
    %c0_23 = arith.constant 0 : index
    %c0_24 = arith.constant 0 : index
    %c4 = arith.constant 4 : index
    %23 = vector.load %arg1[%c0_23, %c0_24, %c4] : memref<1x64x11xbf16, #tpu.memory_space<vmem>>, vector<1x64x3xbf16>
    %24 = vector.shape_cast %23 : vector<1x64x3xbf16> to vector<64x3xbf16>
    %c4_25 = arith.constant 4 : index
    %c0_26 = arith.constant 0 : index
    %c0_27 = arith.constant 0 : index
    %25 = vector.load %arg2[%c4_25, %c0_26, %c0_27] : memref<9x64x64xbf16, #tpu.memory_space<vmem>>, vector<1x64x64xbf16>
    %26 = vector.shape_cast %25 : vector<1x64x64xbf16> to vector<64x64xbf16>
    %cst_28 = arith.constant dense<0.000000e+00> : vector<64x3xf32>
    %27 = tpu.matmul %26, %24, %cst_28 {dimension_numbers = #tpu.dot_dimension_numbers<[1], [0], [0], [1], [0, 0, 1, 1], [], []>} : vector<64x64xbf16>, vector<64x3xbf16>, vector<64x3xf32> -> vector<64x3xf32>
    %28 = arith.addf %22, %27 : vector<64x3xf32>
    %c0_29 = arith.constant 0 : index
    %c0_30 = arith.constant 0 : index
    %c5 = arith.constant 5 : index
    %29 = vector.load %arg1[%c0_29, %c0_30, %c5] : memref<1x64x11xbf16, #tpu.memory_space<vmem>>, vector<1x64x3xbf16>
    %30 = vector.shape_cast %29 : vector<1x64x3xbf16> to vector<64x3xbf16>
    %c5_31 = arith.constant 5 : index
    %c0_32 = arith.constant 0 : index
    %c0_33 = arith.constant 0 : index
    %31 = vector.load %arg2[%c5_31, %c0_32, %c0_33] : memref<9x64x64xbf16, #tpu.memory_space<vmem>>, vector<1x64x64xbf16>
    %32 = vector.shape_cast %31 : vector<1x64x64xbf16> to vector<64x64xbf16>
    %cst_34 = arith.constant dense<0.000000e+00> : vector<64x3xf32>
    %33 = tpu.matmul %32, %30, %cst_34 {dimension_numbers = #tpu.dot_dimension_numbers<[1], [0], [0], [1], [0, 0, 1, 1], [], []>} : vector<64x64xbf16>, vector<64x3xbf16>, vector<64x3xf32> -> vector<64x3xf32>
    %34 = arith.addf %28, %33 : vector<64x3xf32>
    %c0_35 = arith.constant 0 : index
    %c0_36 = arith.constant 0 : index
    %c6 = arith.constant 6 : index
    %35 = vector.load %arg1[%c0_35, %c0_36, %c6] : memref<1x64x11xbf16, #tpu.memory_space<vmem>>, vector<1x64x3xbf16>
    %36 = vector.shape_cast %35 : vector<1x64x3xbf16> to vector<64x3xbf16>
    %c6_37 = arith.constant 6 : index
    %c0_38 = arith.constant 0 : index
    %c0_39 = arith.constant 0 : index
    %37 = vector.load %arg2[%c6_37, %c0_38, %c0_39] : memref<9x64x64xbf16, #tpu.memory_space<vmem>>, vector<1x64x64xbf16>
    %38 = vector.shape_cast %37 : vector<1x64x64xbf16> to vector<64x64xbf16>
    %cst_40 = arith.constant dense<0.000000e+00> : vector<64x3xf32>
    %39 = tpu.matmul %38, %36, %cst_40 {dimension_numbers = #tpu.dot_dimension_numbers<[1], [0], [0], [1], [0, 0, 1, 1], [], []>} : vector<64x64xbf16>, vector<64x3xbf16>, vector<64x3xf32> -> vector<64x3xf32>
    %40 = arith.addf %34, %39 : vector<64x3xf32>
    %c0_41 = arith.constant 0 : index
    %c0_42 = arith.constant 0 : index
    %c7 = arith.constant 7 : index
    %41 = vector.load %arg1[%c0_41, %c0_42, %c7] : memref<1x64x11xbf16, #tpu.memory_space<vmem>>, vector<1x64x3xbf16>
    %42 = vector.shape_cast %41 : vector<1x64x3xbf16> to vector<64x3xbf16>
    %c7_43 = arith.constant 7 : index
    %c0_44 = arith.constant 0 : index
    %c0_45 = arith.constant 0 : index
    %43 = vector.load %arg2[%c7_43, %c0_44, %c0_45] : memref<9x64x64xbf16, #tpu.memory_space<vmem>>, vector<1x64x64xbf16>
    %44 = vector.shape_cast %43 : vector<1x64x64xbf16> to vector<64x64xbf16>
    %cst_46 = arith.constant dense<0.000000e+00> : vector<64x3xf32>
    %45 = tpu.matmul %44, %42, %cst_46 {dimension_numbers = #tpu.dot_dimension_numbers<[1], [0], [0], [1], [0, 0, 1, 1], [], []>} : vector<64x64xbf16>, vector<64x3xbf16>, vector<64x3xf32> -> vector<64x3xf32>
    %46 = arith.addf %40, %45 : vector<64x3xf32>
    %c0_47 = arith.constant 0 : index
    %c0_48 = arith.constant 0 : index
    %c8 = arith.constant 8 : index
    %47 = vector.load %arg1[%c0_47, %c0_48, %c8] : memref<1x64x11xbf16, #tpu.memory_space<vmem>>, vector<1x64x3xbf16>
    %48 = vector.shape_cast %47 : vector<1x64x3xbf16> to vector<64x3xbf16>
    %c8_49 = arith.constant 8 : index
    %c0_50 = arith.constant 0 : index
    %c0_51 = arith.constant 0 : index
    %49 = vector.load %arg2[%c8_49, %c0_50, %c0_51] : memref<9x64x64xbf16, #tpu.memory_space<vmem>>, vector<1x64x64xbf16>
    %50 = vector.shape_cast %49 : vector<1x64x64xbf16> to vector<64x64xbf16>
    %cst_52 = arith.constant dense<0.000000e+00> : vector<64x3xf32>
    %51 = tpu.matmul %50, %48, %cst_52 {dimension_numbers = #tpu.dot_dimension_numbers<[1], [0], [0], [1], [0, 0, 1, 1], [], []>} : vector<64x64xbf16>, vector<64x3xbf16>, vector<64x3xf32> -> vector<64x3xf32>
    %52 = arith.addf %46, %51 : vector<64x3xf32>
    %c0_53 = arith.constant 0 : index
    %c0_54 = arith.constant 0 : index
    %53 = vector.load %arg3[%c0_53, %c0_54] : memref<64x1xf32, #tpu.memory_space<vmem>>, vector<64x1xf32>
    %54 = vector.broadcast %53 : vector<64x1xf32> to vector<64x3xf32>
    %55 = arith.addf %52, %54 : vector<64x3xf32>
    %cst_55 = arith.constant 0.000000e+00 : f32
    %56 = vector.broadcast %cst_55 : f32 to vector<64x3xf32>
    %57 = arith.maximumf %55, %56 : vector<64x3xf32>
    %c0_56 = arith.constant 0 : index
    %c0_57 = arith.constant 0 : index
    %c0_58 = arith.constant 0 : index
    %58 = vector.load %arg4[%c0_56, %c0_57, %c0_58] : memref<1x64x3xf32, #tpu.memory_space<vmem>>, vector<1x64x3xf32>
    %59 = vector.shape_cast %58 : vector<1x64x3xf32> to vector<64x3xf32>
    %60 = vector.shape_cast %57 : vector<64x3xf32> to vector<1x64x3xf32>
    tpu.vector_store %arg4[%c0_56, %c0_57, %c0_58], %60 {strides = array<i32>} : memref<1x64x3xf32, #tpu.memory_space<vmem>>, vector<1x64x3xf32>,
    return
  }
  func.func @transform_0(%arg0: i32) -> (i32, i32, i32) {
    %c0_i32 = arith.constant 0 : i32
    %c0_i32_0 = arith.constant 0 : i32
    %c0_i32_1 = arith.constant 0 : i32
    return %arg0, %c0_i32, %c0_i32_0 : i32, i32, i32
  }
  func.func @transform_1(%arg0: i32) -> (i32, i32, i32) {
    %c0_i32 = arith.constant 0 : i32
    %c0_i32_0 = arith.constant 0 : i32
    %c0_i32_1 = arith.constant 0 : i32
    %c0_i32_2 = arith.constant 0 : i32
    return %c0_i32, %c0_i32_0, %c0_i32_1 : i32, i32, i32
  }
  func.func @transform_2(%arg0: i32) -> (i32, i32) {
    %c0_i32 = arith.constant 0 : i32
    %c0_i32_0 = arith.constant 0 : i32
    %c0_i32_1 = arith.constant 0 : i32
    return %c0_i32, %c0_i32_0 : i32, i32
  }
  func.func @transform_3(%arg0: i32) -> (i32, i32, i32) {
    %c0_i32 = arith.constant 0 : i32
    %c0_i32_0 = arith.constant 0 : i32
    %c0_i32_1 = arith.constant 0 : i32
    return %arg0, %c0_i32, %c0_i32_0 : i32, i32, i32
  }
}

module attributes {stable_mosaic.version = 11 : i64} {
  func.func @_conv_taps_kernel(%arg0: i32, %arg1: memref<1x128x18xbf16, #tpu.memory_space<vmem>>, %arg2: memref<9x32x128xbf16, #tpu.memory_space<vmem>>, %arg3: memref<32x1xf32, #tpu.memory_space<vmem>>, %arg4: memref<1x32x8xf32, #tpu.memory_space<vmem>>) attributes {dimension_semantics = [#tpu.dimension_semantics<parallel>], iteration_bounds = array<i64: 2>, scalar_prefetch = 0 : i64, scratch_operands = 0 : i64, tpu.core_type = #tpu.core_type<tc>, window_params = [{transform_indices = @transform_0, window_bounds = array<i64: 1, 128, 18>}, {pipeline_mode = #tpu.pipeline_mode<synchronous>, transform_indices = @transform_1, window_bounds = array<i64: 9, 32, 128>}, {pipeline_mode = #tpu.pipeline_mode<synchronous>, transform_indices = @transform_2, window_bounds = array<i64: 32, 1>}, {transform_indices = @transform_3, window_bounds = array<i64: 1, 32, 8>}]} {
    %c0 = arith.constant 0 : index
    %c0_0 = arith.constant 0 : index
    %c0_1 = arith.constant 0 : index
    %0 = vector.load %arg1[%c0, %c0_0, %c0_1] : memref<1x128x18xbf16, #tpu.memory_space<vmem>>, vector<1x128x8xbf16>
    %1 = vector.shape_cast %0 : vector<1x128x8xbf16> to vector<128x8xbf16>
    %c0_2 = arith.constant 0 : index
    %c0_3 = arith.constant 0 : index
    %c0_4 = arith.constant 0 : index
    %2 = vector.load %arg2[%c0_2, %c0_3, %c0_4] : memref<9x32x128xbf16, #tpu.memory_space<vmem>>, vector<1x32x128xbf16>
    %3 = vector.shape_cast %2 : vector<1x32x128xbf16> to vector<32x128xbf16>
    %cst = arith.constant dense<0.000000e+00> : vector<32x8xf32>
    %4 = tpu.matmul %3, %1, %cst {dimension_numbers = #tpu.dot_dimension_numbers<[1], [0], [0], [1], [0, 0, 1, 1], [], []>} : vector<32x128xbf16>, vector<128x8xbf16>, vector<32x8xf32> -> vector<32x8xf32>
    %c0_5 = arith.constant 0 : index
    %c0_6 = arith.constant 0 : index
    %c1 = arith.constant 1 : index
    %5 = vector.load %arg1[%c0_5, %c0_6, %c1] : memref<1x128x18xbf16, #tpu.memory_space<vmem>>, vector<1x128x8xbf16>
    %6 = vector.shape_cast %5 : vector<1x128x8xbf16> to vector<128x8xbf16>
    %c1_7 = arith.constant 1 : index
    %c0_8 = arith.constant 0 : index
    %c0_9 = arith.constant 0 : index
    %7 = vector.load %arg2[%c1_7, %c0_8, %c0_9] : memref<9x32x128xbf16, #tpu.memory_space<vmem>>, vector<1x32x128xbf16>
    %8 = vector.shape_cast %7 : vector<1x32x128xbf16> to vector<32x128xbf16>
    %cst_10 = arith.constant dense<0.000000e+00> : vector<32x8xf32>
    %9 = tpu.matmul %8, %6, %cst_10 {dimension_numbers = #tpu.dot_dimension_numbers<[1], [0], [0], [1], [0, 0, 1, 1], [], []>} : vector<32x128xbf16>, vector<128x8xbf16>, vector<32x8xf32> -> vector<32x8xf32>
    %10 = arith.addf %4, %9 : vector<32x8xf32>
    %c0_11 = arith.constant 0 : index
    %c0_12 = arith.constant 0 : index
    %c2 = arith.constant 2 : index
    %11 = vector.load %arg1[%c0_11, %c0_12, %c2] : memref<1x128x18xbf16, #tpu.memory_space<vmem>>, vector<1x128x8xbf16>
    %12 = vector.shape_cast %11 : vector<1x128x8xbf16> to vector<128x8xbf16>
    %c2_13 = arith.constant 2 : index
    %c0_14 = arith.constant 0 : index
    %c0_15 = arith.constant 0 : index
    %13 = vector.load %arg2[%c2_13, %c0_14, %c0_15] : memref<9x32x128xbf16, #tpu.memory_space<vmem>>, vector<1x32x128xbf16>
    %14 = vector.shape_cast %13 : vector<1x32x128xbf16> to vector<32x128xbf16>
    %cst_16 = arith.constant dense<0.000000e+00> : vector<32x8xf32>
    %15 = tpu.matmul %14, %12, %cst_16 {dimension_numbers = #tpu.dot_dimension_numbers<[1], [0], [0], [1], [0, 0, 1, 1], [], []>} : vector<32x128xbf16>, vector<128x8xbf16>, vector<32x8xf32> -> vector<32x8xf32>
    %16 = arith.addf %10, %15 : vector<32x8xf32>
    %c0_17 = arith.constant 0 : index
    %c0_18 = arith.constant 0 : index
    %c4 = arith.constant 4 : index
    %17 = vector.load %arg1[%c0_17, %c0_18, %c4] : memref<1x128x18xbf16, #tpu.memory_space<vmem>>, vector<1x128x8xbf16>
    %18 = vector.shape_cast %17 : vector<1x128x8xbf16> to vector<128x8xbf16>
    %c3 = arith.constant 3 : index
    %c0_19 = arith.constant 0 : index
    %c0_20 = arith.constant 0 : index
    %19 = vector.load %arg2[%c3, %c0_19, %c0_20] : memref<9x32x128xbf16, #tpu.memory_space<vmem>>, vector<1x32x128xbf16>
    %20 = vector.shape_cast %19 : vector<1x32x128xbf16> to vector<32x128xbf16>
    %cst_21 = arith.constant dense<0.000000e+00> : vector<32x8xf32>
    %21 = tpu.matmul %20, %18, %cst_21 {dimension_numbers = #tpu.dot_dimension_numbers<[1], [0], [0], [1], [0, 0, 1, 1], [], []>} : vector<32x128xbf16>, vector<128x8xbf16>, vector<32x8xf32> -> vector<32x8xf32>
    %22 = arith.addf %16, %21 : vector<32x8xf32>
    %c0_22 = arith.constant 0 : index
    %c0_23 = arith.constant 0 : index
    %c5 = arith.constant 5 : index
    %23 = vector.load %arg1[%c0_22, %c0_23, %c5] : memref<1x128x18xbf16, #tpu.memory_space<vmem>>, vector<1x128x8xbf16>
    %24 = vector.shape_cast %23 : vector<1x128x8xbf16> to vector<128x8xbf16>
    %c4_24 = arith.constant 4 : index
    %c0_25 = arith.constant 0 : index
    %c0_26 = arith.constant 0 : index
    %25 = vector.load %arg2[%c4_24, %c0_25, %c0_26] : memref<9x32x128xbf16, #tpu.memory_space<vmem>>, vector<1x32x128xbf16>
    %26 = vector.shape_cast %25 : vector<1x32x128xbf16> to vector<32x128xbf16>
    %cst_27 = arith.constant dense<0.000000e+00> : vector<32x8xf32>
    %27 = tpu.matmul %26, %24, %cst_27 {dimension_numbers = #tpu.dot_dimension_numbers<[1], [0], [0], [1], [0, 0, 1, 1], [], []>} : vector<32x128xbf16>, vector<128x8xbf16>, vector<32x8xf32> -> vector<32x8xf32>
    %28 = arith.addf %22, %27 : vector<32x8xf32>
    %c0_28 = arith.constant 0 : index
    %c0_29 = arith.constant 0 : index
    %c6 = arith.constant 6 : index
    %29 = vector.load %arg1[%c0_28, %c0_29, %c6] : memref<1x128x18xbf16, #tpu.memory_space<vmem>>, vector<1x128x8xbf16>
    %30 = vector.shape_cast %29 : vector<1x128x8xbf16> to vector<128x8xbf16>
    %c5_30 = arith.constant 5 : index
    %c0_31 = arith.constant 0 : index
    %c0_32 = arith.constant 0 : index
    %31 = vector.load %arg2[%c5_30, %c0_31, %c0_32] : memref<9x32x128xbf16, #tpu.memory_space<vmem>>, vector<1x32x128xbf16>
    %32 = vector.shape_cast %31 : vector<1x32x128xbf16> to vector<32x128xbf16>
    %cst_33 = arith.constant dense<0.000000e+00> : vector<32x8xf32>
    %33 = tpu.matmul %32, %30, %cst_33 {dimension_numbers = #tpu.dot_dimension_numbers<[1], [0], [0], [1], [0, 0, 1, 1], [], []>} : vector<32x128xbf16>, vector<128x8xbf16>, vector<32x8xf32> -> vector<32x8xf32>
    %34 = arith.addf %28, %33 : vector<32x8xf32>
    %c0_34 = arith.constant 0 : index
    %c0_35 = arith.constant 0 : index
    %c8 = arith.constant 8 : index
    %35 = vector.load %arg1[%c0_34, %c0_35, %c8] : memref<1x128x18xbf16, #tpu.memory_space<vmem>>, vector<1x128x8xbf16>
    %36 = vector.shape_cast %35 : vector<1x128x8xbf16> to vector<128x8xbf16>
    %c6_36 = arith.constant 6 : index
    %c0_37 = arith.constant 0 : index
    %c0_38 = arith.constant 0 : index
    %37 = vector.load %arg2[%c6_36, %c0_37, %c0_38] : memref<9x32x128xbf16, #tpu.memory_space<vmem>>, vector<1x32x128xbf16>
    %38 = vector.shape_cast %37 : vector<1x32x128xbf16> to vector<32x128xbf16>
    %cst_39 = arith.constant dense<0.000000e+00> : vector<32x8xf32>
    %39 = tpu.matmul %38, %36, %cst_39 {dimension_numbers = #tpu.dot_dimension_numbers<[1], [0], [0], [1], [0, 0, 1, 1], [], []>} : vector<32x128xbf16>, vector<128x8xbf16>, vector<32x8xf32> -> vector<32x8xf32>
    %40 = arith.addf %34, %39 : vector<32x8xf32>
    %c0_40 = arith.constant 0 : index
    %c0_41 = arith.constant 0 : index
    %c9 = arith.constant 9 : index
    %41 = vector.load %arg1[%c0_40, %c0_41, %c9] : memref<1x128x18xbf16, #tpu.memory_space<vmem>>, vector<1x128x8xbf16>
    %42 = vector.shape_cast %41 : vector<1x128x8xbf16> to vector<128x8xbf16>
    %c7 = arith.constant 7 : index
    %c0_42 = arith.constant 0 : index
    %c0_43 = arith.constant 0 : index
    %43 = vector.load %arg2[%c7, %c0_42, %c0_43] : memref<9x32x128xbf16, #tpu.memory_space<vmem>>, vector<1x32x128xbf16>
    %44 = vector.shape_cast %43 : vector<1x32x128xbf16> to vector<32x128xbf16>
    %cst_44 = arith.constant dense<0.000000e+00> : vector<32x8xf32>
    %45 = tpu.matmul %44, %42, %cst_44 {dimension_numbers = #tpu.dot_dimension_numbers<[1], [0], [0], [1], [0, 0, 1, 1], [], []>} : vector<32x128xbf16>, vector<128x8xbf16>, vector<32x8xf32> -> vector<32x8xf32>
    %46 = arith.addf %40, %45 : vector<32x8xf32>
    %c0_45 = arith.constant 0 : index
    %c0_46 = arith.constant 0 : index
    %c10 = arith.constant 10 : index
    %47 = vector.load %arg1[%c0_45, %c0_46, %c10] : memref<1x128x18xbf16, #tpu.memory_space<vmem>>, vector<1x128x8xbf16>
    %48 = vector.shape_cast %47 : vector<1x128x8xbf16> to vector<128x8xbf16>
    %c8_47 = arith.constant 8 : index
    %c0_48 = arith.constant 0 : index
    %c0_49 = arith.constant 0 : index
    %49 = vector.load %arg2[%c8_47, %c0_48, %c0_49] : memref<9x32x128xbf16, #tpu.memory_space<vmem>>, vector<1x32x128xbf16>
    %50 = vector.shape_cast %49 : vector<1x32x128xbf16> to vector<32x128xbf16>
    %cst_50 = arith.constant dense<0.000000e+00> : vector<32x8xf32>
    %51 = tpu.matmul %50, %48, %cst_50 {dimension_numbers = #tpu.dot_dimension_numbers<[1], [0], [0], [1], [0, 0, 1, 1], [], []>} : vector<32x128xbf16>, vector<128x8xbf16>, vector<32x8xf32> -> vector<32x8xf32>
    %52 = arith.addf %46, %51 : vector<32x8xf32>
    %c0_51 = arith.constant 0 : index
    %c0_52 = arith.constant 0 : index
    %53 = vector.load %arg3[%c0_51, %c0_52] : memref<32x1xf32, #tpu.memory_space<vmem>>, vector<32x1xf32>
    %54 = vector.broadcast %53 : vector<32x1xf32> to vector<32x8xf32>
    %55 = arith.addf %52, %54 : vector<32x8xf32>
    %cst_53 = arith.constant 0.000000e+00 : f32
    %56 = vector.broadcast %cst_53 : f32 to vector<32x8xf32>
    %57 = arith.maximumf %55, %56 : vector<32x8xf32>
    %c0_54 = arith.constant 0 : index
    %c0_55 = arith.constant 0 : index
    %c0_56 = arith.constant 0 : index
    %58 = vector.load %arg4[%c0_54, %c0_55, %c0_56] : memref<1x32x8xf32, #tpu.memory_space<vmem>>, vector<1x32x8xf32>
    %59 = vector.shape_cast %58 : vector<1x32x8xf32> to vector<32x8xf32>
    %60 = vector.shape_cast %57 : vector<32x8xf32> to vector<1x32x8xf32>
    tpu.vector_store %arg4[%c0_54, %c0_55, %c0_56], %60 {strides = array<i32>} : memref<1x32x8xf32, #tpu.memory_space<vmem>>, vector<1x32x8xf32>,
    return
  }
  func.func @transform_0(%arg0: i32) -> (i32, i32, i32) {
    %c0_i32 = arith.constant 0 : i32
    %c0_i32_0 = arith.constant 0 : i32
    %c0_i32_1 = arith.constant 0 : i32
    return %arg0, %c0_i32, %c0_i32_0 : i32, i32, i32
  }
  func.func @transform_1(%arg0: i32) -> (i32, i32, i32) {
    %c0_i32 = arith.constant 0 : i32
    %c0_i32_0 = arith.constant 0 : i32
    %c0_i32_1 = arith.constant 0 : i32
    %c0_i32_2 = arith.constant 0 : i32
    return %c0_i32, %c0_i32_0, %c0_i32_1 : i32, i32, i32
  }
  func.func @transform_2(%arg0: i32) -> (i32, i32) {
    %c0_i32 = arith.constant 0 : i32
    %c0_i32_0 = arith.constant 0 : i32
    %c0_i32_1 = arith.constant 0 : i32
    return %c0_i32, %c0_i32_0 : i32, i32
  }
  func.func @transform_3(%arg0: i32) -> (i32, i32, i32) {
    %c0_i32 = arith.constant 0 : i32
    %c0_i32_0 = arith.constant 0 : i32
    %c0_i32_1 = arith.constant 0 : i32
    return %arg0, %c0_i32, %c0_i32_0 : i32, i32, i32
  }
}

module attributes {stable_mosaic.version = 11 : i64} {
  func.func @_conv_taps_kernel(%arg0: i32, %arg1: memref<1x32x18xbf16, #tpu.memory_space<vmem>>, %arg2: memref<9x32x32xbf16, #tpu.memory_space<vmem>>, %arg3: memref<32x1xf32, #tpu.memory_space<vmem>>, %arg4: memref<1x32x8xf32, #tpu.memory_space<vmem>>) attributes {dimension_semantics = [#tpu.dimension_semantics<parallel>], iteration_bounds = array<i64: 2>, scalar_prefetch = 0 : i64, scratch_operands = 0 : i64, tpu.core_type = #tpu.core_type<tc>, window_params = [{transform_indices = @transform_0, window_bounds = array<i64: 1, 32, 18>}, {pipeline_mode = #tpu.pipeline_mode<synchronous>, transform_indices = @transform_1, window_bounds = array<i64: 9, 32, 32>}, {pipeline_mode = #tpu.pipeline_mode<synchronous>, transform_indices = @transform_2, window_bounds = array<i64: 32, 1>}, {transform_indices = @transform_3, window_bounds = array<i64: 1, 32, 8>}]} {
    %c0 = arith.constant 0 : index
    %c0_0 = arith.constant 0 : index
    %c0_1 = arith.constant 0 : index
    %0 = vector.load %arg1[%c0, %c0_0, %c0_1] : memref<1x32x18xbf16, #tpu.memory_space<vmem>>, vector<1x32x8xbf16>
    %1 = vector.shape_cast %0 : vector<1x32x8xbf16> to vector<32x8xbf16>
    %c0_2 = arith.constant 0 : index
    %c0_3 = arith.constant 0 : index
    %c0_4 = arith.constant 0 : index
    %2 = vector.load %arg2[%c0_2, %c0_3, %c0_4] : memref<9x32x32xbf16, #tpu.memory_space<vmem>>, vector<1x32x32xbf16>
    %3 = vector.shape_cast %2 : vector<1x32x32xbf16> to vector<32x32xbf16>
    %cst = arith.constant dense<0.000000e+00> : vector<32x8xf32>
    %4 = tpu.matmul %3, %1, %cst {dimension_numbers = #tpu.dot_dimension_numbers<[1], [0], [0], [1], [0, 0, 1, 1], [], []>} : vector<32x32xbf16>, vector<32x8xbf16>, vector<32x8xf32> -> vector<32x8xf32>
    %c0_5 = arith.constant 0 : index
    %c0_6 = arith.constant 0 : index
    %c1 = arith.constant 1 : index
    %5 = vector.load %arg1[%c0_5, %c0_6, %c1] : memref<1x32x18xbf16, #tpu.memory_space<vmem>>, vector<1x32x8xbf16>
    %6 = vector.shape_cast %5 : vector<1x32x8xbf16> to vector<32x8xbf16>
    %c1_7 = arith.constant 1 : index
    %c0_8 = arith.constant 0 : index
    %c0_9 = arith.constant 0 : index
    %7 = vector.load %arg2[%c1_7, %c0_8, %c0_9] : memref<9x32x32xbf16, #tpu.memory_space<vmem>>, vector<1x32x32xbf16>
    %8 = vector.shape_cast %7 : vector<1x32x32xbf16> to vector<32x32xbf16>
    %cst_10 = arith.constant dense<0.000000e+00> : vector<32x8xf32>
    %9 = tpu.matmul %8, %6, %cst_10 {dimension_numbers = #tpu.dot_dimension_numbers<[1], [0], [0], [1], [0, 0, 1, 1], [], []>} : vector<32x32xbf16>, vector<32x8xbf16>, vector<32x8xf32> -> vector<32x8xf32>
    %10 = arith.addf %4, %9 : vector<32x8xf32>
    %c0_11 = arith.constant 0 : index
    %c0_12 = arith.constant 0 : index
    %c2 = arith.constant 2 : index
    %11 = vector.load %arg1[%c0_11, %c0_12, %c2] : memref<1x32x18xbf16, #tpu.memory_space<vmem>>, vector<1x32x8xbf16>
    %12 = vector.shape_cast %11 : vector<1x32x8xbf16> to vector<32x8xbf16>
    %c2_13 = arith.constant 2 : index
    %c0_14 = arith.constant 0 : index
    %c0_15 = arith.constant 0 : index
    %13 = vector.load %arg2[%c2_13, %c0_14, %c0_15] : memref<9x32x32xbf16, #tpu.memory_space<vmem>>, vector<1x32x32xbf16>
    %14 = vector.shape_cast %13 : vector<1x32x32xbf16> to vector<32x32xbf16>
    %cst_16 = arith.constant dense<0.000000e+00> : vector<32x8xf32>
    %15 = tpu.matmul %14, %12, %cst_16 {dimension_numbers = #tpu.dot_dimension_numbers<[1], [0], [0], [1], [0, 0, 1, 1], [], []>} : vector<32x32xbf16>, vector<32x8xbf16>, vector<32x8xf32> -> vector<32x8xf32>
    %16 = arith.addf %10, %15 : vector<32x8xf32>
    %c0_17 = arith.constant 0 : index
    %c0_18 = arith.constant 0 : index
    %c4 = arith.constant 4 : index
    %17 = vector.load %arg1[%c0_17, %c0_18, %c4] : memref<1x32x18xbf16, #tpu.memory_space<vmem>>, vector<1x32x8xbf16>
    %18 = vector.shape_cast %17 : vector<1x32x8xbf16> to vector<32x8xbf16>
    %c3 = arith.constant 3 : index
    %c0_19 = arith.constant 0 : index
    %c0_20 = arith.constant 0 : index
    %19 = vector.load %arg2[%c3, %c0_19, %c0_20] : memref<9x32x32xbf16, #tpu.memory_space<vmem>>, vector<1x32x32xbf16>
    %20 = vector.shape_cast %19 : vector<1x32x32xbf16> to vector<32x32xbf16>
    %cst_21 = arith.constant dense<0.000000e+00> : vector<32x8xf32>
    %21 = tpu.matmul %20, %18, %cst_21 {dimension_numbers = #tpu.dot_dimension_numbers<[1], [0], [0], [1], [0, 0, 1, 1], [], []>} : vector<32x32xbf16>, vector<32x8xbf16>, vector<32x8xf32> -> vector<32x8xf32>
    %22 = arith.addf %16, %21 : vector<32x8xf32>
    %c0_22 = arith.constant 0 : index
    %c0_23 = arith.constant 0 : index
    %c5 = arith.constant 5 : index
    %23 = vector.load %arg1[%c0_22, %c0_23, %c5] : memref<1x32x18xbf16, #tpu.memory_space<vmem>>, vector<1x32x8xbf16>
    %24 = vector.shape_cast %23 : vector<1x32x8xbf16> to vector<32x8xbf16>
    %c4_24 = arith.constant 4 : index
    %c0_25 = arith.constant 0 : index
    %c0_26 = arith.constant 0 : index
    %25 = vector.load %arg2[%c4_24, %c0_25, %c0_26] : memref<9x32x32xbf16, #tpu.memory_space<vmem>>, vector<1x32x32xbf16>
    %26 = vector.shape_cast %25 : vector<1x32x32xbf16> to vector<32x32xbf16>
    %cst_27 = arith.constant dense<0.000000e+00> : vector<32x8xf32>
    %27 = tpu.matmul %26, %24, %cst_27 {dimension_numbers = #tpu.dot_dimension_numbers<[1], [0], [0], [1], [0, 0, 1, 1], [], []>} : vector<32x32xbf16>, vector<32x8xbf16>, vector<32x8xf32> -> vector<32x8xf32>
    %28 = arith.addf %22, %27 : vector<32x8xf32>
    %c0_28 = arith.constant 0 : index
    %c0_29 = arith.constant 0 : index
    %c6 = arith.constant 6 : index
    %29 = vector.load %arg1[%c0_28, %c0_29, %c6] : memref<1x32x18xbf16, #tpu.memory_space<vmem>>, vector<1x32x8xbf16>
    %30 = vector.shape_cast %29 : vector<1x32x8xbf16> to vector<32x8xbf16>
    %c5_30 = arith.constant 5 : index
    %c0_31 = arith.constant 0 : index
    %c0_32 = arith.constant 0 : index
    %31 = vector.load %arg2[%c5_30, %c0_31, %c0_32] : memref<9x32x32xbf16, #tpu.memory_space<vmem>>, vector<1x32x32xbf16>
    %32 = vector.shape_cast %31 : vector<1x32x32xbf16> to vector<32x32xbf16>
    %cst_33 = arith.constant dense<0.000000e+00> : vector<32x8xf32>
    %33 = tpu.matmul %32, %30, %cst_33 {dimension_numbers = #tpu.dot_dimension_numbers<[1], [0], [0], [1], [0, 0, 1, 1], [], []>} : vector<32x32xbf16>, vector<32x8xbf16>, vector<32x8xf32> -> vector<32x8xf32>
    %34 = arith.addf %28, %33 : vector<32x8xf32>
    %c0_34 = arith.constant 0 : index
    %c0_35 = arith.constant 0 : index
    %c8 = arith.constant 8 : index
    %35 = vector.load %arg1[%c0_34, %c0_35, %c8] : memref<1x32x18xbf16, #tpu.memory_space<vmem>>, vector<1x32x8xbf16>
    %36 = vector.shape_cast %35 : vector<1x32x8xbf16> to vector<32x8xbf16>
    %c6_36 = arith.constant 6 : index
    %c0_37 = arith.constant 0 : index
    %c0_38 = arith.constant 0 : index
    %37 = vector.load %arg2[%c6_36, %c0_37, %c0_38] : memref<9x32x32xbf16, #tpu.memory_space<vmem>>, vector<1x32x32xbf16>
    %38 = vector.shape_cast %37 : vector<1x32x32xbf16> to vector<32x32xbf16>
    %cst_39 = arith.constant dense<0.000000e+00> : vector<32x8xf32>
    %39 = tpu.matmul %38, %36, %cst_39 {dimension_numbers = #tpu.dot_dimension_numbers<[1], [0], [0], [1], [0, 0, 1, 1], [], []>} : vector<32x32xbf16>, vector<32x8xbf16>, vector<32x8xf32> -> vector<32x8xf32>
    %40 = arith.addf %34, %39 : vector<32x8xf32>
    %c0_40 = arith.constant 0 : index
    %c0_41 = arith.constant 0 : index
    %c9 = arith.constant 9 : index
    %41 = vector.load %arg1[%c0_40, %c0_41, %c9] : memref<1x32x18xbf16, #tpu.memory_space<vmem>>, vector<1x32x8xbf16>
    %42 = vector.shape_cast %41 : vector<1x32x8xbf16> to vector<32x8xbf16>
    %c7 = arith.constant 7 : index
    %c0_42 = arith.constant 0 : index
    %c0_43 = arith.constant 0 : index
    %43 = vector.load %arg2[%c7, %c0_42, %c0_43] : memref<9x32x32xbf16, #tpu.memory_space<vmem>>, vector<1x32x32xbf16>
    %44 = vector.shape_cast %43 : vector<1x32x32xbf16> to vector<32x32xbf16>
    %cst_44 = arith.constant dense<0.000000e+00> : vector<32x8xf32>
    %45 = tpu.matmul %44, %42, %cst_44 {dimension_numbers = #tpu.dot_dimension_numbers<[1], [0], [0], [1], [0, 0, 1, 1], [], []>} : vector<32x32xbf16>, vector<32x8xbf16>, vector<32x8xf32> -> vector<32x8xf32>
    %46 = arith.addf %40, %45 : vector<32x8xf32>
    %c0_45 = arith.constant 0 : index
    %c0_46 = arith.constant 0 : index
    %c10 = arith.constant 10 : index
    %47 = vector.load %arg1[%c0_45, %c0_46, %c10] : memref<1x32x18xbf16, #tpu.memory_space<vmem>>, vector<1x32x8xbf16>
    %48 = vector.shape_cast %47 : vector<1x32x8xbf16> to vector<32x8xbf16>
    %c8_47 = arith.constant 8 : index
    %c0_48 = arith.constant 0 : index
    %c0_49 = arith.constant 0 : index
    %49 = vector.load %arg2[%c8_47, %c0_48, %c0_49] : memref<9x32x32xbf16, #tpu.memory_space<vmem>>, vector<1x32x32xbf16>
    %50 = vector.shape_cast %49 : vector<1x32x32xbf16> to vector<32x32xbf16>
    %cst_50 = arith.constant dense<0.000000e+00> : vector<32x8xf32>
    %51 = tpu.matmul %50, %48, %cst_50 {dimension_numbers = #tpu.dot_dimension_numbers<[1], [0], [0], [1], [0, 0, 1, 1], [], []>} : vector<32x32xbf16>, vector<32x8xbf16>, vector<32x8xf32> -> vector<32x8xf32>
    %52 = arith.addf %46, %51 : vector<32x8xf32>
    %c0_51 = arith.constant 0 : index
    %c0_52 = arith.constant 0 : index
    %53 = vector.load %arg3[%c0_51, %c0_52] : memref<32x1xf32, #tpu.memory_space<vmem>>, vector<32x1xf32>
    %54 = vector.broadcast %53 : vector<32x1xf32> to vector<32x8xf32>
    %55 = arith.addf %52, %54 : vector<32x8xf32>
    %cst_53 = arith.constant 0.000000e+00 : f32
    %56 = vector.broadcast %cst_53 : f32 to vector<32x8xf32>
    %57 = arith.maximumf %55, %56 : vector<32x8xf32>
    %c0_54 = arith.constant 0 : index
    %c0_55 = arith.constant 0 : index
    %c0_56 = arith.constant 0 : index
    %58 = vector.load %arg4[%c0_54, %c0_55, %c0_56] : memref<1x32x8xf32, #tpu.memory_space<vmem>>, vector<1x32x8xf32>
    %59 = vector.shape_cast %58 : vector<1x32x8xf32> to vector<32x8xf32>
    %60 = vector.shape_cast %57 : vector<32x8xf32> to vector<1x32x8xf32>
    tpu.vector_store %arg4[%c0_54, %c0_55, %c0_56], %60 {strides = array<i32>} : memref<1x32x8xf32, #tpu.memory_space<vmem>>, vector<1x32x8xf32>,
    return
  }
  func.func @transform_0(%arg0: i32) -> (i32, i32, i32) {
    %c0_i32 = arith.constant 0 : i32
    %c0_i32_0 = arith.constant 0 : i32
    %c0_i32_1 = arith.constant 0 : i32
    return %arg0, %c0_i32, %c0_i32_0 : i32, i32, i32
  }
  func.func @transform_1(%arg0: i32) -> (i32, i32, i32) {
    %c0_i32 = arith.constant 0 : i32
    %c0_i32_0 = arith.constant 0 : i32
    %c0_i32_1 = arith.constant 0 : i32
    %c0_i32_2 = arith.constant 0 : i32
    return %c0_i32, %c0_i32_0, %c0_i32_1 : i32, i32, i32
  }
  func.func @transform_2(%arg0: i32) -> (i32, i32) {
    %c0_i32 = arith.constant 0 : i32
    %c0_i32_0 = arith.constant 0 : i32
    %c0_i32_1 = arith.constant 0 : i32
    return %c0_i32, %c0_i32_0 : i32, i32
  }
  func.func @transform_3(%arg0: i32) -> (i32, i32, i32) {
    %c0_i32 = arith.constant 0 : i32
    %c0_i32_0 = arith.constant 0 : i32
    %c0_i32_1 = arith.constant 0 : i32
    return %arg0, %c0_i32, %c0_i32_0 : i32, i32, i32
  }
}

module attributes {stable_mosaic.version = 11 : i64} {
  func.func @_conv_taps_kernel(%arg0: i32, %arg1: memref<1x64x38xbf16, #tpu.memory_space<vmem>>, %arg2: memref<9x16x64xbf16, #tpu.memory_space<vmem>>, %arg3: memref<16x1xf32, #tpu.memory_space<vmem>>, %arg4: memref<1x16x24xf32, #tpu.memory_space<vmem>>) attributes {dimension_semantics = [#tpu.dimension_semantics<parallel>], iteration_bounds = array<i64: 2>, scalar_prefetch = 0 : i64, scratch_operands = 0 : i64, tpu.core_type = #tpu.core_type<tc>, window_params = [{transform_indices = @transform_0, window_bounds = array<i64: 1, 64, 38>}, {pipeline_mode = #tpu.pipeline_mode<synchronous>, transform_indices = @transform_1, window_bounds = array<i64: 9, 16, 64>}, {pipeline_mode = #tpu.pipeline_mode<synchronous>, transform_indices = @transform_2, window_bounds = array<i64: 16, 1>}, {transform_indices = @transform_3, window_bounds = array<i64: 1, 16, 24>}]} {
    %c0 = arith.constant 0 : index
    %c0_0 = arith.constant 0 : index
    %c0_1 = arith.constant 0 : index
    %0 = vector.load %arg1[%c0, %c0_0, %c0_1] : memref<1x64x38xbf16, #tpu.memory_space<vmem>>, vector<1x64x24xbf16>
    %1 = vector.shape_cast %0 : vector<1x64x24xbf16> to vector<64x24xbf16>
    %c0_2 = arith.constant 0 : index
    %c0_3 = arith.constant 0 : index
    %c0_4 = arith.constant 0 : index
    %2 = vector.load %arg2[%c0_2, %c0_3, %c0_4] : memref<9x16x64xbf16, #tpu.memory_space<vmem>>, vector<1x16x64xbf16>
    %3 = vector.shape_cast %2 : vector<1x16x64xbf16> to vector<16x64xbf16>
    %cst = arith.constant dense<0.000000e+00> : vector<16x24xf32>
    %4 = tpu.matmul %3, %1, %cst {dimension_numbers = #tpu.dot_dimension_numbers<[1], [0], [0], [1], [0, 0, 1, 1], [], []>} : vector<16x64xbf16>, vector<64x24xbf16>, vector<16x24xf32> -> vector<16x24xf32>
    %c0_5 = arith.constant 0 : index
    %c0_6 = arith.constant 0 : index
    %c1 = arith.constant 1 : index
    %5 = vector.load %arg1[%c0_5, %c0_6, %c1] : memref<1x64x38xbf16, #tpu.memory_space<vmem>>, vector<1x64x24xbf16>
    %6 = vector.shape_cast %5 : vector<1x64x24xbf16> to vector<64x24xbf16>
    %c1_7 = arith.constant 1 : index
    %c0_8 = arith.constant 0 : index
    %c0_9 = arith.constant 0 : index
    %7 = vector.load %arg2[%c1_7, %c0_8, %c0_9] : memref<9x16x64xbf16, #tpu.memory_space<vmem>>, vector<1x16x64xbf16>
    %8 = vector.shape_cast %7 : vector<1x16x64xbf16> to vector<16x64xbf16>
    %cst_10 = arith.constant dense<0.000000e+00> : vector<16x24xf32>
    %9 = tpu.matmul %8, %6, %cst_10 {dimension_numbers = #tpu.dot_dimension_numbers<[1], [0], [0], [1], [0, 0, 1, 1], [], []>} : vector<16x64xbf16>, vector<64x24xbf16>, vector<16x24xf32> -> vector<16x24xf32>
    %10 = arith.addf %4, %9 : vector<16x24xf32>
    %c0_11 = arith.constant 0 : index
    %c0_12 = arith.constant 0 : index
    %c2 = arith.constant 2 : index
    %11 = vector.load %arg1[%c0_11, %c0_12, %c2] : memref<1x64x38xbf16, #tpu.memory_space<vmem>>, vector<1x64x24xbf16>
    %12 = vector.shape_cast %11 : vector<1x64x24xbf16> to vector<64x24xbf16>
    %c2_13 = arith.constant 2 : index
    %c0_14 = arith.constant 0 : index
    %c0_15 = arith.constant 0 : index
    %13 = vector.load %arg2[%c2_13, %c0_14, %c0_15] : memref<9x16x64xbf16, #tpu.memory_space<vmem>>, vector<1x16x64xbf16>
    %14 = vector.shape_cast %13 : vector<1x16x64xbf16> to vector<16x64xbf16>
    %cst_16 = arith.constant dense<0.000000e+00> : vector<16x24xf32>
    %15 = tpu.matmul %14, %12, %cst_16 {dimension_numbers = #tpu.dot_dimension_numbers<[1], [0], [0], [1], [0, 0, 1, 1], [], []>} : vector<16x64xbf16>, vector<64x24xbf16>, vector<16x24xf32> -> vector<16x24xf32>
    %16 = arith.addf %10, %15 : vector<16x24xf32>
    %c0_17 = arith.constant 0 : index
    %c0_18 = arith.constant 0 : index
    %c6 = arith.constant 6 : index
    %17 = vector.load %arg1[%c0_17, %c0_18, %c6] : memref<1x64x38xbf16, #tpu.memory_space<vmem>>, vector<1x64x24xbf16>
    %18 = vector.shape_cast %17 : vector<1x64x24xbf16> to vector<64x24xbf16>
    %c3 = arith.constant 3 : index
    %c0_19 = arith.constant 0 : index
    %c0_20 = arith.constant 0 : index
    %19 = vector.load %arg2[%c3, %c0_19, %c0_20] : memref<9x16x64xbf16, #tpu.memory_space<vmem>>, vector<1x16x64xbf16>
    %20 = vector.shape_cast %19 : vector<1x16x64xbf16> to vector<16x64xbf16>
    %cst_21 = arith.constant dense<0.000000e+00> : vector<16x24xf32>
    %21 = tpu.matmul %20, %18, %cst_21 {dimension_numbers = #tpu.dot_dimension_numbers<[1], [0], [0], [1], [0, 0, 1, 1], [], []>} : vector<16x64xbf16>, vector<64x24xbf16>, vector<16x24xf32> -> vector<16x24xf32>
    %22 = arith.addf %16, %21 : vector<16x24xf32>
    %c0_22 = arith.constant 0 : index
    %c0_23 = arith.constant 0 : index
    %c7 = arith.constant 7 : index
    %23 = vector.load %arg1[%c0_22, %c0_23, %c7] : memref<1x64x38xbf16, #tpu.memory_space<vmem>>, vector<1x64x24xbf16>
    %24 = vector.shape_cast %23 : vector<1x64x24xbf16> to vector<64x24xbf16>
    %c4 = arith.constant 4 : index
    %c0_24 = arith.constant 0 : index
    %c0_25 = arith.constant 0 : index
    %25 = vector.load %arg2[%c4, %c0_24, %c0_25] : memref<9x16x64xbf16, #tpu.memory_space<vmem>>, vector<1x16x64xbf16>
    %26 = vector.shape_cast %25 : vector<1x16x64xbf16> to vector<16x64xbf16>
    %cst_26 = arith.constant dense<0.000000e+00> : vector<16x24xf32>
    %27 = tpu.matmul %26, %24, %cst_26 {dimension_numbers = #tpu.dot_dimension_numbers<[1], [0], [0], [1], [0, 0, 1, 1], [], []>} : vector<16x64xbf16>, vector<64x24xbf16>, vector<16x24xf32> -> vector<16x24xf32>
    %28 = arith.addf %22, %27 : vector<16x24xf32>
    %c0_27 = arith.constant 0 : index
    %c0_28 = arith.constant 0 : index
    %c8 = arith.constant 8 : index
    %29 = vector.load %arg1[%c0_27, %c0_28, %c8] : memref<1x64x38xbf16, #tpu.memory_space<vmem>>, vector<1x64x24xbf16>
    %30 = vector.shape_cast %29 : vector<1x64x24xbf16> to vector<64x24xbf16>
    %c5 = arith.constant 5 : index
    %c0_29 = arith.constant 0 : index
    %c0_30 = arith.constant 0 : index
    %31 = vector.load %arg2[%c5, %c0_29, %c0_30] : memref<9x16x64xbf16, #tpu.memory_space<vmem>>, vector<1x16x64xbf16>
    %32 = vector.shape_cast %31 : vector<1x16x64xbf16> to vector<16x64xbf16>
    %cst_31 = arith.constant dense<0.000000e+00> : vector<16x24xf32>
    %33 = tpu.matmul %32, %30, %cst_31 {dimension_numbers = #tpu.dot_dimension_numbers<[1], [0], [0], [1], [0, 0, 1, 1], [], []>} : vector<16x64xbf16>, vector<64x24xbf16>, vector<16x24xf32> -> vector<16x24xf32>
    %34 = arith.addf %28, %33 : vector<16x24xf32>
    %c0_32 = arith.constant 0 : index
    %c0_33 = arith.constant 0 : index
    %c12 = arith.constant 12 : index
    %35 = vector.load %arg1[%c0_32, %c0_33, %c12] : memref<1x64x38xbf16, #tpu.memory_space<vmem>>, vector<1x64x24xbf16>
    %36 = vector.shape_cast %35 : vector<1x64x24xbf16> to vector<64x24xbf16>
    %c6_34 = arith.constant 6 : index
    %c0_35 = arith.constant 0 : index
    %c0_36 = arith.constant 0 : index
    %37 = vector.load %arg2[%c6_34, %c0_35, %c0_36] : memref<9x16x64xbf16, #tpu.memory_space<vmem>>, vector<1x16x64xbf16>
    %38 = vector.shape_cast %37 : vector<1x16x64xbf16> to vector<16x64xbf16>
    %cst_37 = arith.constant dense<0.000000e+00> : vector<16x24xf32>
    %39 = tpu.matmul %38, %36, %cst_37 {dimension_numbers = #tpu.dot_dimension_numbers<[1], [0], [0], [1], [0, 0, 1, 1], [], []>} : vector<16x64xbf16>, vector<64x24xbf16>, vector<16x24xf32> -> vector<16x24xf32>
    %40 = arith.addf %34, %39 : vector<16x24xf32>
    %c0_38 = arith.constant 0 : index
    %c0_39 = arith.constant 0 : index
    %c13 = arith.constant 13 : index
    %41 = vector.load %arg1[%c0_38, %c0_39, %c13] : memref<1x64x38xbf16, #tpu.memory_space<vmem>>, vector<1x64x24xbf16>
    %42 = vector.shape_cast %41 : vector<1x64x24xbf16> to vector<64x24xbf16>
    %c7_40 = arith.constant 7 : index
    %c0_41 = arith.constant 0 : index
    %c0_42 = arith.constant 0 : index
    %43 = vector.load %arg2[%c7_40, %c0_41, %c0_42] : memref<9x16x64xbf16, #tpu.memory_space<vmem>>, vector<1x16x64xbf16>
    %44 = vector.shape_cast %43 : vector<1x16x64xbf16> to vector<16x64xbf16>
    %cst_43 = arith.constant dense<0.000000e+00> : vector<16x24xf32>
    %45 = tpu.matmul %44, %42, %cst_43 {dimension_numbers = #tpu.dot_dimension_numbers<[1], [0], [0], [1], [0, 0, 1, 1], [], []>} : vector<16x64xbf16>, vector<64x24xbf16>, vector<16x24xf32> -> vector<16x24xf32>
    %46 = arith.addf %40, %45 : vector<16x24xf32>
    %c0_44 = arith.constant 0 : index
    %c0_45 = arith.constant 0 : index
    %c14 = arith.constant 14 : index
    %47 = vector.load %arg1[%c0_44, %c0_45, %c14] : memref<1x64x38xbf16, #tpu.memory_space<vmem>>, vector<1x64x24xbf16>
    %48 = vector.shape_cast %47 : vector<1x64x24xbf16> to vector<64x24xbf16>
    %c8_46 = arith.constant 8 : index
    %c0_47 = arith.constant 0 : index
    %c0_48 = arith.constant 0 : index
    %49 = vector.load %arg2[%c8_46, %c0_47, %c0_48] : memref<9x16x64xbf16, #tpu.memory_space<vmem>>, vector<1x16x64xbf16>
    %50 = vector.shape_cast %49 : vector<1x16x64xbf16> to vector<16x64xbf16>
    %cst_49 = arith.constant dense<0.000000e+00> : vector<16x24xf32>
    %51 = tpu.matmul %50, %48, %cst_49 {dimension_numbers = #tpu.dot_dimension_numbers<[1], [0], [0], [1], [0, 0, 1, 1], [], []>} : vector<16x64xbf16>, vector<64x24xbf16>, vector<16x24xf32> -> vector<16x24xf32>
    %52 = arith.addf %46, %51 : vector<16x24xf32>
    %c0_50 = arith.constant 0 : index
    %c0_51 = arith.constant 0 : index
    %53 = vector.load %arg3[%c0_50, %c0_51] : memref<16x1xf32, #tpu.memory_space<vmem>>, vector<16x1xf32>
    %54 = vector.broadcast %53 : vector<16x1xf32> to vector<16x24xf32>
    %55 = arith.addf %52, %54 : vector<16x24xf32>
    %cst_52 = arith.constant 0.000000e+00 : f32
    %56 = vector.broadcast %cst_52 : f32 to vector<16x24xf32>
    %57 = arith.maximumf %55, %56 : vector<16x24xf32>
    %c0_53 = arith.constant 0 : index
    %c0_54 = arith.constant 0 : index
    %c0_55 = arith.constant 0 : index
    %58 = vector.load %arg4[%c0_53, %c0_54, %c0_55] : memref<1x16x24xf32, #tpu.memory_space<vmem>>, vector<1x16x24xf32>
    %59 = vector.shape_cast %58 : vector<1x16x24xf32> to vector<16x24xf32>
    %60 = vector.shape_cast %57 : vector<16x24xf32> to vector<1x16x24xf32>
    tpu.vector_store %arg4[%c0_53, %c0_54, %c0_55], %60 {strides = array<i32>} : memref<1x16x24xf32, #tpu.memory_space<vmem>>, vector<1x16x24xf32>,
    return
  }
  func.func @transform_0(%arg0: i32) -> (i32, i32, i32) {
    %c0_i32 = arith.constant 0 : i32
    %c0_i32_0 = arith.constant 0 : i32
    %c0_i32_1 = arith.constant 0 : i32
    return %arg0, %c0_i32, %c0_i32_0 : i32, i32, i32
  }
  func.func @transform_1(%arg0: i32) -> (i32, i32, i32) {
    %c0_i32 = arith.constant 0 : i32
    %c0_i32_0 = arith.constant 0 : i32
    %c0_i32_1 = arith.constant 0 : i32
    %c0_i32_2 = arith.constant 0 : i32
    return %c0_i32, %c0_i32_0, %c0_i32_1 : i32, i32, i32
  }
  func.func @transform_2(%arg0: i32) -> (i32, i32) {
    %c0_i32 = arith.constant 0 : i32
    %c0_i32_0 = arith.constant 0 : i32
    %c0_i32_1 = arith.constant 0 : i32
    return %c0_i32, %c0_i32_0 : i32, i32
  }
  func.func @transform_3(%arg0: i32) -> (i32, i32, i32) {
    %c0_i32 = arith.constant 0 : i32
    %c0_i32_0 = arith.constant 0 : i32
    %c0_i32_1 = arith.constant 0 : i32
    return %arg0, %c0_i32, %c0_i32_0 : i32, i32, i32
  }
}

module attributes {stable_mosaic.version = 11 : i64} {
  func.func @_conv_taps_kernel(%arg0: i32, %arg1: memref<1x16x38xbf16, #tpu.memory_space<vmem>>, %arg2: memref<9x16x16xbf16, #tpu.memory_space<vmem>>, %arg3: memref<16x1xf32, #tpu.memory_space<vmem>>, %arg4: memref<1x16x24xf32, #tpu.memory_space<vmem>>) attributes {dimension_semantics = [#tpu.dimension_semantics<parallel>], iteration_bounds = array<i64: 2>, scalar_prefetch = 0 : i64, scratch_operands = 0 : i64, tpu.core_type = #tpu.core_type<tc>, window_params = [{transform_indices = @transform_0, window_bounds = array<i64: 1, 16, 38>}, {pipeline_mode = #tpu.pipeline_mode<synchronous>, transform_indices = @transform_1, window_bounds = array<i64: 9, 16, 16>}, {pipeline_mode = #tpu.pipeline_mode<synchronous>, transform_indices = @transform_2, window_bounds = array<i64: 16, 1>}, {transform_indices = @transform_3, window_bounds = array<i64: 1, 16, 24>}]} {
    %c0 = arith.constant 0 : index
    %c0_0 = arith.constant 0 : index
    %c0_1 = arith.constant 0 : index
    %0 = vector.load %arg1[%c0, %c0_0, %c0_1] : memref<1x16x38xbf16, #tpu.memory_space<vmem>>, vector<1x16x24xbf16>
    %1 = vector.shape_cast %0 : vector<1x16x24xbf16> to vector<16x24xbf16>
    %c0_2 = arith.constant 0 : index
    %c0_3 = arith.constant 0 : index
    %c0_4 = arith.constant 0 : index
    %2 = vector.load %arg2[%c0_2, %c0_3, %c0_4] : memref<9x16x16xbf16, #tpu.memory_space<vmem>>, vector<1x16x16xbf16>
    %3 = vector.shape_cast %2 : vector<1x16x16xbf16> to vector<16x16xbf16>
    %cst = arith.constant dense<0.000000e+00> : vector<16x24xf32>
    %4 = tpu.matmul %3, %1, %cst {dimension_numbers = #tpu.dot_dimension_numbers<[1], [0], [0], [1], [0, 0, 1, 1], [], []>} : vector<16x16xbf16>, vector<16x24xbf16>, vector<16x24xf32> -> vector<16x24xf32>
    %c0_5 = arith.constant 0 : index
    %c0_6 = arith.constant 0 : index
    %c1 = arith.constant 1 : index
    %5 = vector.load %arg1[%c0_5, %c0_6, %c1] : memref<1x16x38xbf16, #tpu.memory_space<vmem>>, vector<1x16x24xbf16>
    %6 = vector.shape_cast %5 : vector<1x16x24xbf16> to vector<16x24xbf16>
    %c1_7 = arith.constant 1 : index
    %c0_8 = arith.constant 0 : index
    %c0_9 = arith.constant 0 : index
    %7 = vector.load %arg2[%c1_7, %c0_8, %c0_9] : memref<9x16x16xbf16, #tpu.memory_space<vmem>>, vector<1x16x16xbf16>
    %8 = vector.shape_cast %7 : vector<1x16x16xbf16> to vector<16x16xbf16>
    %cst_10 = arith.constant dense<0.000000e+00> : vector<16x24xf32>
    %9 = tpu.matmul %8, %6, %cst_10 {dimension_numbers = #tpu.dot_dimension_numbers<[1], [0], [0], [1], [0, 0, 1, 1], [], []>} : vector<16x16xbf16>, vector<16x24xbf16>, vector<16x24xf32> -> vector<16x24xf32>
    %10 = arith.addf %4, %9 : vector<16x24xf32>
    %c0_11 = arith.constant 0 : index
    %c0_12 = arith.constant 0 : index
    %c2 = arith.constant 2 : index
    %11 = vector.load %arg1[%c0_11, %c0_12, %c2] : memref<1x16x38xbf16, #tpu.memory_space<vmem>>, vector<1x16x24xbf16>
    %12 = vector.shape_cast %11 : vector<1x16x24xbf16> to vector<16x24xbf16>
    %c2_13 = arith.constant 2 : index
    %c0_14 = arith.constant 0 : index
    %c0_15 = arith.constant 0 : index
    %13 = vector.load %arg2[%c2_13, %c0_14, %c0_15] : memref<9x16x16xbf16, #tpu.memory_space<vmem>>, vector<1x16x16xbf16>
    %14 = vector.shape_cast %13 : vector<1x16x16xbf16> to vector<16x16xbf16>
    %cst_16 = arith.constant dense<0.000000e+00> : vector<16x24xf32>
    %15 = tpu.matmul %14, %12, %cst_16 {dimension_numbers = #tpu.dot_dimension_numbers<[1], [0], [0], [1], [0, 0, 1, 1], [], []>} : vector<16x16xbf16>, vector<16x24xbf16>, vector<16x24xf32> -> vector<16x24xf32>
    %16 = arith.addf %10, %15 : vector<16x24xf32>
    %c0_17 = arith.constant 0 : index
    %c0_18 = arith.constant 0 : index
    %c6 = arith.constant 6 : index
    %17 = vector.load %arg1[%c0_17, %c0_18, %c6] : memref<1x16x38xbf16, #tpu.memory_space<vmem>>, vector<1x16x24xbf16>
    %18 = vector.shape_cast %17 : vector<1x16x24xbf16> to vector<16x24xbf16>
    %c3 = arith.constant 3 : index
    %c0_19 = arith.constant 0 : index
    %c0_20 = arith.constant 0 : index
    %19 = vector.load %arg2[%c3, %c0_19, %c0_20] : memref<9x16x16xbf16, #tpu.memory_space<vmem>>, vector<1x16x16xbf16>
    %20 = vector.shape_cast %19 : vector<1x16x16xbf16> to vector<16x16xbf16>
    %cst_21 = arith.constant dense<0.000000e+00> : vector<16x24xf32>
    %21 = tpu.matmul %20, %18, %cst_21 {dimension_numbers = #tpu.dot_dimension_numbers<[1], [0], [0], [1], [0, 0, 1, 1], [], []>} : vector<16x16xbf16>, vector<16x24xbf16>, vector<16x24xf32> -> vector<16x24xf32>
    %22 = arith.addf %16, %21 : vector<16x24xf32>
    %c0_22 = arith.constant 0 : index
    %c0_23 = arith.constant 0 : index
    %c7 = arith.constant 7 : index
    %23 = vector.load %arg1[%c0_22, %c0_23, %c7] : memref<1x16x38xbf16, #tpu.memory_space<vmem>>, vector<1x16x24xbf16>
    %24 = vector.shape_cast %23 : vector<1x16x24xbf16> to vector<16x24xbf16>
    %c4 = arith.constant 4 : index
    %c0_24 = arith.constant 0 : index
    %c0_25 = arith.constant 0 : index
    %25 = vector.load %arg2[%c4, %c0_24, %c0_25] : memref<9x16x16xbf16, #tpu.memory_space<vmem>>, vector<1x16x16xbf16>
    %26 = vector.shape_cast %25 : vector<1x16x16xbf16> to vector<16x16xbf16>
    %cst_26 = arith.constant dense<0.000000e+00> : vector<16x24xf32>
    %27 = tpu.matmul %26, %24, %cst_26 {dimension_numbers = #tpu.dot_dimension_numbers<[1], [0], [0], [1], [0, 0, 1, 1], [], []>} : vector<16x16xbf16>, vector<16x24xbf16>, vector<16x24xf32> -> vector<16x24xf32>
    %28 = arith.addf %22, %27 : vector<16x24xf32>
    %c0_27 = arith.constant 0 : index
    %c0_28 = arith.constant 0 : index
    %c8 = arith.constant 8 : index
    %29 = vector.load %arg1[%c0_27, %c0_28, %c8] : memref<1x16x38xbf16, #tpu.memory_space<vmem>>, vector<1x16x24xbf16>
    %30 = vector.shape_cast %29 : vector<1x16x24xbf16> to vector<16x24xbf16>
    %c5 = arith.constant 5 : index
    %c0_29 = arith.constant 0 : index
    %c0_30 = arith.constant 0 : index
    %31 = vector.load %arg2[%c5, %c0_29, %c0_30] : memref<9x16x16xbf16, #tpu.memory_space<vmem>>, vector<1x16x16xbf16>
    %32 = vector.shape_cast %31 : vector<1x16x16xbf16> to vector<16x16xbf16>
    %cst_31 = arith.constant dense<0.000000e+00> : vector<16x24xf32>
    %33 = tpu.matmul %32, %30, %cst_31 {dimension_numbers = #tpu.dot_dimension_numbers<[1], [0], [0], [1], [0, 0, 1, 1], [], []>} : vector<16x16xbf16>, vector<16x24xbf16>, vector<16x24xf32> -> vector<16x24xf32>
    %34 = arith.addf %28, %33 : vector<16x24xf32>
    %c0_32 = arith.constant 0 : index
    %c0_33 = arith.constant 0 : index
    %c12 = arith.constant 12 : index
    %35 = vector.load %arg1[%c0_32, %c0_33, %c12] : memref<1x16x38xbf16, #tpu.memory_space<vmem>>, vector<1x16x24xbf16>
    %36 = vector.shape_cast %35 : vector<1x16x24xbf16> to vector<16x24xbf16>
    %c6_34 = arith.constant 6 : index
    %c0_35 = arith.constant 0 : index
    %c0_36 = arith.constant 0 : index
    %37 = vector.load %arg2[%c6_34, %c0_35, %c0_36] : memref<9x16x16xbf16, #tpu.memory_space<vmem>>, vector<1x16x16xbf16>
    %38 = vector.shape_cast %37 : vector<1x16x16xbf16> to vector<16x16xbf16>
    %cst_37 = arith.constant dense<0.000000e+00> : vector<16x24xf32>
    %39 = tpu.matmul %38, %36, %cst_37 {dimension_numbers = #tpu.dot_dimension_numbers<[1], [0], [0], [1], [0, 0, 1, 1], [], []>} : vector<16x16xbf16>, vector<16x24xbf16>, vector<16x24xf32> -> vector<16x24xf32>
    %40 = arith.addf %34, %39 : vector<16x24xf32>
    %c0_38 = arith.constant 0 : index
    %c0_39 = arith.constant 0 : index
    %c13 = arith.constant 13 : index
    %41 = vector.load %arg1[%c0_38, %c0_39, %c13] : memref<1x16x38xbf16, #tpu.memory_space<vmem>>, vector<1x16x24xbf16>
    %42 = vector.shape_cast %41 : vector<1x16x24xbf16> to vector<16x24xbf16>
    %c7_40 = arith.constant 7 : index
    %c0_41 = arith.constant 0 : index
    %c0_42 = arith.constant 0 : index
    %43 = vector.load %arg2[%c7_40, %c0_41, %c0_42] : memref<9x16x16xbf16, #tpu.memory_space<vmem>>, vector<1x16x16xbf16>
    %44 = vector.shape_cast %43 : vector<1x16x16xbf16> to vector<16x16xbf16>
    %cst_43 = arith.constant dense<0.000000e+00> : vector<16x24xf32>
    %45 = tpu.matmul %44, %42, %cst_43 {dimension_numbers = #tpu.dot_dimension_numbers<[1], [0], [0], [1], [0, 0, 1, 1], [], []>} : vector<16x16xbf16>, vector<16x24xbf16>, vector<16x24xf32> -> vector<16x24xf32>
    %46 = arith.addf %40, %45 : vector<16x24xf32>
    %c0_44 = arith.constant 0 : index
    %c0_45 = arith.constant 0 : index
    %c14 = arith.constant 14 : index
    %47 = vector.load %arg1[%c0_44, %c0_45, %c14] : memref<1x16x38xbf16, #tpu.memory_space<vmem>>, vector<1x16x24xbf16>
    %48 = vector.shape_cast %47 : vector<1x16x24xbf16> to vector<16x24xbf16>
    %c8_46 = arith.constant 8 : index
    %c0_47 = arith.constant 0 : index
    %c0_48 = arith.constant 0 : index
    %49 = vector.load %arg2[%c8_46, %c0_47, %c0_48] : memref<9x16x16xbf16, #tpu.memory_space<vmem>>, vector<1x16x16xbf16>
    %50 = vector.shape_cast %49 : vector<1x16x16xbf16> to vector<16x16xbf16>
    %cst_49 = arith.constant dense<0.000000e+00> : vector<16x24xf32>
    %51 = tpu.matmul %50, %48, %cst_49 {dimension_numbers = #tpu.dot_dimension_numbers<[1], [0], [0], [1], [0, 0, 1, 1], [], []>} : vector<16x16xbf16>, vector<16x24xbf16>, vector<16x24xf32> -> vector<16x24xf32>
    %52 = arith.addf %46, %51 : vector<16x24xf32>
    %c0_50 = arith.constant 0 : index
    %c0_51 = arith.constant 0 : index
    %53 = vector.load %arg3[%c0_50, %c0_51] : memref<16x1xf32, #tpu.memory_space<vmem>>, vector<16x1xf32>
    %54 = vector.broadcast %53 : vector<16x1xf32> to vector<16x24xf32>
    %55 = arith.addf %52, %54 : vector<16x24xf32>
    %cst_52 = arith.constant 0.000000e+00 : f32
    %56 = vector.broadcast %cst_52 : f32 to vector<16x24xf32>
    %57 = arith.maximumf %55, %56 : vector<16x24xf32>
    %c0_53 = arith.constant 0 : index
    %c0_54 = arith.constant 0 : index
    %c0_55 = arith.constant 0 : index
    %58 = vector.load %arg4[%c0_53, %c0_54, %c0_55] : memref<1x16x24xf32, #tpu.memory_space<vmem>>, vector<1x16x24xf32>
    %59 = vector.shape_cast %58 : vector<1x16x24xf32> to vector<16x24xf32>
    %60 = vector.shape_cast %57 : vector<16x24xf32> to vector<1x16x24xf32>
    tpu.vector_store %arg4[%c0_53, %c0_54, %c0_55], %60 {strides = array<i32>} : memref<1x16x24xf32, #tpu.memory_space<vmem>>, vector<1x16x24xf32>,
    return
  }
  func.func @transform_0(%arg0: i32) -> (i32, i32, i32) {
    %c0_i32 = arith.constant 0 : i32
    %c0_i32_0 = arith.constant 0 : i32
    %c0_i32_1 = arith.constant 0 : i32
    return %arg0, %c0_i32, %c0_i32_0 : i32, i32, i32
  }
  func.func @transform_1(%arg0: i32) -> (i32, i32, i32) {
    %c0_i32 = arith.constant 0 : i32
    %c0_i32_0 = arith.constant 0 : i32
    %c0_i32_1 = arith.constant 0 : i32
    %c0_i32_2 = arith.constant 0 : i32
    return %c0_i32, %c0_i32_0, %c0_i32_1 : i32, i32, i32
  }
  func.func @transform_2(%arg0: i32) -> (i32, i32) {
    %c0_i32 = arith.constant 0 : i32
    %c0_i32_0 = arith.constant 0 : i32
    %c0_i32_1 = arith.constant 0 : i32
    return %c0_i32, %c0_i32_0 : i32, i32
  }
  func.func @transform_3(%arg0: i32) -> (i32, i32, i32) {
    %c0_i32 = arith.constant 0 : i32
    %c0_i32_0 = arith.constant 0 : i32
    %c0_i32_1 = arith.constant 0 : i32
    return %arg0, %c0_i32, %c0_i32_0 : i32, i32, i32
  }
}

module attributes {stable_mosaic.version = 11 : i64} {
  func.func @_conv_taps_kernel(%arg0: i32, %arg1: memref<1x32x102xbf16, #tpu.memory_space<vmem>>, %arg2: memref<9x8x32xbf16, #tpu.memory_space<vmem>>, %arg3: memref<8x1xf32, #tpu.memory_space<vmem>>, %arg4: memref<1x8x80xf32, #tpu.memory_space<vmem>>) attributes {dimension_semantics = [#tpu.dimension_semantics<parallel>], iteration_bounds = array<i64: 2>, scalar_prefetch = 0 : i64, scratch_operands = 0 : i64, tpu.core_type = #tpu.core_type<tc>, window_params = [{transform_indices = @transform_0, window_bounds = array<i64: 1, 32, 102>}, {pipeline_mode = #tpu.pipeline_mode<synchronous>, transform_indices = @transform_1, window_bounds = array<i64: 9, 8, 32>}, {pipeline_mode = #tpu.pipeline_mode<synchronous>, transform_indices = @transform_2, window_bounds = array<i64: 8, 1>}, {transform_indices = @transform_3, window_bounds = array<i64: 1, 8, 80>}]} {
    %c0 = arith.constant 0 : index
    %c0_0 = arith.constant 0 : index
    %c0_1 = arith.constant 0 : index
    %0 = vector.load %arg1[%c0, %c0_0, %c0_1] : memref<1x32x102xbf16, #tpu.memory_space<vmem>>, vector<1x32x80xbf16>
    %1 = vector.shape_cast %0 : vector<1x32x80xbf16> to vector<32x80xbf16>
    %c0_2 = arith.constant 0 : index
    %c0_3 = arith.constant 0 : index
    %c0_4 = arith.constant 0 : index
    %2 = vector.load %arg2[%c0_2, %c0_3, %c0_4] : memref<9x8x32xbf16, #tpu.memory_space<vmem>>, vector<1x8x32xbf16>
    %3 = vector.shape_cast %2 : vector<1x8x32xbf16> to vector<8x32xbf16>
    %cst = arith.constant dense<0.000000e+00> : vector<8x80xf32>
    %4 = tpu.matmul %3, %1, %cst {dimension_numbers = #tpu.dot_dimension_numbers<[1], [0], [0], [1], [0, 0, 1, 1], [], []>} : vector<8x32xbf16>, vector<32x80xbf16>, vector<8x80xf32> -> vector<8x80xf32>
    %c0_5 = arith.constant 0 : index
    %c0_6 = arith.constant 0 : index
    %c1 = arith.constant 1 : index
    %5 = vector.load %arg1[%c0_5, %c0_6, %c1] : memref<1x32x102xbf16, #tpu.memory_space<vmem>>, vector<1x32x80xbf16>
    %6 = vector.shape_cast %5 : vector<1x32x80xbf16> to vector<32x80xbf16>
    %c1_7 = arith.constant 1 : index
    %c0_8 = arith.constant 0 : index
    %c0_9 = arith.constant 0 : index
    %7 = vector.load %arg2[%c1_7, %c0_8, %c0_9] : memref<9x8x32xbf16, #tpu.memory_space<vmem>>, vector<1x8x32xbf16>
    %8 = vector.shape_cast %7 : vector<1x8x32xbf16> to vector<8x32xbf16>
    %cst_10 = arith.constant dense<0.000000e+00> : vector<8x80xf32>
    %9 = tpu.matmul %8, %6, %cst_10 {dimension_numbers = #tpu.dot_dimension_numbers<[1], [0], [0], [1], [0, 0, 1, 1], [], []>} : vector<8x32xbf16>, vector<32x80xbf16>, vector<8x80xf32> -> vector<8x80xf32>
    %10 = arith.addf %4, %9 : vector<8x80xf32>
    %c0_11 = arith.constant 0 : index
    %c0_12 = arith.constant 0 : index
    %c2 = arith.constant 2 : index
    %11 = vector.load %arg1[%c0_11, %c0_12, %c2] : memref<1x32x102xbf16, #tpu.memory_space<vmem>>, vector<1x32x80xbf16>
    %12 = vector.shape_cast %11 : vector<1x32x80xbf16> to vector<32x80xbf16>
    %c2_13 = arith.constant 2 : index
    %c0_14 = arith.constant 0 : index
    %c0_15 = arith.constant 0 : index
    %13 = vector.load %arg2[%c2_13, %c0_14, %c0_15] : memref<9x8x32xbf16, #tpu.memory_space<vmem>>, vector<1x8x32xbf16>
    %14 = vector.shape_cast %13 : vector<1x8x32xbf16> to vector<8x32xbf16>
    %cst_16 = arith.constant dense<0.000000e+00> : vector<8x80xf32>
    %15 = tpu.matmul %14, %12, %cst_16 {dimension_numbers = #tpu.dot_dimension_numbers<[1], [0], [0], [1], [0, 0, 1, 1], [], []>} : vector<8x32xbf16>, vector<32x80xbf16>, vector<8x80xf32> -> vector<8x80xf32>
    %16 = arith.addf %10, %15 : vector<8x80xf32>
    %c0_17 = arith.constant 0 : index
    %c0_18 = arith.constant 0 : index
    %c10 = arith.constant 10 : index
    %17 = vector.load %arg1[%c0_17, %c0_18, %c10] : memref<1x32x102xbf16, #tpu.memory_space<vmem>>, vector<1x32x80xbf16>
    %18 = vector.shape_cast %17 : vector<1x32x80xbf16> to vector<32x80xbf16>
    %c3 = arith.constant 3 : index
    %c0_19 = arith.constant 0 : index
    %c0_20 = arith.constant 0 : index
    %19 = vector.load %arg2[%c3, %c0_19, %c0_20] : memref<9x8x32xbf16, #tpu.memory_space<vmem>>, vector<1x8x32xbf16>
    %20 = vector.shape_cast %19 : vector<1x8x32xbf16> to vector<8x32xbf16>
    %cst_21 = arith.constant dense<0.000000e+00> : vector<8x80xf32>
    %21 = tpu.matmul %20, %18, %cst_21 {dimension_numbers = #tpu.dot_dimension_numbers<[1], [0], [0], [1], [0, 0, 1, 1], [], []>} : vector<8x32xbf16>, vector<32x80xbf16>, vector<8x80xf32> -> vector<8x80xf32>
    %22 = arith.addf %16, %21 : vector<8x80xf32>
    %c0_22 = arith.constant 0 : index
    %c0_23 = arith.constant 0 : index
    %c11 = arith.constant 11 : index
    %23 = vector.load %arg1[%c0_22, %c0_23, %c11] : memref<1x32x102xbf16, #tpu.memory_space<vmem>>, vector<1x32x80xbf16>
    %24 = vector.shape_cast %23 : vector<1x32x80xbf16> to vector<32x80xbf16>
    %c4 = arith.constant 4 : index
    %c0_24 = arith.constant 0 : index
    %c0_25 = arith.constant 0 : index
    %25 = vector.load %arg2[%c4, %c0_24, %c0_25] : memref<9x8x32xbf16, #tpu.memory_space<vmem>>, vector<1x8x32xbf16>
    %26 = vector.shape_cast %25 : vector<1x8x32xbf16> to vector<8x32xbf16>
    %cst_26 = arith.constant dense<0.000000e+00> : vector<8x80xf32>
    %27 = tpu.matmul %26, %24, %cst_26 {dimension_numbers = #tpu.dot_dimension_numbers<[1], [0], [0], [1], [0, 0, 1, 1], [], []>} : vector<8x32xbf16>, vector<32x80xbf16>, vector<8x80xf32> -> vector<8x80xf32>
    %28 = arith.addf %22, %27 : vector<8x80xf32>
    %c0_27 = arith.constant 0 : index
    %c0_28 = arith.constant 0 : index
    %c12 = arith.constant 12 : index
    %29 = vector.load %arg1[%c0_27, %c0_28, %c12] : memref<1x32x102xbf16, #tpu.memory_space<vmem>>, vector<1x32x80xbf16>
    %30 = vector.shape_cast %29 : vector<1x32x80xbf16> to vector<32x80xbf16>
    %c5 = arith.constant 5 : index
    %c0_29 = arith.constant 0 : index
    %c0_30 = arith.constant 0 : index
    %31 = vector.load %arg2[%c5, %c0_29, %c0_30] : memref<9x8x32xbf16, #tpu.memory_space<vmem>>, vector<1x8x32xbf16>
    %32 = vector.shape_cast %31 : vector<1x8x32xbf16> to vector<8x32xbf16>
    %cst_31 = arith.constant dense<0.000000e+00> : vector<8x80xf32>
    %33 = tpu.matmul %32, %30, %cst_31 {dimension_numbers = #tpu.dot_dimension_numbers<[1], [0], [0], [1], [0, 0, 1, 1], [], []>} : vector<8x32xbf16>, vector<32x80xbf16>, vector<8x80xf32> -> vector<8x80xf32>
    %34 = arith.addf %28, %33 : vector<8x80xf32>
    %c0_32 = arith.constant 0 : index
    %c0_33 = arith.constant 0 : index
    %c20 = arith.constant 20 : index
    %35 = vector.load %arg1[%c0_32, %c0_33, %c20] : memref<1x32x102xbf16, #tpu.memory_space<vmem>>, vector<1x32x80xbf16>
    %36 = vector.shape_cast %35 : vector<1x32x80xbf16> to vector<32x80xbf16>
    %c6 = arith.constant 6 : index
    %c0_34 = arith.constant 0 : index
    %c0_35 = arith.constant 0 : index
    %37 = vector.load %arg2[%c6, %c0_34, %c0_35] : memref<9x8x32xbf16, #tpu.memory_space<vmem>>, vector<1x8x32xbf16>
    %38 = vector.shape_cast %37 : vector<1x8x32xbf16> to vector<8x32xbf16>
    %cst_36 = arith.constant dense<0.000000e+00> : vector<8x80xf32>
    %39 = tpu.matmul %38, %36, %cst_36 {dimension_numbers = #tpu.dot_dimension_numbers<[1], [0], [0], [1], [0, 0, 1, 1], [], []>} : vector<8x32xbf16>, vector<32x80xbf16>, vector<8x80xf32> -> vector<8x80xf32>
    %40 = arith.addf %34, %39 : vector<8x80xf32>
    %c0_37 = arith.constant 0 : index
    %c0_38 = arith.constant 0 : index
    %c21 = arith.constant 21 : index
    %41 = vector.load %arg1[%c0_37, %c0_38, %c21] : memref<1x32x102xbf16, #tpu.memory_space<vmem>>, vector<1x32x80xbf16>
    %42 = vector.shape_cast %41 : vector<1x32x80xbf16> to vector<32x80xbf16>
    %c7 = arith.constant 7 : index
    %c0_39 = arith.constant 0 : index
    %c0_40 = arith.constant 0 : index
    %43 = vector.load %arg2[%c7, %c0_39, %c0_40] : memref<9x8x32xbf16, #tpu.memory_space<vmem>>, vector<1x8x32xbf16>
    %44 = vector.shape_cast %43 : vector<1x8x32xbf16> to vector<8x32xbf16>
    %cst_41 = arith.constant dense<0.000000e+00> : vector<8x80xf32>
    %45 = tpu.matmul %44, %42, %cst_41 {dimension_numbers = #tpu.dot_dimension_numbers<[1], [0], [0], [1], [0, 0, 1, 1], [], []>} : vector<8x32xbf16>, vector<32x80xbf16>, vector<8x80xf32> -> vector<8x80xf32>
    %46 = arith.addf %40, %45 : vector<8x80xf32>
    %c0_42 = arith.constant 0 : index
    %c0_43 = arith.constant 0 : index
    %c22 = arith.constant 22 : index
    %47 = vector.load %arg1[%c0_42, %c0_43, %c22] : memref<1x32x102xbf16, #tpu.memory_space<vmem>>, vector<1x32x80xbf16>
    %48 = vector.shape_cast %47 : vector<1x32x80xbf16> to vector<32x80xbf16>
    %c8 = arith.constant 8 : index
    %c0_44 = arith.constant 0 : index
    %c0_45 = arith.constant 0 : index
    %49 = vector.load %arg2[%c8, %c0_44, %c0_45] : memref<9x8x32xbf16, #tpu.memory_space<vmem>>, vector<1x8x32xbf16>
    %50 = vector.shape_cast %49 : vector<1x8x32xbf16> to vector<8x32xbf16>
    %cst_46 = arith.constant dense<0.000000e+00> : vector<8x80xf32>
    %51 = tpu.matmul %50, %48, %cst_46 {dimension_numbers = #tpu.dot_dimension_numbers<[1], [0], [0], [1], [0, 0, 1, 1], [], []>} : vector<8x32xbf16>, vector<32x80xbf16>, vector<8x80xf32> -> vector<8x80xf32>
    %52 = arith.addf %46, %51 : vector<8x80xf32>
    %c0_47 = arith.constant 0 : index
    %c0_48 = arith.constant 0 : index
    %53 = vector.load %arg3[%c0_47, %c0_48] : memref<8x1xf32, #tpu.memory_space<vmem>>, vector<8x1xf32>
    %54 = vector.broadcast %53 : vector<8x1xf32> to vector<8x80xf32>
    %55 = arith.addf %52, %54 : vector<8x80xf32>
    %cst_49 = arith.constant 0.000000e+00 : f32
    %56 = vector.broadcast %cst_49 : f32 to vector<8x80xf32>
    %57 = arith.maximumf %55, %56 : vector<8x80xf32>
    %c0_50 = arith.constant 0 : index
    %c0_51 = arith.constant 0 : index
    %c0_52 = arith.constant 0 : index
    %58 = vector.load %arg4[%c0_50, %c0_51, %c0_52] : memref<1x8x80xf32, #tpu.memory_space<vmem>>, vector<1x8x80xf32>
    %59 = vector.shape_cast %58 : vector<1x8x80xf32> to vector<8x80xf32>
    %60 = vector.shape_cast %57 : vector<8x80xf32> to vector<1x8x80xf32>
    tpu.vector_store %arg4[%c0_50, %c0_51, %c0_52], %60 {strides = array<i32>} : memref<1x8x80xf32, #tpu.memory_space<vmem>>, vector<1x8x80xf32>,
    return
  }
  func.func @transform_0(%arg0: i32) -> (i32, i32, i32) {
    %c0_i32 = arith.constant 0 : i32
    %c0_i32_0 = arith.constant 0 : i32
    %c0_i32_1 = arith.constant 0 : i32
    return %arg0, %c0_i32, %c0_i32_0 : i32, i32, i32
  }
  func.func @transform_1(%arg0: i32) -> (i32, i32, i32) {
    %c0_i32 = arith.constant 0 : i32
    %c0_i32_0 = arith.constant 0 : i32
    %c0_i32_1 = arith.constant 0 : i32
    %c0_i32_2 = arith.constant 0 : i32
    return %c0_i32, %c0_i32_0, %c0_i32_1 : i32, i32, i32
  }
  func.func @transform_2(%arg0: i32) -> (i32, i32) {
    %c0_i32 = arith.constant 0 : i32
    %c0_i32_0 = arith.constant 0 : i32
    %c0_i32_1 = arith.constant 0 : i32
    return %c0_i32, %c0_i32_0 : i32, i32
  }
  func.func @transform_3(%arg0: i32) -> (i32, i32, i32) {
    %c0_i32 = arith.constant 0 : i32
    %c0_i32_0 = arith.constant 0 : i32
    %c0_i32_1 = arith.constant 0 : i32
    return %arg0, %c0_i32, %c0_i32_0 : i32, i32, i32
  }
}

module attributes {stable_mosaic.version = 11 : i64} {
  func.func @_conv_taps_kernel(%arg0: i32, %arg1: memref<1x8x102xbf16, #tpu.memory_space<vmem>>, %arg2: memref<9x8x8xbf16, #tpu.memory_space<vmem>>, %arg3: memref<8x1xf32, #tpu.memory_space<vmem>>, %arg4: memref<1x8x80xf32, #tpu.memory_space<vmem>>) attributes {dimension_semantics = [#tpu.dimension_semantics<parallel>], iteration_bounds = array<i64: 2>, scalar_prefetch = 0 : i64, scratch_operands = 0 : i64, tpu.core_type = #tpu.core_type<tc>, window_params = [{transform_indices = @transform_0, window_bounds = array<i64: 1, 8, 102>}, {pipeline_mode = #tpu.pipeline_mode<synchronous>, transform_indices = @transform_1, window_bounds = array<i64: 9, 8, 8>}, {pipeline_mode = #tpu.pipeline_mode<synchronous>, transform_indices = @transform_2, window_bounds = array<i64: 8, 1>}, {transform_indices = @transform_3, window_bounds = array<i64: 1, 8, 80>}]} {
    %c0 = arith.constant 0 : index
    %c0_0 = arith.constant 0 : index
    %c0_1 = arith.constant 0 : index
    %0 = vector.load %arg1[%c0, %c0_0, %c0_1] : memref<1x8x102xbf16, #tpu.memory_space<vmem>>, vector<1x8x80xbf16>
    %1 = vector.shape_cast %0 : vector<1x8x80xbf16> to vector<8x80xbf16>
    %c0_2 = arith.constant 0 : index
    %c0_3 = arith.constant 0 : index
    %c0_4 = arith.constant 0 : index
    %2 = vector.load %arg2[%c0_2, %c0_3, %c0_4] : memref<9x8x8xbf16, #tpu.memory_space<vmem>>, vector<1x8x8xbf16>
    %3 = vector.shape_cast %2 : vector<1x8x8xbf16> to vector<8x8xbf16>
    %cst = arith.constant dense<0.000000e+00> : vector<8x80xf32>
    %4 = tpu.matmul %3, %1, %cst {dimension_numbers = #tpu.dot_dimension_numbers<[1], [0], [0], [1], [0, 0, 1, 1], [], []>} : vector<8x8xbf16>, vector<8x80xbf16>, vector<8x80xf32> -> vector<8x80xf32>
    %c0_5 = arith.constant 0 : index
    %c0_6 = arith.constant 0 : index
    %c1 = arith.constant 1 : index
    %5 = vector.load %arg1[%c0_5, %c0_6, %c1] : memref<1x8x102xbf16, #tpu.memory_space<vmem>>, vector<1x8x80xbf16>
    %6 = vector.shape_cast %5 : vector<1x8x80xbf16> to vector<8x80xbf16>
    %c1_7 = arith.constant 1 : index
    %c0_8 = arith.constant 0 : index
    %c0_9 = arith.constant 0 : index
    %7 = vector.load %arg2[%c1_7, %c0_8, %c0_9] : memref<9x8x8xbf16, #tpu.memory_space<vmem>>, vector<1x8x8xbf16>
    %8 = vector.shape_cast %7 : vector<1x8x8xbf16> to vector<8x8xbf16>
    %cst_10 = arith.constant dense<0.000000e+00> : vector<8x80xf32>
    %9 = tpu.matmul %8, %6, %cst_10 {dimension_numbers = #tpu.dot_dimension_numbers<[1], [0], [0], [1], [0, 0, 1, 1], [], []>} : vector<8x8xbf16>, vector<8x80xbf16>, vector<8x80xf32> -> vector<8x80xf32>
    %10 = arith.addf %4, %9 : vector<8x80xf32>
    %c0_11 = arith.constant 0 : index
    %c0_12 = arith.constant 0 : index
    %c2 = arith.constant 2 : index
    %11 = vector.load %arg1[%c0_11, %c0_12, %c2] : memref<1x8x102xbf16, #tpu.memory_space<vmem>>, vector<1x8x80xbf16>
    %12 = vector.shape_cast %11 : vector<1x8x80xbf16> to vector<8x80xbf16>
    %c2_13 = arith.constant 2 : index
    %c0_14 = arith.constant 0 : index
    %c0_15 = arith.constant 0 : index
    %13 = vector.load %arg2[%c2_13, %c0_14, %c0_15] : memref<9x8x8xbf16, #tpu.memory_space<vmem>>, vector<1x8x8xbf16>
    %14 = vector.shape_cast %13 : vector<1x8x8xbf16> to vector<8x8xbf16>
    %cst_16 = arith.constant dense<0.000000e+00> : vector<8x80xf32>
    %15 = tpu.matmul %14, %12, %cst_16 {dimension_numbers = #tpu.dot_dimension_numbers<[1], [0], [0], [1], [0, 0, 1, 1], [], []>} : vector<8x8xbf16>, vector<8x80xbf16>, vector<8x80xf32> -> vector<8x80xf32>
    %16 = arith.addf %10, %15 : vector<8x80xf32>
    %c0_17 = arith.constant 0 : index
    %c0_18 = arith.constant 0 : index
    %c10 = arith.constant 10 : index
    %17 = vector.load %arg1[%c0_17, %c0_18, %c10] : memref<1x8x102xbf16, #tpu.memory_space<vmem>>, vector<1x8x80xbf16>
    %18 = vector.shape_cast %17 : vector<1x8x80xbf16> to vector<8x80xbf16>
    %c3 = arith.constant 3 : index
    %c0_19 = arith.constant 0 : index
    %c0_20 = arith.constant 0 : index
    %19 = vector.load %arg2[%c3, %c0_19, %c0_20] : memref<9x8x8xbf16, #tpu.memory_space<vmem>>, vector<1x8x8xbf16>
    %20 = vector.shape_cast %19 : vector<1x8x8xbf16> to vector<8x8xbf16>
    %cst_21 = arith.constant dense<0.000000e+00> : vector<8x80xf32>
    %21 = tpu.matmul %20, %18, %cst_21 {dimension_numbers = #tpu.dot_dimension_numbers<[1], [0], [0], [1], [0, 0, 1, 1], [], []>} : vector<8x8xbf16>, vector<8x80xbf16>, vector<8x80xf32> -> vector<8x80xf32>
    %22 = arith.addf %16, %21 : vector<8x80xf32>
    %c0_22 = arith.constant 0 : index
    %c0_23 = arith.constant 0 : index
    %c11 = arith.constant 11 : index
    %23 = vector.load %arg1[%c0_22, %c0_23, %c11] : memref<1x8x102xbf16, #tpu.memory_space<vmem>>, vector<1x8x80xbf16>
    %24 = vector.shape_cast %23 : vector<1x8x80xbf16> to vector<8x80xbf16>
    %c4 = arith.constant 4 : index
    %c0_24 = arith.constant 0 : index
    %c0_25 = arith.constant 0 : index
    %25 = vector.load %arg2[%c4, %c0_24, %c0_25] : memref<9x8x8xbf16, #tpu.memory_space<vmem>>, vector<1x8x8xbf16>
    %26 = vector.shape_cast %25 : vector<1x8x8xbf16> to vector<8x8xbf16>
    %cst_26 = arith.constant dense<0.000000e+00> : vector<8x80xf32>
    %27 = tpu.matmul %26, %24, %cst_26 {dimension_numbers = #tpu.dot_dimension_numbers<[1], [0], [0], [1], [0, 0, 1, 1], [], []>} : vector<8x8xbf16>, vector<8x80xbf16>, vector<8x80xf32> -> vector<8x80xf32>
    %28 = arith.addf %22, %27 : vector<8x80xf32>
    %c0_27 = arith.constant 0 : index
    %c0_28 = arith.constant 0 : index
    %c12 = arith.constant 12 : index
    %29 = vector.load %arg1[%c0_27, %c0_28, %c12] : memref<1x8x102xbf16, #tpu.memory_space<vmem>>, vector<1x8x80xbf16>
    %30 = vector.shape_cast %29 : vector<1x8x80xbf16> to vector<8x80xbf16>
    %c5 = arith.constant 5 : index
    %c0_29 = arith.constant 0 : index
    %c0_30 = arith.constant 0 : index
    %31 = vector.load %arg2[%c5, %c0_29, %c0_30] : memref<9x8x8xbf16, #tpu.memory_space<vmem>>, vector<1x8x8xbf16>
    %32 = vector.shape_cast %31 : vector<1x8x8xbf16> to vector<8x8xbf16>
    %cst_31 = arith.constant dense<0.000000e+00> : vector<8x80xf32>
    %33 = tpu.matmul %32, %30, %cst_31 {dimension_numbers = #tpu.dot_dimension_numbers<[1], [0], [0], [1], [0, 0, 1, 1], [], []>} : vector<8x8xbf16>, vector<8x80xbf16>, vector<8x80xf32> -> vector<8x80xf32>
    %34 = arith.addf %28, %33 : vector<8x80xf32>
    %c0_32 = arith.constant 0 : index
    %c0_33 = arith.constant 0 : index
    %c20 = arith.constant 20 : index
    %35 = vector.load %arg1[%c0_32, %c0_33, %c20] : memref<1x8x102xbf16, #tpu.memory_space<vmem>>, vector<1x8x80xbf16>
    %36 = vector.shape_cast %35 : vector<1x8x80xbf16> to vector<8x80xbf16>
    %c6 = arith.constant 6 : index
    %c0_34 = arith.constant 0 : index
    %c0_35 = arith.constant 0 : index
    %37 = vector.load %arg2[%c6, %c0_34, %c0_35] : memref<9x8x8xbf16, #tpu.memory_space<vmem>>, vector<1x8x8xbf16>
    %38 = vector.shape_cast %37 : vector<1x8x8xbf16> to vector<8x8xbf16>
    %cst_36 = arith.constant dense<0.000000e+00> : vector<8x80xf32>
    %39 = tpu.matmul %38, %36, %cst_36 {dimension_numbers = #tpu.dot_dimension_numbers<[1], [0], [0], [1], [0, 0, 1, 1], [], []>} : vector<8x8xbf16>, vector<8x80xbf16>, vector<8x80xf32> -> vector<8x80xf32>
    %40 = arith.addf %34, %39 : vector<8x80xf32>
    %c0_37 = arith.constant 0 : index
    %c0_38 = arith.constant 0 : index
    %c21 = arith.constant 21 : index
    %41 = vector.load %arg1[%c0_37, %c0_38, %c21] : memref<1x8x102xbf16, #tpu.memory_space<vmem>>, vector<1x8x80xbf16>
    %42 = vector.shape_cast %41 : vector<1x8x80xbf16> to vector<8x80xbf16>
    %c7 = arith.constant 7 : index
    %c0_39 = arith.constant 0 : index
    %c0_40 = arith.constant 0 : index
    %43 = vector.load %arg2[%c7, %c0_39, %c0_40] : memref<9x8x8xbf16, #tpu.memory_space<vmem>>, vector<1x8x8xbf16>
    %44 = vector.shape_cast %43 : vector<1x8x8xbf16> to vector<8x8xbf16>
    %cst_41 = arith.constant dense<0.000000e+00> : vector<8x80xf32>
    %45 = tpu.matmul %44, %42, %cst_41 {dimension_numbers = #tpu.dot_dimension_numbers<[1], [0], [0], [1], [0, 0, 1, 1], [], []>} : vector<8x8xbf16>, vector<8x80xbf16>, vector<8x80xf32> -> vector<8x80xf32>
    %46 = arith.addf %40, %45 : vector<8x80xf32>
    %c0_42 = arith.constant 0 : index
    %c0_43 = arith.constant 0 : index
    %c22 = arith.constant 22 : index
    %47 = vector.load %arg1[%c0_42, %c0_43, %c22] : memref<1x8x102xbf16, #tpu.memory_space<vmem>>, vector<1x8x80xbf16>
    %48 = vector.shape_cast %47 : vector<1x8x80xbf16> to vector<8x80xbf16>
    %c8 = arith.constant 8 : index
    %c0_44 = arith.constant 0 : index
    %c0_45 = arith.constant 0 : index
    %49 = vector.load %arg2[%c8, %c0_44, %c0_45] : memref<9x8x8xbf16, #tpu.memory_space<vmem>>, vector<1x8x8xbf16>
    %50 = vector.shape_cast %49 : vector<1x8x8xbf16> to vector<8x8xbf16>
    %cst_46 = arith.constant dense<0.000000e+00> : vector<8x80xf32>
    %51 = tpu.matmul %50, %48, %cst_46 {dimension_numbers = #tpu.dot_dimension_numbers<[1], [0], [0], [1], [0, 0, 1, 1], [], []>} : vector<8x8xbf16>, vector<8x80xbf16>, vector<8x80xf32> -> vector<8x80xf32>
    %52 = arith.addf %46, %51 : vector<8x80xf32>
    %c0_47 = arith.constant 0 : index
    %c0_48 = arith.constant 0 : index
    %53 = vector.load %arg3[%c0_47, %c0_48] : memref<8x1xf32, #tpu.memory_space<vmem>>, vector<8x1xf32>
    %54 = vector.broadcast %53 : vector<8x1xf32> to vector<8x80xf32>
    %55 = arith.addf %52, %54 : vector<8x80xf32>
    %cst_49 = arith.constant 0.000000e+00 : f32
    %56 = vector.broadcast %cst_49 : f32 to vector<8x80xf32>
    %57 = arith.maximumf %55, %56 : vector<8x80xf32>
    %c0_50 = arith.constant 0 : index
    %c0_51 = arith.constant 0 : index
    %c0_52 = arith.constant 0 : index
    %58 = vector.load %arg4[%c0_50, %c0_51, %c0_52] : memref<1x8x80xf32, #tpu.memory_space<vmem>>, vector<1x8x80xf32>
    %59 = vector.shape_cast %58 : vector<1x8x80xf32> to vector<8x80xf32>
    %60 = vector.shape_cast %57 : vector<8x80xf32> to vector<1x8x80xf32>
    tpu.vector_store %arg4[%c0_50, %c0_51, %c0_52], %60 {strides = array<i32>} : memref<1x8x80xf32, #tpu.memory_space<vmem>>, vector<1x8x80xf32>,
    return
  }
  func.func @transform_0(%arg0: i32) -> (i32, i32, i32) {
    %c0_i32 = arith.constant 0 : i32
    %c0_i32_0 = arith.constant 0 : i32
    %c0_i32_1 = arith.constant 0 : i32
    return %arg0, %c0_i32, %c0_i32_0 : i32, i32, i32
  }
  func.func @transform_1(%arg0: i32) -> (i32, i32, i32) {
    %c0_i32 = arith.constant 0 : i32
    %c0_i32_0 = arith.constant 0 : i32
    %c0_i32_1 = arith.constant 0 : i32
    %c0_i32_2 = arith.constant 0 : i32
    return %c0_i32, %c0_i32_0, %c0_i32_1 : i32, i32, i32
  }
  func.func @transform_2(%arg0: i32) -> (i32, i32) {
    %c0_i32 = arith.constant 0 : i32
    %c0_i32_0 = arith.constant 0 : i32
    %c0_i32_1 = arith.constant 0 : i32
    return %c0_i32, %c0_i32_0 : i32, i32
  }
  func.func @transform_3(%arg0: i32) -> (i32, i32, i32) {
    %c0_i32 = arith.constant 0 : i32
    %c0_i32_0 = arith.constant 0 : i32
    %c0_i32_1 = arith.constant 0 : i32
    return %arg0, %c0_i32, %c0_i32_0 : i32, i32, i32
  }
}

module attributes {stable_mosaic.version = 11 : i64} {
  func.func @_conv_taps_kernel(%arg0: i32, %arg1: memref<1x16x326xbf16, #tpu.memory_space<vmem>>, %arg2: memref<9x8x16xbf16, #tpu.memory_space<vmem>>, %arg3: memref<8x1xf32, #tpu.memory_space<vmem>>, %arg4: memref<1x8x288xf32, #tpu.memory_space<vmem>>) attributes {dimension_semantics = [#tpu.dimension_semantics<parallel>], iteration_bounds = array<i64: 2>, scalar_prefetch = 0 : i64, scratch_operands = 0 : i64, tpu.core_type = #tpu.core_type<tc>, window_params = [{transform_indices = @transform_0, window_bounds = array<i64: 1, 16, 326>}, {pipeline_mode = #tpu.pipeline_mode<synchronous>, transform_indices = @transform_1, window_bounds = array<i64: 9, 8, 16>}, {pipeline_mode = #tpu.pipeline_mode<synchronous>, transform_indices = @transform_2, window_bounds = array<i64: 8, 1>}, {transform_indices = @transform_3, window_bounds = array<i64: 1, 8, 288>}]} {
    %c0 = arith.constant 0 : index
    %c0_0 = arith.constant 0 : index
    %c0_1 = arith.constant 0 : index
    %0 = vector.load %arg1[%c0, %c0_0, %c0_1] : memref<1x16x326xbf16, #tpu.memory_space<vmem>>, vector<1x16x288xbf16>
    %1 = vector.shape_cast %0 : vector<1x16x288xbf16> to vector<16x288xbf16>
    %c0_2 = arith.constant 0 : index
    %c0_3 = arith.constant 0 : index
    %c0_4 = arith.constant 0 : index
    %2 = vector.load %arg2[%c0_2, %c0_3, %c0_4] : memref<9x8x16xbf16, #tpu.memory_space<vmem>>, vector<1x8x16xbf16>
    %3 = vector.shape_cast %2 : vector<1x8x16xbf16> to vector<8x16xbf16>
    %cst = arith.constant dense<0.000000e+00> : vector<8x288xf32>
    %4 = tpu.matmul %3, %1, %cst {dimension_numbers = #tpu.dot_dimension_numbers<[1], [0], [0], [1], [0, 0, 1, 1], [], []>} : vector<8x16xbf16>, vector<16x288xbf16>, vector<8x288xf32> -> vector<8x288xf32>
    %c0_5 = arith.constant 0 : index
    %c0_6 = arith.constant 0 : index
    %c1 = arith.constant 1 : index
    %5 = vector.load %arg1[%c0_5, %c0_6, %c1] : memref<1x16x326xbf16, #tpu.memory_space<vmem>>, vector<1x16x288xbf16>
    %6 = vector.shape_cast %5 : vector<1x16x288xbf16> to vector<16x288xbf16>
    %c1_7 = arith.constant 1 : index
    %c0_8 = arith.constant 0 : index
    %c0_9 = arith.constant 0 : index
    %7 = vector.load %arg2[%c1_7, %c0_8, %c0_9] : memref<9x8x16xbf16, #tpu.memory_space<vmem>>, vector<1x8x16xbf16>
    %8 = vector.shape_cast %7 : vector<1x8x16xbf16> to vector<8x16xbf16>
    %cst_10 = arith.constant dense<0.000000e+00> : vector<8x288xf32>
    %9 = tpu.matmul %8, %6, %cst_10 {dimension_numbers = #tpu.dot_dimension_numbers<[1], [0], [0], [1], [0, 0, 1, 1], [], []>} : vector<8x16xbf16>, vector<16x288xbf16>, vector<8x288xf32> -> vector<8x288xf32>
    %10 = arith.addf %4, %9 : vector<8x288xf32>
    %c0_11 = arith.constant 0 : index
    %c0_12 = arith.constant 0 : index
    %c2 = arith.constant 2 : index
    %11 = vector.load %arg1[%c0_11, %c0_12, %c2] : memref<1x16x326xbf16, #tpu.memory_space<vmem>>, vector<1x16x288xbf16>
    %12 = vector.shape_cast %11 : vector<1x16x288xbf16> to vector<16x288xbf16>
    %c2_13 = arith.constant 2 : index
    %c0_14 = arith.constant 0 : index
    %c0_15 = arith.constant 0 : index
    %13 = vector.load %arg2[%c2_13, %c0_14, %c0_15] : memref<9x8x16xbf16, #tpu.memory_space<vmem>>, vector<1x8x16xbf16>
    %14 = vector.shape_cast %13 : vector<1x8x16xbf16> to vector<8x16xbf16>
    %cst_16 = arith.constant dense<0.000000e+00> : vector<8x288xf32>
    %15 = tpu.matmul %14, %12, %cst_16 {dimension_numbers = #tpu.dot_dimension_numbers<[1], [0], [0], [1], [0, 0, 1, 1], [], []>} : vector<8x16xbf16>, vector<16x288xbf16>, vector<8x288xf32> -> vector<8x288xf32>
    %16 = arith.addf %10, %15 : vector<8x288xf32>
    %c0_17 = arith.constant 0 : index
    %c0_18 = arith.constant 0 : index
    %c18 = arith.constant 18 : index
    %17 = vector.load %arg1[%c0_17, %c0_18, %c18] : memref<1x16x326xbf16, #tpu.memory_space<vmem>>, vector<1x16x288xbf16>
    %18 = vector.shape_cast %17 : vector<1x16x288xbf16> to vector<16x288xbf16>
    %c3 = arith.constant 3 : index
    %c0_19 = arith.constant 0 : index
    %c0_20 = arith.constant 0 : index
    %19 = vector.load %arg2[%c3, %c0_19, %c0_20] : memref<9x8x16xbf16, #tpu.memory_space<vmem>>, vector<1x8x16xbf16>
    %20 = vector.shape_cast %19 : vector<1x8x16xbf16> to vector<8x16xbf16>
    %cst_21 = arith.constant dense<0.000000e+00> : vector<8x288xf32>
    %21 = tpu.matmul %20, %18, %cst_21 {dimension_numbers = #tpu.dot_dimension_numbers<[1], [0], [0], [1], [0, 0, 1, 1], [], []>} : vector<8x16xbf16>, vector<16x288xbf16>, vector<8x288xf32> -> vector<8x288xf32>
    %22 = arith.addf %16, %21 : vector<8x288xf32>
    %c0_22 = arith.constant 0 : index
    %c0_23 = arith.constant 0 : index
    %c19 = arith.constant 19 : index
    %23 = vector.load %arg1[%c0_22, %c0_23, %c19] : memref<1x16x326xbf16, #tpu.memory_space<vmem>>, vector<1x16x288xbf16>
    %24 = vector.shape_cast %23 : vector<1x16x288xbf16> to vector<16x288xbf16>
    %c4 = arith.constant 4 : index
    %c0_24 = arith.constant 0 : index
    %c0_25 = arith.constant 0 : index
    %25 = vector.load %arg2[%c4, %c0_24, %c0_25] : memref<9x8x16xbf16, #tpu.memory_space<vmem>>, vector<1x8x16xbf16>
    %26 = vector.shape_cast %25 : vector<1x8x16xbf16> to vector<8x16xbf16>
    %cst_26 = arith.constant dense<0.000000e+00> : vector<8x288xf32>
    %27 = tpu.matmul %26, %24, %cst_26 {dimension_numbers = #tpu.dot_dimension_numbers<[1], [0], [0], [1], [0, 0, 1, 1], [], []>} : vector<8x16xbf16>, vector<16x288xbf16>, vector<8x288xf32> -> vector<8x288xf32>
    %28 = arith.addf %22, %27 : vector<8x288xf32>
    %c0_27 = arith.constant 0 : index
    %c0_28 = arith.constant 0 : index
    %c20 = arith.constant 20 : index
    %29 = vector.load %arg1[%c0_27, %c0_28, %c20] : memref<1x16x326xbf16, #tpu.memory_space<vmem>>, vector<1x16x288xbf16>
    %30 = vector.shape_cast %29 : vector<1x16x288xbf16> to vector<16x288xbf16>
    %c5 = arith.constant 5 : index
    %c0_29 = arith.constant 0 : index
    %c0_30 = arith.constant 0 : index
    %31 = vector.load %arg2[%c5, %c0_29, %c0_30] : memref<9x8x16xbf16, #tpu.memory_space<vmem>>, vector<1x8x16xbf16>
    %32 = vector.shape_cast %31 : vector<1x8x16xbf16> to vector<8x16xbf16>
    %cst_31 = arith.constant dense<0.000000e+00> : vector<8x288xf32>
    %33 = tpu.matmul %32, %30, %cst_31 {dimension_numbers = #tpu.dot_dimension_numbers<[1], [0], [0], [1], [0, 0, 1, 1], [], []>} : vector<8x16xbf16>, vector<16x288xbf16>, vector<8x288xf32> -> vector<8x288xf32>
    %34 = arith.addf %28, %33 : vector<8x288xf32>
    %c0_32 = arith.constant 0 : index
    %c0_33 = arith.constant 0 : index
    %c36 = arith.constant 36 : index
    %35 = vector.load %arg1[%c0_32, %c0_33, %c36] : memref<1x16x326xbf16, #tpu.memory_space<vmem>>, vector<1x16x288xbf16>
    %36 = vector.shape_cast %35 : vector<1x16x288xbf16> to vector<16x288xbf16>
    %c6 = arith.constant 6 : index
    %c0_34 = arith.constant 0 : index
    %c0_35 = arith.constant 0 : index
    %37 = vector.load %arg2[%c6, %c0_34, %c0_35] : memref<9x8x16xbf16, #tpu.memory_space<vmem>>, vector<1x8x16xbf16>
    %38 = vector.shape_cast %37 : vector<1x8x16xbf16> to vector<8x16xbf16>
    %cst_36 = arith.constant dense<0.000000e+00> : vector<8x288xf32>
    %39 = tpu.matmul %38, %36, %cst_36 {dimension_numbers = #tpu.dot_dimension_numbers<[1], [0], [0], [1], [0, 0, 1, 1], [], []>} : vector<8x16xbf16>, vector<16x288xbf16>, vector<8x288xf32> -> vector<8x288xf32>
    %40 = arith.addf %34, %39 : vector<8x288xf32>
    %c0_37 = arith.constant 0 : index
    %c0_38 = arith.constant 0 : index
    %c37 = arith.constant 37 : index
    %41 = vector.load %arg1[%c0_37, %c0_38, %c37] : memref<1x16x326xbf16, #tpu.memory_space<vmem>>, vector<1x16x288xbf16>
    %42 = vector.shape_cast %41 : vector<1x16x288xbf16> to vector<16x288xbf16>
    %c7 = arith.constant 7 : index
    %c0_39 = arith.constant 0 : index
    %c0_40 = arith.constant 0 : index
    %43 = vector.load %arg2[%c7, %c0_39, %c0_40] : memref<9x8x16xbf16, #tpu.memory_space<vmem>>, vector<1x8x16xbf16>
    %44 = vector.shape_cast %43 : vector<1x8x16xbf16> to vector<8x16xbf16>
    %cst_41 = arith.constant dense<0.000000e+00> : vector<8x288xf32>
    %45 = tpu.matmul %44, %42, %cst_41 {dimension_numbers = #tpu.dot_dimension_numbers<[1], [0], [0], [1], [0, 0, 1, 1], [], []>} : vector<8x16xbf16>, vector<16x288xbf16>, vector<8x288xf32> -> vector<8x288xf32>
    %46 = arith.addf %40, %45 : vector<8x288xf32>
    %c0_42 = arith.constant 0 : index
    %c0_43 = arith.constant 0 : index
    %c38 = arith.constant 38 : index
    %47 = vector.load %arg1[%c0_42, %c0_43, %c38] : memref<1x16x326xbf16, #tpu.memory_space<vmem>>, vector<1x16x288xbf16>
    %48 = vector.shape_cast %47 : vector<1x16x288xbf16> to vector<16x288xbf16>
    %c8 = arith.constant 8 : index
    %c0_44 = arith.constant 0 : index
    %c0_45 = arith.constant 0 : index
    %49 = vector.load %arg2[%c8, %c0_44, %c0_45] : memref<9x8x16xbf16, #tpu.memory_space<vmem>>, vector<1x8x16xbf16>
    %50 = vector.shape_cast %49 : vector<1x8x16xbf16> to vector<8x16xbf16>
    %cst_46 = arith.constant dense<0.000000e+00> : vector<8x288xf32>
    %51 = tpu.matmul %50, %48, %cst_46 {dimension_numbers = #tpu.dot_dimension_numbers<[1], [0], [0], [1], [0, 0, 1, 1], [], []>} : vector<8x16xbf16>, vector<16x288xbf16>, vector<8x288xf32> -> vector<8x288xf32>
    %52 = arith.addf %46, %51 : vector<8x288xf32>
    %c0_47 = arith.constant 0 : index
    %c0_48 = arith.constant 0 : index
    %53 = vector.load %arg3[%c0_47, %c0_48] : memref<8x1xf32, #tpu.memory_space<vmem>>, vector<8x1xf32>
    %54 = vector.broadcast %53 : vector<8x1xf32> to vector<8x288xf32>
    %55 = arith.addf %52, %54 : vector<8x288xf32>
    %cst_49 = arith.constant 0.000000e+00 : f32
    %56 = vector.broadcast %cst_49 : f32 to vector<8x288xf32>
    %57 = arith.maximumf %55, %56 : vector<8x288xf32>
    %c0_50 = arith.constant 0 : index
    %c0_51 = arith.constant 0 : index
    %c0_52 = arith.constant 0 : index
    %58 = vector.load %arg4[%c0_50, %c0_51, %c0_52] : memref<1x8x288xf32, #tpu.memory_space<vmem>>, vector<1x8x288xf32>
    %59 = vector.shape_cast %58 : vector<1x8x288xf32> to vector<8x288xf32>
    %60 = vector.shape_cast %57 : vector<8x288xf32> to vector<1x8x288xf32>
    tpu.vector_store %arg4[%c0_50, %c0_51, %c0_52], %60 {strides = array<i32>} : memref<1x8x288xf32, #tpu.memory_space<vmem>>, vector<1x8x288xf32>,
    return
  }
  func.func @transform_0(%arg0: i32) -> (i32, i32, i32) {
    %c0_i32 = arith.constant 0 : i32
    %c0_i32_0 = arith.constant 0 : i32
    %c0_i32_1 = arith.constant 0 : i32
    return %arg0, %c0_i32, %c0_i32_0 : i32, i32, i32
  }
  func.func @transform_1(%arg0: i32) -> (i32, i32, i32) {
    %c0_i32 = arith.constant 0 : i32
    %c0_i32_0 = arith.constant 0 : i32
    %c0_i32_1 = arith.constant 0 : i32
    %c0_i32_2 = arith.constant 0 : i32
    return %c0_i32, %c0_i32_0, %c0_i32_1 : i32, i32, i32
  }
  func.func @transform_2(%arg0: i32) -> (i32, i32) {
    %c0_i32 = arith.constant 0 : i32
    %c0_i32_0 = arith.constant 0 : i32
    %c0_i32_1 = arith.constant 0 : i32
    return %c0_i32, %c0_i32_0 : i32, i32
  }
  func.func @transform_3(%arg0: i32) -> (i32, i32, i32) {
    %c0_i32 = arith.constant 0 : i32
    %c0_i32_0 = arith.constant 0 : i32
    %c0_i32_1 = arith.constant 0 : i32
    return %arg0, %c0_i32, %c0_i32_0 : i32, i32, i32
  }
}

module attributes {stable_mosaic.version = 11 : i64} {
  func.func @_conv_taps_kernel(%arg0: i32, %arg1: memref<1x8x256xbf16, #tpu.memory_space<vmem>>, %arg2: memref<1x3x8xbf16, #tpu.memory_space<vmem>>, %arg3: memref<3x1xf32, #tpu.memory_space<vmem>>, %arg4: memref<1x3x256xf32, #tpu.memory_space<vmem>>) attributes {dimension_semantics = [#tpu.dimension_semantics<parallel>], iteration_bounds = array<i64: 2>, scalar_prefetch = 0 : i64, scratch_operands = 0 : i64, tpu.core_type = #tpu.core_type<tc>, window_params = [{transform_indices = @transform_0, window_bounds = array<i64: 1, 8, 256>}, {pipeline_mode = #tpu.pipeline_mode<synchronous>, transform_indices = @transform_1, window_bounds = array<i64: 1, 3, 8>}, {pipeline_mode = #tpu.pipeline_mode<synchronous>, transform_indices = @transform_2, window_bounds = array<i64: 3, 1>}, {transform_indices = @transform_3, window_bounds = array<i64: 1, 3, 256>}]} {
    %c0 = arith.constant 0 : index
    %c0_0 = arith.constant 0 : index
    %c0_1 = arith.constant 0 : index
    %0 = vector.load %arg1[%c0, %c0_0, %c0_1] : memref<1x8x256xbf16, #tpu.memory_space<vmem>>, vector<1x8x256xbf16>
    %1 = vector.shape_cast %0 : vector<1x8x256xbf16> to vector<8x256xbf16>
    %c0_2 = arith.constant 0 : index
    %c0_3 = arith.constant 0 : index
    %c0_4 = arith.constant 0 : index
    %2 = vector.load %arg2[%c0_2, %c0_3, %c0_4] : memref<1x3x8xbf16, #tpu.memory_space<vmem>>, vector<1x3x8xbf16>
    %3 = vector.shape_cast %2 : vector<1x3x8xbf16> to vector<3x8xbf16>
    %cst = arith.constant dense<0.000000e+00> : vector<3x256xf32>
    %4 = tpu.matmul %3, %1, %cst {dimension_numbers = #tpu.dot_dimension_numbers<[1], [0], [0], [1], [0, 0, 1, 1], [], []>} : vector<3x8xbf16>, vector<8x256xbf16>, vector<3x256xf32> -> vector<3x256xf32>
    %c0_5 = arith.constant 0 : index
    %c0_6 = arith.constant 0 : index
    %5 = vector.load %arg3[%c0_5, %c0_6] : memref<3x1xf32, #tpu.memory_space<vmem>>, vector<3x1xf32>
    %6 = vector.broadcast %5 : vector<3x1xf32> to vector<3x256xf32>
    %7 = arith.addf %4, %6 : vector<3x256xf32>
    %c0_7 = arith.constant 0 : index
    %c0_8 = arith.constant 0 : index
    %c0_9 = arith.constant 0 : index
    %8 = vector.load %arg4[%c0_7, %c0_8, %c0_9] : memref<1x3x256xf32, #tpu.memory_space<vmem>>, vector<1x3x256xf32>
    %9 = vector.shape_cast %8 : vector<1x3x256xf32> to vector<3x256xf32>
    %10 = vector.shape_cast %7 : vector<3x256xf32> to vector<1x3x256xf32>
    tpu.vector_store %arg4[%c0_7, %c0_8, %c0_9], %10 {strides = array<i32>} : memref<1x3x256xf32, #tpu.memory_space<vmem>>, vector<1x3x256xf32>,
    return
  }
  func.func @transform_0(%arg0: i32) -> (i32, i32, i32) {
    %c0_i32 = arith.constant 0 : i32
    %c0_i32_0 = arith.constant 0 : i32
    %c0_i32_1 = arith.constant 0 : i32
    return %arg0, %c0_i32, %c0_i32_0 : i32, i32, i32
  }
  func.func @transform_1(%arg0: i32) -> (i32, i32, i32) {
    %c0_i32 = arith.constant 0 : i32
    %c0_i32_0 = arith.constant 0 : i32
    %c0_i32_1 = arith.constant 0 : i32
    %c0_i32_2 = arith.constant 0 : i32
    return %c0_i32, %c0_i32_0, %c0_i32_1 : i32, i32, i32
  }
  func.func @transform_2(%arg0: i32) -> (i32, i32) {
    %c0_i32 = arith.constant 0 : i32
    %c0_i32_0 = arith.constant 0 : i32
    %c0_i32_1 = arith.constant 0 : i32
    return %c0_i32, %c0_i32_0 : i32, i32
  }
  func.func @transform_3(%arg0: i32) -> (i32, i32, i32) {
    %c0_i32 = arith.constant 0 : i32
    %c0_i32_0 = arith.constant 0 : i32
    %c0_i32_1 = arith.constant 0 : i32
    return %arg0, %c0_i32, %c0_i32_0 : i32, i32, i32
  }
}

</mosaic_0001>

<bundles_post_ra>
// kernel: scan_only_net.19
= control target key start
LH: loop header
LB: loop body
LE: loop exit
PB: predicated region body
PF: predicated region fallthrough
CT: control target
= control target key end

     0   :  { %s1523_s12 = smov 0   ;;  %s1700_s0 = inlined_call_operand.vmem [shape: bf16[2,4,326], index: 0, kind: input, shape index: {}]   ;;  %s1701_s1 = inlined_call_operand.vmem [shape: bf16[9,8,4], index: 1, kind: input, shape index: {}]   ;;  %s1702_s2 = inlined_call_operand.vmem [shape: f32[8,1], index: 2, kind: input, shape index: {}]   ;;  %s1703_s3 = inlined_call_operand.vmem [shape: f32[2,8,288], index: 3, kind: output, shape index: {}]  }
   0x1 LB: > { %s1336_s13 = sadd.s32 4294967295, %s1489_s12   ;;  %p1340_p0 = scmp.ge.s32.totalorder %s1489_s12, 1  ;;  %s1489_s12 = sphi %s1523_s12, %s13_s12  }
   0x2   : > { %p137_p1 = scmp.lt.s32.totalorder %s1489_s12, 3 }
   0x4   : > { %p138_p2 = pnand %p1340_p0, %p137_p1 }
   0x5   : > { %p161_p3 = scmp.lt.s32.totalorder (!%p138_p2), %s1336_s13, 1  ;;  %s1495_s18 = smov (!%p138_p2), 127  }
   0x6   : > { %141 = sbr.rel (%p138_p2) target bundleno = 410 (0x19a), region = 32  ;;  %s1496_s19 = smov (!%p138_p2), 126  }
   0x7   : > { %s1497_s20 = smov (!%p138_p2), 110   ;;  %s1498_s21 = smov (!%p138_p2), 109  }
   0x8   : > { %s1499_s22 = smov (!%p138_p2), 108   ;;  %s1500_s23 = smov (!%p138_p2), 92  }
   0x9   : > { %s1501_s24 = smov (!%p138_p2), 91   ;;  %s1502_s25 = smov (!%p138_p2), 90  }
   0xb   : > { %v181_v0 = vlaneseq  ;;  %v1491_v1 = vmov 1983009808   ;;  %v1492_v3 = vmov 0.0   ;;  %s1705_s13 = smov (!%p161_p3, %s1336_s13), 1  ;;  %vm1493_vm0 = vmmov 0   ;;  %v1265_v48 = vld [vmem:[%s1702_s2] sm:$0xff] }
   0xc   : > { %v179_v2 = vunpack.c.l.s4 %v1491_v1  ;;  %1398 = vmatprep.subr.bf16.mxu1 %v1492_v3  ;;  %1400 = vmatprep.mubr.msk.bf16.mxu1 %vm1493_vm0, %v1492_v3  ;;  %s1452_s14 = smul.u32 6, %s1705_s13  ;;  %v1494_v6 = vmov 0   ;;  %vm206_vm1 = vcmask 1041408   ;;  %vm199_vm2 = vcmask 1039360   ;;  %v1343_v53 = vld [vmem:[%s1701_s1 + $0x4] sm:$0xf] }
   0xd   : > { %v182_v4 = vshrl.u32 %v181_v0, 7  ;;  %248 = vmatprep.mubr.bf16.mxu0 %v1494_v6  ;;  %1474 = vset.pattern.permute.xlu0 %v1494_v6  ;;  %vm202_vm3 = vcmask 31744   ;;  %vm416_vm4 = vcmask 1031168   ;;  %v173_v63 = vld [vmem:[%s1701_s1] sm:$0xf]  ;;  %vm541_vm5 = vcmask 900096  }
   0xe   : > { %v180_v5 = vunpack.c.0.s8 %v179_v2  ;;  %s1544_s17 = scalar_lea.vmem %s1700_s0, %s1452_s14  ;;  %vm666_vm6 = vcmask 891904   ;;  %vm791_vm7 = vcmask 883712   ;;  %vm916_vm8 = vcmask 752640  }
   0xf   : > { %v172_v8 = vld [vmem:[%s1544_s17] sm:$0x3f]  ;;  %vm1041_vm9 = vcmask 744448   ;;  %vm1166_vm10 = vcmask 736256   ;;  %vm1279_vm11 = vcmask 261120  }
  0x10   : > { %v1539_v7 = vsub.s32 %v180_v5, %v182_v4  ;;  %v177_v10 = vcombine.high %v172_v8, %v172_v8  ;;  %v390_v11 = vld [vmem:[%s1544_s17] sm:$0x3f] }
  0x11   : > { %v394_v15 = vcombine.high %v390_v11, %v390_v11  ;;  %v515_v17 = vld [vmem:[%s1544_s17] sm:$0x3f] }
  0x12   : > { %v1548_v9 = vrot.slane %v172_v8, %v1539_v7  ;;  %v1553_v12 = vrot.slane %v177_v10, %v1539_v7  ;;  %v401_v14 = vrot.slane %v390_v11, %v1539_v7  ;;  %v526_v19 = vrot.slane %v515_v17, %v1539_v7  ;;  %v640_v22 = vld [vmem:[%s1544_s17] sm:$0x3f]  ;;  %v1350_v10 = vld [vmem:[%s1701_s1 + $0x8] sm:$0xf] }
  0x13   : > { %v408_v18 = vrot.slane %v394_v15, %v1539_v7  ;;  %v519_v20 = vcombine.high %v515_v17, %v515_v17  ;;  %v651_v24 = vrot.slane %v640_v22, %v1539_v7  ;;  %v644_v25 = vcombine.high %v640_v22, %v640_v22  ;;  %v765_v27 = vld [vmem:[%s1544_s17] sm:$0x3f] }
  0x14   : > { %193 = vrot.lane.b32.xlu0 %v1548_v9, %s1495_s18  ;;  %v1557_v13 = vcombine.high %v1548_v9, %v1548_v9  ;;  %197 = vrot.lane.b32.xlu1 %v1553_v12, %s1495_s18  ;;  %v409_v16 = vcombine.high %v401_v14, %v401_v14  ;;  %v534_v21 = vcombine.high %v526_v19, %v526_v19  ;;  %v890_v32 = vld [vmem:[%s1544_s17] sm:$0x3f]  ;;  %v307_v56 = vsel %vm206_vm1, %v1553_v12, 0 }
  0x15   : > { %v533_v23 = vrot.slane %v519_v20, %v1539_v7  ;;  %v659_v26 = vcombine.high %v651_v24, %v651_v24  ;;  %v658_v28 = vrot.slane %v644_v25, %v1539_v7  ;;  %v776_v29 = vrot.slane %v765_v27, %v1539_v7  ;;  %v1015_v37 = vld [vmem:[%s1544_s17] sm:$0x3f] }
  0x16   : > { %v769_v30 = vcombine.high %v765_v27, %v765_v27  ;;  %v901_v34 = vrot.slane %v890_v32, %v1539_v7  ;;  %v894_v35 = vcombine.high %v890_v32, %v890_v32  ;;  %v1026_v39 = vrot.slane %v1015_v37, %v1539_v7  ;;  %v1140_v42 = vld [vmem:[%s1544_s17] sm:$0x3f]  ;;  %v1358_v27 = vld [vmem:[%s1701_s1 + $0x10] sm:$0xf] }
  0x17   : > { %v784_v31 = vcombine.high %v776_v29, %v776_v29  ;;  %v1019_v40 = vcombine.high %v1015_v37, %v1015_v37  ;;  %v1151_v44 = vrot.slane %v1140_v42, %v1539_v7  ;;  %v1144_v45 = vcombine.high %v1140_v42, %v1140_v42  ;;  %v1366_v42 = vld [vmem:[%s1701_s1 + $0x18] sm:$0xf] }
  0x18   : > { %195 = vrot.lane.b32.xlu0 %v1557_v13, %s1495_s18  ;;  %410 = vrot.lane.b32.xlu1 %v401_v14, %s1496_s19  ;;  %v783_v33 = vrot.slane %v769_v30, %v1539_v7  ;;  %v909_v36 = vcombine.high %v901_v34, %v901_v34  ;;  %v908_v38 = vrot.slane %v894_v35, %v1539_v7  ;;  %v301_v59 = vsel %vm206_vm1, %v1548_v9, 0  ;;  %v1362_v35 = vld [vmem:[%s1701_s1 + $0x14] sm:$0xf] }
  0x19   : > { %v1034_v41 = vcombine.high %v1026_v39, %v1026_v39  ;;  %v1033_v43 = vrot.slane %v1019_v40, %v1539_v7  ;;  %v1159_v46 = vcombine.high %v1151_v44, %v1151_v44  ;;  %v1158_v47 = vrot.slane %v1144_v45, %v1539_v7 }
  0x1c   : > { %412 = vrot.lane.b32.xlu0 %v409_v16, %s1496_s19  ;;  %414 = vrot.lane.b32.xlu1 %v408_v18, %s1496_s19 }
  0x20   : > { %535 = vrot.lane.b32.xlu0 %v526_v19, %s1497_s20  ;;  %537 = vrot.lane.b32.xlu1 %v534_v21, %s1497_s20  ;;  %v1354_v19 = vld [vmem:[%s1701_s1 + $0xc] sm:$0xf] }
  0x24   : > { %539 = vrot.lane.b32.xlu0 %v533_v23, %s1497_s20  ;;  %660 = vrot.lane.b32.xlu1 %v651_v24, %s1498_s21 }
  0x28   : > { %662 = vrot.lane.b32.xlu0 %v659_v26, %s1498_s21  ;;  %664 = vrot.lane.b32.xlu1 %v658_v28, %s1498_s21  ;;  %s1453_s21 = smul.u32 24, %s1705_s13 }
  0x2c   : > { %785 = vrot.lane.b32.xlu0 %v776_v29, %s1499_s22  ;;  %787 = vrot.lane.b32.xlu1 %v784_v31, %s1499_s22 }
  0x30   : > { %789 = vrot.lane.b32.xlu0 %v783_v33, %s1499_s22  ;;  %910 = vrot.lane.b32.xlu1 %v901_v34, %s1500_s23 }
  0x34   : > { %912 = vrot.lane.b32.xlu0 %v909_v36, %s1500_s23  ;;  %914 = vrot.lane.b32.xlu1 %v908_v38, %s1500_s23 }
  0x38   : > { %1035 = vrot.lane.b32.xlu0 %v1026_v39, %s1501_s24  ;;  %1037 = vrot.lane.b32.xlu1 %v1034_v41, %s1501_s24 }
  0x3c   : > { %1039 = vrot.lane.b32.xlu0 %v1033_v43, %s1501_s24  ;;  %1160 = vrot.lane.b32.xlu1 %v1151_v44, %s1502_s25  ;;  %s170_s24 = scalar_lea.vmem %s1703_s3, %s1453_s21 }
  0x40   : > { %1162 = vrot.lane.b32.xlu0 %v1159_v46, %s1502_s25  ;;  %1164 = vrot.lane.b32.xlu1 %v1158_v47, %s1502_s25 }
  0x44   : > { %1268 = vperm.xlu0 %1474, %v1265_v48  }
  0x86   : > { %v194_v49 = vpop.permute.xlu0 %193  ;;  %v198_v50 = vpop.permute.xlu1 %197 }
  0x87   : > { %v214_v51 = vsel %vm206_vm1, %v198_v50, 0 }
  0x88   : > { %1399 = vmatpush3.bf16.msra.mxu1 %v214_v51 }
  0x89   : > { %1404 = vmatprep.subr.bf16.mxu1 %v1492_v3 }
  0x8a   : > { %v196_v52 = vpop.permute.xlu0 %195  ;;  %v411_v58 = vpop.permute.xlu1 %410 }
  0x8b   : > { %v201_v54 = vsel %vm199_vm2, %v196_v52, %v198_v50  ;;  %v200_v55 = vsel %vm199_vm2, %v194_v49, %v196_v52  ;;  %1401 = vmatmul.mubr.msk.bf16.vlgmr.msra.gmra.mxu1 %vm202_vm3, %v1343_v53  ;;  %v1370_v49 = vld [vmem:[%s1701_s1 + $0x1c] sm:$0xf] }
  0x8c   : > { %1344 = vmatprep.subr.msk.bf16.mxu0 %vm206_vm1, %v201_v54  ;;  %v208_v57 = vsel %vm206_vm1, %v200_v55, 0  ;;  %1405 = vmatpush3.bf16.msra.mxu1 %v307_v56 }
  0x8d   : > { %231 = vmatpush1.bf16.msra.mxu0 %v208_v57  ;;  %1406 = vmatprep.mubr.msk.bf16.mxu1 %vm1493_vm0, %v1492_v3 }
  0x8e   : > { %1347 = vmatprep.subr.msk.bf16.mxu0 %vm206_vm1, %v1557_v13  ;;  %v413_v60 = vpop.permute.xlu0 %412  ;;  %1410 = vmatprep.subr.bf16.mxu1 %v1492_v3  ;;  %v415_v61 = vpop.permute.xlu1 %414 }
  0x8f   : > { %v418_v62 = vsel %vm416_vm4, %v413_v60, %v415_v61  ;;  %v417_v1 = vsel %vm416_vm4, %v411_v58, %v413_v60  ;;  %v429_v2 = vsel %vm206_vm1, %v415_v61, 0 }
  0x90   : > { %1345 = vmatmul.mubr.msk.bf16.vlgmr.msra.gmra.mxu0 %vm202_vm3, %v1343_v53  ;;  %v423_v5 = vsel %vm206_vm1, %v417_v1, 0  ;;  %v1374_v53 = vld [vmem:[%s1701_s1 + $0x20] sm:$0xf] }
  0x91   : > { %324 = vmatpush1.bf16.msra.mxu0 %v301_v59  ;;  %341 = vmatprep.mubr.bf16.mxu0 %v1494_v6 }
  0x92   : > { %1351 = vmatprep.subr.msk.bf16.mxu0 %vm206_vm1, %v418_v62  ;;  %v536_v0 = vpop.permute.xlu0 %535  ;;  %v538_v4 = vpop.permute.xlu1 %537 }
  0x93   : > { %1407 = vmatmul.mubr.msk.bf16.vlgmr.msra.gmra.mxu1 %vm202_vm3, %v173_v63  ;;  %v542_v12 = vsel %vm541_vm5, %v536_v0, %v538_v4 }
  0x94   : > { %1411 = vmatpush3.bf16.msra.mxu1 %v429_v2  ;;  %1412 = vmatprep.mubr.msk.bf16.mxu1 %vm1493_vm0, %v1492_v3  ;;  %v548_v15 = vsel %vm206_vm1, %v542_v12, 0 }
  0x95   : > { %1416 = vmatprep.subr.bf16.mxu1 %v1492_v3 }
  0x96   : > { %v540_v7 = vpop.permute.xlu0 %539  ;;  %v661_v9 = vpop.permute.xlu1 %660 }
  0x97   : > { %v543_v8 = vsel %vm541_vm5, %v538_v4, %v540_v7  ;;  %v554_v13 = vsel %vm206_vm1, %v540_v7, 0 }
  0x98   : > { %1348 = vmatmul.mubr.msk.bf16.vlgmr.msra.gmra.mxu0 %vm202_vm3, %v173_v63 }
  0x99   : > { %446 = vmatpush1.bf16.msra.mxu0 %v423_v5  ;;  %463 = vmatprep.mubr.bf16.mxu0 %v1494_v6 }
  0x9a   : > { %1355 = vmatprep.subr.msk.bf16.mxu0 %vm206_vm1, %v543_v8  ;;  %v663_v11 = vpop.permute.xlu0 %662  ;;  %v665_v14 = vpop.permute.xlu1 %664 }
  0x9b   : > { %1413 = vmatmul.mubr.msk.bf16.vlgmr.msra.gmra.mxu1 %vm202_vm3, %v1350_v10  ;;  %v668_v17 = vsel %vm666_vm6, %v663_v11, %v665_v14  ;;  %v667_v20 = vsel %vm666_vm6, %v661_v9, %v663_v11  ;;  %v679_v21 = vsel %vm206_vm1, %v665_v14, 0 }
  0x9c   : > { %1417 = vmatpush3.bf16.msra.mxu1 %v554_v13  ;;  %1418 = vmatprep.mubr.msk.bf16.mxu1 %vm1493_vm0, %v1492_v3  ;;  %v673_v23 = vsel %vm206_vm1, %v667_v20, 0 }
  0x9d   : > { %1422 = vmatprep.subr.bf16.mxu1 %v1492_v3 }
  0x9e   : > { %v786_v16 = vpop.permute.xlu0 %785  ;;  %v788_v18 = vpop.permute.xlu1 %787 }
  0x9f   : > { %v792_v28 = vsel %vm791_vm7, %v786_v16, %v788_v18 }
  0xa0   : > { %1352 = vmatmul.mubr.msk.bf16.vlgmr.msra.gmra.mxu0 %vm202_vm3, %v1350_v10  ;;  %v798_v31 = vsel %vm206_vm1, %v792_v28, 0 }
  0xa1   : > { %571 = vmatpush1.bf16.msra.mxu0 %v548_v15  ;;  %588 = vmatprep.mubr.bf16.mxu0 %v1494_v6 }
  0xa2   : > { %1359 = vmatprep.subr.msk.bf16.mxu0 %vm206_vm1, %v668_v17  ;;  %v790_v22 = vpop.permute.xlu0 %789  ;;  %v911_v24 = vpop.permute.xlu1 %910 }
  0xa3   : > { %1419 = vmatmul.mubr.msk.bf16.vlgmr.msra.gmra.mxu1 %vm202_vm3, %v1354_v19  ;;  %v793_v25 = vsel %vm791_vm7, %v788_v18, %v790_v22  ;;  %v804_v29 = vsel %vm206_vm1, %v790_v22, 0 }
  0xa4   : > { %1423 = vmatpush3.bf16.msra.mxu1 %v679_v21  ;;  %1424 = vmatprep.mubr.msk.bf16.mxu1 %vm1493_vm0, %v1492_v3 }
  0xa5   : > { %1428 = vmatprep.subr.bf16.mxu1 %v1492_v3 }
  0xa6   : > { %v913_v26 = vpop.permute.xlu0 %912  ;;  %v915_v30 = vpop.permute.xlu1 %914 }
  0xa7   : > { %v918_v33 = vsel %vm916_vm8, %v913_v26, %v915_v30  ;;  %v917_v36 = vsel %vm916_vm8, %v911_v24, %v913_v26  ;;  %v929_v37 = vsel %vm206_vm1, %v915_v30, 0 }
  0xa8   : > { %1356 = vmatmul.mubr.msk.bf16.vlgmr.msra.gmra.mxu0 %vm202_vm3, %v1354_v19  ;;  %v923_v39 = vsel %vm206_vm1, %v917_v36, 0 }
  0xa9   : > { %696 = vmatpush1.bf16.msra.mxu0 %v673_v23  ;;  %713 = vmatprep.mubr.bf16.mxu0 %v1494_v6 }
  0xaa   : > { %1363 = vmatprep.subr.msk.bf16.mxu0 %vm206_vm1, %v793_v25  ;;  %v1036_v32 = vpop.permute.xlu0 %1035  ;;  %v1038_v34 = vpop.permute.xlu1 %1037 }
  0xab   : > { %1425 = vmatmul.mubr.msk.bf16.vlgmr.msra.gmra.mxu1 %vm202_vm3, %v1358_v27  ;;  %v1042_v43 = vsel %vm1041_vm9, %v1036_v32, %v1038_v34 }
  0xac   : > { %1429 = vmatpush3.bf16.msra.mxu1 %v804_v29  ;;  %1430 = vmatprep.mubr.msk.bf16.mxu1 %vm1493_vm0, %v1492_v3  ;;  %v1048_v47 = vsel %vm206_vm1, %v1042_v43, 0 }
  0xad   : > { %1434 = vmatprep.subr.bf16.mxu1 %v1492_v3 }
  0xae   : > { %v1040_v38 = vpop.permute.xlu0 %1039  ;;  %v1161_v40 = vpop.permute.xlu1 %1160 }
  0xaf   : > { %v1043_v41 = vsel %vm1041_vm9, %v1038_v34, %v1040_v38  ;;  %v1054_v44 = vsel %vm206_vm1, %v1040_v38, 0 }
  0xb0   : > { %1360 = vmatmul.mubr.msk.bf16.vlgmr.msra.gmra.mxu0 %vm202_vm3, %v1358_v27 }
  0xb1   : > { %821 = vmatpush1.bf16.msra.mxu0 %v798_v31  ;;  %838 = vmatprep.mubr.bf16.mxu0 %v1494_v6 }
  0xb2   : > { %1367 = vmatprep.subr.msk.bf16.mxu0 %vm206_vm1, %v918_v33  ;;  %v1163_v45 = vpop.permute.xlu0 %1162  ;;  %v1165_v46 = vpop.permute.xlu1 %1164 }
  0xb3   : > { %1431 = vmatmul.mubr.msk.bf16.vlgmr.msra.gmra.mxu1 %vm202_vm3, %v1362_v35  ;;  %v1168_v48 = vsel %vm1166_vm10, %v1163_v45, %v1165_v46  ;;  %v1167_v50 = vsel %vm1166_vm10, %v1161_v40, %v1163_v45  ;;  %v1179_v51 = vsel %vm206_vm1, %v1165_v46, 0 }
  0xb4   : > { %1435 = vmatpush3.bf16.msra.mxu1 %v929_v37  ;;  %1436 = vmatprep.mubr.msk.bf16.mxu1 %vm1493_vm0, %v1492_v3  ;;  %v1173_v52 = vsel %vm206_vm1, %v1167_v50, 0 }
  0xb5   : > { %1440 = vmatprep.subr.bf16.mxu1 %v1492_v3 }
  0xb8   : > { %1364 = vmatmul.mubr.msk.bf16.vlgmr.msra.gmra.mxu0 %vm202_vm3, %v1362_v35 }
  0xb9   : > { %946 = vmatpush1.bf16.msra.mxu0 %v923_v39  ;;  %963 = vmatprep.mubr.bf16.mxu0 %v1494_v6 }
  0xba   : > { %1371 = vmatprep.subr.msk.bf16.mxu0 %vm206_vm1, %v1043_v41 }
  0xbb   : > { %1437 = vmatmul.mubr.msk.bf16.vlgmr.msra.gmra.mxu1 %vm202_vm3, %v1366_v42 }
  0xbc   : > { %1441 = vmatpush3.bf16.msra.mxu1 %v1054_v44  ;;  %1442 = vmatprep.mubr.msk.bf16.mxu1 %vm1493_vm0, %v1492_v3 }
  0xbd   : > { %1446 = vmatprep.subr.bf16.mxu1 %v1492_v3 }
  0xc0   : > { %1368 = vmatmul.mubr.msk.bf16.vlgmr.msra.gmra.mxu0 %vm202_vm3, %v1366_v42 }
  0xc1   : > { %1071 = vmatpush1.bf16.msra.mxu0 %v1048_v47  ;;  %1088 = vmatprep.mubr.bf16.mxu0 %v1494_v6 }
  0xc2   : > { %1375 = vmatprep.subr.msk.bf16.mxu0 %vm206_vm1, %v1168_v48 }
  0xc3   : > { %1443 = vmatmul.mubr.msk.bf16.vlgmr.msra.gmra.mxu1 %vm202_vm3, %v1370_v49 }
  0xc4   : > { %1447 = vmatpush3.bf16.msra.mxu1 %v1179_v51  ;;  %1448 = vmatprep.mubr.msk.bf16.mxu1 %vm1493_vm0, %v1492_v3 }
  0xc8   : > { %1372 = vmatmul.mubr.msk.bf16.vlgmr.msra.gmra.mxu0 %vm202_vm3, %v1370_v49 }
  0xc9   : > { %1196 = vmatpush1.bf16.msra.mxu0 %v1173_v52  ;;  %1213 = vmatprep.mubr.bf16.mxu0 %v1494_v6 }
  0xcb   : > { %1449 = vmatmul.mubr.msk.bf16.vlgmr.msra.gmra.mxu1 %vm202_vm3, %v1374_v53 }
  0xd0   : > { %1376 = vmatmul.mubr.msk.bf16.vlgmr.msra.gmra.mxu0 %vm202_vm3, %v1374_v53 }
 0x14b   : > { %v291_v54 = vpop.f32.mrf.mxu1 }
 0x14d   : > { %v1402_v55 = vpop.f32.mrf.mxu1 }
 0x14f   : > { %v294_v57 = vpop.f32.mrf.mxu1 }
 0x150   : > { %v250_v56 = vpop.f32.mrf.mxu0 }
 0x151   : > { %v1403_v59 = vpop.f32.mrf.mxu1 }
 0x152   : > { %v252_v58 = vpop.f32.mrf.mxu0 }
 0x153   : > { %v384_v60 = vpop.f32.mrf.mxu1 }
 0x154   : > { %v254_v3 = vpop.f32.mrf.mxu0  ;;  %v385_v40 = vadd.f32 %v384_v60, %v291_v54 }
 0x155   : > { %v1408_v62 = vpop.f32.mrf.mxu1 }
 0x156   : > { %v255_v61 = vpop.f32.mrf.mxu0 }
 0x157   : > { %v387_v6 = vpop.f32.mrf.mxu1 }
 0x158   : > { %v343_v63 = vpop.f32.mrf.mxu0 }
 0x159   : > { %v1409_v1 = vpop.f32.mrf.mxu1  ;;  %v344_v45 = vadd.f32 %v343_v63, %v250_v56 }
 0x15a   : > { %v345_v0 = vpop.f32.mrf.mxu0 }
 0x15b   : > { %v506_v4 = vpop.f32.mrf.mxu1  ;;  %v346_v49 = vadd.f32 %v345_v0, %v252_v58 }
 0x15c   : > { %v347_v2 = vpop.f32.mrf.mxu0  ;;  %v514_v43 = vadd.f32 %v506_v4, %v385_v40 }
 0x15d   : > { %v1414_v7 = vpop.f32.mrf.mxu1 }
 0x15e   : > { %v348_v5 = vpop.f32.mrf.mxu0 }
 0x15f   : > { %v509_v9 = vpop.f32.mrf.mxu1 }
 0x160   : > { %v465_v8 = vpop.f32.mrf.mxu0 }
 0x161   : > { %v1415_v11 = vpop.f32.mrf.mxu1  ;;  %v512_v50 = vadd.f32 %v465_v8, %v344_v45  ;;  %v1269_v8 = vpop.permute.xlu0 %1268 }
 0x162   : > { %v467_v10 = vpop.f32.mrf.mxu0 }
 0x163   : > { %v631_v13 = vpop.f32.mrf.mxu1  ;;  %v513_v55 = vadd.f32 %v467_v10, %v346_v49 }
 0x164   : > { %v469_v12 = vpop.f32.mrf.mxu0  ;;  %v639_v47 = vadd.f32 %v631_v13, %v514_v43 }
 0x165   : > { %v1420_v15 = vpop.f32.mrf.mxu1 }
 0x166   : > { %v470_v14 = vpop.f32.mrf.mxu0 }
 0x167   : > { %v634_v17 = vpop.f32.mrf.mxu1 }
 0x168   : > { %v590_v16 = vpop.f32.mrf.mxu0 }
 0x169   : > { %v1421_v19 = vpop.f32.mrf.mxu1  ;;  %v637_v57 = vadd.f32 %v590_v16, %v512_v50 }
 0x16a   : > { %v592_v18 = vpop.f32.mrf.mxu0 }
 0x16b   : > { %v756_v21 = vpop.f32.mrf.mxu1  ;;  %v638_v54 = vadd.f32 %v592_v18, %v513_v55 }
 0x16c   : > { %v594_v20 = vpop.f32.mrf.mxu0  ;;  %v764_v52 = vadd.f32 %v756_v21, %v639_v47 }
 0x16d   : > { %v1426_v23 = vpop.f32.mrf.mxu1 }
 0x16e   : > { %v595_v22 = vpop.f32.mrf.mxu0 }
 0x16f   : > { %v759_v25 = vpop.f32.mrf.mxu1 }
 0x170   : > { %v715_v24 = vpop.f32.mrf.mxu0 }
 0x171   : > { %v1427_v27 = vpop.f32.mrf.mxu1  ;;  %v762_v60 = vadd.f32 %v715_v24, %v637_v57 }
 0x172   : > { %v717_v26 = vpop.f32.mrf.mxu0 }
 0x173   : > { %v881_v29 = vpop.f32.mrf.mxu1  ;;  %v763_v56 = vadd.f32 %v717_v26, %v638_v54 }
 0x174   : > { %v719_v28 = vpop.f32.mrf.mxu0  ;;  %v889_v3 = vadd.f32 %v881_v29, %v764_v52 }
 0x175   : > { %v1432_v31 = vpop.f32.mrf.mxu1 }
 0x176   : > { %v720_v30 = vpop.f32.mrf.mxu0 }
 0x177   : > { %v884_v33 = vpop.f32.mrf.mxu1 }
 0x178   : > { %v840_v32 = vpop.f32.mrf.mxu0 }
 0x179   : > { %v1433_v35 = vpop.f32.mrf.mxu1  ;;  %v887_v63 = vadd.f32 %v840_v32, %v762_v60 }
 0x17a   : > { %v842_v34 = vpop.f32.mrf.mxu0 }
 0x17b   : > { %v1006_v37 = vpop.f32.mrf.mxu1  ;;  %v888_v0 = vadd.f32 %v842_v34, %v763_v56 }
 0x17c   : > { %v844_v36 = vpop.f32.mrf.mxu0  ;;  %v1014_v6 = vadd.f32 %v1006_v37, %v889_v3 }
 0x17d   : > { %v1438_v39 = vpop.f32.mrf.mxu1 }
 0x17e   : > { %v845_v38 = vpop.f32.mrf.mxu0 }
 0x17f   : > { %v1009_v42 = vpop.f32.mrf.mxu1 }
 0x180   : > { %v965_v41 = vpop.f32.mrf.mxu0 }
 0x181   : > { %v1439_v46 = vpop.f32.mrf.mxu1  ;;  %v1012_v5 = vadd.f32 %v965_v41, %v887_v63 }
 0x182   : > { %v967_v44 = vpop.f32.mrf.mxu0 }
 0x183   : > { %v1131_v51 = vpop.f32.mrf.mxu1  ;;  %v1013_v11 = vadd.f32 %v967_v44, %v888_v0 }
 0x184   : > { %v969_v48 = vpop.f32.mrf.mxu0  ;;  %v1139_v4 = vadd.f32 %v1131_v51, %v1014_v6 }
 0x185   : > { %v1444_v59 = vpop.f32.mrf.mxu1 }
 0x186   : > { %v970_v53 = vpop.f32.mrf.mxu0 }
 0x187   : > { %v1134_v62 = vpop.f32.mrf.mxu1 }
 0x188   : > { %v1090_v61 = vpop.f32.mrf.mxu0 }
 0x189   : > { %v1445_v2 = vpop.f32.mrf.mxu1  ;;  %v1137_v12 = vadd.f32 %v1090_v61, %v1012_v5 }
 0x18a   : > { %v1092_v1 = vpop.f32.mrf.mxu0 }
 0x18b   : > { %v1256_v7 = vpop.f32.mrf.mxu1  ;;  %v1138_v16 = vadd.f32 %v1092_v1, %v1013_v11 }
 0x18c   : > { %v1094_v58 = vpop.f32.mrf.mxu0  ;;  %v1264_v9 = vadd.f32 %v1256_v7, %v1139_v4 }
 0x18d   : > { %v1450_v13 = vpop.f32.mrf.mxu1 }
 0x18e   : > { %v1095_v10 = vpop.f32.mrf.mxu0  ;;  %v1273_v14 = vadd.f32 %v1269_v8, %v1264_v9 }
 0x18f   : > { %v1259_v18 = vpop.f32.mrf.mxu1 }
 0x190   : > { %v1215_v15 = vpop.f32.mrf.mxu0  ;;  %v1276_v19 = vmax.f32 %v1273_v14, 0.0 }
 0x191   : > { %v1262_v17 = vadd.f32 %v1215_v15, %v1137_v12  ;;  %v1451_v23 = vpop.f32.mrf.mxu1 }
 0x192   : > { %v1217_v20 = vpop.f32.mrf.mxu0  ;;  %1280 = vst.msk [vmem:[%s170_s24 + $0x10] sm:$0xff] %vm1279_vm11, %v1276_v19 }
 0x193   : > { %v1271_v21 = vadd.f32 %v1269_v8, %v1262_v17  ;;  %v1263_v22 = vadd.f32 %v1217_v20, %v1138_v16 }
 0x194   : > { %v1219_v24 = vpop.f32.mrf.mxu0 }
 0x195   : > { %v1274_v25 = vmax.f32 %v1271_v21, 0.0  ;;  %v1272_v26 = vadd.f32 %v1269_v8, %v1263_v22 }
 0x196   : > { %v1220_v27 = vpop.f32.mrf.mxu0 }
 0x197   : > { %1277 = vst [vmem:[%s170_s24] sm:$0xff] %v1274_v25  ;;  %v1275_v28 = vmax.f32 %v1272_v26, 0.0 }
 0x199   : > { %1278 = vst [vmem:[%s170_s24 + $0x8] sm:$0xff] %v1275_v28 }
 0x19a PF: > { %s13_s12 = sadd.s32 1, %s1489_s12  }
 0x19b   : > { %p10_p4 = scmp.ge.s32.totalorder %s13_s12, 4  }
 0x19d   :  { %12 = sbr.rel (!%p10_p4) target bundleno = 1 (0x1), region = 70 }

// kernel: scan_only_net.20
= control target key start
LH: loop header
LB: loop body
LE: loop exit
PB: predicated region body
PF: predicated region fallthrough
CT: control target
= control target key end

     0   :  { %s1385_s12 = smov 0   ;;  %s1520_s0 = inlined_call_operand.vmem [shape: bf16[2,8,326], index: 0, kind: input, shape index: {}]   ;;  %s1521_s1 = inlined_call_operand.vmem [shape: bf16[9,8,8], index: 1, kind: input, shape index: {}]   ;;  %s1522_s2 = inlined_call_operand.vmem [shape: f32[8,1], index: 2, kind: input, shape index: {}]   ;;  %s1523_s3 = inlined_call_operand.vmem [shape: f32[2,8,288], index: 3, kind: output, shape index: {}]  }
   0x1 LB: > { %s1202_s13 = sadd.s32 4294967295, %s1352_s12   ;;  %p1206_p0 = scmp.ge.s32.totalorder %s1352_s12, 1  ;;  %s1352_s12 = sphi %s1385_s12, %s13_s12  }
   0x2   : > { %p137_p1 = scmp.lt.s32.totalorder %s1352_s12, 3 }
   0x4   : > { %p138_p2 = pnand %p1206_p0, %p137_p1 }
   0x5   : > { %p161_p3 = scmp.lt.s32.totalorder (!%p138_p2), %s1202_s13, 1  ;;  %s1357_s18 = smov (!%p138_p2), 127  }
   0x6   : > { %141 = sbr.rel (%p138_p2) target bundleno = 408 (0x198), region = 32  ;;  %s1358_s19 = smov (!%p138_p2), 126  }
   0x7   : > { %s1359_s20 = smov (!%p138_p2), 110   ;;  %s1360_s21 = smov (!%p138_p2), 109  }
   0x8   : > { %s1361_s22 = smov (!%p138_p2), 108   ;;  %s1362_s23 = smov (!%p138_p2), 92  }
   0x9   : > { %s1363_s24 = smov (!%p138_p2), 91   ;;  %s1364_s25 = smov (!%p138_p2), 90  }
   0xb   : > { %v1354_v0 = vmov 0.0   ;;  %vm1355_vm0 = vmmov 0   ;;  %s1525_s13 = smov (!%p161_p3, %s1202_s13), 1  ;;  %v1356_v1 = vmov 0   ;;  %v1131_v6 = vld [vmem:[%s1522_s2] sm:$0xff]  ;;  %vm198_vm1 = vcmask 1043456  }
   0xc   : > { %1267 = vmatprep.subr.bf16.mxu1 %v1354_v0  ;;  %1269 = vmatprep.mubr.msk.bf16.mxu1 %vm1355_vm0, %v1354_v0  ;;  %s1321_s14 = smul.u32 12, %s1525_s13  ;;  %v1209_v10 = vld [vmem:[%s1521_s1 + $0x4] sm:$0xf]  ;;  %vm194_vm2 = vcmask 64512   ;;  %vm191_vm3 = vcmask 1039360   ;;  %vm390_vm4 = vcmask 1031168  }
   0xd   : > { %240 = vmatprep.mubr.bf16.mxu0 %v1356_v1  ;;  %1342 = vset.pattern.permute.xlu0 %v1356_v1  ;;  %v174_v20 = vld [vmem:[%s1521_s1] sm:$0xf]  ;;  %vm497_vm5 = vcmask 900096   ;;  %v1219_v29 = vld [vmem:[%s1521_s1 + $0x8] sm:$0xf]  ;;  %vm604_vm6 = vcmask 891904  }
   0xe   : > { %s165_s17 = scalar_lea.vmem %s1520_s0, %s1321_s14  ;;  %v1223_v37 = vld [vmem:[%s1521_s1 + $0xc] sm:$0xf]  ;;  %vm711_vm7 = vcmask 883712   ;;  %v1227_v45 = vld [vmem:[%s1521_s1 + $0x10] sm:$0xf]  ;;  %vm818_vm8 = vcmask 752640  }
   0xf   : > { %v1343_v2 = vld [vmem:[%s165_s17 + $0x8] ss:$0 sps:$4 sm:$0xff]   ;;  %v172_v3 = vld [vmem:[%s165_s17] sm:$0xff]  ;;  %v1231_v53 = vld [vmem:[%s1521_s1 + $0x14] sm:$0xf]  ;;  %vm925_vm9 = vcmask 744448  }
  0x10   : > { %v1210_v4 = vcombine.low %v172_v3, %v172_v3  ;;  %189 = vrot.lane.b32.xlu1 %v1343_v2, %s1357_s18  ;;  %v1211_v5 = vcombine.high %v172_v3, %v172_v3  ;;  %v299_v11 = vsel %vm198_vm1, %v1343_v2, 0  ;;  %v1235_v61 = vld [vmem:[%s1521_s1 + $0x18] sm:$0xf]  ;;  %vm1032_vm10 = vcmask 736256  }
  0x11   : > { %vm1145_vm11 = vcmask 261120  }
  0x12   : > { %185 = vrot.lane.b32.xlu0 %v1210_v4, %s1357_s18  ;;  %v293_v18 = vsel %vm198_vm1, %v1210_v4, 0 }
  0x14   : > { %384 = vrot.lane.b32.xlu1 %v1210_v4, %s1358_s19 }
  0x16   : > { %187 = vrot.lane.b32.xlu0 %v1211_v5, %s1357_s18 }
  0x18   : > { %388 = vrot.lane.b32.xlu1 %v1343_v2, %s1358_s19 }
  0x1a   : > { %386 = vrot.lane.b32.xlu0 %v1211_v5, %s1358_s19 }
  0x1c   : > { %493 = vrot.lane.b32.xlu1 %v1211_v5, %s1359_s20 }
  0x1e   : > { %491 = vrot.lane.b32.xlu0 %v1210_v4, %s1359_s20 }
  0x20   : > { %598 = vrot.lane.b32.xlu1 %v1210_v4, %s1360_s21 }
  0x22   : > { %495 = vrot.lane.b32.xlu0 %v1343_v2, %s1359_s20 }
  0x24   : > { %602 = vrot.lane.b32.xlu1 %v1343_v2, %s1360_s21 }
  0x26   : > { %600 = vrot.lane.b32.xlu0 %v1211_v5, %s1360_s21  ;;  %s1322_s21 = smul.u32 24, %s1525_s13 }
  0x28   : > { %707 = vrot.lane.b32.xlu1 %v1211_v5, %s1361_s22 }
  0x2a   : > { %705 = vrot.lane.b32.xlu0 %v1210_v4, %s1361_s22 }
  0x2c   : > { %812 = vrot.lane.b32.xlu1 %v1210_v4, %s1362_s23 }
  0x2e   : > { %709 = vrot.lane.b32.xlu0 %v1343_v2, %s1361_s22 }
  0x30   : > { %816 = vrot.lane.b32.xlu1 %v1343_v2, %s1362_s23 }
  0x32   : > { %814 = vrot.lane.b32.xlu0 %v1211_v5, %s1362_s23 }
  0x34   : > { %921 = vrot.lane.b32.xlu1 %v1211_v5, %s1363_s24 }
  0x36   : > { %919 = vrot.lane.b32.xlu0 %v1210_v4, %s1363_s24 }
  0x38   : > { %1026 = vrot.lane.b32.xlu1 %v1210_v4, %s1364_s25 }
  0x3a   : > { %923 = vrot.lane.b32.xlu0 %v1343_v2, %s1363_s24  ;;  %s170_s24 = scalar_lea.vmem %s1523_s3, %s1322_s21 }
  0x3c   : > { %1030 = vrot.lane.b32.xlu1 %v1343_v2, %s1364_s25 }
  0x3e   : > { %1028 = vrot.lane.b32.xlu0 %v1211_v5, %s1364_s25 }
  0x42   : > { %1134 = vperm.xlu0 %1342, %v1131_v6   ;;  %v1239_v6 = vld [vmem:[%s1521_s1 + $0x1c] sm:$0xf] }
  0x82   : > { %v190_v7 = vpop.permute.xlu1 %189 }
  0x83   : > { %v206_v9 = vsel %vm198_vm1, %v190_v7, 0 }
  0x84   : > { %v186_v8 = vpop.permute.xlu0 %185  ;;  %1268 = vmatpush3.bf16.msra.mxu1 %v206_v9 }
  0x85   : > { %1273 = vmatprep.subr.bf16.mxu1 %v1354_v0 }
  0x86   : > { %v385_v12 = vpop.permute.xlu1 %384 }
  0x87   : > { %1270 = vmatmul.mubr.msk.bf16.vlgmr.msra.gmra.mxu1 %vm194_vm2, %v1209_v10 }
  0x88   : > { %v188_v13 = vpop.permute.xlu0 %187  ;;  %1274 = vmatpush3.bf16.msra.mxu1 %v299_v11  ;;  %1275 = vmatprep.mubr.msk.bf16.mxu1 %vm1355_vm0, %v1354_v0  ;;  %v1243_v11 = vld [vmem:[%s1521_s1 + $0x20] sm:$0xf] }
  0x89   : > { %v193_v14 = vsel %vm191_vm3, %v188_v13, %v190_v7  ;;  %v192_v15 = vsel %vm191_vm3, %v186_v8, %v188_v13  ;;  %1279 = vmatprep.subr.bf16.mxu1 %v1354_v0 }
  0x8a   : > { %1213 = vmatprep.subr.msk.bf16.mxu0 %vm198_vm1, %v193_v14  ;;  %v200_v16 = vsel %vm198_vm1, %v192_v15, 0  ;;  %v389_v17 = vpop.permute.xlu1 %388 }
  0x8b   : > { %223 = vmatpush1.bf16.msra.mxu0 %v200_v16  ;;  %v403_v22 = vsel %vm198_vm1, %v389_v17, 0 }
  0x8c   : > { %1216 = vmatprep.subr.msk.bf16.mxu0 %vm198_vm1, %v1211_v5  ;;  %v387_v19 = vpop.permute.xlu0 %386 }
  0x8d   : > { %v392_v21 = vsel %vm390_vm4, %v387_v19, %v389_v17  ;;  %v391_v25 = vsel %vm390_vm4, %v385_v12, %v387_v19 }
  0x8e   : > { %1214 = vmatmul.mubr.msk.bf16.vlgmr.msra.gmra.mxu0 %vm194_vm2, %v1209_v10  ;;  %v494_v23 = vpop.permute.xlu1 %493  ;;  %v397_v26 = vsel %vm198_vm1, %v391_v25, 0 }
  0x8f   : > { %316 = vmatpush1.bf16.msra.mxu0 %v293_v18  ;;  %333 = vmatprep.mubr.bf16.mxu0 %v1356_v1 }
  0x90   : > { %1276 = vmatmul.mubr.msk.bf16.vlgmr.msra.gmra.mxu1 %vm194_vm2, %v174_v20  ;;  %1220 = vmatprep.subr.msk.bf16.mxu0 %vm198_vm1, %v392_v21  ;;  %v492_v24 = vpop.permute.xlu0 %491 }
  0x91   : > { %1280 = vmatpush3.bf16.msra.mxu1 %v403_v22  ;;  %1281 = vmatprep.mubr.msk.bf16.mxu1 %vm1355_vm0, %v1354_v0  ;;  %v498_v33 = vsel %vm497_vm5, %v492_v24, %v494_v23 }
  0x92   : > { %1285 = vmatprep.subr.bf16.mxu1 %v1354_v0  ;;  %v599_v28 = vpop.permute.xlu1 %598  ;;  %v504_v35 = vsel %vm198_vm1, %v498_v33, 0 }
  0x94   : > { %v496_v27 = vpop.permute.xlu0 %495 }
  0x95   : > { %v499_v30 = vsel %vm497_vm5, %v494_v23, %v496_v27  ;;  %v510_v31 = vsel %vm198_vm1, %v496_v27, 0 }
  0x96   : > { %1217 = vmatmul.mubr.msk.bf16.vlgmr.msra.gmra.mxu0 %vm194_vm2, %v174_v20  ;;  %v603_v34 = vpop.permute.xlu1 %602 }
  0x97   : > { %420 = vmatpush1.bf16.msra.mxu0 %v397_v26  ;;  %437 = vmatprep.mubr.bf16.mxu0 %v1356_v1  ;;  %v617_v39 = vsel %vm198_vm1, %v603_v34, 0 }
  0x98   : > { %1282 = vmatmul.mubr.msk.bf16.vlgmr.msra.gmra.mxu1 %vm194_vm2, %v1219_v29  ;;  %1224 = vmatprep.subr.msk.bf16.mxu0 %vm198_vm1, %v499_v30  ;;  %v601_v32 = vpop.permute.xlu0 %600 }
  0x99   : > { %1286 = vmatpush3.bf16.msra.mxu1 %v510_v31  ;;  %1287 = vmatprep.mubr.msk.bf16.mxu1 %vm1355_vm0, %v1354_v0  ;;  %v606_v38 = vsel %vm604_vm6, %v601_v32, %v603_v34  ;;  %v605_v41 = vsel %vm604_vm6, %v599_v28, %v601_v32 }
  0x9a   : > { %1291 = vmatprep.subr.bf16.mxu1 %v1354_v0  ;;  %v708_v40 = vpop.permute.xlu1 %707  ;;  %v611_v43 = vsel %vm198_vm1, %v605_v41, 0 }
  0x9c   : > { %v706_v36 = vpop.permute.xlu0 %705 }
  0x9d   : > { %v712_v49 = vsel %vm711_vm7, %v706_v36, %v708_v40 }
  0x9e   : > { %1221 = vmatmul.mubr.msk.bf16.vlgmr.msra.gmra.mxu0 %vm194_vm2, %v1219_v29  ;;  %v813_v44 = vpop.permute.xlu1 %812  ;;  %v718_v51 = vsel %vm198_vm1, %v712_v49, 0 }
  0x9f   : > { %527 = vmatpush1.bf16.msra.mxu0 %v504_v35  ;;  %544 = vmatprep.mubr.bf16.mxu0 %v1356_v1 }
  0xa0   : > { %1288 = vmatmul.mubr.msk.bf16.vlgmr.msra.gmra.mxu1 %vm194_vm2, %v1223_v37  ;;  %1228 = vmatprep.subr.msk.bf16.mxu0 %vm198_vm1, %v606_v38  ;;  %v710_v42 = vpop.permute.xlu0 %709 }
  0xa1   : > { %1292 = vmatpush3.bf16.msra.mxu1 %v617_v39  ;;  %1293 = vmatprep.mubr.msk.bf16.mxu1 %vm1355_vm0, %v1354_v0  ;;  %v713_v46 = vsel %vm711_vm7, %v708_v40, %v710_v42  ;;  %v724_v47 = vsel %vm198_vm1, %v710_v42, 0 }
  0xa2   : > { %1297 = vmatprep.subr.bf16.mxu1 %v1354_v0  ;;  %v817_v50 = vpop.permute.xlu1 %816 }
  0xa3   : > { %v831_v55 = vsel %vm198_vm1, %v817_v50, 0 }
  0xa4   : > { %v815_v48 = vpop.permute.xlu0 %814 }
  0xa5   : > { %v820_v54 = vsel %vm818_vm8, %v815_v48, %v817_v50  ;;  %v819_v57 = vsel %vm818_vm8, %v813_v44, %v815_v48 }
  0xa6   : > { %1225 = vmatmul.mubr.msk.bf16.vlgmr.msra.gmra.mxu0 %vm194_vm2, %v1223_v37  ;;  %v922_v56 = vpop.permute.xlu1 %921  ;;  %v825_v59 = vsel %vm198_vm1, %v819_v57, 0 }
  0xa7   : > { %634 = vmatpush1.bf16.msra.mxu0 %v611_v43  ;;  %651 = vmatprep.mubr.bf16.mxu0 %v1356_v1 }
  0xa8   : > { %1294 = vmatmul.mubr.msk.bf16.vlgmr.msra.gmra.mxu1 %vm194_vm2, %v1227_v45  ;;  %1232 = vmatprep.subr.msk.bf16.mxu0 %vm198_vm1, %v713_v46  ;;  %v920_v52 = vpop.permute.xlu0 %919 }
  0xa9   : > { %1298 = vmatpush3.bf16.msra.mxu1 %v724_v47  ;;  %1299 = vmatprep.mubr.msk.bf16.mxu1 %vm1355_vm0, %v1354_v0  ;;  %v926_v2 = vsel %vm925_vm9, %v920_v52, %v922_v56 }
  0xaa   : > { %1303 = vmatprep.subr.bf16.mxu1 %v1354_v0  ;;  %v1027_v60 = vpop.permute.xlu1 %1026  ;;  %v932_v5 = vsel %vm198_vm1, %v926_v2, 0 }
  0xac   : > { %v924_v58 = vpop.permute.xlu0 %923 }
  0xad   : > { %v927_v62 = vsel %vm925_vm9, %v922_v56, %v924_v58  ;;  %v938_v63 = vsel %vm198_vm1, %v924_v58, 0 }
  0xae   : > { %1229 = vmatmul.mubr.msk.bf16.vlgmr.msra.gmra.mxu0 %vm194_vm2, %v1227_v45  ;;  %v1031_v4 = vpop.permute.xlu1 %1030 }
  0xaf   : > { %741 = vmatpush1.bf16.msra.mxu0 %v718_v51  ;;  %758 = vmatprep.mubr.bf16.mxu0 %v1356_v1  ;;  %v1045_v8 = vsel %vm198_vm1, %v1031_v4, 0 }
  0xb0   : > { %1300 = vmatmul.mubr.msk.bf16.vlgmr.msra.gmra.mxu1 %vm194_vm2, %v1231_v53  ;;  %1236 = vmatprep.subr.msk.bf16.mxu0 %vm198_vm1, %v820_v54  ;;  %v1029_v3 = vpop.permute.xlu0 %1028 }
  0xb1   : > { %1304 = vmatpush3.bf16.msra.mxu1 %v831_v55  ;;  %1305 = vmatprep.mubr.msk.bf16.mxu1 %vm1355_vm0, %v1354_v0  ;;  %v1034_v7 = vsel %vm1032_vm10, %v1029_v3, %v1031_v4  ;;  %v1033_v9 = vsel %vm1032_vm10, %v1027_v60, %v1029_v3 }
  0xb2   : > { %1309 = vmatprep.subr.bf16.mxu1 %v1354_v0  ;;  %v1039_v10 = vsel %vm198_vm1, %v1033_v9, 0 }
  0xb6   : > { %1233 = vmatmul.mubr.msk.bf16.vlgmr.msra.gmra.mxu0 %vm194_vm2, %v1231_v53 }
  0xb7   : > { %848 = vmatpush1.bf16.msra.mxu0 %v825_v59  ;;  %865 = vmatprep.mubr.bf16.mxu0 %v1356_v1 }
  0xb8   : > { %1306 = vmatmul.mubr.msk.bf16.vlgmr.msra.gmra.mxu1 %vm194_vm2, %v1235_v61  ;;  %1240 = vmatprep.subr.msk.bf16.mxu0 %vm198_vm1, %v927_v62 }
  0xb9   : > { %1310 = vmatpush3.bf16.msra.mxu1 %v938_v63  ;;  %1311 = vmatprep.mubr.msk.bf16.mxu1 %vm1355_vm0, %v1354_v0 }
  0xba   : > { %1315 = vmatprep.subr.bf16.mxu1 %v1354_v0 }
  0xbe   : > { %1237 = vmatmul.mubr.msk.bf16.vlgmr.msra.gmra.mxu0 %vm194_vm2, %v1235_v61 }
  0xbf   : > { %955 = vmatpush1.bf16.msra.mxu0 %v932_v5  ;;  %972 = vmatprep.mubr.bf16.mxu0 %v1356_v1 }
  0xc0   : > { %1312 = vmatmul.mubr.msk.bf16.vlgmr.msra.gmra.mxu1 %vm194_vm2, %v1239_v6  ;;  %1244 = vmatprep.subr.msk.bf16.mxu0 %vm198_vm1, %v1034_v7 }
  0xc1   : > { %1316 = vmatpush3.bf16.msra.mxu1 %v1045_v8  ;;  %1317 = vmatprep.mubr.msk.bf16.mxu1 %vm1355_vm0, %v1354_v0 }
  0xc6   : > { %1241 = vmatmul.mubr.msk.bf16.vlgmr.msra.gmra.mxu0 %vm194_vm2, %v1239_v6 }
  0xc7   : > { %1062 = vmatpush1.bf16.msra.mxu0 %v1039_v10  ;;  %1079 = vmatprep.mubr.bf16.mxu0 %v1356_v1 }
  0xc8   : > { %1318 = vmatmul.mubr.msk.bf16.vlgmr.msra.gmra.mxu1 %vm194_vm2, %v1243_v11 }
  0xce   : > { %1245 = vmatmul.mubr.msk.bf16.vlgmr.msra.gmra.mxu0 %vm194_vm2, %v1243_v11 }
 0x147   : > { %v283_v12 = vpop.f32.mrf.mxu1 }
 0x149   : > { %v1271_v13 = vpop.f32.mrf.mxu1 }
 0x14b   : > { %v286_v14 = vpop.f32.mrf.mxu1 }
 0x14d   : > { %v1272_v0 = vpop.f32.mrf.mxu1 }
 0x14e   : > { %v242_v15 = vpop.f32.mrf.mxu0 }
 0x150   : > { %v244_v16 = vpop.f32.mrf.mxu0  ;;  %v376_v17 = vpop.f32.mrf.mxu1 }
 0x151   : > { %v377_v59 = vadd.f32 %v376_v17, %v283_v12 }
 0x152   : > { %v246_v18 = vpop.f32.mrf.mxu0  ;;  %v1277_v19 = vpop.f32.mrf.mxu1 }
 0x154   : > { %v247_v20 = vpop.f32.mrf.mxu0  ;;  %v379_v21 = vpop.f32.mrf.mxu1 }
 0x156   : > { %v335_v22 = vpop.f32.mrf.mxu0  ;;  %v1278_v23 = vpop.f32.mrf.mxu1 }
 0x157   : > { %v336_v6 = vadd.f32 %v335_v22, %v242_v15 }
 0x158   : > { %v337_v24 = vpop.f32.mrf.mxu0  ;;  %v480_v25 = vpop.f32.mrf.mxu1 }
 0x159   : > { %v488_v62 = vadd.f32 %v480_v25, %v377_v59  ;;  %v338_v10 = vadd.f32 %v337_v24, %v244_v16 }
 0x15a   : > { %v339_v1 = vpop.f32.mrf.mxu0  ;;  %v1283_v26 = vpop.f32.mrf.mxu1 }
 0x15b   : > { %v1135_v1 = vpop.permute.xlu0 %1134 }
 0x15c   : > { %v340_v27 = vpop.f32.mrf.mxu0  ;;  %v483_v28 = vpop.f32.mrf.mxu1 }
 0x15e   : > { %v439_v29 = vpop.f32.mrf.mxu0  ;;  %v1284_v30 = vpop.f32.mrf.mxu1 }
 0x15f   : > { %v486_v11 = vadd.f32 %v439_v29, %v336_v6 }
 0x160   : > { %v441_v31 = vpop.f32.mrf.mxu0  ;;  %v587_v32 = vpop.f32.mrf.mxu1 }
 0x161   : > { %v595_v3 = vadd.f32 %v587_v32, %v488_v62  ;;  %v487_v18 = vadd.f32 %v441_v31, %v338_v10 }
 0x162   : > { %v443_v33 = vpop.f32.mrf.mxu0  ;;  %v1289_v34 = vpop.f32.mrf.mxu1 }
 0x164   : > { %v444_v35 = vpop.f32.mrf.mxu0  ;;  %v590_v36 = vpop.f32.mrf.mxu1 }
 0x166   : > { %v546_v37 = vpop.f32.mrf.mxu0  ;;  %v1290_v38 = vpop.f32.mrf.mxu1 }
 0x167   : > { %v593_v12 = vadd.f32 %v546_v37, %v486_v11 }
 0x168   : > { %v548_v39 = vpop.f32.mrf.mxu0  ;;  %v694_v40 = vpop.f32.mrf.mxu1 }
 0x169   : > { %v702_v7 = vadd.f32 %v694_v40, %v595_v3  ;;  %v594_v21 = vadd.f32 %v548_v39, %v487_v18 }
 0x16a   : > { %v550_v41 = vpop.f32.mrf.mxu0  ;;  %v1295_v42 = vpop.f32.mrf.mxu1 }
 0x16c   : > { %v551_v43 = vpop.f32.mrf.mxu0  ;;  %v697_v44 = vpop.f32.mrf.mxu1 }
 0x16e   : > { %v653_v45 = vpop.f32.mrf.mxu0  ;;  %v1296_v46 = vpop.f32.mrf.mxu1 }
 0x16f   : > { %v700_v23 = vadd.f32 %v653_v45, %v593_v12 }
 0x170   : > { %v655_v47 = vpop.f32.mrf.mxu0  ;;  %v801_v48 = vpop.f32.mrf.mxu1 }
 0x171   : > { %v809_v13 = vadd.f32 %v801_v48, %v702_v7  ;;  %v701_v22 = vadd.f32 %v655_v47, %v594_v21 }
 0x172   : > { %v657_v49 = vpop.f32.mrf.mxu0  ;;  %v1301_v50 = vpop.f32.mrf.mxu1 }
 0x174   : > { %v658_v51 = vpop.f32.mrf.mxu0  ;;  %v804_v52 = vpop.f32.mrf.mxu1 }
 0x176   : > { %v760_v53 = vpop.f32.mrf.mxu0  ;;  %v1302_v54 = vpop.f32.mrf.mxu1 }
 0x177   : > { %v807_v27 = vadd.f32 %v760_v53, %v700_v23 }
 0x178   : > { %v762_v55 = vpop.f32.mrf.mxu0  ;;  %v908_v56 = vpop.f32.mrf.mxu1 }
 0x179   : > { %v916_v17 = vadd.f32 %v908_v56, %v809_v13  ;;  %v808_v29 = vadd.f32 %v762_v55, %v701_v22 }
 0x17a   : > { %v764_v57 = vpop.f32.mrf.mxu0  ;;  %v1307_v58 = vpop.f32.mrf.mxu1 }
 0x17c   : > { %v765_v60 = vpop.f32.mrf.mxu0  ;;  %v911_v61 = vpop.f32.mrf.mxu1 }
 0x17e   : > { %v867_v63 = vpop.f32.mrf.mxu0  ;;  %v1308_v2 = vpop.f32.mrf.mxu1 }
 0x17f   : > { %v914_v30 = vadd.f32 %v867_v63, %v807_v27 }
 0x180   : > { %v869_v4 = vpop.f32.mrf.mxu0  ;;  %v1015_v5 = vpop.f32.mrf.mxu1 }
 0x181   : > { %v1023_v25 = vadd.f32 %v1015_v5, %v916_v17  ;;  %v915_v34 = vadd.f32 %v869_v4, %v808_v29 }
 0x182   : > { %v871_v8 = vpop.f32.mrf.mxu0  ;;  %v1313_v9 = vpop.f32.mrf.mxu1 }
 0x184   : > { %v872_v14 = vpop.f32.mrf.mxu0  ;;  %v1018_v0 = vpop.f32.mrf.mxu1 }
 0x186   : > { %v974_v19 = vpop.f32.mrf.mxu0  ;;  %v1314_v20 = vpop.f32.mrf.mxu1 }
 0x187   : > { %v1021_v35 = vadd.f32 %v974_v19, %v914_v30 }
 0x188   : > { %v976_v26 = vpop.f32.mrf.mxu0  ;;  %v1122_v15 = vpop.f32.mrf.mxu1 }
 0x189   : > { %v1130_v16 = vadd.f32 %v1122_v15, %v1023_v25  ;;  %v1022_v39 = vadd.f32 %v976_v26, %v915_v34 }
 0x18a   : > { %v978_v24 = vpop.f32.mrf.mxu0  ;;  %v1319_v28 = vpop.f32.mrf.mxu1 }
 0x18b   : > { %v1139_v32 = vadd.f32 %v1135_v1, %v1130_v16 }
 0x18c   : > { %v979_v31 = vpop.f32.mrf.mxu0  ;;  %v1125_v33 = vpop.f32.mrf.mxu1 }
 0x18d   : > { %v1142_v36 = vmax.f32 %v1139_v32, 0.0 }
 0x18e   : > { %v1081_v37 = vpop.f32.mrf.mxu0  ;;  %v1320_v38 = vpop.f32.mrf.mxu1 }
 0x18f   : > { %1146 = vst.msk [vmem:[%s170_s24 + $0x10] sm:$0xff] %vm1145_vm11, %v1142_v36  ;;  %v1128_v40 = vadd.f32 %v1081_v37, %v1021_v35 }
 0x190   : > { %v1083_v41 = vpop.f32.mrf.mxu0 }
 0x191   : > { %v1137_v42 = vadd.f32 %v1135_v1, %v1128_v40  ;;  %v1129_v43 = vadd.f32 %v1083_v41, %v1022_v39 }
 0x192   : > { %v1085_v44 = vpop.f32.mrf.mxu0 }
 0x193   : > { %v1140_v45 = vmax.f32 %v1137_v42, 0.0  ;;  %v1138_v46 = vadd.f32 %v1135_v1, %v1129_v43 }
 0x194   : > { %v1086_v47 = vpop.f32.mrf.mxu0 }
 0x195   : > { %1143 = vst [vmem:[%s170_s24] sm:$0xff] %v1140_v45  ;;  %v1141_v48 = vmax.f32 %v1138_v46, 0.0 }
 0x197   : > { %1144 = vst [vmem:[%s170_s24 + $0x8] sm:$0xff] %v1141_v48 }
 0x198 PF: > { %s13_s12 = sadd.s32 1, %s1352_s12  }
 0x199   : > { %p10_p4 = scmp.ge.s32.totalorder %s13_s12, 4  }
 0x19b   :  { %12 = sbr.rel (!%p10_p4) target bundleno = 1 (0x1), region = 70 }

// kernel: scan_only_net.21
= control target key start
LH: loop header
LB: loop body
LE: loop exit
PB: predicated region body
PF: predicated region fallthrough
CT: control target
= control target key end

     0   :  { %s961_s12 = smov 0   ;;  %s1060_s0 = inlined_call_operand.vmem [shape: bf16[2,8,102], index: 0, kind: input, shape index: {}]   ;;  %s1061_s1 = inlined_call_operand.vmem [shape: bf16[9,16,8], index: 1, kind: input, shape index: {}]   ;;  %s1062_s2 = inlined_call_operand.vmem [shape: f32[16,1], index: 2, kind: input, shape index: {}]   ;;  %s1063_s3 = inlined_call_operand.vmem [shape: f32[2,16,80], index: 3, kind: output, shape index: {}]  }
   0x1 LB: > { %s773_s13 = sadd.s32 4294967295, %s928_s12   ;;  %p777_p0 = scmp.ge.s32.totalorder %s928_s12, 1  ;;  %s928_s12 = sphi %s961_s12, %s13_s12  }
   0x2   : > { %p136_p1 = scmp.lt.s32.totalorder %s928_s12, 3 }
   0x4   : > { %p137_p2 = pnand %p777_p0, %p136_p1 }
   0x5   : > { %p159_p3 = scmp.lt.s32.totalorder (!%p137_p2), %s773_s13, 1  ;;  %s932_s20 = smov (!%p137_p2), 127  }
   0x6   : > { %140 = sbr.rel (%p137_p2) target bundleno = 372 (0x174), region = 32  ;;  %s933_s21 = smov (!%p137_p2), 118  }
   0x7   : > { %s934_s22 = smov (!%p137_p2), 126   ;;  %s935_s23 = smov (!%p137_p2), 117  }
   0x8   : > { %s936_s24 = smov (!%p137_p2), 116   ;;  %s937_s25 = smov (!%p137_p2), 108  }
   0x9   : > { %s938_s26 = smov (!%p137_p2), 107   ;;  %s939_s27 = smov (!%p137_p2), 106  }
   0xb   : > { %v930_v0 = vmov 0.0   ;;  %s1065_s13 = smov (!%p159_p3, %s773_s13), 1  ;;  %vm931_vm0 = vmmov 0   ;;  %vm189_vm1 = vcmask 1043456   ;;  %vm185_vm2 = vcmask 64512   ;;  %v914_v4 = vld [vmem:[%s1061_s1] sm:$0xff]  }
   0xc   : > { %837 = vmatprep.subr.bf16.mxu0 %v930_v0  ;;  %843 = vmatprep.subr.bf16.mxu1 %v930_v0  ;;  %s778_s14 = sshll.u32 %s1065_s13, 2  ;;  %v699_v5 = vld [vmem:[%s1062_s2] sm:$0xff]  ;;  %v700_v6 = vld [vmem:[%s1062_s2 + $0x8] sm:$0xff]  ;;  %v940_v7 = vmov 0   ;;  %v916_v13 = vld [vmem:[%s1061_s1 + $0x18] sm:$0xff]   ;;  %vm715_vm3 = vcmask 654336  }
   0xd   : > { %839 = vmatprep.mubr.msk.bf16.mxu0 %vm931_vm0, %v930_v0  ;;  %845 = vmatprep.mubr.msk.bf16.mxu1 %vm931_vm0, %v930_v0  ;;  %s162_s17 = scalar_lea.vmem %s1060_s0, %s778_s14  ;;  %v913_v11 = vld [vmem:[%s1061_s1 + $0x8] sm:$0xff]   ;;  %v915_v18 = vld [vmem:[%s1061_s1 + $0x10] sm:$0xff]   ;;  %v917_v25 = vld [vmem:[%s1061_s1 + $0x20] sm:$0xff]  }
   0xe   : > { %v169_v1 = vld [vmem:[%s162_s17] sm:$0xf]  ;;  %910 = vset.pattern.permute.xlu0 %v940_v7  ;;  %911 = vset.pattern.permute.xlu1 %v940_v7  ;;  %v918_v20 = vld [vmem:[%s1061_s1 + $0x28] sm:$0xff]   ;;  %v920_v26 = vld [vmem:[%s1061_s1 + $0x38] sm:$0xff]  }
   0xf   : > { %v784_v2 = vcombine.low %v169_v1, %v169_v1  ;;  %v243_v3 = vsel %vm189_vm1, %v169_v1, 0  ;;  %v919_v29 = vld [vmem:[%s1061_s1 + $0x30] sm:$0xff]   ;;  %v921_v31 = vld [vmem:[%s1061_s1 + $0x40] sm:$0xff]  }
  0x10   : > { %844 = vmatpush3.bf16.msra.mxu1 %v243_v3 }
  0x11   : > { %183 = vrot.lane.b32.xlu0 %v784_v2, %s932_s20  ;;  %353 = vrot.lane.b32.xlu1 %v784_v2, %s933_s21 }
  0x12   : > { %855 = vmatprep.subr.bf16.mxu1 %v930_v0 }
  0x13   : > { %846 = vmatmul.mubr.msk.bf16.vlgmr.msra.gmra.mxu1 %vm185_vm2, %v914_v4 }
  0x14   : > { %857 = vmatprep.mubr.msk.bf16.mxu1 %vm931_vm0, %v930_v0 }
  0x15   : > { %294 = vrot.lane.b32.xlu0 %v784_v2, %s934_s22  ;;  %412 = vrot.lane.b32.xlu1 %v784_v2, %s935_s23  ;;  %s818_s23 = sshll.u32 %s1065_s13, 4 }
  0x19   : > { %471 = vrot.lane.b32.xlu0 %v784_v2, %s936_s24  ;;  %530 = vrot.lane.b32.xlu1 %v784_v2, %s937_s25 }
  0x1d   : > { %589 = vrot.lane.b32.xlu0 %v784_v2, %s938_s26  ;;  %648 = vrot.lane.b32.xlu1 %v784_v2, %s939_s27  ;;  %s167_s26 = scalar_lea.vmem %s1063_s3, %s818_s23 }
  0x21   : > { %703 = vperm.xlu0 %910, %v699_v5   ;;  %708 = vperm.xlu1 %911, %v700_v6  }
  0x83   : > { %v184_v8 = vpop.permute.xlu0 %183  ;;  %v354_v9 = vpop.permute.xlu1 %353 }
  0x84   : > { %v191_v10 = vsel %vm189_vm1, %v184_v8, 0  ;;  %v359_v12 = vsel %vm189_vm1, %v354_v9, 0 }
  0x85   : > { %838 = vmatpush3.bf16.msra.mxu0 %v191_v10  ;;  %856 = vmatpush3.bf16.msra.mxu1 %v359_v12 }
  0x86   : > { %849 = vmatprep.subr.bf16.mxu0 %v930_v0  ;;  %867 = vmatprep.subr.bf16.mxu1 %v930_v0 }
  0x87   : > { %v295_v14 = vpop.permute.xlu0 %294  ;;  %v413_v16 = vpop.permute.xlu1 %412 }
  0x88   : > { %v300_v15 = vsel %vm189_vm1, %v295_v14, 0  ;;  %840 = vmatmul.mubr.msk.bf16.vlgmr.msra.gmra.mxu0 %vm185_vm2, %v913_v11  ;;  %858 = vmatmul.mubr.msk.bf16.vlgmr.msra.gmra.mxu1 %vm185_vm2, %v916_v13  ;;  %v418_v21 = vsel %vm189_vm1, %v413_v16, 0 }
  0x89   : > { %850 = vmatpush3.bf16.msra.mxu0 %v300_v15  ;;  %851 = vmatprep.mubr.msk.bf16.mxu0 %vm931_vm0, %v930_v0 }
  0x8a   : > { %861 = vmatprep.subr.bf16.mxu0 %v930_v0  ;;  %869 = vmatprep.mubr.msk.bf16.mxu1 %vm931_vm0, %v930_v0 }
  0x8b   : > { %v472_v17 = vpop.permute.xlu0 %471  ;;  %v531_v24 = vpop.permute.xlu1 %530 }
  0x8c   : > { %v477_v19 = vsel %vm189_vm1, %v472_v17, 0  ;;  %v536_v27 = vsel %vm189_vm1, %v531_v24, 0 }
  0x8d   : > { %868 = vmatpush3.bf16.msra.mxu1 %v477_v19 }
  0x8e   : > { %879 = vmatprep.subr.bf16.mxu1 %v930_v0 }
  0x8f   : > { %v590_v22 = vpop.permute.xlu0 %589  ;;  %v649_v28 = vpop.permute.xlu1 %648 }
  0x90   : > { %852 = vmatmul.mubr.msk.bf16.vlgmr.msra.gmra.mxu0 %vm185_vm2, %v915_v18  ;;  %870 = vmatmul.mubr.msk.bf16.vlgmr.msra.gmra.mxu1 %vm185_vm2, %v918_v20  ;;  %v595_v23 = vsel %vm189_vm1, %v590_v22, 0  ;;  %v654_v30 = vsel %vm189_vm1, %v649_v28, 0 }
  0x91   : > { %862 = vmatpush3.bf16.msra.mxu0 %v418_v21  ;;  %863 = vmatprep.mubr.msk.bf16.mxu0 %vm931_vm0, %v930_v0 }
  0x92   : > { %873 = vmatprep.subr.bf16.mxu0 %v930_v0  ;;  %880 = vmatpush3.bf16.msra.mxu1 %v595_v23 }
  0x93   : > { %881 = vmatprep.mubr.msk.bf16.mxu1 %vm931_vm0, %v930_v0 }
  0x98   : > { %864 = vmatmul.mubr.msk.bf16.vlgmr.msra.gmra.mxu0 %vm185_vm2, %v917_v25  ;;  %882 = vmatmul.mubr.msk.bf16.vlgmr.msra.gmra.mxu1 %vm185_vm2, %v920_v26 }
  0x99   : > { %874 = vmatpush3.bf16.msra.mxu0 %v536_v27  ;;  %875 = vmatprep.mubr.msk.bf16.mxu0 %vm931_vm0, %v930_v0 }
  0x9a   : > { %885 = vmatprep.subr.bf16.mxu0 %v930_v0 }
  0x9c   : > { %v704_v14 = vpop.permute.xlu0 %703  ;;  %v709_v20 = vpop.permute.xlu1 %708 }
  0xa0   : > { %876 = vmatmul.mubr.msk.bf16.vlgmr.msra.gmra.mxu0 %vm185_vm2, %v919_v29 }
  0xa1   : > { %886 = vmatpush3.bf16.msra.mxu0 %v654_v30  ;;  %887 = vmatprep.mubr.msk.bf16.mxu0 %vm931_vm0, %v930_v0 }
  0xa8   : > { %888 = vmatmul.mubr.msk.bf16.vlgmr.msra.gmra.mxu0 %vm185_vm2, %v921_v31 }
  0xd3   : > { %v279_v32 = vpop.f32.mrf.mxu1 }
  0xd5   : > { %v847_v33 = vpop.f32.mrf.mxu1 }
  0xd7   : > { %v282_v34 = vpop.f32.mrf.mxu1 }
  0xd9   : > { %v848_v35 = vpop.f32.mrf.mxu1 }
 0x148   : > { %v227_v36 = vpop.f32.mrf.mxu0  ;;  %v395_v37 = vpop.f32.mrf.mxu1 }
 0x149   : > { %v280_v50 = vadd.f32 %v279_v32, %v227_v36 }
 0x14a   : > { %v841_v38 = vpop.f32.mrf.mxu0  ;;  %v859_v39 = vpop.f32.mrf.mxu1 }
 0x14c   : > { %v230_v40 = vpop.f32.mrf.mxu0  ;;  %v398_v41 = vpop.f32.mrf.mxu1 }
 0x14d   : > { %v283_v56 = vadd.f32 %v282_v34, %v230_v40 }
 0x14e   : > { %v842_v42 = vpop.f32.mrf.mxu0  ;;  %v860_v43 = vpop.f32.mrf.mxu1 }
 0x150   : > { %v336_v44 = vpop.f32.mrf.mxu0  ;;  %v513_v45 = vpop.f32.mrf.mxu1 }
 0x151   : > { %v343_v53 = vadd.f32 %v336_v44, %v280_v50 }
 0x152   : > { %v853_v46 = vpop.f32.mrf.mxu0  ;;  %v871_v47 = vpop.f32.mrf.mxu1 }
 0x153   : > { %v402_v59 = vadd.f32 %v395_v37, %v343_v53 }
 0x154   : > { %v339_v48 = vpop.f32.mrf.mxu0  ;;  %v516_v49 = vpop.f32.mrf.mxu1 }
 0x155   : > { %v344_v60 = vadd.f32 %v339_v48, %v283_v56 }
 0x156   : > { %v854_v51 = vpop.f32.mrf.mxu0  ;;  %v872_v52 = vpop.f32.mrf.mxu1 }
 0x157   : > { %v403_v2 = vadd.f32 %v398_v41, %v344_v60 }
 0x158   : > { %v454_v54 = vpop.f32.mrf.mxu0  ;;  %v631_v55 = vpop.f32.mrf.mxu1 }
 0x159   : > { %v461_v63 = vadd.f32 %v454_v54, %v402_v59 }
 0x15a   : > { %v865_v57 = vpop.f32.mrf.mxu0  ;;  %v883_v58 = vpop.f32.mrf.mxu1 }
 0x15b   : > { %v520_v4 = vadd.f32 %v513_v45, %v461_v63 }
 0x15c   : > { %v457_v61 = vpop.f32.mrf.mxu0  ;;  %v634_v62 = vpop.f32.mrf.mxu1 }
 0x15d   : > { %v462_v5 = vadd.f32 %v457_v61, %v403_v2 }
 0x15e   : > { %v866_v0 = vpop.f32.mrf.mxu0  ;;  %v884_v1 = vpop.f32.mrf.mxu1 }
 0x15f   : > { %v521_v9 = vadd.f32 %v516_v49, %v462_v5 }
 0x160   : > { %v572_v3 = vpop.f32.mrf.mxu0 }
 0x161   : > { %v579_v7 = vadd.f32 %v572_v3, %v520_v4 }
 0x162   : > { %v877_v6 = vpop.f32.mrf.mxu0 }
 0x163   : > { %v638_v11 = vadd.f32 %v631_v55, %v579_v7 }
 0x164   : > { %v575_v8 = vpop.f32.mrf.mxu0 }
 0x165   : > { %v580_v12 = vadd.f32 %v575_v8, %v521_v9 }
 0x166   : > { %v878_v10 = vpop.f32.mrf.mxu0 }
 0x167   : > { %v639_v17 = vadd.f32 %v634_v62, %v580_v12 }
 0x168   : > { %v690_v13 = vpop.f32.mrf.mxu0 }
 0x169   : > { %v697_v15 = vadd.f32 %v690_v13, %v638_v11 }
 0x16a   : > { %v889_v16 = vpop.f32.mrf.mxu0 }
 0x16b   : > { %v711_v18 = vadd.f32 %v704_v14, %v697_v15 }
 0x16c   : > { %v693_v19 = vpop.f32.mrf.mxu0 }
 0x16d   : > { %v713_v21 = vmax.f32 %v711_v18, 0.0  ;;  %v698_v22 = vadd.f32 %v693_v19, %v639_v17 }
 0x16e   : > { %v890_v23 = vpop.f32.mrf.mxu0 }
 0x16f   : > { %716 = vst.msk [vmem:[%s167_s26] sm:$0xff] %vm715_vm3, %v713_v21  ;;  %v712_v24 = vadd.f32 %v709_v20, %v698_v22 }
 0x171   : > { %v714_v25 = vmax.f32 %v712_v24, 0.0 }
 0x173   : > { %717 = vst.msk [vmem:[%s167_s26 + $0x8] sm:$0xff] %vm715_vm3, %v714_v25 }
 0x174 PF: > { %s13_s12 = sadd.s32 1, %s928_s12  }
 0x175   : > { %p10_p4 = scmp.ge.s32.totalorder %s13_s12, 4  }
 0x177   :  { %12 = sbr.rel (!%p10_p4) target bundleno = 1 (0x1), region = 70 }

// kernel: scan_only_net.22
= control target key start
LH: loop header
LB: loop body
LE: loop exit
PB: predicated region body
PF: predicated region fallthrough
CT: control target
= control target key end

     0   :  { %s950_s12 = smov 0   ;;  %s1040_s0 = inlined_call_operand.vmem [shape: bf16[2,16,102], index: 0, kind: input, shape index: {}]   ;;  %s1041_s1 = inlined_call_operand.vmem [shape: bf16[9,16,16], index: 1, kind: input, shape index: {}]   ;;  %s1042_s2 = inlined_call_operand.vmem [shape: f32[16,1], index: 2, kind: input, shape index: {}]   ;;  %s1043_s3 = inlined_call_operand.vmem [shape: f32[2,16,80], index: 3, kind: output, shape index: {}]  }
   0x1 LB: > { %s760_s13 = sadd.s32 4294967295, %s917_s12   ;;  %p764_p0 = scmp.ge.s32.totalorder %s917_s12, 1  ;;  %s917_s12 = sphi %s950_s12, %s13_s12  }
   0x2   : > { %p137_p1 = scmp.lt.s32.totalorder %s917_s12, 3 }
   0x4   : > { %p138_p2 = pnand %p764_p0, %p137_p1 }
   0x5   : > { %p161_p3 = scmp.lt.s32.totalorder (!%p138_p2), %s760_s13, 1  ;;  %s921_s20 = smov (!%p138_p2), 127  }
   0x6   : > { %141 = sbr.rel (%p138_p2) target bundleno = 369 (0x171), region = 32  ;;  %s922_s21 = smov (!%p138_p2), 118  }
   0x7   : > { %s923_s22 = smov (!%p138_p2), 126   ;;  %s924_s23 = smov (!%p138_p2), 117  }
   0x8   : > { %s925_s24 = smov (!%p138_p2), 116   ;;  %s926_s25 = smov (!%p138_p2), 108  }
   0x9   : > { %s927_s26 = smov (!%p138_p2), 107   ;;  %s928_s27 = smov (!%p138_p2), 106  }
   0xb   : > { %v919_v0 = vmov 0.0   ;;  %s1045_s13 = smov (!%p161_p3, %s760_s13), 1  ;;  %vm920_vm0 = vmmov 0   ;;  %v903_v2 = vld [vmem:[%s1041_s1] sm:$0xff]   ;;  %vm192_vm1 = vcmask 130048   ;;  %v687_v4 = vld [vmem:[%s1042_s2 + $0x8] sm:$0xff] }
   0xc   : > { %826 = vmatprep.subr.bf16.mxu0 %v919_v0  ;;  %832 = vmatprep.subr.bf16.mxu1 %v919_v0  ;;  %s806_s14 = sshll.u32 %s1045_s13, 3  ;;  %v686_v3 = vld [vmem:[%s1042_s2] sm:$0xff]  ;;  %v929_v5 = vmov 0   ;;  %v902_v7 = vld [vmem:[%s1041_s1 + $0x8] sm:$0xff]   ;;  %v905_v9 = vld [vmem:[%s1041_s1 + $0x18] sm:$0xff]   ;;  %vm702_vm2 = vcmask 654336  }
   0xd   : > { %828 = vmatprep.mubr.msk.bf16.mxu0 %vm920_vm0, %v919_v0  ;;  %834 = vmatprep.mubr.msk.bf16.mxu1 %vm920_vm0, %v919_v0  ;;  %s165_s17 = scalar_lea.vmem %s1040_s0, %s806_s14  ;;  %v904_v11 = vld [vmem:[%s1041_s1 + $0x10] sm:$0xff]   ;;  %v907_v13 = vld [vmem:[%s1041_s1 + $0x28] sm:$0xff]   ;;  %v906_v16 = vld [vmem:[%s1041_s1 + $0x20] sm:$0xff]  }
   0xe   : > { %v901_v1 = vld [vmem:[%s165_s17] sm:$0xff]   ;;  %899 = vset.pattern.permute.xlu0 %v929_v5  ;;  %900 = vset.pattern.permute.xlu1 %v929_v5  ;;  %v909_v17 = vld [vmem:[%s1041_s1 + $0x38] sm:$0xff]   ;;  %v908_v19 = vld [vmem:[%s1041_s1 + $0x30] sm:$0xff]  }
   0xf   : > { %189 = vrot.lane.b32.xlu0 %v901_v1, %s921_s20  ;;  %352 = vrot.lane.b32.xlu1 %v901_v1, %s922_s21  ;;  %v910_v21 = vld [vmem:[%s1041_s1 + $0x40] sm:$0xff]  }
  0x10   : > { %833 = vmatpush3.bf16.msra.mxu1 %v901_v1 }
  0x11   : > { %844 = vmatprep.subr.bf16.mxu1 %v919_v0 }
  0x13   : > { %295 = vrot.lane.b32.xlu0 %v901_v1, %s923_s22  ;;  %409 = vrot.lane.b32.xlu1 %v901_v1, %s924_s23  ;;  %s807_s23 = sshll.u32 %s1045_s13, 4 }
  0x14   : > { %835 = vmatmul.mubr.msk.bf16.vlgmr.msra.gmra.mxu1 %vm192_vm1, %v903_v2 }
  0x15   : > { %846 = vmatprep.mubr.msk.bf16.mxu1 %vm920_vm0, %v919_v0 }
  0x17   : > { %466 = vrot.lane.b32.xlu0 %v901_v1, %s925_s24  ;;  %523 = vrot.lane.b32.xlu1 %v901_v1, %s926_s25 }
  0x1b   : > { %580 = vrot.lane.b32.xlu0 %v901_v1, %s927_s26  ;;  %637 = vrot.lane.b32.xlu1 %v901_v1, %s928_s27  ;;  %s170_s26 = scalar_lea.vmem %s1043_s3, %s807_s23 }
  0x1f   : > { %690 = vperm.xlu0 %899, %v686_v3   ;;  %695 = vperm.xlu1 %900, %v687_v4  }
  0x81   : > { %v190_v6 = vpop.permute.xlu0 %189  ;;  %v353_v8 = vpop.permute.xlu1 %352 }
  0x82   : > { %827 = vmatpush3.bf16.msra.mxu0 %v190_v6  ;;  %845 = vmatpush3.bf16.msra.mxu1 %v353_v8 }
  0x83   : > { %838 = vmatprep.subr.bf16.mxu0 %v919_v0  ;;  %856 = vmatprep.subr.bf16.mxu1 %v919_v0 }
  0x85   : > { %829 = vmatmul.mubr.msk.bf16.vlgmr.msra.gmra.mxu0 %vm192_vm1, %v902_v7  ;;  %v296_v10 = vpop.permute.xlu0 %295  ;;  %847 = vmatmul.mubr.msk.bf16.vlgmr.msra.gmra.mxu1 %vm192_vm1, %v905_v9  ;;  %v410_v14 = vpop.permute.xlu1 %409 }
  0x86   : > { %839 = vmatpush3.bf16.msra.mxu0 %v296_v10  ;;  %840 = vmatprep.mubr.msk.bf16.mxu0 %vm920_vm0, %v919_v0 }
  0x87   : > { %850 = vmatprep.subr.bf16.mxu0 %v919_v0  ;;  %858 = vmatprep.mubr.msk.bf16.mxu1 %vm920_vm0, %v919_v0 }
  0x89   : > { %v467_v12 = vpop.permute.xlu0 %466  ;;  %v524_v18 = vpop.permute.xlu1 %523 }
  0x8a   : > { %857 = vmatpush3.bf16.msra.mxu1 %v467_v12 }
  0x8b   : > { %868 = vmatprep.subr.bf16.mxu1 %v919_v0 }
  0x8d   : > { %841 = vmatmul.mubr.msk.bf16.vlgmr.msra.gmra.mxu0 %vm192_vm1, %v904_v11  ;;  %859 = vmatmul.mubr.msk.bf16.vlgmr.msra.gmra.mxu1 %vm192_vm1, %v907_v13  ;;  %v581_v15 = vpop.permute.xlu0 %580  ;;  %v638_v20 = vpop.permute.xlu1 %637 }
  0x8e   : > { %851 = vmatpush3.bf16.msra.mxu0 %v410_v14  ;;  %852 = vmatprep.mubr.msk.bf16.mxu0 %vm920_vm0, %v919_v0 }
  0x8f   : > { %862 = vmatprep.subr.bf16.mxu0 %v919_v0  ;;  %869 = vmatpush3.bf16.msra.mxu1 %v581_v15 }
  0x90   : > { %870 = vmatprep.mubr.msk.bf16.mxu1 %vm920_vm0, %v919_v0 }
  0x95   : > { %853 = vmatmul.mubr.msk.bf16.vlgmr.msra.gmra.mxu0 %vm192_vm1, %v906_v16  ;;  %871 = vmatmul.mubr.msk.bf16.vlgmr.msra.gmra.mxu1 %vm192_vm1, %v909_v17 }
  0x96   : > { %863 = vmatpush3.bf16.msra.mxu0 %v524_v18  ;;  %864 = vmatprep.mubr.msk.bf16.mxu0 %vm920_vm0, %v919_v0 }
  0x97   : > { %874 = vmatprep.subr.bf16.mxu0 %v919_v0 }
  0x9a   : > { %v691_v4 = vpop.permute.xlu0 %690  ;;  %v696_v10 = vpop.permute.xlu1 %695 }
  0x9d   : > { %865 = vmatmul.mubr.msk.bf16.vlgmr.msra.gmra.mxu0 %vm192_vm1, %v908_v19 }
  0x9e   : > { %875 = vmatpush3.bf16.msra.mxu0 %v638_v20  ;;  %876 = vmatprep.mubr.msk.bf16.mxu0 %vm920_vm0, %v919_v0 }
  0xa5   : > { %877 = vmatmul.mubr.msk.bf16.vlgmr.msra.gmra.mxu0 %vm192_vm1, %v910_v21 }
  0xd4   : > { %v280_v22 = vpop.f32.mrf.mxu1 }
  0xd6   : > { %v836_v23 = vpop.f32.mrf.mxu1 }
  0xd8   : > { %v283_v24 = vpop.f32.mrf.mxu1 }
  0xda   : > { %v837_v25 = vpop.f32.mrf.mxu1 }
 0x145   : > { %v230_v26 = vpop.f32.mrf.mxu0  ;;  %v392_v27 = vpop.f32.mrf.mxu1 }
 0x146   : > { %v281_v40 = vadd.f32 %v280_v22, %v230_v26 }
 0x147   : > { %v830_v28 = vpop.f32.mrf.mxu0  ;;  %v848_v29 = vpop.f32.mrf.mxu1 }
 0x149   : > { %v233_v30 = vpop.f32.mrf.mxu0  ;;  %v395_v31 = vpop.f32.mrf.mxu1 }
 0x14a   : > { %v284_v46 = vadd.f32 %v283_v24, %v233_v30 }
 0x14b   : > { %v831_v32 = vpop.f32.mrf.mxu0  ;;  %v849_v33 = vpop.f32.mrf.mxu1 }
 0x14d   : > { %v335_v34 = vpop.f32.mrf.mxu0  ;;  %v506_v35 = vpop.f32.mrf.mxu1 }
 0x14e   : > { %v342_v43 = vadd.f32 %v335_v34, %v281_v40 }
 0x14f   : > { %v842_v36 = vpop.f32.mrf.mxu0  ;;  %v860_v37 = vpop.f32.mrf.mxu1 }
 0x150   : > { %v399_v49 = vadd.f32 %v392_v27, %v342_v43 }
 0x151   : > { %v338_v38 = vpop.f32.mrf.mxu0  ;;  %v509_v39 = vpop.f32.mrf.mxu1 }
 0x152   : > { %v343_v50 = vadd.f32 %v338_v38, %v284_v46 }
 0x153   : > { %v843_v41 = vpop.f32.mrf.mxu0  ;;  %v861_v42 = vpop.f32.mrf.mxu1 }
 0x154   : > { %v400_v56 = vadd.f32 %v395_v31, %v343_v50 }
 0x155   : > { %v449_v44 = vpop.f32.mrf.mxu0  ;;  %v620_v45 = vpop.f32.mrf.mxu1 }
 0x156   : > { %v456_v53 = vadd.f32 %v449_v44, %v399_v49 }
 0x157   : > { %v854_v47 = vpop.f32.mrf.mxu0  ;;  %v872_v48 = vpop.f32.mrf.mxu1 }
 0x158   : > { %v513_v58 = vadd.f32 %v506_v35, %v456_v53 }
 0x159   : > { %v452_v51 = vpop.f32.mrf.mxu0  ;;  %v623_v52 = vpop.f32.mrf.mxu1 }
 0x15a   : > { %v457_v59 = vadd.f32 %v452_v51, %v400_v56 }
 0x15b   : > { %v855_v54 = vpop.f32.mrf.mxu0  ;;  %v873_v55 = vpop.f32.mrf.mxu1 }
 0x15c   : > { %v514_v63 = vadd.f32 %v509_v39, %v457_v59 }
 0x15d   : > { %v563_v57 = vpop.f32.mrf.mxu0 }
 0x15e   : > { %v570_v61 = vadd.f32 %v563_v57, %v513_v58 }
 0x15f   : > { %v866_v60 = vpop.f32.mrf.mxu0 }
 0x160   : > { %v627_v1 = vadd.f32 %v620_v45, %v570_v61 }
 0x161   : > { %v566_v62 = vpop.f32.mrf.mxu0 }
 0x162   : > { %v571_v2 = vadd.f32 %v566_v62, %v514_v63 }
 0x163   : > { %v867_v0 = vpop.f32.mrf.mxu0 }
 0x164   : > { %v628_v7 = vadd.f32 %v623_v52, %v571_v2 }
 0x165   : > { %v677_v3 = vpop.f32.mrf.mxu0 }
 0x166   : > { %v684_v5 = vadd.f32 %v677_v3, %v627_v1 }
 0x167   : > { %v878_v6 = vpop.f32.mrf.mxu0 }
 0x168   : > { %v698_v8 = vadd.f32 %v691_v4, %v684_v5 }
 0x169   : > { %v680_v9 = vpop.f32.mrf.mxu0 }
 0x16a   : > { %v700_v11 = vmax.f32 %v698_v8, 0.0  ;;  %v685_v12 = vadd.f32 %v680_v9, %v628_v7 }
 0x16b   : > { %v879_v13 = vpop.f32.mrf.mxu0 }
 0x16c   : > { %703 = vst.msk [vmem:[%s170_s26] sm:$0xff] %vm702_vm2, %v700_v11  ;;  %v699_v14 = vadd.f32 %v696_v10, %v685_v12 }
 0x16e   : > { %v701_v15 = vmax.f32 %v699_v14, 0.0 }
 0x170   : > { %704 = vst.msk [vmem:[%s170_s26 + $0x8] sm:$0xff] %vm702_vm2, %v701_v15 }
 0x171 PF: > { %s13_s12 = sadd.s32 1, %s917_s12  }
 0x172   : > { %p10_p4 = scmp.ge.s32.totalorder %s13_s12, 4  }
 0x174   :  { %12 = sbr.rel (!%p10_p4) target bundleno = 1 (0x1), region = 70 }

// kernel: scan_only_net.23
= control target key start
LH: loop header
LB: loop body
LE: loop exit
PB: predicated region body
PF: predicated region fallthrough
CT: control target
= control target key end

     0   :  { %s1192_s12 = smov 0   ;;  %s1301_s0 = inlined_call_operand.vmem [shape: bf16[2,16,38], index: 0, kind: input, shape index: {}]   ;;  %s1302_s1 = inlined_call_operand.vmem [shape: bf16[9,32,16], index: 1, kind: input, shape index: {}]   ;;  %s1303_s2 = inlined_call_operand.vmem [shape: f32[32,1], index: 2, kind: input, shape index: {}]   ;;  %s1304_s3 = inlined_call_operand.vmem [shape: f32[2,32,24], index: 3, kind: output, shape index: {}]  }
   0x1 LB: > { %s954_s13 = sadd.s32 4294967295, %s1161_s12   ;;  %p958_p0 = scmp.ge.s32.totalorder %s1161_s12, 1  ;;  %s1161_s12 = sphi %s1192_s12, %s13_s12  }
   0x2   : > { %p137_p1 = scmp.lt.s32.totalorder %s1161_s12, 3 }
   0x4   : > { %p138_p2 = pnand %p958_p0, %p137_p1 }
   0x5   : > { %p161_p3 = scmp.lt.s32.totalorder (!%p138_p2), %s954_s13, 1  ;;  %s1163_s22 = smov (!%p138_p2), 127  }
   0x6   : > { %141 = sbr.rel (%p138_p2) target bundleno = 372 (0x174), region = 32  ;;  %s1164_s23 = smov (!%p138_p2), 122  }
   0x7   : > { %s1165_s28 = smov (!%p138_p2), 126   ;;  %s1166_s29 = smov (!%p138_p2), 121  }
   0x8   : > { %s1167_s30 = smov (!%p138_p2), 120   ;;  %s1168_s4 = smov (!%p138_p2), 116  }
   0x9   : > { %s1169_s5 = smov (!%p138_p2), 115   ;;  %s1170_s6 = smov (!%p138_p2), 114  }
   0xb   : > { %v1137_v0 = vld [vmem:[%s1302_s1 + $0x10] sm:$0xff]   ;;  %vm201_vm0 = vcmask 130048   ;;  %s1306_s13 = smov (!%p161_p3, %s954_s13), 1  ;;  %v1138_v1 = vld [vmem:[%s1302_s1] sm:$0xff]   ;;  %v1140_v3 = vld [vmem:[%s1302_s1 + $0x8] sm:$0xff]   ;;  %v1171_v7 = vmov 0  }
   0xc   : > { %1065 = vmatprep.mubr.msk.bf16.mxu0 %vm201_vm0, %v1137_v0  ;;  %s1034_s18 = sshll.u32 %s1306_s13, 3  ;;  %1071 = vmatprep.mubr.msk.bf16.mxu1 %vm201_vm0, %v1138_v1  ;;  %v1143_v4 = vld [vmem:[%s1302_s1 + $0x30] sm:$0xff]   ;;  %v863_v5 = vld [vmem:[%s1303_s2 + $0x8] sm:$0xff]  ;;  %v862_v6 = vld [vmem:[%s1303_s2] sm:$0xff]  ;;  %s1035_s20 = sshll.u32 %s1306_s13, 5  ;;  %vm894_vm1 = vcmask 195584  }
   0xd   : > { %s165_s21 = scalar_lea.vmem %s1301_s0, %s1034_s18  ;;  %1135 = vset.pattern.permute.xlu1 %v1171_v7  ;;  %1134 = vset.pattern.permute.xlu0 %v1171_v7  ;;  %v864_v8 = vld [vmem:[%s1303_s2 + $0x10] sm:$0xff]  ;;  %v865_v9 = vld [vmem:[%s1303_s2 + $0x18] sm:$0xff]  ;;  %v1141_v13 = vld [vmem:[%s1302_s1 + $0x20] sm:$0xff]  }
   0xe   : > { %v1136_v2 = vld [vmem:[%s165_s21] sm:$0xff]   ;;  %v1139_v12 = vld [vmem:[%s1302_s1 + $0x18] sm:$0xff]   ;;  %v1147_v17 = vld [vmem:[%s1302_s1 + $0x50] sm:$0xff]  }
   0xf   : > { %198 = vrot.lane.b32.xlu0 %v1136_v2, %s1163_s22  ;;  %415 = vrot.lane.b32.xlu1 %v1136_v2, %s1164_s23  ;;  %v1144_v14 = vld [vmem:[%s1302_s1 + $0x38] sm:$0xff]   ;;  %v1142_v19 = vld [vmem:[%s1302_s1 + $0x28] sm:$0xff]   ;;  %s170_s23 = scalar_lea.vmem %s1304_s3, %s1035_s20 }
  0x10   : > { %1069 = vmatprep.subr.bf16.mxu1 %v1136_v2  ;;  %v1145_v20 = vld [vmem:[%s1302_s1 + $0x40] sm:$0xff]   ;;  %v1148_v21 = vld [vmem:[%s1302_s1 + $0x58] sm:$0xff]   ;;  %v1151_v24 = vld [vmem:[%s1302_s1 + $0x70] sm:$0xff]  }
  0x11   : > { %1070 = vmatpush3.bf16.msra.mxu1 %v1136_v2  ;;  %v1146_v25 = vld [vmem:[%s1302_s1 + $0x48] sm:$0xff]   ;;  %v1149_v26 = vld [vmem:[%s1302_s1 + $0x60] sm:$0xff]   ;;  %v1152_v27 = vld [vmem:[%s1302_s1 + $0x78] sm:$0xff]  }
  0x12   : > { %v1150_v29 = vld [vmem:[%s1302_s1 + $0x68] sm:$0xff]   ;;  %v1153_v30 = vld [vmem:[%s1302_s1 + $0x80] sm:$0xff]  }
  0x13   : > { %338 = vrot.lane.b32.xlu0 %v1136_v2, %s1165_s28  ;;  %492 = vrot.lane.b32.xlu1 %v1136_v2, %s1166_s29  ;;  %v1154_v31 = vld [vmem:[%s1302_s1 + $0x88] sm:$0xff]  }
  0x14   : > { %1072 = vmatmul.mubr.msk.bf16.vlgmr.msra.gmra.mxu1 %vm201_vm0, %v1140_v3 }
  0x15   : > { %1083 = vmatprep.mubr.msk.bf16.mxu1 %vm201_vm0, %v1143_v4 }
  0x17   : > { %569 = vrot.lane.b32.xlu0 %v1136_v2, %s1167_s30  ;;  %646 = vrot.lane.b32.xlu1 %v1136_v2, %s1168_s4 }
  0x1b   : > { %723 = vrot.lane.b32.xlu0 %v1136_v2, %s1169_s5  ;;  %800 = vrot.lane.b32.xlu1 %v1136_v2, %s1170_s6 }
  0x1f   : > { %873 = vperm.xlu1 %1135, %v863_v5   ;;  %868 = vperm.xlu0 %1134, %v862_v6  }
  0x23   : > { %878 = vperm.xlu1 %1135, %v864_v8   ;;  %883 = vperm.xlu0 %1134, %v865_v9  }
  0x81   : > { %v199_v10 = vpop.permute.xlu0 %198  ;;  %v416_v11 = vpop.permute.xlu1 %415 }
  0x82   : > { %1063 = vmatprep.subr.bf16.mxu0 %v199_v10  ;;  %1081 = vmatprep.subr.bf16.mxu1 %v416_v11 }
  0x83   : > { %1064 = vmatpush3.bf16.msra.mxu0 %v199_v10  ;;  %1082 = vmatpush3.bf16.msra.mxu1 %v416_v11 }
  0x85   : > { %v339_v15 = vpop.permute.xlu0 %338  ;;  %v493_v16 = vpop.permute.xlu1 %492 }
  0x86   : > { %1066 = vmatmul.mubr.msk.bf16.vlgmr.msra.gmra.mxu0 %vm201_vm0, %v1139_v12  ;;  %1075 = vmatprep.subr.bf16.mxu0 %v339_v15 }
  0x87   : > { %1076 = vmatpush3.bf16.msra.mxu0 %v339_v15  ;;  %1077 = vmatprep.mubr.msk.bf16.mxu0 %vm201_vm0, %v1141_v13 }
  0x88   : > { %1087 = vmatprep.subr.bf16.mxu0 %v493_v16  ;;  %1084 = vmatmul.mubr.msk.bf16.vlgmr.msra.gmra.mxu1 %vm201_vm0, %v1144_v14 }
  0x89   : > { %v570_v18 = vpop.permute.xlu0 %569  ;;  %1095 = vmatprep.mubr.msk.bf16.mxu1 %vm201_vm0, %v1147_v17  ;;  %v647_v22 = vpop.permute.xlu1 %646 }
  0x8a   : > { %1093 = vmatprep.subr.bf16.mxu1 %v570_v18 }
  0x8b   : > { %1094 = vmatpush3.bf16.msra.mxu1 %v570_v18 }
  0x8d   : > { %v724_v23 = vpop.permute.xlu0 %723  ;;  %v801_v28 = vpop.permute.xlu1 %800 }
  0x8e   : > { %1078 = vmatmul.mubr.msk.bf16.vlgmr.msra.gmra.mxu0 %vm201_vm0, %v1142_v19  ;;  %1105 = vmatprep.subr.bf16.mxu1 %v724_v23 }
  0x8f   : > { %1088 = vmatpush3.bf16.msra.mxu0 %v493_v16  ;;  %1089 = vmatprep.mubr.msk.bf16.mxu0 %vm201_vm0, %v1145_v20 }
  0x90   : > { %1099 = vmatprep.subr.bf16.mxu0 %v647_v22  ;;  %1096 = vmatmul.mubr.msk.bf16.vlgmr.msra.gmra.mxu1 %vm201_vm0, %v1148_v21 }
  0x91   : > { %1106 = vmatpush3.bf16.msra.mxu1 %v724_v23  ;;  %1107 = vmatprep.mubr.msk.bf16.mxu1 %vm201_vm0, %v1151_v24 }
  0x96   : > { %1090 = vmatmul.mubr.msk.bf16.vlgmr.msra.gmra.mxu0 %vm201_vm0, %v1146_v25 }
  0x97   : > { %1100 = vmatpush3.bf16.msra.mxu0 %v647_v22  ;;  %1101 = vmatprep.mubr.msk.bf16.mxu0 %vm201_vm0, %v1149_v26 }
  0x98   : > { %1111 = vmatprep.subr.bf16.mxu0 %v801_v28  ;;  %1108 = vmatmul.mubr.msk.bf16.vlgmr.msra.gmra.mxu1 %vm201_vm0, %v1152_v27 }
  0x9a   : > { %v874_v10 = vpop.permute.xlu1 %873  ;;  %v869_v23 = vpop.permute.xlu0 %868 }
  0x9e   : > { %1102 = vmatmul.mubr.msk.bf16.vlgmr.msra.gmra.mxu0 %vm201_vm0, %v1150_v29  ;;  %v879_v24 = vpop.permute.xlu1 %878 }
  0x9f   : > { %1112 = vmatpush3.bf16.msra.mxu0 %v801_v28  ;;  %1113 = vmatprep.mubr.msk.bf16.mxu0 %vm201_vm0, %v1153_v30 }
  0xa6   : > { %1114 = vmatmul.mubr.msk.bf16.vlgmr.msra.gmra.mxu0 %vm201_vm0, %v1154_v31 }
  0xd4   : > { %v1073_v32 = vpop.f32.mrf.mxu1 }
  0xd6   : > { %v308_v33 = vpop.f32.mrf.mxu1 }
  0xd8   : > { %v1074_v34 = vpop.f32.mrf.mxu1 }
  0xda   : > { %v311_v35 = vpop.f32.mrf.mxu1 }
 0x146   : > { %v1067_v36 = vpop.f32.mrf.mxu0 }
 0x147   : > { %v317_v49 = vadd.f32 %v1073_v32, %v1067_v36 }
 0x148   : > { %v242_v37 = vpop.f32.mrf.mxu0  ;;  %v1085_v38 = vpop.f32.mrf.mxu1 }
 0x149   : > { %v309_v51 = vadd.f32 %v308_v33, %v242_v37 }
 0x14a   : > { %v1068_v39 = vpop.f32.mrf.mxu0  ;;  %v458_v40 = vpop.f32.mrf.mxu1 }
 0x14b   : > { %v320_v55 = vadd.f32 %v1074_v34, %v1068_v39 }
 0x14c   : > { %v245_v41 = vpop.f32.mrf.mxu0  ;;  %v1086_v42 = vpop.f32.mrf.mxu1 }
 0x14d   : > { %v312_v58 = vadd.f32 %v311_v35, %v245_v41 }
 0x14e   : > { %v1079_v43 = vpop.f32.mrf.mxu0  ;;  %v461_v44 = vpop.f32.mrf.mxu1 }
 0x14f   : > { %v398_v52 = vadd.f32 %v1079_v43, %v317_v49 }
 0x150   : > { %v381_v45 = vpop.f32.mrf.mxu0  ;;  %v1097_v46 = vpop.f32.mrf.mxu1 }
 0x151   : > { %v396_v56 = vadd.f32 %v381_v45, %v309_v51  ;;  %v475_v59 = vadd.f32 %v1085_v38, %v398_v52 }
 0x152   : > { %v1080_v47 = vpop.f32.mrf.mxu0  ;;  %v612_v48 = vpop.f32.mrf.mxu1 }
 0x153   : > { %v399_v60 = vadd.f32 %v1080_v47, %v320_v55  ;;  %v473_v63 = vadd.f32 %v458_v40, %v396_v56  ;;  %v884_v40 = vpop.permute.xlu0 %883 }
 0x154   : > { %v384_v50 = vpop.f32.mrf.mxu0  ;;  %v1098_v54 = vpop.f32.mrf.mxu1 }
 0x155   : > { %v397_v0 = vadd.f32 %v384_v50, %v312_v58  ;;  %v476_v3 = vadd.f32 %v1086_v42, %v399_v60 }
 0x156   : > { %v1091_v53 = vpop.f32.mrf.mxu0  ;;  %v615_v62 = vpop.f32.mrf.mxu1 }
 0x157   : > { %v552_v1 = vadd.f32 %v1091_v53, %v475_v59  ;;  %v474_v7 = vadd.f32 %v461_v44, %v397_v0 }
 0x158   : > { %v535_v57 = vpop.f32.mrf.mxu0  ;;  %v1109_v6 = vpop.f32.mrf.mxu1 }
 0x159   : > { %v550_v4 = vadd.f32 %v535_v57, %v473_v63  ;;  %v629_v8 = vadd.f32 %v1097_v46, %v552_v1 }
 0x15a   : > { %v1092_v61 = vpop.f32.mrf.mxu0  ;;  %v766_v15 = vpop.f32.mrf.mxu1 }
 0x15b   : > { %v553_v9 = vadd.f32 %v1092_v61, %v476_v3  ;;  %v627_v12 = vadd.f32 %v612_v48, %v550_v4 }
 0x15c   : > { %v538_v2 = vpop.f32.mrf.mxu0  ;;  %v1110_v25 = vpop.f32.mrf.mxu1 }
 0x15d   : > { %v551_v13 = vadd.f32 %v538_v2, %v474_v7  ;;  %v630_v17 = vadd.f32 %v1098_v54, %v553_v9 }
 0x15e   : > { %v1103_v5 = vpop.f32.mrf.mxu0  ;;  %v769_v34 = vpop.f32.mrf.mxu1 }
 0x15f   : > { %v706_v14 = vadd.f32 %v1103_v5, %v629_v8  ;;  %v628_v20 = vadd.f32 %v615_v62, %v551_v13 }
 0x160   : > { %v689_v11 = vpop.f32.mrf.mxu0 }
 0x161   : > { %v704_v18 = vadd.f32 %v689_v11, %v627_v12  ;;  %v783_v21 = vadd.f32 %v1109_v6, %v706_v14 }
 0x162   : > { %v1104_v16 = vpop.f32.mrf.mxu0 }
 0x163   : > { %v707_v22 = vadd.f32 %v1104_v16, %v630_v17  ;;  %v781_v27 = vadd.f32 %v766_v15, %v704_v18 }
 0x164   : > { %v692_v19 = vpop.f32.mrf.mxu0 }
 0x165   : > { %v705_v28 = vadd.f32 %v692_v19, %v628_v20  ;;  %v784_v31 = vadd.f32 %v1110_v25, %v707_v22 }
 0x166   : > { %v1115_v26 = vpop.f32.mrf.mxu0 }
 0x167   : > { %v860_v29 = vadd.f32 %v1115_v26, %v783_v21  ;;  %v782_v36 = vadd.f32 %v769_v34, %v705_v28 }
 0x168   : > { %v843_v30 = vpop.f32.mrf.mxu0 }
 0x169   : > { %v888_v32 = vadd.f32 %v879_v24, %v860_v29  ;;  %v858_v33 = vadd.f32 %v843_v30, %v781_v27 }
 0x16a   : > { %v1116_v35 = vpop.f32.mrf.mxu0 }
 0x16b   : > { %v892_v37 = vmax.f32 %v888_v32, 0.0  ;;  %v886_v38 = vadd.f32 %v869_v23, %v858_v33  ;;  %v861_v39 = vadd.f32 %v1116_v35, %v784_v31 }
 0x16c   : > { %v846_v41 = vpop.f32.mrf.mxu0 }
 0x16d   : > { %897 = vst.msk [vmem:[%s170_s23 + $0x10] sm:$0xff] %vm894_vm1, %v892_v37  ;;  %v890_v42 = vmax.f32 %v886_v38, 0.0  ;;  %v889_v43 = vadd.f32 %v884_v40, %v861_v39  ;;  %v859_v44 = vadd.f32 %v846_v41, %v782_v36 }
 0x16f   : > { %895 = vst.msk [vmem:[%s170_s23] sm:$0xff] %vm894_vm1, %v890_v42  ;;  %v893_v45 = vmax.f32 %v889_v43, 0.0  ;;  %v887_v46 = vadd.f32 %v874_v10, %v859_v44 }
 0x171   : > { %898 = vst.msk [vmem:[%s170_s23 + $0x18] sm:$0xff] %vm894_vm1, %v893_v45  ;;  %v891_v47 = vmax.f32 %v887_v46, 0.0 }
 0x173   : > { %896 = vst.msk [vmem:[%s170_s23 + $0x8] sm:$0xff] %vm894_vm1, %v891_v47 }
 0x174 PF: > { %s13_s12 = sadd.s32 1, %s1161_s12  }
 0x175   : > { %p10_p4 = scmp.ge.s32.totalorder %s13_s12, 4  }
 0x177   :  { %12 = sbr.rel (!%p10_p4) target bundleno = 1 (0x1), region = 70 }

// kernel: scan_only_net.24
= control target key start
LH: loop header
LB: loop body
LE: loop exit
PB: predicated region body
PF: predicated region fallthrough
CT: control target
= control target key end

     0   :  { %s1253_s12 = smov 0   ;;  %s1362_s0 = inlined_call_operand.vmem [shape: bf16[2,32,38], index: 0, kind: input, shape index: {}]   ;;  %s1363_s1 = inlined_call_operand.vmem [shape: bf16[9,32,32], index: 1, kind: input, shape index: {}]   ;;  %s1364_s2 = inlined_call_operand.vmem [shape: f32[32,1], index: 2, kind: input, shape index: {}]   ;;  %s1365_s3 = inlined_call_operand.vmem [shape: f32[2,32,24], index: 3, kind: output, shape index: {}]  }
   0x1 LB: > { %s986_s13 = sadd.s32 4294967295, %s1222_s12   ;;  %p990_p0 = scmp.ge.s32.totalorder %s1222_s12, 1  ;;  %s1222_s12 = sphi %s1253_s12, %s13_s12  }
   0x2   : > { %p137_p1 = scmp.lt.s32.totalorder %s1222_s12, 3 }
   0x4   : > { %p138_p2 = pnand %p990_p0, %p137_p1 }
   0x5   : > { %p161_p3 = scmp.lt.s32.totalorder (!%p138_p2), %s986_s13, 1  ;;  %s1224_s22 = smov (!%p138_p2), 127  }
   0x6   : > { %141 = sbr.rel (%p138_p2) target bundleno = 376 (0x178), region = 32  ;;  %s1225_s23 = smov (!%p138_p2), 126  }
   0x7   : > { %s1226_s28 = smov (!%p138_p2), 122   ;;  %s1227_s29 = smov (!%p138_p2), 121  }
   0x8   : > { %s1228_s30 = smov (!%p138_p2), 120   ;;  %s1229_s4 = smov (!%p138_p2), 116  }
   0x9   : > { %s1230_s5 = smov (!%p138_p2), 115   ;;  %s1231_s6 = smov (!%p138_p2), 114  }
   0xb   : > { %v1198_v0 = vld [vmem:[%s1363_s1 + $0x10] sm:$0xff]   ;;  %vm211_vm0 = vcmask 261120   ;;  %s1367_s13 = smov (!%p161_p3, %s986_s13), 1  ;;  %v1199_v1 = vld [vmem:[%s1363_s1] sm:$0xff]   ;;  %v1201_v4 = vld [vmem:[%s1363_s1 + $0x8] sm:$0xff]   ;;  %v1232_v6 = vmov 0  }
   0xc   : > { %1109 = vmatprep.mubr.msk.bf16.mxu0 %vm211_vm0, %v1198_v0  ;;  %s1067_s18 = sshll.u32 %s1367_s13, 4  ;;  %1117 = vmatprep.mubr.msk.bf16.mxu1 %vm211_vm0, %v1199_v1  ;;  %v1204_v5 = vld [vmem:[%s1363_s1 + $0x30] sm:$0xff]   ;;  %v895_v7 = vld [vmem:[%s1364_s2 + $0x8] sm:$0xff]  ;;  %v894_v8 = vld [vmem:[%s1364_s2] sm:$0xff]  ;;  %s1068_s20 = sshll.u32 %s1367_s13, 5  ;;  %vm926_vm1 = vcmask 195584  }
   0xd   : > { %s165_s21 = scalar_lea.vmem %s1362_s0, %s1067_s18  ;;  %1195 = vset.pattern.permute.xlu1 %v1232_v6  ;;  %1194 = vset.pattern.permute.xlu0 %v1232_v6  ;;  %v896_v9 = vld [vmem:[%s1364_s2 + $0x10] sm:$0xff]  ;;  %v897_v10 = vld [vmem:[%s1364_s2 + $0x18] sm:$0xff]  ;;  %v1202_v16 = vld [vmem:[%s1363_s1 + $0x20] sm:$0xff]  }
   0xe   : > { %v1196_v2 = vld [vmem:[%s165_s21 + $0x8] sm:$0xff]   ;;  %v1197_v3 = vld [vmem:[%s165_s21] sm:$0xff]   ;;  %v1200_v15 = vld [vmem:[%s1363_s1 + $0x18] sm:$0xff]  }
   0xf   : > { %207 = vrot.lane.b32.xlu0 %v1196_v2, %s1224_s22  ;;  %351 = vrot.lane.b32.xlu1 %v1196_v2, %s1225_s23  ;;  %v1203_v21 = vld [vmem:[%s1363_s1 + $0x28] sm:$0xff]   ;;  %v1205_v22 = vld [vmem:[%s1363_s1 + $0x38] sm:$0xff]  }
  0x10   : > { %1113 = vmatprep.subr.bf16.mxu1 %v1196_v2  ;;  %v1206_v25 = vld [vmem:[%s1363_s1 + $0x40] sm:$0xff]   ;;  %v1208_v26 = vld [vmem:[%s1363_s1 + $0x50] sm:$0xff]   ;;  %v1207_v29 = vld [vmem:[%s1363_s1 + $0x48] sm:$0xff]  }
  0x11   : > { %1114 = vmatpush3.bf16.msra.mxu1 %v1196_v2  ;;  %v1209_v30 = vld [vmem:[%s1363_s1 + $0x58] sm:$0xff]   ;;  %v1210_v32 = vld [vmem:[%s1363_s1 + $0x60] sm:$0xff]   ;;  %v1212_v33 = vld [vmem:[%s1363_s1 + $0x70] sm:$0xff]  }
  0x12   : > { %1115 = vmatprep.subr.bf16.mxu1 %v1197_v3  ;;  %v1211_v36 = vld [vmem:[%s1363_s1 + $0x68] sm:$0xff]   ;;  %v1213_v37 = vld [vmem:[%s1363_s1 + $0x78] sm:$0xff]   ;;  %v1214_v38 = vld [vmem:[%s1363_s1 + $0x80] sm:$0xff]  }
  0x13   : > { %205 = vrot.lane.b32.xlu0 %v1197_v3, %s1224_s22  ;;  %349 = vrot.lane.b32.xlu1 %v1197_v3, %s1225_s23  ;;  %v1215_v40 = vld [vmem:[%s1363_s1 + $0x88] sm:$0xff]   ;;  %s170_s23 = scalar_lea.vmem %s1365_s3, %s1068_s20 }
  0x15   : > { %1116 = vmatpush3.bf16.msra.mxu1 %v1197_v3 }
  0x17   : > { %431 = vrot.lane.b32.xlu0 %v1196_v2, %s1226_s28  ;;  %511 = vrot.lane.b32.xlu1 %v1196_v2, %s1227_s29 }
  0x18   : > { %1118 = vmatmul.mubr.msk.bf16.vlgmr.msra.gmra.mxu1 %vm211_vm0, %v1201_v4 }
  0x19   : > { %1133 = vmatprep.mubr.msk.bf16.mxu1 %vm211_vm0, %v1204_v5 }
  0x1b   : > { %429 = vrot.lane.b32.xlu0 %v1197_v3, %s1226_s28  ;;  %509 = vrot.lane.b32.xlu1 %v1197_v3, %s1227_s29 }
  0x1f   : > { %591 = vrot.lane.b32.xlu0 %v1196_v2, %s1228_s30  ;;  %671 = vrot.lane.b32.xlu1 %v1196_v2, %s1229_s4 }
  0x23   : > { %589 = vrot.lane.b32.xlu0 %v1197_v3, %s1228_s30  ;;  %669 = vrot.lane.b32.xlu1 %v1197_v3, %s1229_s4 }
  0x27   : > { %751 = vrot.lane.b32.xlu0 %v1196_v2, %s1230_s5  ;;  %831 = vrot.lane.b32.xlu1 %v1196_v2, %s1231_s6 }
  0x2b   : > { %749 = vrot.lane.b32.xlu0 %v1197_v3, %s1230_s5  ;;  %829 = vrot.lane.b32.xlu1 %v1197_v3, %s1231_s6 }
  0x2f   : > { %905 = vperm.xlu1 %1195, %v895_v7   ;;  %900 = vperm.xlu0 %1194, %v894_v8  }
  0x33   : > { %910 = vperm.xlu1 %1195, %v896_v9   ;;  %915 = vperm.xlu0 %1194, %v897_v10  }
  0x81   : > { %v208_v11 = vpop.permute.xlu0 %207  ;;  %v352_v12 = vpop.permute.xlu1 %351 }
  0x82   : > { %1105 = vmatprep.subr.bf16.mxu0 %v208_v11 }
  0x83   : > { %1106 = vmatpush3.bf16.msra.mxu0 %v208_v11 }
  0x85   : > { %v206_v13 = vpop.permute.xlu0 %205  ;;  %v350_v14 = vpop.permute.xlu1 %349 }
  0x86   : > { %1107 = vmatprep.subr.bf16.mxu0 %v206_v13 }
  0x87   : > { %1108 = vmatpush3.bf16.msra.mxu0 %v206_v13 }
  0x88   : > { %1121 = vmatprep.subr.bf16.mxu0 %v352_v12 }
  0x89   : > { %v432_v17 = vpop.permute.xlu0 %431  ;;  %v512_v18 = vpop.permute.xlu1 %511 }
  0x8a   : > { %1110 = vmatmul.mubr.msk.bf16.vlgmr.msra.gmra.mxu0 %vm211_vm0, %v1200_v15  ;;  %1129 = vmatprep.subr.bf16.mxu1 %v432_v17 }
  0x8b   : > { %1122 = vmatpush3.bf16.msra.mxu0 %v352_v12  ;;  %1130 = vmatpush3.bf16.msra.mxu1 %v432_v17 }
  0x8c   : > { %1123 = vmatprep.subr.bf16.mxu0 %v350_v14  ;;  %1125 = vmatprep.mubr.msk.bf16.mxu0 %vm211_vm0, %v1202_v16 }
  0x8d   : > { %v430_v19 = vpop.permute.xlu0 %429  ;;  %v510_v20 = vpop.permute.xlu1 %509 }
  0x8e   : > { %1131 = vmatprep.subr.bf16.mxu1 %v430_v19 }
  0x8f   : > { %1124 = vmatpush3.bf16.msra.mxu0 %v350_v14  ;;  %1132 = vmatpush3.bf16.msra.mxu1 %v430_v19 }
  0x90   : > { %1137 = vmatprep.subr.bf16.mxu0 %v512_v18 }
  0x91   : > { %v592_v23 = vpop.permute.xlu0 %591  ;;  %v672_v24 = vpop.permute.xlu1 %671 }
  0x92   : > { %1126 = vmatmul.mubr.msk.bf16.vlgmr.msra.gmra.mxu0 %vm211_vm0, %v1203_v21  ;;  %1134 = vmatmul.mubr.msk.bf16.vlgmr.msra.gmra.mxu1 %vm211_vm0, %v1205_v22 }
  0x93   : > { %1138 = vmatpush3.bf16.msra.mxu0 %v512_v18  ;;  %1145 = vmatprep.subr.bf16.mxu1 %v592_v23 }
  0x94   : > { %1146 = vmatpush3.bf16.msra.mxu1 %v592_v23  ;;  %1139 = vmatprep.subr.bf16.mxu0 %v510_v20 }
  0x95   : > { %v590_v27 = vpop.permute.xlu0 %589  ;;  %1141 = vmatprep.mubr.msk.bf16.mxu0 %vm211_vm0, %v1206_v25  ;;  %1149 = vmatprep.mubr.msk.bf16.mxu1 %vm211_vm0, %v1208_v26  ;;  %v670_v28 = vpop.permute.xlu1 %669 }
  0x96   : > { %1147 = vmatprep.subr.bf16.mxu1 %v590_v27 }
  0x97   : > { %1140 = vmatpush3.bf16.msra.mxu0 %v510_v20 }
  0x98   : > { %1148 = vmatpush3.bf16.msra.mxu1 %v590_v27  ;;  %1153 = vmatprep.subr.bf16.mxu0 %v672_v24 }
  0x99   : > { %v752_v31 = vpop.permute.xlu0 %751  ;;  %v832_v34 = vpop.permute.xlu1 %831 }
  0x9a   : > { %1142 = vmatmul.mubr.msk.bf16.vlgmr.msra.gmra.mxu0 %vm211_vm0, %v1207_v29  ;;  %1161 = vmatprep.subr.bf16.mxu1 %v752_v31 }
  0x9b   : > { %1150 = vmatmul.mubr.msk.bf16.vlgmr.msra.gmra.mxu1 %vm211_vm0, %v1209_v30  ;;  %1154 = vmatpush3.bf16.msra.mxu0 %v672_v24 }
  0x9c   : > { %1162 = vmatpush3.bf16.msra.mxu1 %v752_v31  ;;  %1155 = vmatprep.subr.bf16.mxu0 %v670_v28 }
  0x9d   : > { %v750_v35 = vpop.permute.xlu0 %749  ;;  %1157 = vmatprep.mubr.msk.bf16.mxu0 %vm211_vm0, %v1210_v32  ;;  %1165 = vmatprep.mubr.msk.bf16.mxu1 %vm211_vm0, %v1212_v33  ;;  %v830_v39 = vpop.permute.xlu1 %829 }
  0x9e   : > { %1163 = vmatprep.subr.bf16.mxu1 %v750_v35 }
  0x9f   : > { %1156 = vmatpush3.bf16.msra.mxu0 %v670_v28 }
  0xa0   : > { %1164 = vmatpush3.bf16.msra.mxu1 %v750_v35  ;;  %1169 = vmatprep.subr.bf16.mxu0 %v832_v34 }
  0xa2   : > { %1158 = vmatmul.mubr.msk.bf16.vlgmr.msra.gmra.mxu0 %vm211_vm0, %v1211_v36 }
  0xa3   : > { %1166 = vmatmul.mubr.msk.bf16.vlgmr.msra.gmra.mxu1 %vm211_vm0, %v1213_v37  ;;  %1170 = vmatpush3.bf16.msra.mxu0 %v832_v34 }
  0xa4   : > { %1171 = vmatprep.subr.bf16.mxu0 %v830_v39  ;;  %1173 = vmatprep.mubr.msk.bf16.mxu0 %vm211_vm0, %v1214_v38 }
  0xa7   : > { %1172 = vmatpush3.bf16.msra.mxu0 %v830_v39 }
  0xaa   : > { %1174 = vmatmul.mubr.msk.bf16.vlgmr.msra.gmra.mxu0 %vm211_vm0, %v1215_v40  ;;  %v906_v19 = vpop.permute.xlu1 %905  ;;  %v901_v32 = vpop.permute.xlu0 %900 }
  0xae   : > { %v911_v33 = vpop.permute.xlu1 %910 }
  0xd8   : > { %v1119_v41 = vpop.f32.mrf.mxu1 }
  0xda   : > { %v319_v42 = vpop.f32.mrf.mxu1 }
  0xdc   : > { %v1120_v44 = vpop.f32.mrf.mxu1 }
  0xde   : > { %v322_v47 = vpop.f32.mrf.mxu1 }
 0x14a   : > { %v1111_v43 = vpop.f32.mrf.mxu0 }
 0x14b   : > { %v328_v55 = vadd.f32 %v1119_v41, %v1111_v43 }
 0x14c   : > { %v252_v45 = vpop.f32.mrf.mxu0 }
 0x14d   : > { %v320_v58 = vadd.f32 %v319_v42, %v252_v45 }
 0x14e   : > { %v1112_v46 = vpop.f32.mrf.mxu0 }
 0x14f   : > { %v331_v61 = vadd.f32 %v1120_v44, %v1112_v46 }
 0x150   : > { %v255_v48 = vpop.f32.mrf.mxu0 }
 0x151   : > { %v323_v1 = vadd.f32 %v322_v47, %v255_v48 }
 0x152   : > { %v1127_v49 = vpop.f32.mrf.mxu0  ;;  %v1135_v50 = vpop.f32.mrf.mxu1 }
 0x153   : > { %v412_v59 = vadd.f32 %v1127_v49, %v328_v55  ;;  %v916_v49 = vpop.permute.xlu0 %915 }
 0x154   : > { %v395_v51 = vpop.f32.mrf.mxu0  ;;  %v475_v52 = vpop.f32.mrf.mxu1 }
 0x155   : > { %v410_v62 = vadd.f32 %v395_v51, %v320_v58  ;;  %v492_v2 = vadd.f32 %v1135_v50, %v412_v59 }
 0x156   : > { %v1128_v53 = vpop.f32.mrf.mxu0  ;;  %v1136_v54 = vpop.f32.mrf.mxu1 }
 0x157   : > { %v413_v3 = vadd.f32 %v1128_v53, %v331_v61  ;;  %v490_v6 = vadd.f32 %v475_v52, %v410_v62 }
 0x158   : > { %v398_v56 = vpop.f32.mrf.mxu0  ;;  %v478_v57 = vpop.f32.mrf.mxu1 }
 0x159   : > { %v411_v7 = vadd.f32 %v398_v56, %v323_v1  ;;  %v493_v11 = vadd.f32 %v1136_v54, %v413_v3 }
 0x15a   : > { %v1143_v60 = vpop.f32.mrf.mxu0 }
 0x15b   : > { %v1151_v63 = vpop.f32.mrf.mxu1  ;;  %v572_v8 = vadd.f32 %v1143_v60, %v492_v2  ;;  %v491_v15 = vadd.f32 %v478_v57, %v411_v7 }
 0x15c   : > { %v555_v0 = vpop.f32.mrf.mxu0 }
 0x15d   : > { %v635_v4 = vpop.f32.mrf.mxu1  ;;  %v570_v12 = vadd.f32 %v555_v0, %v490_v6  ;;  %v652_v16 = vadd.f32 %v1151_v63, %v572_v8 }
 0x15e   : > { %v1144_v5 = vpop.f32.mrf.mxu0 }
 0x15f   : > { %v1152_v9 = vpop.f32.mrf.mxu1  ;;  %v573_v17 = vadd.f32 %v1144_v5, %v493_v11  ;;  %v650_v21 = vadd.f32 %v635_v4, %v570_v12 }
 0x160   : > { %v558_v10 = vpop.f32.mrf.mxu0 }
 0x161   : > { %v638_v13 = vpop.f32.mrf.mxu1  ;;  %v571_v22 = vadd.f32 %v558_v10, %v491_v15  ;;  %v653_v26 = vadd.f32 %v1152_v9, %v573_v17 }
 0x162   : > { %v1159_v14 = vpop.f32.mrf.mxu0 }
 0x163   : > { %v1167_v18 = vpop.f32.mrf.mxu1  ;;  %v732_v23 = vadd.f32 %v1159_v14, %v652_v16  ;;  %v651_v29 = vadd.f32 %v638_v13, %v571_v22 }
 0x164   : > { %v715_v20 = vpop.f32.mrf.mxu0 }
 0x165   : > { %v795_v24 = vpop.f32.mrf.mxu1  ;;  %v730_v27 = vadd.f32 %v715_v20, %v650_v21  ;;  %v812_v30 = vadd.f32 %v1167_v18, %v732_v23 }
 0x166   : > { %v1160_v25 = vpop.f32.mrf.mxu0 }
 0x167   : > { %v733_v31 = vadd.f32 %v1160_v25, %v653_v26  ;;  %v1168_v34 = vpop.f32.mrf.mxu1  ;;  %v810_v36 = vadd.f32 %v795_v24, %v730_v27 }
 0x168   : > { %v718_v28 = vpop.f32.mrf.mxu0 }
 0x169   : > { %v731_v37 = vadd.f32 %v718_v28, %v651_v29  ;;  %v813_v40 = vadd.f32 %v1168_v34, %v733_v31  ;;  %v798_v43 = vpop.f32.mrf.mxu1 }
 0x16a   : > { %v1175_v35 = vpop.f32.mrf.mxu0 }
 0x16b   : > { %v892_v38 = vadd.f32 %v1175_v35, %v812_v30  ;;  %v811_v45 = vadd.f32 %v798_v43, %v731_v37 }
 0x16c   : > { %v875_v39 = vpop.f32.mrf.mxu0 }
 0x16d   : > { %v920_v41 = vadd.f32 %v911_v33, %v892_v38  ;;  %v890_v42 = vadd.f32 %v875_v39, %v810_v36 }
 0x16e   : > { %v1176_v44 = vpop.f32.mrf.mxu0 }
 0x16f   : > { %v924_v46 = vmax.f32 %v920_v41, 0.0  ;;  %v918_v47 = vadd.f32 %v901_v32, %v890_v42  ;;  %v893_v48 = vadd.f32 %v1176_v44, %v813_v40 }
 0x170   : > { %v878_v50 = vpop.f32.mrf.mxu0 }
 0x171   : > { %929 = vst.msk [vmem:[%s170_s23 + $0x10] sm:$0xff] %vm926_vm1, %v924_v46  ;;  %v922_v51 = vmax.f32 %v918_v47, 0.0  ;;  %v921_v52 = vadd.f32 %v916_v49, %v893_v48  ;;  %v891_v53 = vadd.f32 %v878_v50, %v811_v45 }
 0x173   : > { %927 = vst.msk [vmem:[%s170_s23] sm:$0xff] %vm926_vm1, %v922_v51  ;;  %v925_v54 = vmax.f32 %v921_v52, 0.0  ;;  %v919_v55 = vadd.f32 %v906_v19, %v891_v53 }
 0x175   : > { %930 = vst.msk [vmem:[%s170_s23 + $0x18] sm:$0xff] %vm926_vm1, %v925_v54  ;;  %v923_v56 = vmax.f32 %v919_v55, 0.0 }
 0x177   : > { %928 = vst.msk [vmem:[%s170_s23 + $0x8] sm:$0xff] %vm926_vm1, %v923_v56 }
 0x178 PF: > { %s13_s12 = sadd.s32 1, %s1222_s12  }
 0x179   : > { %p10_p4 = scmp.ge.s32.totalorder %s13_s12, 4  }
 0x17b   :  { %12 = sbr.rel (!%p10_p4) target bundleno = 1 (0x1), region = 70 }

// kernel: scan_only_net.25
= control target key start
LH: loop header
LB: loop body
LE: loop exit
PB: predicated region body
PF: predicated region fallthrough
CT: control target
= control target key end

     0   :  { %s1785_s12 = smov 0   ;;  %s2031_s0 = inlined_call_operand.vmem [shape: bf16[2,32,18], index: 0, kind: input, shape index: {}]   ;;  %s2032_s1 = inlined_call_operand.vmem [shape: bf16[9,64,32], index: 1, kind: input, shape index: {}]   ;;  %s2033_s2 = inlined_call_operand.vmem [shape: f32[64,1], index: 2, kind: input, shape index: {}]   ;;  %s2034_s3 = inlined_call_operand.vmem [shape: f32[2,64,8], index: 3, kind: output, shape index: {}]  }
   0x1 LB: > { %s1374_s13 = sadd.s32 4294967295, %s1754_s12   ;;  %p1378_p0 = scmp.ge.s32.totalorder %s1754_s12, 1  ;;  %s1754_s12 = sphi %s1785_s12, %s13_s12  }
   0x2   : > { %p137_p1 = scmp.lt.s32.totalorder %s1754_s12, 3 }
   0x4   : > { %p138_p2 = pnand %p1378_p0, %p137_p1 }
   0x5   : > { %p161_p3 = scmp.lt.s32.totalorder (!%p138_p2), %s1374_s13, 1  ;;  %s1756_s22 = smov (!%p138_p2), 127  }
   0x6   : > { %141 = sbr.rel (%p138_p2) target bundleno = 410 (0x19a), region = 32  ;;  %s1757_s23 = smov (!%p138_p2), 126  }
   0x7   : > { %s1758_s24 = smov (!%p138_p2), 124   ;;  %s1759_s25 = smov (!%p138_p2), 123  }
   0x8   : > { %s1760_s26 = smov (!%p138_p2), 122   ;;  %s1761_s27 = smov (!%p138_p2), 120  }
   0x9   : > { %s1762_s28 = smov (!%p138_p2), 119   ;;  %s1763_s29 = smov (!%p138_p2), 118  }
   0xb   : > { %v1712_v0 = vld [vmem:[%s2032_s1 + $0x20] sm:$0xff]   ;;  %vm229_vm0 = vcmask 261120   ;;  %s2036_s13 = smov (!%p161_p3, %s1374_s13), 1  ;;  %v1713_v1 = vld [vmem:[%s2032_s1 + $0x30] sm:$0xff]   ;;  %v1247_v4 = vld [vmem:[%s2033_s2 + $0x8] sm:$0xff]  ;;  %v1764_v6 = vmov 0  }
   0xc   : > { %1583 = vmatprep.mubr.msk.bf16.mxu0 %vm229_vm0, %v1712_v0  ;;  %s1523_s18 = sshll.u32 %s2036_s13, 4  ;;  %1587 = vmatprep.mubr.msk.bf16.mxu1 %vm229_vm0, %v1713_v1  ;;  %v1246_v5 = vld [vmem:[%s2033_s2] sm:$0xff]  ;;  %v1248_v7 = vld [vmem:[%s2033_s2 + $0x10] sm:$0xff]  ;;  %v1249_v8 = vld [vmem:[%s2033_s2 + $0x18] sm:$0xff]  ;;  %s1524_s14 = sshll.u32 %s2036_s13, 6  ;;  %vm1310_vm1 = vcmask 64512  }
   0xd   : > { %s165_s21 = scalar_lea.vmem %s2031_s0, %s1523_s18  ;;  %1709 = vset.pattern.permute.xlu1 %v1764_v6  ;;  %1708 = vset.pattern.permute.xlu0 %v1764_v6  ;;  %v1250_v9 = vld [vmem:[%s2033_s2 + $0x20] sm:$0xff]  ;;  %v1251_v10 = vld [vmem:[%s2033_s2 + $0x28] sm:$0xff]  ;;  %v1252_v11 = vld [vmem:[%s2033_s2 + $0x30] sm:$0xff]  ;;  %s2009_s13 = scalar_lea.vmem %s2034_s3, %s1524_s14 }
   0xe   : > { %v1807_v2 = vld [vmem:[%s165_s21 + $0x8] sm:$0xff]   ;;  %v1810_v3 = vld [vmem:[%s165_s21] sm:$0xff]   ;;  %v1253_v12 = vld [vmem:[%s2033_s2 + $0x38] sm:$0xff] }
   0xf   : > { %225 = vrot.lane.b32.xlu0 %v1807_v2, %s1756_s22  ;;  %437 = vrot.lane.b32.xlu1 %v1807_v2, %s1757_s23  ;;  %v1714_v16 = vld [vmem:[%s2032_s1 + $0x28] sm:$0xff]   ;;  %v1715_v17 = vld [vmem:[%s2032_s1 + $0x38] sm:$0xff]  }
  0x10   : > { %v1716_v19 = vld [vmem:[%s2032_s1] sm:$0xff]   ;;  %v1718_v23 = vld [vmem:[%s2032_s1 + $0x8] sm:$0xff]   ;;  %v1720_v25 = vld [vmem:[%s2032_s1 + $0x10] sm:$0xff]  }
  0x11   : > { %v1717_v20 = vld [vmem:[%s2032_s1 + $0x40] sm:$0xff]   ;;  %v1719_v24 = vld [vmem:[%s2032_s1 + $0x48] sm:$0xff]   ;;  %v1721_v26 = vld [vmem:[%s2032_s1 + $0x50] sm:$0xff]  }
  0x12   : > { %v1722_v31 = vld [vmem:[%s2032_s1 + $0x18] sm:$0xff]   ;;  %v1724_v33 = vld [vmem:[%s2032_s1 + $0x60] sm:$0xff]   ;;  %v1726_v35 = vld [vmem:[%s2032_s1 + $0x68] sm:$0xff]  }
  0x13   : > { %223 = vrot.lane.b32.xlu0 %v1810_v3, %s1756_s22  ;;  %435 = vrot.lane.b32.xlu1 %v1810_v3, %s1757_s23  ;;  %v1723_v32 = vld [vmem:[%s2032_s1 + $0x58] sm:$0xff]   ;;  %v1725_v34 = vld [vmem:[%s2032_s1 + $0x80] sm:$0xff]  }
  0x14   : > { %v1727_v36 = vld [vmem:[%s2032_s1 + $0x88] sm:$0xff]   ;;  %v1728_v37 = vld [vmem:[%s2032_s1 + $0x70] sm:$0xff]   ;;  %v1730_v43 = vld [vmem:[%s2032_s1 + $0x78] sm:$0xff]  }
  0x15   : > { %v1729_v38 = vld [vmem:[%s2032_s1 + $0x90] sm:$0xff]   ;;  %v1731_v44 = vld [vmem:[%s2032_s1 + $0x98] sm:$0xff]   ;;  %v1732_v45 = vld [vmem:[%s2032_s1 + $0xa0] sm:$0xff]  }
  0x16   : > { %v1733_v46 = vld [vmem:[%s2032_s1 + $0xc0] sm:$0xff]   ;;  %v1734_v47 = vld [vmem:[%s2032_s1 + $0xa8] sm:$0xff]   ;;  %v1736_v49 = vld [vmem:[%s2032_s1 + $0xb0] sm:$0xff]  }
  0x17   : > { %557 = vrot.lane.b32.xlu0 %v1807_v2, %s1758_s24  ;;  %677 = vrot.lane.b32.xlu1 %v1807_v2, %s1759_s25  ;;  %v1735_v48 = vld [vmem:[%s2032_s1 + $0xc8] sm:$0xff]   ;;  %v1737_v50 = vld [vmem:[%s2032_s1 + $0xd0] sm:$0xff]  }
  0x18   : > { %v1738_v53 = vld [vmem:[%s2032_s1 + $0xb8] sm:$0xff]   ;;  %v1740_v55 = vld [vmem:[%s2032_s1 + $0xe0] sm:$0xff]   ;;  %v1742_v57 = vld [vmem:[%s2032_s1 + $0xe8] sm:$0xff]  }
  0x19   : > { %v1739_v54 = vld [vmem:[%s2032_s1 + $0xd8] sm:$0xff]   ;;  %v1741_v56 = vld [vmem:[%s2032_s1 + $0x100] sm:$0xff]   ;;  %v1743_v58 = vld [vmem:[%s2032_s1 + $0x108] sm:$0xff]  }
  0x1a   : > { %v1744_v59 = vld [vmem:[%s2032_s1 + $0xf0] sm:$0xff]   ;;  %v1746_v61 = vld [vmem:[%s2032_s1 + $0xf8] sm:$0xff]  }
  0x1b   : > { %555 = vrot.lane.b32.xlu0 %v1810_v3, %s1758_s24  ;;  %675 = vrot.lane.b32.xlu1 %v1810_v3, %s1759_s25  ;;  %v1745_v60 = vld [vmem:[%s2032_s1 + $0x110] sm:$0xff]   ;;  %v1747_v62 = vld [vmem:[%s2032_s1 + $0x118] sm:$0xff]  }
  0x1f   : > { %797 = vrot.lane.b32.xlu0 %v1807_v2, %s1760_s26  ;;  %917 = vrot.lane.b32.xlu1 %v1807_v2, %s1761_s27 }
  0x23   : > { %795 = vrot.lane.b32.xlu0 %v1810_v3, %s1760_s26  ;;  %915 = vrot.lane.b32.xlu1 %v1810_v3, %s1761_s27 }
  0x27   : > { %1037 = vrot.lane.b32.xlu0 %v1807_v2, %s1762_s28  ;;  %1157 = vrot.lane.b32.xlu1 %v1807_v2, %s1763_s29 }
  0x2b   : > { %1035 = vrot.lane.b32.xlu0 %v1810_v3, %s1762_s28  ;;  %1155 = vrot.lane.b32.xlu1 %v1810_v3, %s1763_s29 }
  0x2f   : > { %1261 = vperm.xlu1 %1709, %v1247_v4   ;;  %1256 = vperm.xlu0 %1708, %v1246_v5  }
  0x33   : > { %1266 = vperm.xlu1 %1709, %v1248_v7   ;;  %1271 = vperm.xlu0 %1708, %v1249_v8  }
  0x37   : > { %1276 = vperm.xlu1 %1709, %v1250_v9   ;;  %1281 = vperm.xlu0 %1708, %v1251_v10  }
  0x3b   : > { %1286 = vperm.xlu1 %1709, %v1252_v11   ;;  %1291 = vperm.xlu0 %1708, %v1253_v12  }
  0x81   : > { %v226_v13 = vpop.permute.xlu0 %225  ;;  %v438_v14 = vpop.permute.xlu1 %437 }
  0x82   : > { %1579 = vmatprep.subr.bf16.mxu0 %v226_v13  ;;  %1687 = vmatprep.subr.bf16.mxu1 %v226_v13 }
  0x83   : > { %1580 = vmatpush3.bf16.msra.mxu0 %v226_v13  ;;  %1689 = vmatpush3.bf16.msra.mxu1 %v226_v13 }
  0x85   : > { %v224_v15 = vpop.permute.xlu0 %223  ;;  %v436_v18 = vpop.permute.xlu1 %435 }
  0x86   : > { %1581 = vmatprep.subr.bf16.mxu0 %v224_v15  ;;  %1688 = vmatprep.subr.bf16.mxu1 %v224_v15 }
  0x87   : > { %1582 = vmatpush3.bf16.msra.mxu0 %v224_v15  ;;  %1690 = vmatpush3.bf16.msra.mxu1 %v224_v15 }
  0x88   : > { %1591 = vmatprep.subr.bf16.mxu1 %v1807_v2  ;;  %1603 = vmatprep.subr.bf16.mxu0 %v438_v14 }
  0x89   : > { %v558_v21 = vpop.permute.xlu0 %557  ;;  %v678_v22 = vpop.permute.xlu1 %677 }
  0x8a   : > { %1584 = vmatmul.mubr.msk.bf16.vlgmr.msra.gmra.mxu0 %vm229_vm0, %v1714_v16  ;;  %1588 = vmatmul.mubr.msk.bf16.vlgmr.msra.gmra.mxu1 %vm229_vm0, %v1715_v17 }
  0x8b   : > { %1592 = vmatpush3.bf16.msra.mxu1 %v1807_v2  ;;  %1604 = vmatpush3.bf16.msra.mxu0 %v438_v14 }
  0x8c   : > { %1593 = vmatprep.subr.bf16.mxu1 %v1810_v3  ;;  %1605 = vmatprep.subr.bf16.mxu0 %v436_v18 }
  0x8d   : > { %1595 = vmatprep.mubr.msk.bf16.mxu1 %vm229_vm0, %v1716_v19  ;;  %1607 = vmatprep.mubr.msk.bf16.mxu0 %vm229_vm0, %v1717_v20  ;;  %v556_v27 = vpop.permute.xlu0 %555  ;;  %v676_v28 = vpop.permute.xlu1 %675 }
  0x8f   : > { %1594 = vmatpush3.bf16.msra.mxu1 %v1810_v3  ;;  %1606 = vmatpush3.bf16.msra.mxu0 %v436_v18 }
  0x90   : > { %1615 = vmatprep.subr.bf16.mxu1 %v558_v21  ;;  %1627 = vmatprep.subr.bf16.mxu0 %v678_v22 }
  0x91   : > { %v798_v29 = vpop.permute.xlu0 %797  ;;  %v918_v30 = vpop.permute.xlu1 %917 }
  0x92   : > { %1596 = vmatmul.mubr.msk.bf16.vlgmr.msra.gmra.mxu1 %vm229_vm0, %v1718_v23  ;;  %1608 = vmatmul.mubr.msk.bf16.vlgmr.msra.gmra.mxu0 %vm229_vm0, %v1719_v24 }
  0x93   : > { %1616 = vmatpush3.bf16.msra.mxu1 %v558_v21  ;;  %1628 = vmatpush3.bf16.msra.mxu0 %v678_v22 }
  0x94   : > { %1599 = vmatprep.mubr.msk.bf16.mxu1 %vm229_vm0, %v1720_v25  ;;  %1611 = vmatprep.mubr.msk.bf16.mxu0 %vm229_vm0, %v1721_v26 }
  0x95   : > { %1617 = vmatprep.subr.bf16.mxu1 %v556_v27  ;;  %1629 = vmatprep.subr.bf16.mxu0 %v676_v28  ;;  %v796_v39 = vpop.permute.xlu0 %795  ;;  %v916_v40 = vpop.permute.xlu1 %915 }
  0x97   : > { %1618 = vmatpush3.bf16.msra.mxu1 %v556_v27  ;;  %1630 = vmatpush3.bf16.msra.mxu0 %v676_v28 }
  0x98   : > { %1639 = vmatprep.subr.bf16.mxu1 %v798_v29  ;;  %1651 = vmatprep.subr.bf16.mxu0 %v918_v30 }
  0x99   : > { %v1038_v41 = vpop.permute.xlu0 %1037  ;;  %v1158_v42 = vpop.permute.xlu1 %1157 }
  0x9a   : > { %1600 = vmatmul.mubr.msk.bf16.gmra.mxu1 %vm229_vm0, %v1722_v31  ;;  %1612 = vmatmul.mubr.msk.bf16.gmra.mxu0 %vm229_vm0, %v1723_v32 }
  0x9b   : > { %1619 = vmatprep.mubr.msk.bf16.mxu1 %vm229_vm0, %v1724_v33  ;;  %1631 = vmatprep.mubr.msk.bf16.mxu0 %vm229_vm0, %v1725_v34 }
  0x9d   : > { %v1036_v51 = vpop.permute.xlu0 %1035  ;;  %v1156_v52 = vpop.permute.xlu1 %1155 }
  0xa2   : > { %1620 = vmatmul.mubr.msk.bf16.vlgmr.msra.gmra.mxu1 %vm229_vm0, %v1726_v35  ;;  %1632 = vmatmul.mubr.msk.bf16.vlgmr.msra.gmra.mxu0 %vm229_vm0, %v1727_v36 }
  0xa3   : > { %1640 = vmatpush3.bf16.msra.mxu1 %v798_v29  ;;  %1652 = vmatpush3.bf16.msra.mxu0 %v918_v30 }
  0xa4   : > { %1623 = vmatprep.mubr.msk.bf16.mxu1 %vm229_vm0, %v1728_v37  ;;  %1635 = vmatprep.mubr.msk.bf16.mxu0 %vm229_vm0, %v1729_v38 }
  0xa5   : > { %1641 = vmatprep.subr.bf16.mxu1 %v796_v39  ;;  %1653 = vmatprep.subr.bf16.mxu0 %v916_v40 }
  0xa7   : > { %1642 = vmatpush3.bf16.msra.mxu1 %v796_v39  ;;  %1654 = vmatpush3.bf16.msra.mxu0 %v916_v40 }
  0xa8   : > { %1663 = vmatprep.subr.bf16.mxu1 %v1038_v41  ;;  %1675 = vmatprep.subr.bf16.mxu0 %v1158_v42 }
  0xaa   : > { %1624 = vmatmul.mubr.msk.bf16.gmra.mxu1 %vm229_vm0, %v1730_v43  ;;  %1636 = vmatmul.mubr.msk.bf16.gmra.mxu0 %vm229_vm0, %v1731_v44 }
  0xab   : > { %1643 = vmatprep.mubr.msk.bf16.mxu1 %vm229_vm0, %v1732_v45  ;;  %1655 = vmatprep.mubr.msk.bf16.mxu0 %vm229_vm0, %v1733_v46 }
  0xb2   : > { %1644 = vmatmul.mubr.msk.bf16.vlgmr.msra.gmra.mxu1 %vm229_vm0, %v1734_v47  ;;  %1656 = vmatmul.mubr.msk.bf16.vlgmr.msra.gmra.mxu0 %vm229_vm0, %v1735_v48 }
  0xb3   : > { %1664 = vmatpush3.bf16.msra.mxu1 %v1038_v41  ;;  %1676 = vmatpush3.bf16.msra.mxu0 %v1158_v42 }
  0xb4   : > { %1647 = vmatprep.mubr.msk.bf16.mxu1 %vm229_vm0, %v1736_v49  ;;  %1659 = vmatprep.mubr.msk.bf16.mxu0 %vm229_vm0, %v1737_v50 }
  0xb5   : > { %1665 = vmatprep.subr.bf16.mxu1 %v1036_v51  ;;  %1677 = vmatprep.subr.bf16.mxu0 %v1156_v52 }
  0xb7   : > { %1666 = vmatpush3.bf16.msra.mxu1 %v1036_v51  ;;  %1678 = vmatpush3.bf16.msra.mxu0 %v1156_v52 }
  0xba   : > { %1648 = vmatmul.mubr.msk.bf16.gmra.mxu1 %vm229_vm0, %v1738_v53  ;;  %1660 = vmatmul.mubr.msk.bf16.gmra.mxu0 %vm229_vm0, %v1739_v54 }
  0xbb   : > { %1667 = vmatprep.mubr.msk.bf16.mxu1 %vm229_vm0, %v1740_v55  ;;  %1679 = vmatprep.mubr.msk.bf16.mxu0 %vm229_vm0, %v1741_v56 }
  0xc2   : > { %1668 = vmatmul.mubr.msk.bf16.vlgmr.msra.gmra.mxu1 %vm229_vm0, %v1742_v57  ;;  %1680 = vmatmul.mubr.msk.bf16.vlgmr.msra.gmra.mxu0 %vm229_vm0, %v1743_v58 }
  0xc3   : > { %1671 = vmatprep.mubr.msk.bf16.mxu1 %vm229_vm0, %v1744_v59  ;;  %1683 = vmatprep.mubr.msk.bf16.mxu0 %vm229_vm0, %v1745_v60 }
  0xca   : > { %1672 = vmatmul.mubr.msk.bf16.gmra.mxu1 %vm229_vm0, %v1746_v61  ;;  %1684 = vmatmul.mubr.msk.bf16.gmra.mxu0 %vm229_vm0, %v1747_v62 }
 0x14a   : > { %v1585_v63 = vpop.f32.mrf.mxu0  ;;  %v1589_v0 = vpop.f32.mrf.mxu1 }
 0x14c   : > { %v276_v1 = vpop.f32.mrf.mxu0  ;;  %v292_v2 = vpop.f32.mrf.mxu1 }
 0x14e   : > { %v1586_v3 = vpop.f32.mrf.mxu0  ;;  %v1590_v4 = vpop.f32.mrf.mxu1 }
 0x150   : > { %v279_v5 = vpop.f32.mrf.mxu0  ;;  %v1991_v6 = vpop.f32.mrf.mxu1 }
 0x152   : > { %v1597_v7 = vpop.f32.mrf.mxu1  ;;  %v1609_v8 = vpop.f32.mrf.mxu0 }
 0x153   : > { %v384_v39 = vadd.f32 %v1597_v7, %v1585_v63  ;;  %v1999_v63 = vpop.permute.xlu1 %1261 }
 0x154   : > { %v375_v9 = vpop.f32.mrf.mxu1  ;;  %v487_v10 = vpop.f32.mrf.mxu0 }
 0x155   : > { %v376_v42 = vadd.f32 %v375_v9, %v276_v1  ;;  %v520_v45 = vadd.f32 %v1609_v8, %v384_v39 }
 0x156   : > { %v1598_v11 = vpop.f32.mrf.mxu1  ;;  %v1610_v12 = vpop.f32.mrf.mxu0 }
 0x157   : > { %v387_v46 = vadd.f32 %v1598_v11, %v1586_v3  ;;  %v518_v49 = vadd.f32 %v487_v10, %v376_v42  ;;  %v1267_v39 = vpop.permute.xlu1 %1266 }
 0x158   : > { %v378_v13 = vpop.f32.mrf.mxu1  ;;  %v490_v14 = vpop.f32.mrf.mxu0 }
 0x159   : > { %v379_v50 = vadd.f32 %v378_v13, %v279_v5  ;;  %v521_v55 = vadd.f32 %v1610_v12, %v387_v46 }
 0x15a   : > { %v1601_v15 = vpop.f32.mrf.mxu1  ;;  %v1613_v16 = vpop.f32.mrf.mxu0 }
 0x15b   : > { %v400_v52 = vadd.f32 %v1601_v15, %v1589_v0  ;;  %v519_v60 = vadd.f32 %v490_v14, %v379_v50  ;;  %v1257_v14 = vpop.permute.xlu0 %1256 }
 0x15c   : > { %v391_v17 = vpop.f32.mrf.mxu1  ;;  %v503_v18 = vpop.f32.mrf.mxu0 }
 0x15d   : > { %v392_v57 = vadd.f32 %v391_v17, %v292_v2  ;;  %v524_v1 = vadd.f32 %v1613_v16, %v400_v52  ;;  %v1277_v52 = vpop.permute.xlu1 %1276 }
 0x15e   : > { %v1602_v19 = vpop.f32.mrf.mxu1  ;;  %v1614_v20 = vpop.f32.mrf.mxu0 }
 0x15f   : > { %v403_v3 = vadd.f32 %v1602_v19, %v1590_v4  ;;  %v522_v0 = vadd.f32 %v503_v18, %v392_v57 }
 0x160   : > { %v394_v21 = vpop.f32.mrf.mxu1  ;;  %v1993_v22 = vpop.f32.mrf.mxu0 }
 0x161   : > { %v395_v11 = vadd.f32 %v394_v21, %v1991_v6 }
 0x162   : > { %v1621_v23 = vpop.f32.mrf.mxu1  ;;  %v1633_v24 = vpop.f32.mrf.mxu0 }
 0x163   : > { %v640_v51 = vadd.f32 %v1621_v23, %v520_v45  ;;  %v525_v23 = vadd.f32 %v1614_v20, %v403_v3 }
 0x164   : > { %v607_v25 = vpop.f32.mrf.mxu1  ;;  %v727_v26 = vpop.f32.mrf.mxu0 }
 0x165   : > { %v638_v56 = vadd.f32 %v607_v25, %v518_v49  ;;  %v760_v61 = vadd.f32 %v1633_v24, %v640_v51 }
 0x166   : > { %v1622_v27 = vpop.f32.mrf.mxu1  ;;  %v1634_v28 = vpop.f32.mrf.mxu0 }
 0x167   : > { %v641_v62 = vadd.f32 %v1622_v27, %v521_v55  ;;  %v758_v9 = vadd.f32 %v727_v26, %v638_v56  ;;  %v523_v26 = vadd.f32 %v1993_v22, %v395_v11 }
 0x168   : > { %v610_v29 = vpop.f32.mrf.mxu1  ;;  %v730_v30 = vpop.f32.mrf.mxu0 }
 0x169   : > { %v639_v5 = vadd.f32 %v610_v29, %v519_v60  ;;  %v761_v15 = vadd.f32 %v1634_v28, %v641_v62 }
 0x16a   : > { %v1625_v31 = vpop.f32.mrf.mxu1  ;;  %v1637_v32 = vpop.f32.mrf.mxu0 }
 0x16b   : > { %v644_v12 = vadd.f32 %v1625_v31, %v524_v1  ;;  %v759_v16 = vadd.f32 %v730_v30, %v639_v5  ;;  %v1272_v30 = vpop.permute.xlu0 %1271 }
 0x16c   : > { %v623_v33 = vpop.f32.mrf.mxu1  ;;  %v743_v34 = vpop.f32.mrf.mxu0 }
 0x16d   : > { %v642_v24 = vadd.f32 %v623_v33, %v522_v0  ;;  %v764_v18 = vadd.f32 %v1637_v32, %v644_v12  ;;  %v1287_v12 = vpop.permute.xlu1 %1286 }
 0x16e   : > { %v1626_v35 = vpop.f32.mrf.mxu1  ;;  %v1995_v36 = vpop.f32.mrf.mxu0 }
 0x16f   : > { %v645_v29 = vadd.f32 %v1626_v35, %v525_v23  ;;  %v762_v42 = vadd.f32 %v743_v34, %v642_v24  ;;  %v1282_v1 = vpop.permute.xlu0 %1281 }
 0x170   : > { %v626_v37 = vpop.f32.mrf.mxu1  ;;  %v1997_v38 = vpop.f32.mrf.mxu0 }
 0x171   : > { %v765_v49 = vadd.f32 %v1995_v36, %v645_v29 }
 0x172   : > { %v1645_v40 = vpop.f32.mrf.mxu1  ;;  %v1657_v41 = vpop.f32.mrf.mxu0 }
 0x173   : > { %v880_v10 = vadd.f32 %v1645_v40, %v760_v61 }
 0x174   : > { %v847_v43 = vpop.f32.mrf.mxu1  ;;  %v967_v44 = vpop.f32.mrf.mxu0 }
 0x175   : > { %v878_v17 = vadd.f32 %v847_v43, %v758_v9  ;;  %v1000_v4 = vadd.f32 %v1657_v41, %v880_v10  ;;  %v643_v43 = vadd.f32 %v626_v37, %v523_v26 }
 0x176   : > { %v1646_v47 = vpop.f32.mrf.mxu1  ;;  %v1658_v48 = vpop.f32.mrf.mxu0 }
 0x177   : > { %v881_v19 = vadd.f32 %v1646_v47, %v761_v15  ;;  %v998_v31 = vadd.f32 %v967_v44, %v878_v17  ;;  %v763_v34 = vadd.f32 %v1997_v38, %v643_v43 }
 0x178   : > { %v850_v53 = vpop.f32.mrf.mxu1  ;;  %v970_v54 = vpop.f32.mrf.mxu0 }
 0x179   : > { %v879_v40 = vadd.f32 %v850_v53, %v759_v16  ;;  %v1001_v46 = vadd.f32 %v1658_v48, %v881_v19 }
 0x17a   : > { %v1649_v58 = vpop.f32.mrf.mxu1  ;;  %v1661_v59 = vpop.f32.mrf.mxu0 }
 0x17b   : > { %v884_v20 = vadd.f32 %v1649_v58, %v764_v18  ;;  %v999_v50 = vadd.f32 %v970_v54, %v879_v40 }
 0x17c   : > { %v863_v7 = vpop.f32.mrf.mxu1  ;;  %v983_v8 = vpop.f32.mrf.mxu0 }
 0x17d   : > { %v882_v22 = vadd.f32 %v863_v7, %v762_v42  ;;  %v1004_v37 = vadd.f32 %v1661_v59, %v884_v20 }
 0x17e   : > { %v1650_v13 = vpop.f32.mrf.mxu1  ;;  %v1662_v2 = vpop.f32.mrf.mxu0 }
 0x17f   : > { %v885_v55 = vadd.f32 %v1650_v13, %v765_v49  ;;  %v1002_v60 = vadd.f32 %v983_v8, %v882_v22 }
 0x180   : > { %v866_v25 = vpop.f32.mrf.mxu1  ;;  %v986_v27 = vpop.f32.mrf.mxu0 }
 0x181   : > { %v883_v61 = vadd.f32 %v866_v25, %v763_v34  ;;  %v1005_v5 = vadd.f32 %v1662_v2, %v885_v55 }
 0x182   : > { %v1669_v6 = vpop.f32.mrf.mxu1  ;;  %v1681_v21 = vpop.f32.mrf.mxu0 }
 0x183   : > { %v1120_v28 = vadd.f32 %v1669_v6, %v1000_v4  ;;  %v1003_v17 = vadd.f32 %v986_v27, %v883_v61  ;;  %v1292_v27 = vpop.permute.xlu0 %1291 }
 0x184   : > { %v1087_v33 = vpop.f32.mrf.mxu1  ;;  %v1207_v45 = vpop.f32.mrf.mxu0 }
 0x185   : > { %v1240_v41 = vadd.f32 %v1681_v21, %v1120_v28  ;;  %v1118_v47 = vadd.f32 %v1087_v33, %v998_v31 }
 0x186   : > { %v1670_v32 = vpop.f32.mrf.mxu1  ;;  %v1682_v35 = vpop.f32.mrf.mxu0 }
 0x187   : > { %v1296_v51 = vadd.f32 %v1267_v39, %v1240_v41  ;;  %v1238_v44 = vadd.f32 %v1207_v45, %v1118_v47  ;;  %v1121_v53 = vadd.f32 %v1670_v32, %v1001_v46 }
 0x188   : > { %v1090_v36 = vpop.f32.mrf.mxu1  ;;  %v1210_v48 = vpop.f32.mrf.mxu0 }
 0x189   : > { %v1304_v56 = vmax.f32 %v1296_v51, 0.0  ;;  %v1294_v57 = vadd.f32 %v1257_v14, %v1238_v44  ;;  %v1241_v54 = vadd.f32 %v1682_v35, %v1121_v53  ;;  %v1119_v58 = vadd.f32 %v1090_v36, %v999_v50 }
 0x18a   : > { %v1673_v62 = vpop.f32.mrf.mxu1  ;;  %v1685_v38 = vpop.f32.mrf.mxu0 }
 0x18b   : > { %1313 = vst.msk [vmem:[%s2009_s13 + $0x10] sm:$0xff] %vm1310_vm1, %v1304_v56  ;;  %v1302_v59 = vmax.f32 %v1294_v57, 0.0  ;;  %v1297_v3 = vadd.f32 %v1272_v30, %v1241_v54  ;;  %v1239_v7 = vadd.f32 %v1210_v48, %v1119_v58  ;;  %v1124_v9 = vadd.f32 %v1673_v62, %v1004_v37 }
 0x18c   : > { %v1103_v10 = vpop.f32.mrf.mxu1  ;;  %v1223_v0 = vpop.f32.mrf.mxu0 }
 0x18d   : > { %1311 = vst.msk [vmem:[%s2009_s13] sm:$0xff] %vm1310_vm1, %v1302_v59  ;;  %v1305_v11 = vmax.f32 %v1297_v3, 0.0  ;;  %v1295_v8 = vadd.f32 %v1999_v63, %v1239_v7  ;;  %v1244_v13 = vadd.f32 %v1685_v38, %v1124_v9  ;;  %v1122_v15 = vadd.f32 %v1103_v10, %v1002_v60 }
 0x18e   : > { %v1674_v14 = vpop.f32.mrf.mxu1  ;;  %v1686_v23 = vpop.f32.mrf.mxu0 }
 0x18f   : > { %1314 = vst.msk [vmem:[%s2009_s13 + $0x18] sm:$0xff] %vm1310_vm1, %v1305_v11  ;;  %v1303_v24 = vmax.f32 %v1295_v8, 0.0  ;;  %v1300_v2 = vadd.f32 %v1287_v12, %v1244_v13  ;;  %v1242_v25 = vadd.f32 %v1223_v0, %v1122_v15  ;;  %v1125_v16 = vadd.f32 %v1674_v14, %v1005_v5 }
 0x190   : > { %v1106_v4 = vpop.f32.mrf.mxu1  ;;  %v1226_v18 = vpop.f32.mrf.mxu0 }
 0x191   : > { %1312 = vst.msk [vmem:[%s2009_s13 + $0x8] sm:$0xff] %vm1310_vm1, %v1303_v24  ;;  %v1308_v63 = vmax.f32 %v1300_v2, 0.0  ;;  %v1298_v19 = vadd.f32 %v1277_v52, %v1242_v25  ;;  %v1245_v39 = vadd.f32 %v1686_v23, %v1125_v16  ;;  %v1123_v26 = vadd.f32 %v1106_v4, %v1003_v17 }
 0x193   : > { %1317 = vst.msk [vmem:[%s2009_s13 + $0x30] sm:$0xff] %vm1310_vm1, %v1308_v63  ;;  %v1306_v29 = vmax.f32 %v1298_v19, 0.0  ;;  %v1301_v6 = vadd.f32 %v1292_v27, %v1245_v39  ;;  %v1243_v21 = vadd.f32 %v1226_v18, %v1123_v26 }
 0x195   : > { %1315 = vst.msk [vmem:[%s2009_s13 + $0x20] sm:$0xff] %vm1310_vm1, %v1306_v29  ;;  %v1309_v31 = vmax.f32 %v1301_v6, 0.0  ;;  %v1299_v40 = vadd.f32 %v1282_v1, %v1243_v21 }
 0x197   : > { %1318 = vst.msk [vmem:[%s2009_s13 + $0x38] sm:$0xff] %vm1310_vm1, %v1309_v31  ;;  %v1307_v28 = vmax.f32 %v1299_v40, 0.0 }
 0x199   : > { %1316 = vst.msk [vmem:[%s2009_s13 + $0x28] sm:$0xff] %vm1310_vm1, %v1307_v28 }
 0x19a PF: > { %s13_s12 = sadd.s32 1, %s1754_s12  }
 0x19b   : > { %p10_p4 = scmp.ge.s32.totalorder %s13_s12, 4  }
 0x19d   :  { %12 = sbr.rel (!%p10_p4) target bundleno = 1 (0x1), region = 70 }

// kernel: scan_only_net.26
= control target key start
LH: loop header
LB: loop body
LE: loop exit
PB: predicated region body
PF: predicated region fallthrough
CT: control target
= control target key end

     0   :  { %s1911_s12 = smov 0   ;;  %s2175_s0 = inlined_call_operand.vmem [shape: bf16[2,64,18], index: 0, kind: input, shape index: {}]   ;;  %s2176_s1 = inlined_call_operand.vmem [shape: bf16[9,64,64], index: 1, kind: input, shape index: {}]   ;;  %s2177_s2 = inlined_call_operand.vmem [shape: f32[64,1], index: 2, kind: input, shape index: {}]   ;;  %s2178_s3 = inlined_call_operand.vmem [shape: f32[2,64,8], index: 3, kind: output, shape index: {}]  }
   0x1 LB: > { %s1438_s13 = sadd.s32 4294967295, %s1880_s12   ;;  %p1442_p0 = scmp.ge.s32.totalorder %s1880_s12, 1  ;;  %s1880_s12 = sphi %s1911_s12, %s13_s12  }
   0x2   : > { %p137_p1 = scmp.lt.s32.totalorder %s1880_s12, 3 }
   0x4   : > { %p138_p2 = pnand %p1442_p0, %p137_p1 }
   0x6   : > { %141 = sbr.rel (%p138_p2) target bundleno = 418 (0x1a2), region = 32 }
   0xb   : > { %p161_p3 = scmp.lt.s32.totalorder %s1438_s13, 1  ;;  %v1838_v0 = vld [vmem:[%s2176_s1] sm:$0xff]   ;;  %vm249_vm0 = vcmask 523264   ;;  %s1882_s20 = smov 127   ;;  %v1839_v6 = vld [vmem:[%s2176_s1 + $0x8] sm:$0xff]   ;;  %v1842_v7 = vld [vmem:[%s2176_s1 + $0x10] sm:$0xff]  }
   0xc   : > { %1687 = vmatprep.mubr.msk.bf16.mxu1 %vm249_vm0, %v1838_v0  ;;  %v1840_v5 = vld [vmem:[%s2176_s1 + $0x20] sm:$0xff]   ;;  %s1883_s23 = smov 126   ;;  %s1884_s24 = smov 124   ;;  %v1843_v8 = vld [vmem:[%s2176_s1 + $0x18] sm:$0xff]   ;;  %v1311_v11 = vld [vmem:[%s2177_s2 + $0x8] sm:$0xff]  ;;  %v1890_v12 = vmov 0  }
   0xd   : > { %s2182_s13 = smov (!%p161_p3, %s1438_s13), 1  ;;  %1671 = vmatprep.mubr.msk.bf16.mxu0 %vm249_vm0, %v1840_v5  ;;  %v1846_v9 = vld [vmem:[%s2176_s1 + $0x60] sm:$0xff]   ;;  %s1885_s6 = smov 123   ;;  %1833 = vset.pattern.permute.xlu1 %v1890_v12  ;;  %v1313_v13 = vld [vmem:[%s2177_s2 + $0x18] sm:$0xff]  ;;  %v1312_v14 = vld [vmem:[%s2177_s2 + $0x10] sm:$0xff]  ;;  %vm1374_vm1 = vcmask 64512  }
   0xe   : > { %s1589_s16 = sshll.u32 %s2182_s13, 5  ;;  %s1886_s7 = smov 122   ;;  %v1310_v10 = vld [vmem:[%s2177_s2] sm:$0xff]  ;;  %1832 = vset.pattern.permute.xlu0 %v1890_v12  ;;  %v1315_v15 = vld [vmem:[%s2177_s2 + $0x28] sm:$0xff]  ;;  %v1317_v17 = vld [vmem:[%s2177_s2 + $0x38] sm:$0xff] }
   0xf   : > { %s165_s19 = scalar_lea.vmem %s2175_s0, %s1589_s16  ;;  %s1887_s8 = smov 120   ;;  %v1314_v16 = vld [vmem:[%s2177_s2 + $0x20] sm:$0xff]  ;;  %v1316_v18 = vld [vmem:[%s2177_s2 + $0x30] sm:$0xff]  ;;  %v1841_v27 = vld [vmem:[%s2176_s1 + $0x28] sm:$0xff]  }
  0x10   : > { %v1834_v1 = vld [vmem:[%s165_s19 + $0x18] sm:$0xff]   ;;  %v1835_v2 = vld [vmem:[%s165_s19 + $0x8] sm:$0xff]   ;;  %v1836_v3 = vld [vmem:[%s165_s19 + $0x10] sm:$0xff]   ;;  %s1888_s9 = smov 119   ;;  %s1889_s10 = smov 118  }
  0x11   : > { %243 = vrot.lane.b32.xlu0 %v1834_v1, %s1882_s20  ;;  %1679 = vmatprep.subr.bf16.mxu1 %v1834_v1  ;;  %v1837_v4 = vld [vmem:[%s165_s19] sm:$0xff]   ;;  %v1844_v29 = vld [vmem:[%s2176_s1 + $0x30] sm:$0xff]   ;;  %v1845_v33 = vld [vmem:[%s2176_s1 + $0x38] sm:$0xff]   ;;  %s1590_s14 = sshll.u32 %s2182_s13, 6 }
  0x12   : > { %239 = vrot.lane.b32.xlu1 %v1835_v2, %s1882_s20  ;;  %1680 = vmatpush3.bf16.msra.mxu1 %v1834_v1  ;;  %v1847_v34 = vld [vmem:[%s2176_s1 + $0x68] sm:$0xff]   ;;  %v1848_v36 = vld [vmem:[%s2176_s1 + $0x40] sm:$0xff]   ;;  %v1850_v38 = vld [vmem:[%s2176_s1 + $0x70] sm:$0xff]   ;;  %s2147_s13 = scalar_lea.vmem %s2178_s3, %s1590_s14 }
  0x13   : > { %1681 = vmatprep.subr.bf16.mxu1 %v1836_v3  ;;  %v1849_v41 = vld [vmem:[%s2176_s1 + $0x48] sm:$0xff]   ;;  %v1851_v42 = vld [vmem:[%s2176_s1 + $0x78] sm:$0xff]   ;;  %v1852_v44 = vld [vmem:[%s2176_s1 + $0x50] sm:$0xff]  }
  0x14   : > { %v1854_v46 = vld [vmem:[%s2176_s1 + $0xa0] sm:$0xff]   ;;  %v1853_v49 = vld [vmem:[%s2176_s1 + $0x58] sm:$0xff]   ;;  %v1855_v50 = vld [vmem:[%s2176_s1 + $0xa8] sm:$0xff]  }
  0x15   : > { %241 = vrot.lane.b32.xlu0 %v1836_v3, %s1882_s20  ;;  %v1856_v52 = vld [vmem:[%s2176_s1 + $0x80] sm:$0xff]   ;;  %v1858_v54 = vld [vmem:[%s2176_s1 + $0xb0] sm:$0xff]   ;;  %v1857_v57 = vld [vmem:[%s2176_s1 + $0x88] sm:$0xff]  }
  0x16   : > { %237 = vrot.lane.b32.xlu1 %v1837_v4, %s1882_s20  ;;  %1682 = vmatpush3.bf16.msra.mxu1 %v1836_v3  ;;  %v1859_v58 = vld [vmem:[%s2176_s1 + $0xb8] sm:$0xff]   ;;  %v1860_v60 = vld [vmem:[%s2176_s1 + $0x90] sm:$0xff]   ;;  %v1862_v62 = vld [vmem:[%s2176_s1 + $0xe0] sm:$0xff]  }
  0x17   : > { %1683 = vmatprep.subr.bf16.mxu1 %v1835_v2  ;;  %v1866_v5 = vld [vmem:[%s2176_s1 + $0xf0] sm:$0xff]  }
  0x19   : > { %463 = vrot.lane.b32.xlu0 %v1834_v1, %s1883_s23 }
  0x1a   : > { %589 = vrot.lane.b32.xlu1 %v1834_v1, %s1884_s24  ;;  %1684 = vmatpush3.bf16.msra.mxu1 %v1835_v2 }
  0x1b   : > { %1685 = vmatprep.subr.bf16.mxu1 %v1837_v4 }
  0x1d   : > { %461 = vrot.lane.b32.xlu0 %v1836_v3, %s1883_s23 }
  0x1e   : > { %587 = vrot.lane.b32.xlu1 %v1836_v3, %s1884_s24  ;;  %1686 = vmatpush3.bf16.msra.mxu1 %v1837_v4 }
  0x21   : > { %459 = vrot.lane.b32.xlu0 %v1835_v2, %s1883_s23  ;;  %1688 = vmatmul.mubr.msk.bf16.vlgmr.msra.gmra.mxu1 %vm249_vm0, %v1839_v6 }
  0x22   : > { %585 = vrot.lane.b32.xlu1 %v1835_v2, %s1884_s24  ;;  %1691 = vmatprep.mubr.msk.bf16.mxu1 %vm249_vm0, %v1842_v7  ;;  %v1865_v7 = vld [vmem:[%s2176_s1 + $0xc8] sm:$0xff]  }
  0x25   : > { %457 = vrot.lane.b32.xlu0 %v1837_v4, %s1883_s23 }
  0x26   : > { %583 = vrot.lane.b32.xlu1 %v1837_v4, %s1884_s24 }
  0x29   : > { %715 = vrot.lane.b32.xlu0 %v1834_v1, %s1885_s6  ;;  %1692 = vmatmul.mubr.msk.bf16.gmra.mxu1 %vm249_vm0, %v1843_v8 }
  0x2a   : > { %841 = vrot.lane.b32.xlu1 %v1834_v1, %s1886_s7  ;;  %1719 = vmatprep.mubr.msk.bf16.mxu1 %vm249_vm0, %v1846_v9  ;;  %v1868_v9 = vld [vmem:[%s2176_s1 + $0xd0] sm:$0xff]  }
  0x2d   : > { %713 = vrot.lane.b32.xlu0 %v1836_v3, %s1885_s6 }
  0x2e   : > { %839 = vrot.lane.b32.xlu1 %v1836_v3, %s1886_s7 }
  0x31   : > { %711 = vrot.lane.b32.xlu0 %v1835_v2, %s1885_s6 }
  0x32   : > { %837 = vrot.lane.b32.xlu1 %v1835_v2, %s1886_s7 }
  0x35   : > { %709 = vrot.lane.b32.xlu0 %v1837_v4, %s1885_s6 }
  0x36   : > { %835 = vrot.lane.b32.xlu1 %v1837_v4, %s1886_s7 }
  0x39   : > { %967 = vrot.lane.b32.xlu0 %v1834_v1, %s1887_s8 }
  0x3a   : > { %1093 = vrot.lane.b32.xlu1 %v1834_v1, %s1888_s9 }
  0x3d   : > { %965 = vrot.lane.b32.xlu0 %v1836_v3, %s1887_s8 }
  0x3e   : > { %1091 = vrot.lane.b32.xlu1 %v1836_v3, %s1888_s9 }
  0x41   : > { %963 = vrot.lane.b32.xlu0 %v1835_v2, %s1887_s8 }
  0x42   : > { %1089 = vrot.lane.b32.xlu1 %v1835_v2, %s1888_s9 }
  0x45   : > { %961 = vrot.lane.b32.xlu0 %v1837_v4, %s1887_s8 }
  0x46   : > { %1087 = vrot.lane.b32.xlu1 %v1837_v4, %s1888_s9 }
  0x49   : > { %1219 = vrot.lane.b32.xlu0 %v1834_v1, %s1889_s10  ;;  %v1861_v1 = vld [vmem:[%s2176_s1 + $0x98] sm:$0xff]  }
  0x4a   : > { %1217 = vrot.lane.b32.xlu1 %v1836_v3, %s1889_s10  ;;  %v1863_v3 = vld [vmem:[%s2176_s1 + $0xe8] sm:$0xff]  }
  0x4d   : > { %1215 = vrot.lane.b32.xlu0 %v1835_v2, %s1889_s10  ;;  %v1864_v2 = vld [vmem:[%s2176_s1 + $0xc0] sm:$0xff]  }
  0x4e   : > { %1213 = vrot.lane.b32.xlu1 %v1837_v4, %s1889_s10 }
  0x51   : > { %1320 = vperm.xlu0 %1832, %v1310_v10   ;;  %v1867_v10 = vld [vmem:[%s2176_s1 + $0xf8] sm:$0xff]  }
  0x52   : > { %1325 = vperm.xlu1 %1833, %v1311_v11   ;;  %v1870_v11 = vld [vmem:[%s2176_s1 + $0x110] sm:$0xff]  }
  0x55   : > { %1335 = vperm.xlu0 %1832, %v1313_v13   ;;  %v1869_v13 = vld [vmem:[%s2176_s1 + $0xd8] sm:$0xff]  }
  0x56   : > { %1330 = vperm.xlu1 %1833, %v1312_v14   ;;  %v1872_v14 = vld [vmem:[%s2176_s1 + $0x100] sm:$0xff]  }
  0x59   : > { %1345 = vperm.xlu0 %1832, %v1315_v15   ;;  %v1871_v15 = vld [vmem:[%s2176_s1 + $0x118] sm:$0xff]  }
  0x5a   : > { %1340 = vperm.xlu1 %1833, %v1314_v16   ;;  %v1873_v16 = vld [vmem:[%s2176_s1 + $0x108] sm:$0xff]  }
  0x5d   : > { %1355 = vperm.xlu0 %1832, %v1317_v17  }
  0x5e   : > { %1350 = vperm.xlu1 %1833, %v1316_v18  }
  0x83   : > { %v244_v19 = vpop.permute.xlu0 %243 }
  0x84   : > { %1663 = vmatprep.subr.bf16.mxu0 %v244_v19  ;;  %v240_v20 = vpop.permute.xlu1 %239 }
  0x85   : > { %1664 = vmatpush3.bf16.msra.mxu0 %v244_v19 }
  0x87   : > { %v242_v21 = vpop.permute.xlu0 %241 }
  0x88   : > { %1665 = vmatprep.subr.bf16.mxu0 %v242_v21  ;;  %v238_v22 = vpop.permute.xlu1 %237 }
  0x89   : > { %1666 = vmatpush3.bf16.msra.mxu0 %v242_v21 }
  0x8a   : > { %1667 = vmatprep.subr.bf16.mxu0 %v240_v20 }
  0x8b   : > { %v464_v23 = vpop.permute.xlu0 %463 }
  0x8c   : > { %v590_v24 = vpop.permute.xlu1 %589 }
  0x8d   : > { %1668 = vmatpush3.bf16.msra.mxu0 %v240_v20  ;;  %1711 = vmatprep.subr.bf16.mxu1 %v590_v24 }
  0x8e   : > { %1669 = vmatprep.subr.bf16.mxu0 %v238_v22  ;;  %1712 = vmatpush3.bf16.msra.mxu1 %v590_v24 }
  0x8f   : > { %v462_v25 = vpop.permute.xlu0 %461 }
  0x90   : > { %v588_v26 = vpop.permute.xlu1 %587 }
  0x91   : > { %1670 = vmatpush3.bf16.msra.mxu0 %v238_v22  ;;  %1713 = vmatprep.subr.bf16.mxu1 %v588_v26 }
  0x92   : > { %1695 = vmatprep.subr.bf16.mxu0 %v464_v23  ;;  %1714 = vmatpush3.bf16.msra.mxu1 %v588_v26 }
  0x93   : > { %v460_v28 = vpop.permute.xlu0 %459 }
  0x94   : > { %1672 = vmatmul.mubr.msk.bf16.vlgmr.msra.gmra.mxu0 %vm249_vm0, %v1841_v27  ;;  %v586_v30 = vpop.permute.xlu1 %585 }
  0x95   : > { %1696 = vmatpush3.bf16.msra.mxu0 %v464_v23  ;;  %1715 = vmatprep.subr.bf16.mxu1 %v586_v30 }
  0x96   : > { %1697 = vmatprep.subr.bf16.mxu0 %v462_v25  ;;  %1716 = vmatpush3.bf16.msra.mxu1 %v586_v30 }
  0x97   : > { %v458_v31 = vpop.permute.xlu0 %457  ;;  %1675 = vmatprep.mubr.msk.bf16.mxu0 %vm249_vm0, %v1844_v29 }
  0x98   : > { %v584_v32 = vpop.permute.xlu1 %583 }
  0x99   : > { %1698 = vmatpush3.bf16.msra.mxu0 %v462_v25  ;;  %1717 = vmatprep.subr.bf16.mxu1 %v584_v32 }
  0x9a   : > { %1699 = vmatprep.subr.bf16.mxu0 %v460_v28  ;;  %1718 = vmatpush3.bf16.msra.mxu1 %v584_v32 }
  0x9b   : > { %v716_v35 = vpop.permute.xlu0 %715 }
  0x9c   : > { %1676 = vmatmul.mubr.msk.bf16.gmra.mxu0 %vm249_vm0, %v1845_v33  ;;  %v842_v37 = vpop.permute.xlu1 %841 }
  0x9d   : > { %1700 = vmatpush3.bf16.msra.mxu0 %v460_v28  ;;  %1720 = vmatmul.mubr.msk.bf16.vlgmr.msra.gmra.mxu1 %vm249_vm0, %v1847_v34 }
  0x9e   : > { %1743 = vmatprep.subr.bf16.mxu1 %v842_v37  ;;  %1701 = vmatprep.subr.bf16.mxu0 %v458_v31 }
  0x9f   : > { %1744 = vmatpush3.bf16.msra.mxu1 %v842_v37  ;;  %v714_v39 = vpop.permute.xlu0 %713  ;;  %1703 = vmatprep.mubr.msk.bf16.mxu0 %vm249_vm0, %v1848_v36 }
  0xa0   : > { %v840_v40 = vpop.permute.xlu1 %839  ;;  %1723 = vmatprep.mubr.msk.bf16.mxu1 %vm249_vm0, %v1850_v38 }
  0xa1   : > { %1702 = vmatpush3.bf16.msra.mxu0 %v458_v31  ;;  %1745 = vmatprep.subr.bf16.mxu1 %v840_v40 }
  0xa2   : > { %1727 = vmatprep.subr.bf16.mxu0 %v716_v35 }
  0xa3   : > { %1746 = vmatpush3.bf16.msra.mxu1 %v840_v40  ;;  %v712_v43 = vpop.permute.xlu0 %711 }
  0xa4   : > { %1704 = vmatmul.mubr.msk.bf16.vlgmr.msra.gmra.mxu0 %vm249_vm0, %v1849_v41  ;;  %v838_v45 = vpop.permute.xlu1 %837 }
  0xa5   : > { %1728 = vmatpush3.bf16.msra.mxu0 %v716_v35  ;;  %1724 = vmatmul.mubr.msk.bf16.gmra.mxu1 %vm249_vm0, %v1851_v42 }
  0xa6   : > { %1747 = vmatprep.subr.bf16.mxu1 %v838_v45  ;;  %1729 = vmatprep.subr.bf16.mxu0 %v714_v39 }
  0xa7   : > { %1748 = vmatpush3.bf16.msra.mxu1 %v838_v45  ;;  %v710_v47 = vpop.permute.xlu0 %709  ;;  %1707 = vmatprep.mubr.msk.bf16.mxu0 %vm249_vm0, %v1852_v44 }
  0xa8   : > { %v836_v48 = vpop.permute.xlu1 %835  ;;  %1751 = vmatprep.mubr.msk.bf16.mxu1 %vm249_vm0, %v1854_v46 }
  0xa9   : > { %1730 = vmatpush3.bf16.msra.mxu0 %v714_v39  ;;  %1749 = vmatprep.subr.bf16.mxu1 %v836_v48 }
  0xaa   : > { %1731 = vmatprep.subr.bf16.mxu0 %v712_v43 }
  0xab   : > { %1750 = vmatpush3.bf16.msra.mxu1 %v836_v48  ;;  %v968_v51 = vpop.permute.xlu0 %967 }
  0xac   : > { %1708 = vmatmul.mubr.msk.bf16.gmra.mxu0 %vm249_vm0, %v1853_v49  ;;  %v1094_v53 = vpop.permute.xlu1 %1093 }
  0xad   : > { %1732 = vmatpush3.bf16.msra.mxu0 %v712_v43  ;;  %1775 = vmatprep.subr.bf16.mxu1 %v1094_v53 }
  0xae   : > { %1752 = vmatmul.mubr.msk.bf16.vlgmr.msra.gmra.mxu1 %vm249_vm0, %v1855_v50  ;;  %1733 = vmatprep.subr.bf16.mxu0 %v710_v47 }
  0xaf   : > { %1776 = vmatpush3.bf16.msra.mxu1 %v1094_v53  ;;  %v966_v55 = vpop.permute.xlu0 %965  ;;  %1735 = vmatprep.mubr.msk.bf16.mxu0 %vm249_vm0, %v1856_v52 }
  0xb0   : > { %v1092_v56 = vpop.permute.xlu1 %1091  ;;  %1755 = vmatprep.mubr.msk.bf16.mxu1 %vm249_vm0, %v1858_v54 }
  0xb1   : > { %1734 = vmatpush3.bf16.msra.mxu0 %v710_v47  ;;  %1777 = vmatprep.subr.bf16.mxu1 %v1092_v56 }
  0xb2   : > { %1759 = vmatprep.subr.bf16.mxu0 %v968_v51 }
  0xb3   : > { %1778 = vmatpush3.bf16.msra.mxu1 %v1092_v56  ;;  %v964_v59 = vpop.permute.xlu0 %963 }
  0xb4   : > { %1736 = vmatmul.mubr.msk.bf16.vlgmr.msra.gmra.mxu0 %vm249_vm0, %v1857_v57  ;;  %v1090_v61 = vpop.permute.xlu1 %1089 }
  0xb5   : > { %1760 = vmatpush3.bf16.msra.mxu0 %v968_v51  ;;  %1779 = vmatprep.subr.bf16.mxu1 %v1090_v61 }
  0xb6   : > { %1756 = vmatmul.mubr.msk.bf16.gmra.mxu1 %vm249_vm0, %v1859_v58  ;;  %1761 = vmatprep.subr.bf16.mxu0 %v966_v55 }
  0xb7   : > { %1780 = vmatpush3.bf16.msra.mxu1 %v1090_v61  ;;  %v962_v63 = vpop.permute.xlu0 %961  ;;  %1739 = vmatprep.mubr.msk.bf16.mxu0 %vm249_vm0, %v1860_v60 }
  0xb8   : > { %v1088_v0 = vpop.permute.xlu1 %1087  ;;  %1783 = vmatprep.mubr.msk.bf16.mxu1 %vm249_vm0, %v1862_v62 }
  0xb9   : > { %1762 = vmatpush3.bf16.msra.mxu0 %v966_v55  ;;  %1781 = vmatprep.subr.bf16.mxu1 %v1088_v0 }
  0xba   : > { %1763 = vmatprep.subr.bf16.mxu0 %v964_v59 }
  0xbb   : > { %1782 = vmatpush3.bf16.msra.mxu1 %v1088_v0  ;;  %v1220_v4 = vpop.permute.xlu0 %1219 }
  0xbc   : > { %1740 = vmatmul.mubr.msk.bf16.gmra.mxu0 %vm249_vm0, %v1861_v1  ;;  %1807 = vmatprep.subr.bf16.mxu1 %v1220_v4  ;;  %v1218_v6 = vpop.permute.xlu1 %1217 }
  0xbd   : > { %1764 = vmatpush3.bf16.msra.mxu0 %v964_v59  ;;  %1767 = vmatprep.mubr.msk.bf16.mxu0 %vm249_vm0, %v1864_v2 }
  0xbe   : > { %1784 = vmatmul.mubr.msk.bf16.vlgmr.msra.gmra.mxu1 %vm249_vm0, %v1863_v3  ;;  %1765 = vmatprep.subr.bf16.mxu0 %v962_v63 }
  0xbf   : > { %1811 = vmatpush3.bf16.msra.mxu1 %v1220_v4  ;;  %1787 = vmatprep.mubr.msk.bf16.mxu1 %vm249_vm0, %v1866_v5  ;;  %v1216_v8 = vpop.permute.xlu0 %1215 }
  0xc0   : > { %1808 = vmatprep.subr.bf16.mxu1 %v1218_v6  ;;  %v1214_v12 = vpop.permute.xlu1 %1213 }
  0xc1   : > { %1766 = vmatpush3.bf16.msra.mxu0 %v962_v63 }
  0xc2   : > { %1791 = vmatprep.subr.bf16.mxu0 %v1220_v4 }
  0xc3   : > { %1812 = vmatpush3.bf16.msra.mxu1 %v1218_v6 }
  0xc4   : > { %1768 = vmatmul.mubr.msk.bf16.vlgmr.msra.gmra.mxu0 %vm249_vm0, %v1865_v7  ;;  %1809 = vmatprep.subr.bf16.mxu1 %v1216_v8 }
  0xc5   : > { %1792 = vmatpush3.bf16.msra.mxu0 %v1220_v4  ;;  %1771 = vmatprep.mubr.msk.bf16.mxu0 %vm249_vm0, %v1868_v9 }
  0xc6   : > { %1788 = vmatmul.mubr.msk.bf16.gmra.mxu1 %vm249_vm0, %v1867_v10  ;;  %1793 = vmatprep.subr.bf16.mxu0 %v1218_v6 }
  0xc7   : > { %1813 = vmatpush3.bf16.msra.mxu1 %v1216_v8  ;;  %1803 = vmatprep.mubr.msk.bf16.mxu1 %vm249_vm0, %v1870_v11 }
  0xc8   : > { %1810 = vmatprep.subr.bf16.mxu1 %v1214_v12 }
  0xc9   : > { %1794 = vmatpush3.bf16.msra.mxu0 %v1218_v6 }
  0xca   : > { %1795 = vmatprep.subr.bf16.mxu0 %v1216_v8 }
  0xcb   : > { %1814 = vmatpush3.bf16.msra.mxu1 %v1214_v12 }
  0xcc   : > { %1772 = vmatmul.mubr.msk.bf16.gmra.mxu0 %vm249_vm0, %v1869_v13  ;;  %v2123_v13 = vpop.permute.xlu0 %1320 }
  0xcd   : > { %1796 = vmatpush3.bf16.msra.mxu0 %v1216_v8  ;;  %1799 = vmatprep.mubr.msk.bf16.mxu0 %vm249_vm0, %v1872_v14  ;;  %v2117_v1 = vpop.permute.xlu1 %1325 }
  0xce   : > { %1804 = vmatmul.mubr.msk.bf16.vlgmr.msra.gmra.mxu1 %vm249_vm0, %v1871_v15  ;;  %1797 = vmatprep.subr.bf16.mxu0 %v1214_v12  ;;  %2179 = vst [vmem:[#allocation2_spill] sm:$0xff] %v2117_v1 }
  0xd1   : > { %1798 = vmatpush3.bf16.msra.mxu0 %v1214_v12  ;;  %v2127_v1 = vpop.permute.xlu1 %1330 }
  0xd4   : > { %1800 = vmatmul.mubr.msk.bf16.vlgmr.msra.gmra.mxu0 %vm249_vm0, %v1873_v16 }
  0xe1   : > { %v1689_v17 = vpop.f32.mrf.mxu1 }
  0xe3   : > { %v397_v18 = vpop.f32.mrf.mxu1 }
  0xe5   : > { %v1690_v19 = vpop.f32.mrf.mxu1 }
  0xe7   : > { %v2093_v20 = vpop.f32.mrf.mxu1 }
  0xe9   : > { %v1693_v21 = vpop.f32.mrf.mxu1 }
  0xeb   : > { %v413_v22 = vpop.f32.mrf.mxu1 }
  0xed   : > { %v1694_v24 = vpop.f32.mrf.mxu1 }
  0xef   : > { %v416_v27 = vpop.f32.mrf.mxu1 }
 0x154   : > { %v1673_v23 = vpop.f32.mrf.mxu0 }
 0x155   : > { %v406_v2 = vadd.f32 %v1689_v17, %v1673_v23 }
 0x156   : > { %v296_v25 = vpop.f32.mrf.mxu0 }
 0x157   : > { %v398_v7 = vadd.f32 %v397_v18, %v296_v25 }
 0x158   : > { %v1674_v26 = vpop.f32.mrf.mxu0 }
 0x159   : > { %v409_v14 = vadd.f32 %v1690_v19, %v1674_v26 }
 0x15a   : > { %v299_v28 = vpop.f32.mrf.mxu0 }
 0x15b   : > { %v401_v18 = vadd.f32 %v2093_v20, %v299_v28 }
 0x15c   : > { %v1677_v29 = vpop.f32.mrf.mxu0 }
 0x15d   : > { %v1721_v30 = vpop.f32.mrf.mxu1  ;;  %v422_v0 = vadd.f32 %v1693_v21, %v1677_v29 }
 0x15e   : > { %v312_v31 = vpop.f32.mrf.mxu0 }
 0x15f   : > { %v2095_v32 = vpop.f32.mrf.mxu1  ;;  %v414_v5 = vadd.f32 %v413_v22, %v312_v31 }
 0x160   : > { %v1678_v33 = vpop.f32.mrf.mxu0 }
 0x161   : > { %v2097_v34 = vpop.f32.mrf.mxu1  ;;  %v425_v11 = vadd.f32 %v1694_v24, %v1678_v33 }
 0x162   : > { %v315_v35 = vpop.f32.mrf.mxu0 }
 0x163   : > { %v2099_v36 = vpop.f32.mrf.mxu1  ;;  %v417_v17 = vadd.f32 %v416_v27, %v315_v35 }
 0x164   : > { %v1705_v37 = vpop.f32.mrf.mxu0 }
 0x165   : > { %v1725_v38 = vpop.f32.mrf.mxu1  ;;  %v548_v8 = vadd.f32 %v1705_v37, %v406_v2 }
 0x166   : > { %v515_v39 = vpop.f32.mrf.mxu0 }
 0x167   : > { %v657_v40 = vpop.f32.mrf.mxu1  ;;  %v546_v15 = vadd.f32 %v515_v39, %v398_v7  ;;  %v674_v25 = vadd.f32 %v1721_v30, %v548_v8 }
 0x168   : > { %v1706_v41 = vpop.f32.mrf.mxu0 }
 0x169   : > { %v1726_v42 = vpop.f32.mrf.mxu1  ;;  %v549_v22 = vadd.f32 %v1706_v41, %v409_v14  ;;  %v672_v26 = vadd.f32 %v2095_v32, %v546_v15 }
 0x16a   : > { %v518_v43 = vpop.f32.mrf.mxu0 }
 0x16b   : > { %v2101_v44 = vpop.f32.mrf.mxu1  ;;  %v675_v20 = vadd.f32 %v2097_v34, %v549_v22 }
 0x16c   : > { %v1709_v45 = vpop.f32.mrf.mxu0 }
 0x16d   : > { %v552_v6 = vadd.f32 %v1709_v45, %v422_v0 }
 0x16e   : > { %v531_v46 = vpop.f32.mrf.mxu0  ;;  %v2103_v47 = vpop.f32.mrf.mxu1 }
 0x16f   : > { %v550_v12 = vadd.f32 %v531_v46, %v414_v5  ;;  %v678_v29 = vadd.f32 %v1725_v38, %v552_v6  ;;  %v547_v46 = vadd.f32 %v518_v43, %v401_v18  ;;  %v2131_v38 = vpop.permute.xlu0 %1335 }
 0x170   : > { %v1710_v48 = vpop.f32.mrf.mxu0  ;;  %v2105_v49 = vpop.f32.mrf.mxu1 }
 0x171   : > { %v553_v23 = vadd.f32 %v1710_v48, %v425_v11  ;;  %v676_v45 = vadd.f32 %v657_v40, %v550_v12  ;;  %v1341_v40 = vpop.permute.xlu1 %1340 }
 0x172   : > { %v534_v50 = vpop.f32.mrf.mxu0  ;;  %v2107_v51 = vpop.f32.mrf.mxu1 }
 0x173   : > { %v551_v24 = vadd.f32 %v534_v50, %v417_v17  ;;  %v679_v35 = vadd.f32 %v1726_v42, %v553_v23 }
 0x174   : > { %v1737_v52 = vpop.f32.mrf.mxu0  ;;  %v2109_v53 = vpop.f32.mrf.mxu1 }
 0x175   : > { %v800_v19 = vadd.f32 %v1737_v52, %v674_v25  ;;  %v677_v50 = vadd.f32 %v2101_v44, %v551_v24  ;;  %v673_v52 = vadd.f32 %v2099_v36, %v547_v46  ;;  %v1346_v44 = vpop.permute.xlu0 %1345  ;;  %v1351_v17 = vpop.permute.xlu1 %1350 }
 0x176   : > { %v767_v54 = vpop.f32.mrf.mxu0  ;;  %v1757_v55 = vpop.f32.mrf.mxu1 }
 0x177   : > { %v798_v48 = vadd.f32 %v767_v54, %v672_v26  ;;  %v926_v32 = vadd.f32 %v2103_v47, %v800_v19 }
 0x178   : > { %v1738_v56 = vpop.f32.mrf.mxu0  ;;  %v909_v57 = vpop.f32.mrf.mxu1 }
 0x179   : > { %v801_v43 = vadd.f32 %v1738_v56, %v675_v20  ;;  %v924_v7 = vadd.f32 %v2105_v49, %v798_v48 }
 0x17a   : > { %v770_v58 = vpop.f32.mrf.mxu0  ;;  %v2111_v59 = vpop.f32.mrf.mxu1 }
 0x17b   : > { %v799_v54 = vadd.f32 %v770_v58, %v673_v52  ;;  %v927_v47 = vadd.f32 %v2107_v51, %v801_v43 }
 0x17c   : > { %v1741_v60 = vpop.f32.mrf.mxu0  ;;  %v2113_v61 = vpop.f32.mrf.mxu1 }
 0x17d   : > { %v804_v33 = vadd.f32 %v1741_v60, %v678_v29  ;;  %v925_v49 = vadd.f32 %v2109_v53, %v799_v54 }
 0x17e   : > { %v783_v62 = vpop.f32.mrf.mxu0  ;;  %v2115_v63 = vpop.f32.mrf.mxu1 }
 0x17f   : > { %v802_v27 = vadd.f32 %v783_v62, %v676_v45  ;;  %v930_v60 = vadd.f32 %v1757_v55, %v804_v33  ;;  %v1356_v45 = vpop.permute.xlu0 %1355 }
 0x180   : > { %v1742_v3 = vpop.f32.mrf.mxu0  ;;  %v2119_v4 = vpop.f32.mrf.mxu1 }
 0x181   : > { %v805_v41 = vadd.f32 %v1742_v3, %v679_v35  ;;  %v928_v6 = vadd.f32 %v909_v57, %v802_v27 }
 0x182   : > { %v786_v9 = vpop.f32.mrf.mxu0  ;;  %v2121_v10 = vpop.f32.mrf.mxu1 }
 0x183   : > { %v803_v42 = vadd.f32 %v786_v9, %v677_v50  ;;  %v931_v56 = vadd.f32 %v2111_v59, %v805_v41 }
 0x184   : > { %v1769_v16 = vpop.f32.mrf.mxu0  ;;  %v2125_v21 = vpop.f32.mrf.mxu1 }
 0x185   : > { %v1052_v34 = vadd.f32 %v1769_v16, %v926_v32  ;;  %v929_v58 = vadd.f32 %v2113_v61, %v803_v42 }
 0x186   : > { %v1019_v31 = vpop.f32.mrf.mxu0  ;;  %v1789_v37 = vpop.f32.mrf.mxu1 }
 0x187   : > { %v1050_v36 = vadd.f32 %v1019_v31, %v924_v7  ;;  %v1178_v29 = vadd.f32 %v2115_v63, %v1052_v34 }
 0x188   : > { %v1770_v39 = vpop.f32.mrf.mxu0  ;;  %v1161_v0 = vpop.f32.mrf.mxu1 }
 0x189   : > { %v1053_v16 = vadd.f32 %v1770_v39, %v927_v47  ;;  %v1176_v53 = vadd.f32 %v2119_v4, %v1050_v36 }
 0x18a   : > { %v1022_v28 = vpop.f32.mrf.mxu0  ;;  %v1790_v30 = vpop.f32.mrf.mxu1 }
 0x18b   : > { %v1051_v31 = vadd.f32 %v1022_v28, %v925_v49  ;;  %v1179_v26 = vadd.f32 %v2121_v10, %v1053_v16 }
 0x18c   : > { %v1773_v2 = vpop.f32.mrf.mxu0  ;;  %v1164_v62 = vpop.f32.mrf.mxu1 }
 0x18d   : > { %v1056_v5 = vadd.f32 %v1773_v2, %v930_v60  ;;  %v1177_v28 = vadd.f32 %v2125_v21, %v1051_v31  ;;  %v2180_v2 = vld [vmem:[#allocation2_spill] sm:$0xff] }
 0x18e   : > { %v1035_v3 = vpop.f32.mrf.mxu0  ;;  %v1805_v8 = vpop.f32.mrf.mxu1 }
 0x18f   : > { %v1054_v55 = vadd.f32 %v1035_v3, %v928_v6  ;;  %v1182_v11 = vadd.f32 %v1789_v37, %v1056_v5 }
 0x190   : > { %v1774_v12 = vpop.f32.mrf.mxu0  ;;  %v1287_v14 = vpop.f32.mrf.mxu1 }
 0x191   : > { %v1308_v9 = vadd.f32 %v1805_v8, %v1182_v11  ;;  %v1057_v15 = vadd.f32 %v1774_v12, %v931_v56  ;;  %v1180_v57 = vadd.f32 %v1161_v0, %v1054_v55 }
 0x192   : > { %v1038_v23 = vpop.f32.mrf.mxu0  ;;  %v1806_v51 = vpop.f32.mrf.mxu1 }
 0x193   : > { %v1364_v18 = vadd.f32 %v1351_v17, %v1308_v9  ;;  %v1306_v59 = vadd.f32 %v1287_v14, %v1180_v57  ;;  %v1055_v22 = vadd.f32 %v1038_v23, %v929_v58  ;;  %v1183_v25 = vadd.f32 %v1790_v30, %v1057_v15 }
 0x194   : > { %v1801_v61 = vpop.f32.mrf.mxu0  ;;  %v1290_v35 = vpop.f32.mrf.mxu1 }
 0x195   : > { %v1372_v37 = vmax.f32 %v1364_v18, 0.0  ;;  %v1362_v24 = vadd.f32 %v1341_v40, %v1306_v59  ;;  %v1309_v63 = vadd.f32 %v1806_v51, %v1183_v25  ;;  %v1304_v33 = vadd.f32 %v1801_v61, %v1178_v29 }
 0x196   : > { %v1181_v46 = vadd.f32 %v1164_v62, %v1055_v22  ;;  %v1271_v19 = vpop.f32.mrf.mxu0 }
 0x197   : > { %1381 = vst.msk [vmem:[%s2147_s13 + $0x30] sm:$0xff] %vm1374_vm1, %v1372_v37  ;;  %v1370_v39 = vmax.f32 %v1362_v24, 0.0  ;;  %v1365_v0 = vadd.f32 %v1356_v45, %v1309_v63  ;;  %v1360_v27 = vadd.f32 %v2127_v1, %v1304_v33  ;;  %v1302_v4 = vadd.f32 %v1271_v19, %v1176_v53 }
 0x198   : > { %v1307_v48 = vadd.f32 %v1290_v35, %v1181_v46  ;;  %v1802_v20 = vpop.f32.mrf.mxu0 }
 0x199   : > { %1379 = vst.msk [vmem:[%s2147_s13 + $0x20] sm:$0xff] %vm1374_vm1, %v1370_v39  ;;  %v1373_v30 = vmax.f32 %v1365_v0, 0.0  ;;  %v1368_v10 = vmax.f32 %v1360_v27, 0.0  ;;  %v1358_v41 = vadd.f32 %v2123_v13, %v1302_v4  ;;  %v1305_v50 = vadd.f32 %v1802_v20, %v1179_v26 }
 0x19a   : > { %v1363_v60 = vadd.f32 %v1346_v44, %v1307_v48  ;;  %v1274_v40 = vpop.f32.mrf.mxu0 }
 0x19b   : > { %1382 = vst.msk [vmem:[%s2147_s13 + $0x38] sm:$0xff] %vm1374_vm1, %v1373_v30  ;;  %1377 = vst.msk [vmem:[%s2147_s13 + $0x10] sm:$0xff] %vm1374_vm1, %v1368_v10  ;;  %v1366_v1 = vmax.f32 %v1358_v41, 0.0  ;;  %v1361_v43 = vadd.f32 %v2131_v38, %v1305_v50  ;;  %v1303_v21 = vadd.f32 %v1274_v40, %v1177_v28 }
 0x19c   : > { %v1371_v52 = vmax.f32 %v1363_v60, 0.0 }
 0x19d   : > { %1375 = vst.msk [vmem:[%s2147_s13] sm:$0xff] %vm1374_vm1, %v1366_v1  ;;  %v1369_v32 = vmax.f32 %v1361_v43, 0.0  ;;  %v1359_v62 = vadd.f32 %v2180_v2, %v1303_v21 }
 0x19e   : > { %1380 = vst.msk [vmem:[%s2147_s13 + $0x28] sm:$0xff] %vm1374_vm1, %v1371_v52 }
 0x19f   : > { %1378 = vst.msk [vmem:[%s2147_s13 + $0x18] sm:$0xff] %vm1374_vm1, %v1369_v32  ;;  %v1367_v13 = vmax.f32 %v1359_v62, 0.0 }
 0x1a1   : > { %1376 = vst.msk [vmem:[%s2147_s13 + $0x8] sm:$0xff] %vm1374_vm1, %v1367_v13 }
 0x1a2 PF: > { %s13_s12 = sadd.s32 1, %s1880_s12  }
 0x1a3   : > { %p10_p4 = scmp.ge.s32.totalorder %s13_s12, 4  }
 0x1a5   :  { %12 = sbr.rel (!%p10_p4) target bundleno = 1 (0x1), region = 70 }

// kernel: scan_only_net.29
= control target key start
LH: loop header
LB: loop body
LE: loop exit
PB: predicated region body
PF: predicated region fallthrough
CT: control target
= control target key end

     0   :  { %s1564_s12 = smov 0   ;;  %s1751_s0 = inlined_call_operand.vmem [shape: bf16[2,128,18], index: 0, kind: input, shape index: {}]   ;;  %s1752_s1 = inlined_call_operand.vmem [shape: bf16[9,32,128], index: 1, kind: input, shape index: {}]   ;;  %s1753_s2 = inlined_call_operand.vmem [shape: f32[32,1], index: 2, kind: input, shape index: {}]   ;;  %s1754_s3 = inlined_call_operand.vmem [shape: f32[2,32,8], index: 3, kind: output, shape index: {}]  }
   0x1 LB: > { %s1141_s13 = sadd.s32 4294967295, %s1533_s12   ;;  %p1145_p0 = scmp.ge.s32.totalorder %s1533_s12, 1  ;;  %s1533_s12 = sphi %s1564_s12, %s13_s12  }
   0x2   : > { %p137_p1 = scmp.lt.s32.totalorder %s1533_s12, 3 }
   0x4   : > { %p138_p2 = pnand %p1145_p0, %p137_p1 }
   0x5   : > { %p161_p3 = scmp.lt.s32.totalorder (!%p138_p2), %s1141_s13, 1  ;;  %s1535_s18 = smov (!%p138_p2), 127  }
   0x6   : > { %141 = sbr.rel (%p138_p2) target bundleno = 496 (0x1f0), region = 32  ;;  %s1536_s19 = smov (!%p138_p2), 126  }
   0x7   : > { %s1537_s26 = smov (!%p138_p2), 124   ;;  %s1538_s27 = smov (!%p138_p2), 123  }
   0x8   : > { %s1539_s30 = smov (!%p138_p2), 122   ;;  %s1540_s4 = smov (!%p138_p2), 120  }
   0x9   : > { %s1541_s5 = smov (!%p138_p2), 119   ;;  %s1542_s6 = smov (!%p138_p2), 118  }
   0xb   : > { %s1756_s13 = smov (!%p161_p3, %s1141_s13), 1  ;;  %v1509_v8 = vld [vmem:[%s1752_s1 + $0x10] sm:$0xff]   ;;  %v1510_v9 = vld [vmem:[%s1752_s1] sm:$0xff]   ;;  %v1512_v10 = vld [vmem:[%s1752_s1 + $0x8] sm:$0xff]   ;;  %vm1081_vm0 = vcmask 64512  }
   0xc   : > { %s1210_s14 = sshll.u32 %s1756_s13, 6  ;;  %1318 = vmatprep.mubr.bf16.mxu0 %v1509_v8  ;;  %1338 = vmatprep.mubr.bf16.mxu1 %v1510_v9  ;;  %v1515_v11 = vld [vmem:[%s1752_s1 + $0x30] sm:$0xff]   ;;  %v1511_v27 = vld [vmem:[%s1752_s1 + $0x18] sm:$0xff]   ;;  %v1513_v29 = vld [vmem:[%s1752_s1 + $0x20] sm:$0xff]   ;;  %v1543_v8 = vmov 0   ;;  %s1211_s20 = sshll.u32 %s1756_s13, 5 }
   0xd   : > { %s165_s17 = scalar_lea.vmem %s1751_s0, %s1210_s14  ;;  %v1514_v45 = vld [vmem:[%s1752_s1 + $0x28] sm:$0xff]   ;;  %v1516_v46 = vld [vmem:[%s1752_s1 + $0x38] sm:$0xff]   ;;  %v1517_v49 = vld [vmem:[%s1752_s1 + $0x40] sm:$0xff]   ;;  %1500 = vset.pattern.permute.xlu1 %v1543_v8  ;;  %1499 = vset.pattern.permute.xlu0 %v1543_v8  ;;  %s170_s23 = scalar_lea.vmem %s1754_s3, %s1211_s20 }
   0xe   : > { %v1578_v0 = vld [vmem:[%s165_s17 + $0x38] sm:$0xff]   ;;  %v1580_v1 = vld [vmem:[%s165_s17 + $0x30] sm:$0xff]   ;;  %v1583_v2 = vld [vmem:[%s165_s17 + $0x28] sm:$0xff]  }
   0xf   : > { %263 = vrot.lane.b32.xlu0 %v1578_v0, %s1535_s18  ;;  %1322 = vmatprep.subr.bf16.mxu1 %v1578_v0  ;;  %v1588_v3 = vld [vmem:[%s165_s17 + $0x20] sm:$0xff]   ;;  %v1592_v4 = vld [vmem:[%s165_s17 + $0x18] sm:$0xff]   ;;  %v1594_v5 = vld [vmem:[%s165_s17 + $0x10] sm:$0xff]  }
  0x10   : > { %1323 = vmatpush3.bf16.msra.mxu1 %v1578_v0  ;;  %259 = vrot.lane.b32.xlu1 %v1583_v2, %s1535_s18  ;;  %v1598_v6 = vld [vmem:[%s165_s17 + $0x8] sm:$0xff]   ;;  %v1602_v7 = vld [vmem:[%s165_s17] sm:$0xff]   ;;  %v1519_v50 = vld [vmem:[%s1752_s1 + $0x50] sm:$0xff]  }
  0x11   : > { %1324 = vmatprep.subr.bf16.mxu1 %v1580_v1  ;;  %v1049_v9 = vld [vmem:[%s1753_s2] sm:$0xff] }
  0x13   : > { %261 = vrot.lane.b32.xlu0 %v1580_v1, %s1535_s18 }
  0x14   : > { %1325 = vmatpush3.bf16.msra.mxu1 %v1580_v1  ;;  %257 = vrot.lane.b32.xlu1 %v1588_v3, %s1535_s18 }
  0x15   : > { %1326 = vmatprep.subr.bf16.mxu1 %v1583_v2 }
  0x17   : > { %255 = vrot.lane.b32.xlu0 %v1592_v4, %s1535_s18 }
  0x18   : > { %1327 = vmatpush3.bf16.msra.mxu1 %v1583_v2  ;;  %253 = vrot.lane.b32.xlu1 %v1594_v5, %s1535_s18 }
  0x19   : > { %1328 = vmatprep.subr.bf16.mxu1 %v1588_v3 }
  0x1b   : > { %251 = vrot.lane.b32.xlu0 %v1598_v6, %s1535_s18 }
  0x1c   : > { %1329 = vmatpush3.bf16.msra.mxu1 %v1588_v3  ;;  %249 = vrot.lane.b32.xlu1 %v1602_v7, %s1535_s18 }
  0x1d   : > { %1330 = vmatprep.subr.bf16.mxu1 %v1592_v4 }
  0x1f   : > { %422 = vrot.lane.b32.xlu0 %v1578_v0, %s1536_s19 }
  0x20   : > { %1331 = vmatpush3.bf16.msra.mxu1 %v1592_v4  ;;  %420 = vrot.lane.b32.xlu1 %v1580_v1, %s1536_s19 }
  0x21   : > { %1332 = vmatprep.subr.bf16.mxu1 %v1594_v5 }
  0x23   : > { %418 = vrot.lane.b32.xlu0 %v1583_v2, %s1536_s19 }
  0x24   : > { %1333 = vmatpush3.bf16.msra.mxu1 %v1594_v5  ;;  %416 = vrot.lane.b32.xlu1 %v1588_v3, %s1536_s19 }
  0x25   : > { %1334 = vmatprep.subr.bf16.mxu1 %v1598_v6 }
  0x27   : > { %414 = vrot.lane.b32.xlu0 %v1592_v4, %s1536_s19 }
  0x28   : > { %1335 = vmatpush3.bf16.msra.mxu1 %v1598_v6  ;;  %412 = vrot.lane.b32.xlu1 %v1594_v5, %s1536_s19 }
  0x29   : > { %1336 = vmatprep.subr.bf16.mxu1 %v1602_v7 }
  0x2b   : > { %410 = vrot.lane.b32.xlu0 %v1598_v6, %s1536_s19 }
  0x2c   : > { %1337 = vmatpush3.bf16.msra.mxu1 %v1602_v7  ;;  %408 = vrot.lane.b32.xlu1 %v1602_v7, %s1536_s19 }
  0x2f   : > { %516 = vrot.lane.b32.xlu0 %v1578_v0, %s1537_s26  ;;  %1339 = vmatmul.mubr.bf16.vlgmr.msra.gmra.mxu1 %v1512_v10  ;;  %v1051_v10 = vld [vmem:[%s1753_s2 + $0x10] sm:$0xff] }
  0x30   : > { %610 = vrot.lane.b32.xlu1 %v1578_v0, %s1538_s27  ;;  %1378 = vmatprep.mubr.bf16.mxu1 %v1515_v11 }
  0x33   : > { %514 = vrot.lane.b32.xlu0 %v1580_v1, %s1537_s26 }
  0x34   : > { %608 = vrot.lane.b32.xlu1 %v1580_v1, %s1538_s27 }
  0x37   : > { %512 = vrot.lane.b32.xlu0 %v1583_v2, %s1537_s26 }
  0x38   : > { %606 = vrot.lane.b32.xlu1 %v1583_v2, %s1538_s27 }
  0x3b   : > { %510 = vrot.lane.b32.xlu0 %v1588_v3, %s1537_s26 }
  0x3c   : > { %604 = vrot.lane.b32.xlu1 %v1588_v3, %s1538_s27 }
  0x3f   : > { %508 = vrot.lane.b32.xlu0 %v1592_v4, %s1537_s26 }
  0x40   : > { %602 = vrot.lane.b32.xlu1 %v1592_v4, %s1538_s27 }
  0x43   : > { %506 = vrot.lane.b32.xlu0 %v1594_v5, %s1537_s26 }
  0x44   : > { %600 = vrot.lane.b32.xlu1 %v1594_v5, %s1538_s27 }
  0x47   : > { %504 = vrot.lane.b32.xlu0 %v1598_v6, %s1537_s26 }
  0x48   : > { %598 = vrot.lane.b32.xlu1 %v1598_v6, %s1538_s27 }
  0x4b   : > { %502 = vrot.lane.b32.xlu0 %v1602_v7, %s1537_s26 }
  0x4c   : > { %596 = vrot.lane.b32.xlu1 %v1602_v7, %s1538_s27 }
  0x4f   : > { %704 = vrot.lane.b32.xlu0 %v1578_v0, %s1539_s30 }
  0x50   : > { %798 = vrot.lane.b32.xlu1 %v1578_v0, %s1540_s4 }
  0x53   : > { %702 = vrot.lane.b32.xlu0 %v1580_v1, %s1539_s30 }
  0x54   : > { %796 = vrot.lane.b32.xlu1 %v1580_v1, %s1540_s4 }
  0x57   : > { %700 = vrot.lane.b32.xlu0 %v1583_v2, %s1539_s30 }
  0x58   : > { %794 = vrot.lane.b32.xlu1 %v1583_v2, %s1540_s4 }
  0x5b   : > { %698 = vrot.lane.b32.xlu0 %v1588_v3, %s1539_s30 }
  0x5c   : > { %792 = vrot.lane.b32.xlu1 %v1588_v3, %s1540_s4 }
  0x5f   : > { %696 = vrot.lane.b32.xlu0 %v1592_v4, %s1539_s30 }
  0x60   : > { %790 = vrot.lane.b32.xlu1 %v1592_v4, %s1540_s4 }
  0x63   : > { %694 = vrot.lane.b32.xlu0 %v1594_v5, %s1539_s30 }
  0x64   : > { %788 = vrot.lane.b32.xlu1 %v1594_v5, %s1540_s4 }
  0x67   : > { %692 = vrot.lane.b32.xlu0 %v1598_v6, %s1539_s30 }
  0x68   : > { %786 = vrot.lane.b32.xlu1 %v1598_v6, %s1540_s4 }
  0x6b   : > { %690 = vrot.lane.b32.xlu0 %v1602_v7, %s1539_s30 }
  0x6c   : > { %784 = vrot.lane.b32.xlu1 %v1602_v7, %s1540_s4 }
  0x6f   : > { %892 = vrot.lane.b32.xlu0 %v1578_v0, %s1541_s5 }
  0x70   : > { %986 = vrot.lane.b32.xlu1 %v1578_v0, %s1542_s6  ;;  %v1518_v0 = vld [vmem:[%s1752_s1 + $0x48] sm:$0xff]  }
  0x73   : > { %890 = vrot.lane.b32.xlu0 %v1580_v1, %s1541_s5 }
  0x74   : > { %984 = vrot.lane.b32.xlu1 %v1580_v1, %s1542_s6  ;;  %v1520_v1 = vld [vmem:[%s1752_s1 + $0x58] sm:$0xff]  }
  0x77   : > { %888 = vrot.lane.b32.xlu0 %v1583_v2, %s1541_s5 }
  0x78   : > { %982 = vrot.lane.b32.xlu1 %v1583_v2, %s1542_s6 }
  0x7b   : > { %886 = vrot.lane.b32.xlu0 %v1588_v3, %s1541_s5 }
  0x7c   : > { %980 = vrot.lane.b32.xlu1 %v1588_v3, %s1542_s6  ;;  %v1521_v3 = vld [vmem:[%s1752_s1 + $0x60] sm:$0xff]  }
  0x7f   : > { %884 = vrot.lane.b32.xlu0 %v1592_v4, %s1541_s5 }
  0x80   : > { %978 = vrot.lane.b32.xlu1 %v1592_v4, %s1542_s6  ;;  %v1523_v4 = vld [vmem:[%s1752_s1 + $0x70] sm:$0xff]  }
  0x81   : > { %v264_v12 = vpop.permute.xlu0 %263 }
  0x82   : > { %1302 = vmatprep.subr.bf16.mxu0 %v264_v12  ;;  %v260_v13 = vpop.permute.xlu1 %259 }
  0x83   : > { %1303 = vmatpush3.bf16.msra.mxu0 %v264_v12  ;;  %882 = vrot.lane.b32.xlu0 %v1594_v5, %s1541_s5 }
  0x84   : > { %976 = vrot.lane.b32.xlu1 %v1594_v5, %s1542_s6 }
  0x85   : > { %v262_v14 = vpop.permute.xlu0 %261 }
  0x86   : > { %1304 = vmatprep.subr.bf16.mxu0 %v262_v14  ;;  %v258_v15 = vpop.permute.xlu1 %257 }
  0x87   : > { %1305 = vmatpush3.bf16.msra.mxu0 %v262_v14  ;;  %880 = vrot.lane.b32.xlu0 %v1598_v6, %s1541_s5 }
  0x88   : > { %1306 = vmatprep.subr.bf16.mxu0 %v260_v13  ;;  %974 = vrot.lane.b32.xlu1 %v1598_v6, %s1542_s6  ;;  %v1050_v6 = vld [vmem:[%s1753_s2 + $0x8] sm:$0xff] }
  0x89   : > { %v256_v16 = vpop.permute.xlu0 %255 }
  0x8a   : > { %v254_v17 = vpop.permute.xlu1 %253 }
  0x8b   : > { %1307 = vmatpush3.bf16.msra.mxu0 %v260_v13  ;;  %878 = vrot.lane.b32.xlu0 %v1602_v7, %s1541_s5  ;;  %v1052_v13 = vld [vmem:[%s1753_s2 + $0x18] sm:$0xff] }
  0x8c   : > { %1308 = vmatprep.subr.bf16.mxu0 %v258_v15  ;;  %972 = vrot.lane.b32.xlu1 %v1602_v7, %s1542_s6 }
  0x8d   : > { %v252_v18 = vpop.permute.xlu0 %251 }
  0x8e   : > { %v250_v19 = vpop.permute.xlu1 %249 }
  0x8f   : > { %1309 = vmatpush3.bf16.msra.mxu0 %v258_v15  ;;  %1055 = vperm.xlu0 %1499, %v1049_v9  }
  0x90   : > { %1310 = vmatprep.subr.bf16.mxu0 %v256_v16  ;;  %1060 = vperm.xlu1 %1500, %v1050_v6  }
  0x91   : > { %v423_v20 = vpop.permute.xlu0 %422 }
  0x92   : > { %v421_v21 = vpop.permute.xlu1 %420 }
  0x93   : > { %1311 = vmatpush3.bf16.msra.mxu0 %v256_v16  ;;  %1070 = vperm.xlu0 %1499, %v1052_v13  }
  0x94   : > { %1312 = vmatprep.subr.bf16.mxu0 %v254_v17  ;;  %1065 = vperm.xlu1 %1500, %v1051_v10  }
  0x95   : > { %v419_v22 = vpop.permute.xlu0 %418 }
  0x96   : > { %v417_v23 = vpop.permute.xlu1 %416 }
  0x97   : > { %1313 = vmatpush3.bf16.msra.mxu0 %v254_v17 }
  0x98   : > { %1314 = vmatprep.subr.bf16.mxu0 %v252_v18 }
  0x99   : > { %v415_v24 = vpop.permute.xlu0 %414 }
  0x9a   : > { %v413_v25 = vpop.permute.xlu1 %412 }
  0x9b   : > { %1315 = vmatpush3.bf16.msra.mxu0 %v252_v18 }
  0x9c   : > { %1316 = vmatprep.subr.bf16.mxu0 %v250_v19 }
  0x9d   : > { %v411_v26 = vpop.permute.xlu0 %410 }
  0x9e   : > { %v409_v28 = vpop.permute.xlu1 %408 }
  0x9f   : > { %1317 = vmatpush3.bf16.msra.mxu0 %v250_v19 }
  0xa0   : > { %1342 = vmatprep.subr.bf16.mxu0 %v423_v20 }
  0xa1   : > { %v517_v30 = vpop.permute.xlu0 %516 }
  0xa2   : > { %1319 = vmatmul.mubr.bf16.vlgmr.msra.gmra.mxu0 %v1511_v27  ;;  %1362 = vmatprep.subr.bf16.mxu1 %v517_v30  ;;  %v611_v31 = vpop.permute.xlu1 %610 }
  0xa3   : > { %1343 = vmatpush3.bf16.msra.mxu0 %v423_v20  ;;  %1363 = vmatpush3.bf16.msra.mxu1 %v517_v30  ;;  %v1526_v30 = vld [vmem:[%s1752_s1 + $0x88] sm:$0xff]  }
  0xa4   : > { %1344 = vmatprep.subr.bf16.mxu0 %v421_v21  ;;  %1358 = vmatprep.mubr.bf16.mxu0 %v1513_v29 }
  0xa5   : > { %v515_v32 = vpop.permute.xlu0 %514 }
  0xa6   : > { %1364 = vmatprep.subr.bf16.mxu1 %v515_v32  ;;  %v609_v33 = vpop.permute.xlu1 %608 }
  0xa7   : > { %1345 = vmatpush3.bf16.msra.mxu0 %v421_v21  ;;  %1365 = vmatpush3.bf16.msra.mxu1 %v515_v32 }
  0xa8   : > { %1346 = vmatprep.subr.bf16.mxu0 %v419_v22 }
  0xa9   : > { %v513_v34 = vpop.permute.xlu0 %512 }
  0xaa   : > { %1366 = vmatprep.subr.bf16.mxu1 %v513_v34  ;;  %v607_v35 = vpop.permute.xlu1 %606 }
  0xab   : > { %1347 = vmatpush3.bf16.msra.mxu0 %v419_v22  ;;  %1367 = vmatpush3.bf16.msra.mxu1 %v513_v34  ;;  %v1522_v22 = vld [vmem:[%s1752_s1 + $0x68] sm:$0xff]  }
  0xac   : > { %1348 = vmatprep.subr.bf16.mxu0 %v417_v23 }
  0xad   : > { %v511_v36 = vpop.permute.xlu0 %510 }
  0xae   : > { %1368 = vmatprep.subr.bf16.mxu1 %v511_v36  ;;  %v605_v37 = vpop.permute.xlu1 %604 }
  0xaf   : > { %1349 = vmatpush3.bf16.msra.mxu0 %v417_v23  ;;  %1369 = vmatpush3.bf16.msra.mxu1 %v511_v36  ;;  %v1524_v23 = vld [vmem:[%s1752_s1 + $0x78] sm:$0xff]  }
  0xb0   : > { %1350 = vmatprep.subr.bf16.mxu0 %v415_v24 }
  0xb1   : > { %v509_v38 = vpop.permute.xlu0 %508 }
  0xb2   : > { %1370 = vmatprep.subr.bf16.mxu1 %v509_v38  ;;  %v603_v39 = vpop.permute.xlu1 %602 }
  0xb3   : > { %1351 = vmatpush3.bf16.msra.mxu0 %v415_v24  ;;  %1371 = vmatpush3.bf16.msra.mxu1 %v509_v38  ;;  %v1525_v24 = vld [vmem:[%s1752_s1 + $0x80] sm:$0xff]  }
  0xb4   : > { %1352 = vmatprep.subr.bf16.mxu0 %v413_v25 }
  0xb5   : > { %v507_v40 = vpop.permute.xlu0 %506 }
  0xb6   : > { %1372 = vmatprep.subr.bf16.mxu1 %v507_v40  ;;  %v601_v41 = vpop.permute.xlu1 %600 }
  0xb7   : > { %1353 = vmatpush3.bf16.msra.mxu0 %v413_v25  ;;  %1373 = vmatpush3.bf16.msra.mxu1 %v507_v40 }
  0xb8   : > { %1354 = vmatprep.subr.bf16.mxu0 %v411_v26 }
  0xb9   : > { %v505_v42 = vpop.permute.xlu0 %504 }
  0xba   : > { %1374 = vmatprep.subr.bf16.mxu1 %v505_v42  ;;  %v599_v43 = vpop.permute.xlu1 %598 }
  0xbb   : > { %1355 = vmatpush3.bf16.msra.mxu0 %v411_v26  ;;  %1375 = vmatpush3.bf16.msra.mxu1 %v505_v42 }
  0xbc   : > { %1356 = vmatprep.subr.bf16.mxu0 %v409_v28 }
  0xbd   : > { %v503_v44 = vpop.permute.xlu0 %502 }
  0xbe   : > { %1376 = vmatprep.subr.bf16.mxu1 %v503_v44  ;;  %v597_v47 = vpop.permute.xlu1 %596 }
  0xbf   : > { %1357 = vmatpush3.bf16.msra.mxu0 %v409_v28  ;;  %1377 = vmatpush3.bf16.msra.mxu1 %v503_v44 }
  0xc0   : > { %1382 = vmatprep.subr.bf16.mxu0 %v611_v31 }
  0xc1   : > { %v705_v48 = vpop.permute.xlu0 %704 }
  0xc2   : > { %1359 = vmatmul.mubr.bf16.vlgmr.msra.gmra.mxu0 %v1514_v45  ;;  %1379 = vmatmul.mubr.bf16.vlgmr.msra.gmra.mxu1 %v1516_v46  ;;  %v799_v51 = vpop.permute.xlu1 %798 }
  0xc3   : > { %1383 = vmatpush3.bf16.msra.mxu0 %v611_v31  ;;  %1402 = vmatprep.subr.bf16.mxu1 %v705_v48 }
  0xc4   : > { %1403 = vmatpush3.bf16.msra.mxu1 %v705_v48  ;;  %1384 = vmatprep.subr.bf16.mxu0 %v609_v33 }
  0xc5   : > { %v703_v52 = vpop.permute.xlu0 %702  ;;  %1398 = vmatprep.mubr.bf16.mxu0 %v1517_v49  ;;  %1418 = vmatprep.mubr.bf16.mxu1 %v1519_v50 }
  0xc6   : > { %1404 = vmatprep.subr.bf16.mxu1 %v703_v52  ;;  %v797_v53 = vpop.permute.xlu1 %796 }
  0xc7   : > { %1385 = vmatpush3.bf16.msra.mxu0 %v609_v33 }
  0xc8   : > { %1405 = vmatpush3.bf16.msra.mxu1 %v703_v52  ;;  %1386 = vmatprep.subr.bf16.mxu0 %v607_v35 }
  0xc9   : > { %v701_v54 = vpop.permute.xlu0 %700 }
  0xca   : > { %1406 = vmatprep.subr.bf16.mxu1 %v701_v54  ;;  %v795_v55 = vpop.permute.xlu1 %794 }
  0xcb   : > { %1387 = vmatpush3.bf16.msra.mxu0 %v607_v35 }
  0xcc   : > { %1407 = vmatpush3.bf16.msra.mxu1 %v701_v54  ;;  %1388 = vmatprep.subr.bf16.mxu0 %v605_v37 }
  0xcd   : > { %v699_v56 = vpop.permute.xlu0 %698 }
  0xce   : > { %1408 = vmatprep.subr.bf16.mxu1 %v699_v56  ;;  %v793_v58 = vpop.permute.xlu1 %792 }
  0xcf   : > { %1389 = vmatpush3.bf16.msra.mxu0 %v605_v37 }
  0xd0   : > { %1409 = vmatpush3.bf16.msra.mxu1 %v699_v56  ;;  %1390 = vmatprep.subr.bf16.mxu0 %v603_v39 }
  0xd1   : > { %v697_v57 = vpop.permute.xlu0 %696 }
  0xd2   : > { %1410 = vmatprep.subr.bf16.mxu1 %v697_v57  ;;  %v791_v60 = vpop.permute.xlu1 %790 }
  0xd3   : > { %1391 = vmatpush3.bf16.msra.mxu0 %v603_v39 }
  0xd4   : > { %1411 = vmatpush3.bf16.msra.mxu1 %v697_v57  ;;  %1392 = vmatprep.subr.bf16.mxu0 %v601_v41 }
  0xd5   : > { %v695_v59 = vpop.permute.xlu0 %694 }
  0xd6   : > { %1412 = vmatprep.subr.bf16.mxu1 %v695_v59  ;;  %v789_v63 = vpop.permute.xlu1 %788 }
  0xd7   : > { %1393 = vmatpush3.bf16.msra.mxu0 %v601_v41 }
  0xd8   : > { %1413 = vmatpush3.bf16.msra.mxu1 %v695_v59  ;;  %1394 = vmatprep.subr.bf16.mxu0 %v599_v43 }
  0xd9   : > { %v693_v61 = vpop.permute.xlu0 %692 }
  0xda   : > { %1414 = vmatprep.subr.bf16.mxu1 %v693_v61  ;;  %v787_v5 = vpop.permute.xlu1 %786 }
  0xdb   : > { %1395 = vmatpush3.bf16.msra.mxu0 %v599_v43 }
  0xdc   : > { %1415 = vmatpush3.bf16.msra.mxu1 %v693_v61  ;;  %1396 = vmatprep.subr.bf16.mxu0 %v597_v47 }
  0xdd   : > { %v691_v62 = vpop.permute.xlu0 %690 }
  0xde   : > { %1416 = vmatprep.subr.bf16.mxu1 %v691_v62  ;;  %v785_v12 = vpop.permute.xlu1 %784 }
  0xdf   : > { %1397 = vmatpush3.bf16.msra.mxu0 %v597_v47 }
  0xe0   : > { %1417 = vmatpush3.bf16.msra.mxu1 %v691_v62  ;;  %1422 = vmatprep.subr.bf16.mxu0 %v799_v51 }
  0xe1   : > { %v893_v2 = vpop.permute.xlu0 %892 }
  0xe2   : > { %1399 = vmatmul.mubr.bf16.vlgmr.msra.gmra.mxu0 %v1518_v0  ;;  %1442 = vmatprep.subr.bf16.mxu1 %v893_v2  ;;  %v987_v15 = vpop.permute.xlu1 %986 }
  0xe3   : > { %1423 = vmatpush3.bf16.msra.mxu0 %v799_v51  ;;  %1419 = vmatmul.mubr.bf16.vlgmr.msra.gmra.mxu1 %v1520_v1 }
  0xe4   : > { %1443 = vmatpush3.bf16.msra.mxu1 %v893_v2  ;;  %1424 = vmatprep.subr.bf16.mxu0 %v797_v53 }
  0xe5   : > { %v891_v7 = vpop.permute.xlu0 %890  ;;  %1438 = vmatprep.mubr.bf16.mxu0 %v1521_v3  ;;  %1458 = vmatprep.mubr.bf16.mxu1 %v1523_v4 }
  0xe6   : > { %1444 = vmatprep.subr.bf16.mxu1 %v891_v7  ;;  %v985_v18 = vpop.permute.xlu1 %984 }
  0xe7   : > { %1425 = vmatpush3.bf16.msra.mxu0 %v797_v53 }
  0xe8   : > { %1445 = vmatpush3.bf16.msra.mxu1 %v891_v7  ;;  %1426 = vmatprep.subr.bf16.mxu0 %v795_v55 }
  0xe9   : > { %v889_v11 = vpop.permute.xlu0 %888 }
  0xea   : > { %1446 = vmatprep.subr.bf16.mxu1 %v889_v11  ;;  %v983_v20 = vpop.permute.xlu1 %982 }
  0xeb   : > { %1427 = vmatpush3.bf16.msra.mxu0 %v795_v55 }
  0xec   : > { %1447 = vmatpush3.bf16.msra.mxu1 %v889_v11  ;;  %1428 = vmatprep.subr.bf16.mxu0 %v793_v58 }
  0xed   : > { %v887_v14 = vpop.permute.xlu0 %886 }
  0xee   : > { %1448 = vmatprep.subr.bf16.mxu1 %v887_v14  ;;  %v981_v25 = vpop.permute.xlu1 %980 }
  0xef   : > { %1429 = vmatpush3.bf16.msra.mxu0 %v793_v58  ;;  %v1340_v32 = vpop.f32.mrf.mxu1 }
  0xf0   : > { %1449 = vmatpush3.bf16.msra.mxu1 %v887_v14  ;;  %1430 = vmatprep.subr.bf16.mxu0 %v791_v60 }
  0xf1   : > { %v885_v16 = vpop.permute.xlu0 %884  ;;  %v376_v34 = vpop.f32.mrf.mxu1 }
  0xf2   : > { %1450 = vmatprep.subr.bf16.mxu1 %v885_v16  ;;  %v979_v26 = vpop.permute.xlu1 %978 }
  0xf3   : > { %1431 = vmatpush3.bf16.msra.mxu0 %v791_v60  ;;  %v1341_v36 = vpop.f32.mrf.mxu1 }
  0xf4   : > { %1451 = vmatpush3.bf16.msra.mxu1 %v885_v16  ;;  %1432 = vmatprep.subr.bf16.mxu0 %v789_v63 }
  0xf5   : > { %v883_v17 = vpop.permute.xlu0 %882  ;;  %v379_v39 = vpop.f32.mrf.mxu1 }
  0xf6   : > { %1452 = vmatprep.subr.bf16.mxu1 %v883_v17  ;;  %v977_v27 = vpop.permute.xlu1 %976 }
  0xf7   : > { %1433 = vmatpush3.bf16.msra.mxu0 %v789_v63 }
  0xf8   : > { %1453 = vmatpush3.bf16.msra.mxu1 %v883_v17  ;;  %1434 = vmatprep.subr.bf16.mxu0 %v787_v5 }
  0xf9   : > { %v881_v19 = vpop.permute.xlu0 %880 }
  0xfa   : > { %1454 = vmatprep.subr.bf16.mxu1 %v881_v19  ;;  %v975_v28 = vpop.permute.xlu1 %974 }
  0xfb   : > { %1435 = vmatpush3.bf16.msra.mxu0 %v787_v5 }
  0xfc   : > { %1455 = vmatpush3.bf16.msra.mxu1 %v881_v19  ;;  %1436 = vmatprep.subr.bf16.mxu0 %v785_v12 }
  0xfd   : > { %v879_v21 = vpop.permute.xlu0 %878 }
  0xfe   : > { %1456 = vmatprep.subr.bf16.mxu1 %v879_v21  ;;  %v973_v29 = vpop.permute.xlu1 %972 }
  0xff   : > { %1437 = vmatpush3.bf16.msra.mxu0 %v785_v12 }
 0x100   : > { %1457 = vmatpush3.bf16.msra.mxu1 %v879_v21  ;;  %1462 = vmatprep.subr.bf16.mxu0 %v987_v15 }
 0x102   : > { %1439 = vmatmul.mubr.bf16.vlgmr.msra.gmra.mxu0 %v1522_v22 }
 0x103   : > { %1463 = vmatpush3.bf16.msra.mxu0 %v987_v15  ;;  %1459 = vmatmul.mubr.bf16.vlgmr.msra.gmra.mxu1 %v1524_v23 }
 0x104   : > { %1464 = vmatprep.subr.bf16.mxu0 %v985_v18  ;;  %1478 = vmatprep.mubr.bf16.mxu0 %v1525_v24 }
 0x107   : > { %1465 = vmatpush3.bf16.msra.mxu0 %v985_v18 }
 0x108   : > { %1466 = vmatprep.subr.bf16.mxu0 %v983_v20 }
 0x10a   : > { %v1056_v23 = vpop.permute.xlu0 %1055 }
 0x10b   : > { %1467 = vmatpush3.bf16.msra.mxu0 %v983_v20  ;;  %v1061_v10 = vpop.permute.xlu1 %1060 }
 0x10c   : > { %1468 = vmatprep.subr.bf16.mxu0 %v981_v25 }
 0x10f   : > { %1469 = vmatpush3.bf16.msra.mxu0 %v981_v25  ;;  %v1066_v25 = vpop.permute.xlu1 %1065 }
 0x110   : > { %1470 = vmatprep.subr.bf16.mxu0 %v979_v26 }
 0x113   : > { %1471 = vmatpush3.bf16.msra.mxu0 %v979_v26 }
 0x114   : > { %1472 = vmatprep.subr.bf16.mxu0 %v977_v27 }
 0x117   : > { %1473 = vmatpush3.bf16.msra.mxu0 %v977_v27 }
 0x118   : > { %1474 = vmatprep.subr.bf16.mxu0 %v975_v28 }
 0x11b   : > { %1475 = vmatpush3.bf16.msra.mxu0 %v975_v28 }
 0x11c   : > { %1476 = vmatprep.subr.bf16.mxu0 %v973_v29 }
 0x11f   : > { %1477 = vmatpush3.bf16.msra.mxu0 %v973_v29 }
 0x122   : > { %1479 = vmatmul.mubr.bf16.vlgmr.msra.gmra.mxu0 %v1526_v30 }
 0x162   : > { %v1320_v31 = vpop.f32.mrf.mxu0 }
 0x163   : > { %v385_v52 = vadd.f32 %v1340_v32, %v1320_v31 }
 0x164   : > { %v307_v33 = vpop.f32.mrf.mxu0 }
 0x165   : > { %v377_v53 = vadd.f32 %v376_v34, %v307_v33 }
 0x166   : > { %v1321_v35 = vpop.f32.mrf.mxu0 }
 0x167   : > { %v388_v57 = vadd.f32 %v1341_v36, %v1321_v35 }
 0x168   : > { %v310_v37 = vpop.f32.mrf.mxu0 }
 0x169   : > { %v380_v60 = vadd.f32 %v379_v39, %v310_v37  ;;  %v1071_v39 = vpop.permute.xlu0 %1070 }
 0x182   : > { %v1360_v38 = vpop.f32.mrf.mxu0  ;;  %v1380_v41 = vpop.f32.mrf.mxu1 }
 0x183   : > { %v483_v54 = vadd.f32 %v1360_v38, %v385_v52 }
 0x184   : > { %v466_v40 = vpop.f32.mrf.mxu0  ;;  %v560_v43 = vpop.f32.mrf.mxu1 }
 0x185   : > { %v481_v58 = vadd.f32 %v466_v40, %v377_v53  ;;  %v577_v61 = vadd.f32 %v1380_v41, %v483_v54 }
 0x186   : > { %v1361_v42 = vpop.f32.mrf.mxu0  ;;  %v1381_v45 = vpop.f32.mrf.mxu1 }
 0x187   : > { %v484_v62 = vadd.f32 %v1361_v42, %v388_v57  ;;  %v575_v0 = vadd.f32 %v560_v43, %v481_v58 }
 0x188   : > { %v469_v44 = vpop.f32.mrf.mxu0  ;;  %v563_v47 = vpop.f32.mrf.mxu1 }
 0x189   : > { %v482_v1 = vadd.f32 %v469_v44, %v380_v60  ;;  %v578_v5 = vadd.f32 %v1381_v45, %v484_v62 }
 0x18b   : > { %v576_v7 = vadd.f32 %v563_v47, %v482_v1 }
 0x1a2   : > { %v1400_v46 = vpop.f32.mrf.mxu0 }
 0x1a3   : > { %v1420_v49 = vpop.f32.mrf.mxu1  ;;  %v671_v2 = vadd.f32 %v1400_v46, %v577_v61 }
 0x1a4   : > { %v654_v48 = vpop.f32.mrf.mxu0 }
 0x1a5   : > { %v748_v51 = vpop.f32.mrf.mxu1  ;;  %v669_v6 = vadd.f32 %v654_v48, %v575_v0  ;;  %v765_v8 = vadd.f32 %v1420_v49, %v671_v2 }
 0x1a6   : > { %v1401_v50 = vpop.f32.mrf.mxu0 }
 0x1a7   : > { %v1421_v56 = vpop.f32.mrf.mxu1  ;;  %v672_v9 = vadd.f32 %v1401_v50, %v578_v5  ;;  %v763_v13 = vadd.f32 %v748_v51, %v669_v6 }
 0x1a8   : > { %v657_v55 = vpop.f32.mrf.mxu0 }
 0x1a9   : > { %v751_v63 = vpop.f32.mrf.mxu1  ;;  %v670_v14 = vadd.f32 %v657_v55, %v576_v7  ;;  %v766_v16 = vadd.f32 %v1421_v56, %v672_v9 }
 0x1ab   : > { %v764_v20 = vadd.f32 %v751_v63, %v670_v14 }
 0x1c2   : > { %v1440_v59 = vpop.f32.mrf.mxu0 }
 0x1c3   : > { %v1460_v4 = vpop.f32.mrf.mxu1  ;;  %v859_v15 = vadd.f32 %v1440_v59, %v765_v8 }
 0x1c4   : > { %v842_v3 = vpop.f32.mrf.mxu0 }
 0x1c5   : > { %v936_v12 = vpop.f32.mrf.mxu1  ;;  %v857_v17 = vadd.f32 %v842_v3, %v763_v13  ;;  %v953_v21 = vadd.f32 %v1460_v4, %v859_v15 }
 0x1c6   : > { %v1441_v11 = vpop.f32.mrf.mxu0 }
 0x1c7   : > { %v1461_v19 = vpop.f32.mrf.mxu1  ;;  %v860_v22 = vadd.f32 %v1441_v11, %v766_v16  ;;  %v951_v26 = vadd.f32 %v936_v12, %v857_v17 }
 0x1c8   : > { %v845_v18 = vpop.f32.mrf.mxu0 }
 0x1c9   : > { %v858_v27 = vadd.f32 %v845_v18, %v764_v20  ;;  %v939_v29 = vpop.f32.mrf.mxu1  ;;  %v954_v31 = vadd.f32 %v1461_v19, %v860_v22 }
 0x1cb   : > { %v952_v35 = vadd.f32 %v939_v29, %v858_v27 }
 0x1e2   : > { %v1480_v24 = vpop.f32.mrf.mxu0 }
 0x1e3   : > { %v1047_v28 = vadd.f32 %v1480_v24, %v953_v21 }
 0x1e4   : > { %v1030_v30 = vpop.f32.mrf.mxu0 }
 0x1e5   : > { %v1045_v32 = vadd.f32 %v1030_v30, %v951_v26  ;;  %v1075_v33 = vadd.f32 %v1066_v25, %v1047_v28 }
 0x1e6   : > { %v1481_v34 = vpop.f32.mrf.mxu0 }
 0x1e7   : > { %v1073_v36 = vadd.f32 %v1056_v23, %v1045_v32  ;;  %v1079_v37 = vmax.f32 %v1075_v33, 0.0  ;;  %v1048_v38 = vadd.f32 %v1481_v34, %v954_v31 }
 0x1e8   : > { %v1033_v40 = vpop.f32.mrf.mxu0 }
 0x1e9   : > { %v1077_v41 = vmax.f32 %v1073_v36, 0.0  ;;  %1084 = vst.msk [vmem:[%s170_s23 + $0x10] sm:$0xff] %vm1081_vm0, %v1079_v37  ;;  %v1076_v42 = vadd.f32 %v1071_v39, %v1048_v38  ;;  %v1046_v43 = vadd.f32 %v1033_v40, %v952_v35 }
 0x1eb   : > { %1082 = vst.msk [vmem:[%s170_s23] sm:$0xff] %vm1081_vm0, %v1077_v41  ;;  %v1080_v44 = vmax.f32 %v1076_v42, 0.0  ;;  %v1074_v45 = vadd.f32 %v1061_v10, %v1046_v43 }
 0x1ed   : > { %1085 = vst.msk [vmem:[%s170_s23 + $0x18] sm:$0xff] %vm1081_vm0, %v1080_v44  ;;  %v1078_v46 = vmax.f32 %v1074_v45, 0.0 }
 0x1ef   : > { %1083 = vst.msk [vmem:[%s170_s23 + $0x8] sm:$0xff] %vm1081_vm0, %v1078_v46 }
 0x1f0 PF: > { %s13_s12 = sadd.s32 1, %s1533_s12  }
 0x1f1   : > { %p10_p4 = scmp.ge.s32.totalorder %s13_s12, 4  }
 0x1f3   :  { %12 = sbr.rel (!%p10_p4) target bundleno = 1 (0x1), region = 70 }

// kernel: scan_only_net.27
= control target key start
LH: loop header
LB: loop body
LE: loop exit
PB: predicated region body
PF: predicated region fallthrough
CT: control target
= control target key end

     0   :  { %s1911_s12 = smov 0   ;;  %s2175_s0 = inlined_call_operand.vmem [shape: bf16[2,64,11], index: 0, kind: input, shape index: {}]   ;;  %s2176_s1 = inlined_call_operand.vmem [shape: bf16[9,64,64], index: 1, kind: input, shape index: {}]   ;;  %s2177_s2 = inlined_call_operand.vmem [shape: f32[64,1], index: 2, kind: input, shape index: {}]   ;;  %s2178_s3 = inlined_call_operand.vmem [shape: f32[2,64,3], index: 3, kind: output, shape index: {}]  }
   0x1 LB: > { %s1438_s13 = sadd.s32 4294967295, %s1880_s12   ;;  %p1442_p0 = scmp.ge.s32.totalorder %s1880_s12, 1  ;;  %s1880_s12 = sphi %s1911_s12, %s13_s12  }
   0x2   : > { %p137_p1 = scmp.lt.s32.totalorder %s1880_s12, 3 }
   0x4   : > { %p138_p2 = pnand %p1442_p0, %p137_p1 }
   0x6   : > { %141 = sbr.rel (%p138_p2) target bundleno = 418 (0x1a2), region = 32 }
   0xb   : > { %p161_p3 = scmp.lt.s32.totalorder %s1438_s13, 1  ;;  %v1838_v0 = vld [vmem:[%s2176_s1] sm:$0xff]   ;;  %vm249_vm0 = vcmask 523264   ;;  %s1882_s20 = smov 127   ;;  %v1839_v6 = vld [vmem:[%s2176_s1 + $0x8] sm:$0xff]   ;;  %v1842_v7 = vld [vmem:[%s2176_s1 + $0x10] sm:$0xff]  }
   0xc   : > { %1687 = vmatprep.mubr.msk.bf16.mxu1 %vm249_vm0, %v1838_v0  ;;  %v1840_v5 = vld [vmem:[%s2176_s1 + $0x20] sm:$0xff]   ;;  %s1883_s23 = smov 126   ;;  %s1884_s24 = smov 125   ;;  %v1843_v8 = vld [vmem:[%s2176_s1 + $0x18] sm:$0xff]   ;;  %v1311_v11 = vld [vmem:[%s2177_s2 + $0x8] sm:$0xff]  ;;  %v1890_v12 = vmov 0  }
   0xd   : > { %s2182_s13 = smov (!%p161_p3, %s1438_s13), 1  ;;  %1671 = vmatprep.mubr.msk.bf16.mxu0 %vm249_vm0, %v1840_v5  ;;  %v1846_v9 = vld [vmem:[%s2176_s1 + $0x60] sm:$0xff]   ;;  %s1885_s6 = smov 124   ;;  %1833 = vset.pattern.permute.xlu1 %v1890_v12  ;;  %v1313_v13 = vld [vmem:[%s2177_s2 + $0x18] sm:$0xff]  ;;  %v1312_v14 = vld [vmem:[%s2177_s2 + $0x10] sm:$0xff]  ;;  %vm1374_vm1 = vcmask 23552  }
   0xe   : > { %s1589_s16 = sshll.u32 %s2182_s13, 5  ;;  %s1886_s7 = smov 123   ;;  %v1310_v10 = vld [vmem:[%s2177_s2] sm:$0xff]  ;;  %1832 = vset.pattern.permute.xlu0 %v1890_v12  ;;  %v1315_v15 = vld [vmem:[%s2177_s2 + $0x28] sm:$0xff]  ;;  %v1317_v17 = vld [vmem:[%s2177_s2 + $0x38] sm:$0xff] }
   0xf   : > { %s165_s19 = scalar_lea.vmem %s2175_s0, %s1589_s16  ;;  %s1887_s8 = smov 122   ;;  %v1314_v16 = vld [vmem:[%s2177_s2 + $0x20] sm:$0xff]  ;;  %v1316_v18 = vld [vmem:[%s2177_s2 + $0x30] sm:$0xff]  ;;  %v1841_v27 = vld [vmem:[%s2176_s1 + $0x28] sm:$0xff]  }
  0x10   : > { %v1834_v1 = vld [vmem:[%s165_s19 + $0x18] sm:$0xff]   ;;  %v1835_v2 = vld [vmem:[%s165_s19 + $0x8] sm:$0xff]   ;;  %v1836_v3 = vld [vmem:[%s165_s19 + $0x10] sm:$0xff]   ;;  %s1888_s9 = smov 121   ;;  %s1889_s10 = smov 120  }
  0x11   : > { %243 = vrot.lane.b32.xlu0 %v1834_v1, %s1882_s20  ;;  %1679 = vmatprep.subr.bf16.mxu1 %v1834_v1  ;;  %v1837_v4 = vld [vmem:[%s165_s19] sm:$0xff]   ;;  %v1844_v29 = vld [vmem:[%s2176_s1 + $0x30] sm:$0xff]   ;;  %v1845_v33 = vld [vmem:[%s2176_s1 + $0x38] sm:$0xff]   ;;  %s1590_s14 = sshll.u32 %s2182_s13, 6 }
  0x12   : > { %239 = vrot.lane.b32.xlu1 %v1835_v2, %s1882_s20  ;;  %1680 = vmatpush3.bf16.msra.mxu1 %v1834_v1  ;;  %v1847_v34 = vld [vmem:[%s2176_s1 + $0x68] sm:$0xff]   ;;  %v1848_v36 = vld [vmem:[%s2176_s1 + $0x40] sm:$0xff]   ;;  %v1850_v38 = vld [vmem:[%s2176_s1 + $0x70] sm:$0xff]   ;;  %s2147_s13 = scalar_lea.vmem %s2178_s3, %s1590_s14 }
  0x13   : > { %1681 = vmatprep.subr.bf16.mxu1 %v1836_v3  ;;  %v1849_v41 = vld [vmem:[%s2176_s1 + $0x48] sm:$0xff]   ;;  %v1851_v42 = vld [vmem:[%s2176_s1 + $0x78] sm:$0xff]   ;;  %v1852_v44 = vld [vmem:[%s2176_s1 + $0x50] sm:$0xff]  }
  0x14   : > { %v1854_v46 = vld [vmem:[%s2176_s1 + $0xa0] sm:$0xff]   ;;  %v1853_v49 = vld [vmem:[%s2176_s1 + $0x58] sm:$0xff]   ;;  %v1855_v50 = vld [vmem:[%s2176_s1 + $0xa8] sm:$0xff]  }
  0x15   : > { %241 = vrot.lane.b32.xlu0 %v1836_v3, %s1882_s20  ;;  %v1856_v52 = vld [vmem:[%s2176_s1 + $0x80] sm:$0xff]   ;;  %v1858_v54 = vld [vmem:[%s2176_s1 + $0xb0] sm:$0xff]   ;;  %v1857_v57 = vld [vmem:[%s2176_s1 + $0x88] sm:$0xff]  }
  0x16   : > { %237 = vrot.lane.b32.xlu1 %v1837_v4, %s1882_s20  ;;  %1682 = vmatpush3.bf16.msra.mxu1 %v1836_v3  ;;  %v1859_v58 = vld [vmem:[%s2176_s1 + $0xb8] sm:$0xff]   ;;  %v1860_v60 = vld [vmem:[%s2176_s1 + $0x90] sm:$0xff]   ;;  %v1862_v62 = vld [vmem:[%s2176_s1 + $0xe0] sm:$0xff]  }
  0x17   : > { %1683 = vmatprep.subr.bf16.mxu1 %v1835_v2  ;;  %v1866_v5 = vld [vmem:[%s2176_s1 + $0xf0] sm:$0xff]  }
  0x19   : > { %463 = vrot.lane.b32.xlu0 %v1834_v1, %s1883_s23 }
  0x1a   : > { %589 = vrot.lane.b32.xlu1 %v1834_v1, %s1884_s24  ;;  %1684 = vmatpush3.bf16.msra.mxu1 %v1835_v2 }
  0x1b   : > { %1685 = vmatprep.subr.bf16.mxu1 %v1837_v4 }
  0x1d   : > { %461 = vrot.lane.b32.xlu0 %v1836_v3, %s1883_s23 }
  0x1e   : > { %587 = vrot.lane.b32.xlu1 %v1836_v3, %s1884_s24  ;;  %1686 = vmatpush3.bf16.msra.mxu1 %v1837_v4 }
  0x21   : > { %459 = vrot.lane.b32.xlu0 %v1835_v2, %s1883_s23  ;;  %1688 = vmatmul.mubr.msk.bf16.vlgmr.msra.gmra.mxu1 %vm249_vm0, %v1839_v6 }
  0x22   : > { %585 = vrot.lane.b32.xlu1 %v1835_v2, %s1884_s24  ;;  %1691 = vmatprep.mubr.msk.bf16.mxu1 %vm249_vm0, %v1842_v7  ;;  %v1865_v7 = vld [vmem:[%s2176_s1 + $0xc8] sm:$0xff]  }
  0x25   : > { %457 = vrot.lane.b32.xlu0 %v1837_v4, %s1883_s23 }
  0x26   : > { %583 = vrot.lane.b32.xlu1 %v1837_v4, %s1884_s24 }
  0x29   : > { %715 = vrot.lane.b32.xlu0 %v1834_v1, %s1885_s6  ;;  %1692 = vmatmul.mubr.msk.bf16.gmra.mxu1 %vm249_vm0, %v1843_v8 }
  0x2a   : > { %841 = vrot.lane.b32.xlu1 %v1834_v1, %s1886_s7  ;;  %1719 = vmatprep.mubr.msk.bf16.mxu1 %vm249_vm0, %v1846_v9  ;;  %v1868_v9 = vld [vmem:[%s2176_s1 + $0xd0] sm:$0xff]  }
  0x2d   : > { %713 = vrot.lane.b32.xlu0 %v1836_v3, %s1885_s6 }
  0x2e   : > { %839 = vrot.lane.b32.xlu1 %v1836_v3, %s1886_s7 }
  0x31   : > { %711 = vrot.lane.b32.xlu0 %v1835_v2, %s1885_s6 }
  0x32   : > { %837 = vrot.lane.b32.xlu1 %v1835_v2, %s1886_s7 }
  0x35   : > { %709 = vrot.lane.b32.xlu0 %v1837_v4, %s1885_s6 }
  0x36   : > { %835 = vrot.lane.b32.xlu1 %v1837_v4, %s1886_s7 }
  0x39   : > { %967 = vrot.lane.b32.xlu0 %v1834_v1, %s1887_s8 }
  0x3a   : > { %1093 = vrot.lane.b32.xlu1 %v1834_v1, %s1888_s9 }
  0x3d   : > { %965 = vrot.lane.b32.xlu0 %v1836_v3, %s1887_s8 }
  0x3e   : > { %1091 = vrot.lane.b32.xlu1 %v1836_v3, %s1888_s9 }
  0x41   : > { %963 = vrot.lane.b32.xlu0 %v1835_v2, %s1887_s8 }
  0x42   : > { %1089 = vrot.lane.b32.xlu1 %v1835_v2, %s1888_s9 }
  0x45   : > { %961 = vrot.lane.b32.xlu0 %v1837_v4, %s1887_s8 }
  0x46   : > { %1087 = vrot.lane.b32.xlu1 %v1837_v4, %s1888_s9 }
  0x49   : > { %1219 = vrot.lane.b32.xlu0 %v1834_v1, %s1889_s10  ;;  %v1861_v1 = vld [vmem:[%s2176_s1 + $0x98] sm:$0xff]  }
  0x4a   : > { %1217 = vrot.lane.b32.xlu1 %v1836_v3, %s1889_s10  ;;  %v1863_v3 = vld [vmem:[%s2176_s1 + $0xe8] sm:$0xff]  }
  0x4d   : > { %1215 = vrot.lane.b32.xlu0 %v1835_v2, %s1889_s10  ;;  %v1864_v2 = vld [vmem:[%s2176_s1 + $0xc0] sm:$0xff]  }
  0x4e   : > { %1213 = vrot.lane.b32.xlu1 %v1837_v4, %s1889_s10 }
  0x51   : > { %1320 = vperm.xlu0 %1832, %v1310_v10   ;;  %v1867_v10 = vld [vmem:[%s2176_s1 + $0xf8] sm:$0xff]  }
  0x52   : > { %1325 = vperm.xlu1 %1833, %v1311_v11   ;;  %v1870_v11 = vld [vmem:[%s2176_s1 + $0x110] sm:$0xff]  }
  0x55   : > { %1335 = vperm.xlu0 %1832, %v1313_v13   ;;  %v1869_v13 = vld [vmem:[%s2176_s1 + $0xd8] sm:$0xff]  }
  0x56   : > { %1330 = vperm.xlu1 %1833, %v1312_v14   ;;  %v1872_v14 = vld [vmem:[%s2176_s1 + $0x100] sm:$0xff]  }
  0x59   : > { %1345 = vperm.xlu0 %1832, %v1315_v15   ;;  %v1871_v15 = vld [vmem:[%s2176_s1 + $0x118] sm:$0xff]  }
  0x5a   : > { %1340 = vperm.xlu1 %1833, %v1314_v16   ;;  %v1873_v16 = vld [vmem:[%s2176_s1 + $0x108] sm:$0xff]  }
  0x5d   : > { %1355 = vperm.xlu0 %1832, %v1317_v17  }
  0x5e   : > { %1350 = vperm.xlu1 %1833, %v1316_v18  }
  0x83   : > { %v244_v19 = vpop.permute.xlu0 %243 }
  0x84   : > { %1663 = vmatprep.subr.bf16.mxu0 %v244_v19  ;;  %v240_v20 = vpop.permute.xlu1 %239 }
  0x85   : > { %1664 = vmatpush3.bf16.msra.mxu0 %v244_v19 }
  0x87   : > { %v242_v21 = vpop.permute.xlu0 %241 }
  0x88   : > { %1665 = vmatprep.subr.bf16.mxu0 %v242_v21  ;;  %v238_v22 = vpop.permute.xlu1 %237 }
  0x89   : > { %1666 = vmatpush3.bf16.msra.mxu0 %v242_v21 }
  0x8a   : > { %1667 = vmatprep.subr.bf16.mxu0 %v240_v20 }
  0x8b   : > { %v464_v23 = vpop.permute.xlu0 %463 }
  0x8c   : > { %v590_v24 = vpop.permute.xlu1 %589 }
  0x8d   : > { %1668 = vmatpush3.bf16.msra.mxu0 %v240_v20  ;;  %1711 = vmatprep.subr.bf16.mxu1 %v590_v24 }
  0x8e   : > { %1669 = vmatprep.subr.bf16.mxu0 %v238_v22  ;;  %1712 = vmatpush3.bf16.msra.mxu1 %v590_v24 }
  0x8f   : > { %v462_v25 = vpop.permute.xlu0 %461 }
  0x90   : > { %v588_v26 = vpop.permute.xlu1 %587 }
  0x91   : > { %1670 = vmatpush3.bf16.msra.mxu0 %v238_v22  ;;  %1713 = vmatprep.subr.bf16.mxu1 %v588_v26 }
  0x92   : > { %1695 = vmatprep.subr.bf16.mxu0 %v464_v23  ;;  %1714 = vmatpush3.bf16.msra.mxu1 %v588_v26 }
  0x93   : > { %v460_v28 = vpop.permute.xlu0 %459 }
  0x94   : > { %1672 = vmatmul.mubr.msk.bf16.vlgmr.msra.gmra.mxu0 %vm249_vm0, %v1841_v27  ;;  %v586_v30 = vpop.permute.xlu1 %585 }
  0x95   : > { %1696 = vmatpush3.bf16.msra.mxu0 %v464_v23  ;;  %1715 = vmatprep.subr.bf16.mxu1 %v586_v30 }
  0x96   : > { %1697 = vmatprep.subr.bf16.mxu0 %v462_v25  ;;  %1716 = vmatpush3.bf16.msra.mxu1 %v586_v30 }
  0x97   : > { %v458_v31 = vpop.permute.xlu0 %457  ;;  %1675 = vmatprep.mubr.msk.bf16.mxu0 %vm249_vm0, %v1844_v29 }
  0x98   : > { %v584_v32 = vpop.permute.xlu1 %583 }
  0x99   : > { %1698 = vmatpush3.bf16.msra.mxu0 %v462_v25  ;;  %1717 = vmatprep.subr.bf16.mxu1 %v584_v32 }
  0x9a   : > { %1699 = vmatprep.subr.bf16.mxu0 %v460_v28  ;;  %1718 = vmatpush3.bf16.msra.mxu1 %v584_v32 }
  0x9b   : > { %v716_v35 = vpop.permute.xlu0 %715 }
  0x9c   : > { %1676 = vmatmul.mubr.msk.bf16.gmra.mxu0 %vm249_vm0, %v1845_v33  ;;  %v842_v37 = vpop.permute.xlu1 %841 }
  0x9d   : > { %1700 = vmatpush3.bf16.msra.mxu0 %v460_v28  ;;  %1720 = vmatmul.mubr.msk.bf16.vlgmr.msra.gmra.mxu1 %vm249_vm0, %v1847_v34 }
  0x9e   : > { %1743 = vmatprep.subr.bf16.mxu1 %v842_v37  ;;  %1701 = vmatprep.subr.bf16.mxu0 %v458_v31 }
  0x9f   : > { %1744 = vmatpush3.bf16.msra.mxu1 %v842_v37  ;;  %v714_v39 = vpop.permute.xlu0 %713  ;;  %1703 = vmatprep.mubr.msk.bf16.mxu0 %vm249_vm0, %v1848_v36 }
  0xa0   : > { %v840_v40 = vpop.permute.xlu1 %839  ;;  %1723 = vmatprep.mubr.msk.bf16.mxu1 %vm249_vm0, %v1850_v38 }
  0xa1   : > { %1702 = vmatpush3.bf16.msra.mxu0 %v458_v31  ;;  %1745 = vmatprep.subr.bf16.mxu1 %v840_v40 }
  0xa2   : > { %1727 = vmatprep.subr.bf16.mxu0 %v716_v35 }
  0xa3   : > { %1746 = vmatpush3.bf16.msra.mxu1 %v840_v40  ;;  %v712_v43 = vpop.permute.xlu0 %711 }
  0xa4   : > { %1704 = vmatmul.mubr.msk.bf16.vlgmr.msra.gmra.mxu0 %vm249_vm0, %v1849_v41  ;;  %v838_v45 = vpop.permute.xlu1 %837 }
  0xa5   : > { %1728 = vmatpush3.bf16.msra.mxu0 %v716_v35  ;;  %1724 = vmatmul.mubr.msk.bf16.gmra.mxu1 %vm249_vm0, %v1851_v42 }
  0xa6   : > { %1747 = vmatprep.subr.bf16.mxu1 %v838_v45  ;;  %1729 = vmatprep.subr.bf16.mxu0 %v714_v39 }
  0xa7   : > { %1748 = vmatpush3.bf16.msra.mxu1 %v838_v45  ;;  %v710_v47 = vpop.permute.xlu0 %709  ;;  %1707 = vmatprep.mubr.msk.bf16.mxu0 %vm249_vm0, %v1852_v44 }
  0xa8   : > { %v836_v48 = vpop.permute.xlu1 %835  ;;  %1751 = vmatprep.mubr.msk.bf16.mxu1 %vm249_vm0, %v1854_v46 }
  0xa9   : > { %1730 = vmatpush3.bf16.msra.mxu0 %v714_v39  ;;  %1749 = vmatprep.subr.bf16.mxu1 %v836_v48 }
  0xaa   : > { %1731 = vmatprep.subr.bf16.mxu0 %v712_v43 }
  0xab   : > { %1750 = vmatpush3.bf16.msra.mxu1 %v836_v48  ;;  %v968_v51 = vpop.permute.xlu0 %967 }
  0xac   : > { %1708 = vmatmul.mubr.msk.bf16.gmra.mxu0 %vm249_vm0, %v1853_v49  ;;  %v1094_v53 = vpop.permute.xlu1 %1093 }
  0xad   : > { %1732 = vmatpush3.bf16.msra.mxu0 %v712_v43  ;;  %1775 = vmatprep.subr.bf16.mxu1 %v1094_v53 }
  0xae   : > { %1752 = vmatmul.mubr.msk.bf16.vlgmr.msra.gmra.mxu1 %vm249_vm0, %v1855_v50  ;;  %1733 = vmatprep.subr.bf16.mxu0 %v710_v47 }
  0xaf   : > { %1776 = vmatpush3.bf16.msra.mxu1 %v1094_v53  ;;  %v966_v55 = vpop.permute.xlu0 %965  ;;  %1735 = vmatprep.mubr.msk.bf16.mxu0 %vm249_vm0, %v1856_v52 }
  0xb0   : > { %v1092_v56 = vpop.permute.xlu1 %1091  ;;  %1755 = vmatprep.mubr.msk.bf16.mxu1 %vm249_vm0, %v1858_v54 }
  0xb1   : > { %1734 = vmatpush3.bf16.msra.mxu0 %v710_v47  ;;  %1777 = vmatprep.subr.bf16.mxu1 %v1092_v56 }
  0xb2   : > { %1759 = vmatprep.subr.bf16.mxu0 %v968_v51 }
  0xb3   : > { %1778 = vmatpush3.bf16.msra.mxu1 %v1092_v56  ;;  %v964_v59 = vpop.permute.xlu0 %963 }
  0xb4   : > { %1736 = vmatmul.mubr.msk.bf16.vlgmr.msra.gmra.mxu0 %vm249_vm0, %v1857_v57  ;;  %v1090_v61 = vpop.permute.xlu1 %1089 }
  0xb5   : > { %1760 = vmatpush3.bf16.msra.mxu0 %v968_v51  ;;  %1779 = vmatprep.subr.bf16.mxu1 %v1090_v61 }
  0xb6   : > { %1756 = vmatmul.mubr.msk.bf16.gmra.mxu1 %vm249_vm0, %v1859_v58  ;;  %1761 = vmatprep.subr.bf16.mxu0 %v966_v55 }
  0xb7   : > { %1780 = vmatpush3.bf16.msra.mxu1 %v1090_v61  ;;  %v962_v63 = vpop.permute.xlu0 %961  ;;  %1739 = vmatprep.mubr.msk.bf16.mxu0 %vm249_vm0, %v1860_v60 }
  0xb8   : > { %v1088_v0 = vpop.permute.xlu1 %1087  ;;  %1783 = vmatprep.mubr.msk.bf16.mxu1 %vm249_vm0, %v1862_v62 }
  0xb9   : > { %1762 = vmatpush3.bf16.msra.mxu0 %v966_v55  ;;  %1781 = vmatprep.subr.bf16.mxu1 %v1088_v0 }
  0xba   : > { %1763 = vmatprep.subr.bf16.mxu0 %v964_v59 }
  0xbb   : > { %1782 = vmatpush3.bf16.msra.mxu1 %v1088_v0  ;;  %v1220_v4 = vpop.permute.xlu0 %1219 }
  0xbc   : > { %1740 = vmatmul.mubr.msk.bf16.gmra.mxu0 %vm249_vm0, %v1861_v1  ;;  %1807 = vmatprep.subr.bf16.mxu1 %v1220_v4  ;;  %v1218_v6 = vpop.permute.xlu1 %1217 }
  0xbd   : > { %1764 = vmatpush3.bf16.msra.mxu0 %v964_v59  ;;  %1767 = vmatprep.mubr.msk.bf16.mxu0 %vm249_vm0, %v1864_v2 }
  0xbe   : > { %1784 = vmatmul.mubr.msk.bf16.vlgmr.msra.gmra.mxu1 %vm249_vm0, %v1863_v3  ;;  %1765 = vmatprep.subr.bf16.mxu0 %v962_v63 }
  0xbf   : > { %1811 = vmatpush3.bf16.msra.mxu1 %v1220_v4  ;;  %1787 = vmatprep.mubr.msk.bf16.mxu1 %vm249_vm0, %v1866_v5  ;;  %v1216_v8 = vpop.permute.xlu0 %1215 }
  0xc0   : > { %1808 = vmatprep.subr.bf16.mxu1 %v1218_v6  ;;  %v1214_v12 = vpop.permute.xlu1 %1213 }
  0xc1   : > { %1766 = vmatpush3.bf16.msra.mxu0 %v962_v63 }
  0xc2   : > { %1791 = vmatprep.subr.bf16.mxu0 %v1220_v4 }
  0xc3   : > { %1812 = vmatpush3.bf16.msra.mxu1 %v1218_v6 }
  0xc4   : > { %1768 = vmatmul.mubr.msk.bf16.vlgmr.msra.gmra.mxu0 %vm249_vm0, %v1865_v7  ;;  %1809 = vmatprep.subr.bf16.mxu1 %v1216_v8 }
  0xc5   : > { %1792 = vmatpush3.bf16.msra.mxu0 %v1220_v4  ;;  %1771 = vmatprep.mubr.msk.bf16.mxu0 %vm249_vm0, %v1868_v9 }
  0xc6   : > { %1788 = vmatmul.mubr.msk.bf16.gmra.mxu1 %vm249_vm0, %v1867_v10  ;;  %1793 = vmatprep.subr.bf16.mxu0 %v1218_v6 }
  0xc7   : > { %1813 = vmatpush3.bf16.msra.mxu1 %v1216_v8  ;;  %1803 = vmatprep.mubr.msk.bf16.mxu1 %vm249_vm0, %v1870_v11 }
  0xc8   : > { %1810 = vmatprep.subr.bf16.mxu1 %v1214_v12 }
  0xc9   : > { %1794 = vmatpush3.bf16.msra.mxu0 %v1218_v6 }
  0xca   : > { %1795 = vmatprep.subr.bf16.mxu0 %v1216_v8 }
  0xcb   : > { %1814 = vmatpush3.bf16.msra.mxu1 %v1214_v12 }
  0xcc   : > { %1772 = vmatmul.mubr.msk.bf16.gmra.mxu0 %vm249_vm0, %v1869_v13  ;;  %v2123_v13 = vpop.permute.xlu0 %1320 }
  0xcd   : > { %1796 = vmatpush3.bf16.msra.mxu0 %v1216_v8  ;;  %1799 = vmatprep.mubr.msk.bf16.mxu0 %vm249_vm0, %v1872_v14  ;;  %v2117_v1 = vpop.permute.xlu1 %1325 }
  0xce   : > { %1804 = vmatmul.mubr.msk.bf16.vlgmr.msra.gmra.mxu1 %vm249_vm0, %v1871_v15  ;;  %1797 = vmatprep.subr.bf16.mxu0 %v1214_v12  ;;  %2179 = vst [vmem:[#allocation2_spill] sm:$0xff] %v2117_v1 }
  0xd1   : > { %1798 = vmatpush3.bf16.msra.mxu0 %v1214_v12  ;;  %v2127_v1 = vpop.permute.xlu1 %1330 }
  0xd4   : > { %1800 = vmatmul.mubr.msk.bf16.vlgmr.msra.gmra.mxu0 %vm249_vm0, %v1873_v16 }
  0xe1   : > { %v1689_v17 = vpop.f32.mrf.mxu1 }
  0xe3   : > { %v397_v18 = vpop.f32.mrf.mxu1 }
  0xe5   : > { %v1690_v19 = vpop.f32.mrf.mxu1 }
  0xe7   : > { %v2093_v20 = vpop.f32.mrf.mxu1 }
  0xe9   : > { %v1693_v21 = vpop.f32.mrf.mxu1 }
  0xeb   : > { %v413_v22 = vpop.f32.mrf.mxu1 }
  0xed   : > { %v1694_v24 = vpop.f32.mrf.mxu1 }
  0xef   : > { %v416_v27 = vpop.f32.mrf.mxu1 }
 0x154   : > { %v1673_v23 = vpop.f32.mrf.mxu0 }
 0x155   : > { %v406_v2 = vadd.f32 %v1689_v17, %v1673_v23 }
 0x156   : > { %v296_v25 = vpop.f32.mrf.mxu0 }
 0x157   : > { %v398_v7 = vadd.f32 %v397_v18, %v296_v25 }
 0x158   : > { %v1674_v26 = vpop.f32.mrf.mxu0 }
 0x159   : > { %v409_v14 = vadd.f32 %v1690_v19, %v1674_v26 }
 0x15a   : > { %v299_v28 = vpop.f32.mrf.mxu0 }
 0x15b   : > { %v401_v18 = vadd.f32 %v2093_v20, %v299_v28 }
 0x15c   : > { %v1677_v29 = vpop.f32.mrf.mxu0 }
 0x15d   : > { %v1721_v30 = vpop.f32.mrf.mxu1  ;;  %v422_v0 = vadd.f32 %v1693_v21, %v1677_v29 }
 0x15e   : > { %v312_v31 = vpop.f32.mrf.mxu0 }
 0x15f   : > { %v2095_v32 = vpop.f32.mrf.mxu1  ;;  %v414_v5 = vadd.f32 %v413_v22, %v312_v31 }
 0x160   : > { %v1678_v33 = vpop.f32.mrf.mxu0 }
 0x161   : > { %v2097_v34 = vpop.f32.mrf.mxu1  ;;  %v425_v11 = vadd.f32 %v1694_v24, %v1678_v33 }
 0x162   : > { %v315_v35 = vpop.f32.mrf.mxu0 }
 0x163   : > { %v2099_v36 = vpop.f32.mrf.mxu1  ;;  %v417_v17 = vadd.f32 %v416_v27, %v315_v35 }
 0x164   : > { %v1705_v37 = vpop.f32.mrf.mxu0 }
 0x165   : > { %v1725_v38 = vpop.f32.mrf.mxu1  ;;  %v548_v8 = vadd.f32 %v1705_v37, %v406_v2 }
 0x166   : > { %v515_v39 = vpop.f32.mrf.mxu0 }
 0x167   : > { %v657_v40 = vpop.f32.mrf.mxu1  ;;  %v546_v15 = vadd.f32 %v515_v39, %v398_v7  ;;  %v674_v25 = vadd.f32 %v1721_v30, %v548_v8 }
 0x168   : > { %v1706_v41 = vpop.f32.mrf.mxu0 }
 0x169   : > { %v1726_v42 = vpop.f32.mrf.mxu1  ;;  %v549_v22 = vadd.f32 %v1706_v41, %v409_v14  ;;  %v672_v26 = vadd.f32 %v2095_v32, %v546_v15 }
 0x16a   : > { %v518_v43 = vpop.f32.mrf.mxu0 }
 0x16b   : > { %v2101_v44 = vpop.f32.mrf.mxu1  ;;  %v675_v20 = vadd.f32 %v2097_v34, %v549_v22 }
 0x16c   : > { %v1709_v45 = vpop.f32.mrf.mxu0 }
 0x16d   : > { %v552_v6 = vadd.f32 %v1709_v45, %v422_v0 }
 0x16e   : > { %v531_v46 = vpop.f32.mrf.mxu0  ;;  %v2103_v47 = vpop.f32.mrf.mxu1 }
 0x16f   : > { %v550_v12 = vadd.f32 %v531_v46, %v414_v5  ;;  %v678_v29 = vadd.f32 %v1725_v38, %v552_v6  ;;  %v547_v46 = vadd.f32 %v518_v43, %v401_v18  ;;  %v2131_v38 = vpop.permute.xlu0 %1335 }
 0x170   : > { %v1710_v48 = vpop.f32.mrf.mxu0  ;;  %v2105_v49 = vpop.f32.mrf.mxu1 }
 0x171   : > { %v553_v23 = vadd.f32 %v1710_v48, %v425_v11  ;;  %v676_v45 = vadd.f32 %v657_v40, %v550_v12  ;;  %v1341_v40 = vpop.permute.xlu1 %1340 }
 0x172   : > { %v534_v50 = vpop.f32.mrf.mxu0  ;;  %v2107_v51 = vpop.f32.mrf.mxu1 }
 0x173   : > { %v551_v24 = vadd.f32 %v534_v50, %v417_v17  ;;  %v679_v35 = vadd.f32 %v1726_v42, %v553_v23 }
 0x174   : > { %v1737_v52 = vpop.f32.mrf.mxu0  ;;  %v2109_v53 = vpop.f32.mrf.mxu1 }
 0x175   : > { %v800_v19 = vadd.f32 %v1737_v52, %v674_v25  ;;  %v677_v50 = vadd.f32 %v2101_v44, %v551_v24  ;;  %v673_v52 = vadd.f32 %v2099_v36, %v547_v46  ;;  %v1346_v44 = vpop.permute.xlu0 %1345  ;;  %v1351_v17 = vpop.permute.xlu1 %1350 }
 0x176   : > { %v767_v54 = vpop.f32.mrf.mxu0  ;;  %v1757_v55 = vpop.f32.mrf.mxu1 }
 0x177   : > { %v798_v48 = vadd.f32 %v767_v54, %v672_v26  ;;  %v926_v32 = vadd.f32 %v2103_v47, %v800_v19 }
 0x178   : > { %v1738_v56 = vpop.f32.mrf.mxu0  ;;  %v909_v57 = vpop.f32.mrf.mxu1 }
 0x179   : > { %v801_v43 = vadd.f32 %v1738_v56, %v675_v20  ;;  %v924_v7 = vadd.f32 %v2105_v49, %v798_v48 }
 0x17a   : > { %v770_v58 = vpop.f32.mrf.mxu0  ;;  %v2111_v59 = vpop.f32.mrf.mxu1 }
 0x17b   : > { %v799_v54 = vadd.f32 %v770_v58, %v673_v52  ;;  %v927_v47 = vadd.f32 %v2107_v51, %v801_v43 }
 0x17c   : > { %v1741_v60 = vpop.f32.mrf.mxu0  ;;  %v2113_v61 = vpop.f32.mrf.mxu1 }
 0x17d   : > { %v804_v33 = vadd.f32 %v1741_v60, %v678_v29  ;;  %v925_v49 = vadd.f32 %v2109_v53, %v799_v54 }
 0x17e   : > { %v783_v62 = vpop.f32.mrf.mxu0  ;;  %v2115_v63 = vpop.f32.mrf.mxu1 }
 0x17f   : > { %v802_v27 = vadd.f32 %v783_v62, %v676_v45  ;;  %v930_v60 = vadd.f32 %v1757_v55, %v804_v33  ;;  %v1356_v45 = vpop.permute.xlu0 %1355 }
 0x180   : > { %v1742_v3 = vpop.f32.mrf.mxu0  ;;  %v2119_v4 = vpop.f32.mrf.mxu1 }
 0x181   : > { %v805_v41 = vadd.f32 %v1742_v3, %v679_v35  ;;  %v928_v6 = vadd.f32 %v909_v57, %v802_v27 }
 0x182   : > { %v786_v9 = vpop.f32.mrf.mxu0  ;;  %v2121_v10 = vpop.f32.mrf.mxu1 }
 0x183   : > { %v803_v42 = vadd.f32 %v786_v9, %v677_v50  ;;  %v931_v56 = vadd.f32 %v2111_v59, %v805_v41 }
 0x184   : > { %v1769_v16 = vpop.f32.mrf.mxu0  ;;  %v2125_v21 = vpop.f32.mrf.mxu1 }
 0x185   : > { %v1052_v34 = vadd.f32 %v1769_v16, %v926_v32  ;;  %v929_v58 = vadd.f32 %v2113_v61, %v803_v42 }
 0x186   : > { %v1019_v31 = vpop.f32.mrf.mxu0  ;;  %v1789_v37 = vpop.f32.mrf.mxu1 }
 0x187   : > { %v1050_v36 = vadd.f32 %v1019_v31, %v924_v7  ;;  %v1178_v29 = vadd.f32 %v2115_v63, %v1052_v34 }
 0x188   : > { %v1770_v39 = vpop.f32.mrf.mxu0  ;;  %v1161_v0 = vpop.f32.mrf.mxu1 }
 0x189   : > { %v1053_v16 = vadd.f32 %v1770_v39, %v927_v47  ;;  %v1176_v53 = vadd.f32 %v2119_v4, %v1050_v36 }
 0x18a   : > { %v1022_v28 = vpop.f32.mrf.mxu0  ;;  %v1790_v30 = vpop.f32.mrf.mxu1 }
 0x18b   : > { %v1051_v31 = vadd.f32 %v1022_v28, %v925_v49  ;;  %v1179_v26 = vadd.f32 %v2121_v10, %v1053_v16 }
 0x18c   : > { %v1773_v2 = vpop.f32.mrf.mxu0  ;;  %v1164_v62 = vpop.f32.mrf.mxu1 }
 0x18d   : > { %v1056_v5 = vadd.f32 %v1773_v2, %v930_v60  ;;  %v1177_v28 = vadd.f32 %v2125_v21, %v1051_v31  ;;  %v2180_v2 = vld [vmem:[#allocation2_spill] sm:$0xff] }
 0x18e   : > { %v1035_v3 = vpop.f32.mrf.mxu0  ;;  %v1805_v8 = vpop.f32.mrf.mxu1 }
 0x18f   : > { %v1054_v55 = vadd.f32 %v1035_v3, %v928_v6  ;;  %v1182_v11 = vadd.f32 %v1789_v37, %v1056_v5 }
 0x190   : > { %v1774_v12 = vpop.f32.mrf.mxu0  ;;  %v1287_v14 = vpop.f32.mrf.mxu1 }
 0x191   : > { %v1308_v9 = vadd.f32 %v1805_v8, %v1182_v11  ;;  %v1057_v15 = vadd.f32 %v1774_v12, %v931_v56  ;;  %v1180_v57 = vadd.f32 %v1161_v0, %v1054_v55 }
 0x192   : > { %v1038_v23 = vpop.f32.mrf.mxu0  ;;  %v1806_v51 = vpop.f32.mrf.mxu1 }
 0x193   : > { %v1364_v18 = vadd.f32 %v1351_v17, %v1308_v9  ;;  %v1306_v59 = vadd.f32 %v1287_v14, %v1180_v57  ;;  %v1055_v22 = vadd.f32 %v1038_v23, %v929_v58  ;;  %v1183_v25 = vadd.f32 %v1790_v30, %v1057_v15 }
 0x194   : > { %v1801_v61 = vpop.f32.mrf.mxu0  ;;  %v1290_v35 = vpop.f32.mrf.mxu1 }
 0x195   : > { %v1372_v37 = vmax.f32 %v1364_v18, 0.0  ;;  %v1362_v24 = vadd.f32 %v1341_v40, %v1306_v59  ;;  %v1309_v63 = vadd.f32 %v1806_v51, %v1183_v25  ;;  %v1304_v33 = vadd.f32 %v1801_v61, %v1178_v29 }
 0x196   : > { %v1181_v46 = vadd.f32 %v1164_v62, %v1055_v22  ;;  %v1271_v19 = vpop.f32.mrf.mxu0 }
 0x197   : > { %1381 = vst.msk [vmem:[%s2147_s13 + $0x30] sm:$0xff] %vm1374_vm1, %v1372_v37  ;;  %v1370_v39 = vmax.f32 %v1362_v24, 0.0  ;;  %v1365_v0 = vadd.f32 %v1356_v45, %v1309_v63  ;;  %v1360_v27 = vadd.f32 %v2127_v1, %v1304_v33  ;;  %v1302_v4 = vadd.f32 %v1271_v19, %v1176_v53 }
 0x198   : > { %v1307_v48 = vadd.f32 %v1290_v35, %v1181_v46  ;;  %v1802_v20 = vpop.f32.mrf.mxu0 }
 0x199   : > { %1379 = vst.msk [vmem:[%s2147_s13 + $0x20] sm:$0xff] %vm1374_vm1, %v1370_v39  ;;  %v1373_v30 = vmax.f32 %v1365_v0, 0.0  ;;  %v1368_v10 = vmax.f32 %v1360_v27, 0.0  ;;  %v1358_v41 = vadd.f32 %v2123_v13, %v1302_v4  ;;  %v1305_v50 = vadd.f32 %v1802_v20, %v1179_v26 }
 0x19a   : > { %v1363_v60 = vadd.f32 %v1346_v44, %v1307_v48  ;;  %v1274_v40 = vpop.f32.mrf.mxu0 }
 0x19b   : > { %1382 = vst.msk [vmem:[%s2147_s13 + $0x38] sm:$0xff] %vm1374_vm1, %v1373_v30  ;;  %1377 = vst.msk [vmem:[%s2147_s13 + $0x10] sm:$0xff] %vm1374_vm1, %v1368_v10  ;;  %v1366_v1 = vmax.f32 %v1358_v41, 0.0  ;;  %v1361_v43 = vadd.f32 %v2131_v38, %v1305_v50  ;;  %v1303_v21 = vadd.f32 %v1274_v40, %v1177_v28 }
 0x19c   : > { %v1371_v52 = vmax.f32 %v1363_v60, 0.0 }
 0x19d   : > { %1375 = vst.msk [vmem:[%s2147_s13] sm:$0xff] %vm1374_vm1, %v1366_v1  ;;  %v1369_v32 = vmax.f32 %v1361_v43, 0.0  ;;  %v1359_v62 = vadd.f32 %v2180_v2, %v1303_v21 }
 0x19e   : > { %1380 = vst.msk [vmem:[%s2147_s13 + $0x28] sm:$0xff] %vm1374_vm1, %v1371_v52 }
 0x19f   : > { %1378 = vst.msk [vmem:[%s2147_s13 + $0x18] sm:$0xff] %vm1374_vm1, %v1369_v32  ;;  %v1367_v13 = vmax.f32 %v1359_v62, 0.0 }
 0x1a1   : > { %1376 = vst.msk [vmem:[%s2147_s13 + $0x8] sm:$0xff] %vm1374_vm1, %v1367_v13 }
 0x1a2 PF: > { %s13_s12 = sadd.s32 1, %s1880_s12  }
 0x1a3   : > { %p10_p4 = scmp.ge.s32.totalorder %s13_s12, 4  }
 0x1a5   :  { %12 = sbr.rel (!%p10_p4) target bundleno = 1 (0x1), region = 70 }

// kernel: scan_only_net.30
= control target key start
LH: loop header
LB: loop body
LE: loop exit
PB: predicated region body
PF: predicated region fallthrough
CT: control target
= control target key end

     0   :  { %s1253_s12 = smov 0   ;;  %s1362_s0 = inlined_call_operand.vmem [shape: bf16[2,32,18], index: 0, kind: input, shape index: {}]   ;;  %s1363_s1 = inlined_call_operand.vmem [shape: bf16[9,32,32], index: 1, kind: input, shape index: {}]   ;;  %s1364_s2 = inlined_call_operand.vmem [shape: f32[32,1], index: 2, kind: input, shape index: {}]   ;;  %s1365_s3 = inlined_call_operand.vmem [shape: f32[2,32,8], index: 3, kind: output, shape index: {}]  }
   0x1 LB: > { %s986_s13 = sadd.s32 4294967295, %s1222_s12   ;;  %p990_p0 = scmp.ge.s32.totalorder %s1222_s12, 1  ;;  %s1222_s12 = sphi %s1253_s12, %s13_s12  }
   0x2   : > { %p137_p1 = scmp.lt.s32.totalorder %s1222_s12, 3 }
   0x4   : > { %p138_p2 = pnand %p990_p0, %p137_p1 }
   0x5   : > { %p161_p3 = scmp.lt.s32.totalorder (!%p138_p2), %s986_s13, 1  ;;  %s1224_s22 = smov (!%p138_p2), 127  }
   0x6   : > { %141 = sbr.rel (%p138_p2) target bundleno = 376 (0x178), region = 32  ;;  %s1225_s23 = smov (!%p138_p2), 126  }
   0x7   : > { %s1226_s28 = smov (!%p138_p2), 124   ;;  %s1227_s29 = smov (!%p138_p2), 123  }
   0x8   : > { %s1228_s30 = smov (!%p138_p2), 122   ;;  %s1229_s4 = smov (!%p138_p2), 120  }
   0x9   : > { %s1230_s5 = smov (!%p138_p2), 119   ;;  %s1231_s6 = smov (!%p138_p2), 118  }
   0xb   : > { %v1198_v0 = vld [vmem:[%s1363_s1 + $0x10] sm:$0xff]   ;;  %vm211_vm0 = vcmask 261120   ;;  %s1367_s13 = smov (!%p161_p3, %s986_s13), 1  ;;  %v1199_v1 = vld [vmem:[%s1363_s1] sm:$0xff]   ;;  %v1201_v4 = vld [vmem:[%s1363_s1 + $0x8] sm:$0xff]   ;;  %v1232_v6 = vmov 0  }
   0xc   : > { %1109 = vmatprep.mubr.msk.bf16.mxu0 %vm211_vm0, %v1198_v0  ;;  %s1067_s18 = sshll.u32 %s1367_s13, 4  ;;  %1117 = vmatprep.mubr.msk.bf16.mxu1 %vm211_vm0, %v1199_v1  ;;  %v1204_v5 = vld [vmem:[%s1363_s1 + $0x30] sm:$0xff]   ;;  %v895_v7 = vld [vmem:[%s1364_s2 + $0x8] sm:$0xff]  ;;  %v894_v8 = vld [vmem:[%s1364_s2] sm:$0xff]  ;;  %s1068_s20 = sshll.u32 %s1367_s13, 5  ;;  %vm926_vm1 = vcmask 64512  }
   0xd   : > { %s165_s21 = scalar_lea.vmem %s1362_s0, %s1067_s18  ;;  %1195 = vset.pattern.permute.xlu1 %v1232_v6  ;;  %1194 = vset.pattern.permute.xlu0 %v1232_v6  ;;  %v896_v9 = vld [vmem:[%s1364_s2 + $0x10] sm:$0xff]  ;;  %v897_v10 = vld [vmem:[%s1364_s2 + $0x18] sm:$0xff]  ;;  %v1202_v16 = vld [vmem:[%s1363_s1 + $0x20] sm:$0xff]  }
   0xe   : > { %v1196_v2 = vld [vmem:[%s165_s21 + $0x8] sm:$0xff]   ;;  %v1197_v3 = vld [vmem:[%s165_s21] sm:$0xff]   ;;  %v1200_v15 = vld [vmem:[%s1363_s1 + $0x18] sm:$0xff]  }
   0xf   : > { %207 = vrot.lane.b32.xlu0 %v1196_v2, %s1224_s22  ;;  %351 = vrot.lane.b32.xlu1 %v1196_v2, %s1225_s23  ;;  %v1203_v21 = vld [vmem:[%s1363_s1 + $0x28] sm:$0xff]   ;;  %v1205_v22 = vld [vmem:[%s1363_s1 + $0x38] sm:$0xff]  }
  0x10   : > { %1113 = vmatprep.subr.bf16.mxu1 %v1196_v2  ;;  %v1206_v25 = vld [vmem:[%s1363_s1 + $0x40] sm:$0xff]   ;;  %v1208_v26 = vld [vmem:[%s1363_s1 + $0x50] sm:$0xff]   ;;  %v1207_v29 = vld [vmem:[%s1363_s1 + $0x48] sm:$0xff]  }
  0x11   : > { %1114 = vmatpush3.bf16.msra.mxu1 %v1196_v2  ;;  %v1209_v30 = vld [vmem:[%s1363_s1 + $0x58] sm:$0xff]   ;;  %v1210_v32 = vld [vmem:[%s1363_s1 + $0x60] sm:$0xff]   ;;  %v1212_v33 = vld [vmem:[%s1363_s1 + $0x70] sm:$0xff]  }
  0x12   : > { %1115 = vmatprep.subr.bf16.mxu1 %v1197_v3  ;;  %v1211_v36 = vld [vmem:[%s1363_s1 + $0x68] sm:$0xff]   ;;  %v1213_v37 = vld [vmem:[%s1363_s1 + $0x78] sm:$0xff]   ;;  %v1214_v38 = vld [vmem:[%s1363_s1 + $0x80] sm:$0xff]  }
  0x13   : > { %205 = vrot.lane.b32.xlu0 %v1197_v3, %s1224_s22  ;;  %349 = vrot.lane.b32.xlu1 %v1197_v3, %s1225_s23  ;;  %v1215_v40 = vld [vmem:[%s1363_s1 + $0x88] sm:$0xff]   ;;  %s170_s23 = scalar_lea.vmem %s1365_s3, %s1068_s20 }
  0x15   : > { %1116 = vmatpush3.bf16.msra.mxu1 %v1197_v3 }
  0x17   : > { %431 = vrot.lane.b32.xlu0 %v1196_v2, %s1226_s28  ;;  %511 = vrot.lane.b32.xlu1 %v1196_v2, %s1227_s29 }
  0x18   : > { %1118 = vmatmul.mubr.msk.bf16.vlgmr.msra.gmra.mxu1 %vm211_vm0, %v1201_v4 }
  0x19   : > { %1133 = vmatprep.mubr.msk.bf16.mxu1 %vm211_vm0, %v1204_v5 }
  0x1b   : > { %429 = vrot.lane.b32.xlu0 %v1197_v3, %s1226_s28  ;;  %509 = vrot.lane.b32.xlu1 %v1197_v3, %s1227_s29 }
  0x1f   : > { %591 = vrot.lane.b32.xlu0 %v1196_v2, %s1228_s30  ;;  %671 = vrot.lane.b32.xlu1 %v1196_v2, %s1229_s4 }
  0x23   : > { %589 = vrot.lane.b32.xlu0 %v1197_v3, %s1228_s30  ;;  %669 = vrot.lane.b32.xlu1 %v1197_v3, %s1229_s4 }
  0x27   : > { %751 = vrot.lane.b32.xlu0 %v1196_v2, %s1230_s5  ;;  %831 = vrot.lane.b32.xlu1 %v1196_v2, %s1231_s6 }
  0x2b   : > { %749 = vrot.lane.b32.xlu0 %v1197_v3, %s1230_s5  ;;  %829 = vrot.lane.b32.xlu1 %v1197_v3, %s1231_s6 }
  0x2f   : > { %905 = vperm.xlu1 %1195, %v895_v7   ;;  %900 = vperm.xlu0 %1194, %v894_v8  }
  0x33   : > { %910 = vperm.xlu1 %1195, %v896_v9   ;;  %915 = vperm.xlu0 %1194, %v897_v10  }
  0x81   : > { %v208_v11 = vpop.permute.xlu0 %207  ;;  %v352_v12 = vpop.permute.xlu1 %351 }
  0x82   : > { %1105 = vmatprep.subr.bf16.mxu0 %v208_v11 }
  0x83   : > { %1106 = vmatpush3.bf16.msra.mxu0 %v208_v11 }
  0x85   : > { %v206_v13 = vpop.permute.xlu0 %205  ;;  %v350_v14 = vpop.permute.xlu1 %349 }
  0x86   : > { %1107 = vmatprep.subr.bf16.mxu0 %v206_v13 }
  0x87   : > { %1108 = vmatpush3.bf16.msra.mxu0 %v206_v13 }
  0x88   : > { %1121 = vmatprep.subr.bf16.mxu0 %v352_v12 }
  0x89   : > { %v432_v17 = vpop.permute.xlu0 %431  ;;  %v512_v18 = vpop.permute.xlu1 %511 }
  0x8a   : > { %1110 = vmatmul.mubr.msk.bf16.vlgmr.msra.gmra.mxu0 %vm211_vm0, %v1200_v15  ;;  %1129 = vmatprep.subr.bf16.mxu1 %v432_v17 }
  0x8b   : > { %1122 = vmatpush3.bf16.msra.mxu0 %v352_v12  ;;  %1130 = vmatpush3.bf16.msra.mxu1 %v432_v17 }
  0x8c   : > { %1123 = vmatprep.subr.bf16.mxu0 %v350_v14  ;;  %1125 = vmatprep.mubr.msk.bf16.mxu0 %vm211_vm0, %v1202_v16 }
  0x8d   : > { %v430_v19 = vpop.permute.xlu0 %429  ;;  %v510_v20 = vpop.permute.xlu1 %509 }
  0x8e   : > { %1131 = vmatprep.subr.bf16.mxu1 %v430_v19 }
  0x8f   : > { %1124 = vmatpush3.bf16.msra.mxu0 %v350_v14  ;;  %1132 = vmatpush3.bf16.msra.mxu1 %v430_v19 }
  0x90   : > { %1137 = vmatprep.subr.bf16.mxu0 %v512_v18 }
  0x91   : > { %v592_v23 = vpop.permute.xlu0 %591  ;;  %v672_v24 = vpop.permute.xlu1 %671 }
  0x92   : > { %1126 = vmatmul.mubr.msk.bf16.vlgmr.msra.gmra.mxu0 %vm211_vm0, %v1203_v21  ;;  %1134 = vmatmul.mubr.msk.bf16.vlgmr.msra.gmra.mxu1 %vm211_vm0, %v1205_v22 }
  0x93   : > { %1138 = vmatpush3.bf16.msra.mxu0 %v512_v18  ;;  %1145 = vmatprep.subr.bf16.mxu1 %v592_v23 }
  0x94   : > { %1146 = vmatpush3.bf16.msra.mxu1 %v592_v23  ;;  %1139 = vmatprep.subr.bf16.mxu0 %v510_v20 }
  0x95   : > { %v590_v27 = vpop.permute.xlu0 %589  ;;  %1141 = vmatprep.mubr.msk.bf16.mxu0 %vm211_vm0, %v1206_v25  ;;  %1149 = vmatprep.mubr.msk.bf16.mxu1 %vm211_vm0, %v1208_v26  ;;  %v670_v28 = vpop.permute.xlu1 %669 }
  0x96   : > { %1147 = vmatprep.subr.bf16.mxu1 %v590_v27 }
  0x97   : > { %1140 = vmatpush3.bf16.msra.mxu0 %v510_v20 }
  0x98   : > { %1148 = vmatpush3.bf16.msra.mxu1 %v590_v27  ;;  %1153 = vmatprep.subr.bf16.mxu0 %v672_v24 }
  0x99   : > { %v752_v31 = vpop.permute.xlu0 %751  ;;  %v832_v34 = vpop.permute.xlu1 %831 }
  0x9a   : > { %1142 = vmatmul.mubr.msk.bf16.vlgmr.msra.gmra.mxu0 %vm211_vm0, %v1207_v29  ;;  %1161 = vmatprep.subr.bf16.mxu1 %v752_v31 }
  0x9b   : > { %1150 = vmatmul.mubr.msk.bf16.vlgmr.msra.gmra.mxu1 %vm211_vm0, %v1209_v30  ;;  %1154 = vmatpush3.bf16.msra.mxu0 %v672_v24 }
  0x9c   : > { %1162 = vmatpush3.bf16.msra.mxu1 %v752_v31  ;;  %1155 = vmatprep.subr.bf16.mxu0 %v670_v28 }
  0x9d   : > { %v750_v35 = vpop.permute.xlu0 %749  ;;  %1157 = vmatprep.mubr.msk.bf16.mxu0 %vm211_vm0, %v1210_v32  ;;  %1165 = vmatprep.mubr.msk.bf16.mxu1 %vm211_vm0, %v1212_v33  ;;  %v830_v39 = vpop.permute.xlu1 %829 }
  0x9e   : > { %1163 = vmatprep.subr.bf16.mxu1 %v750_v35 }
  0x9f   : > { %1156 = vmatpush3.bf16.msra.mxu0 %v670_v28 }
  0xa0   : > { %1164 = vmatpush3.bf16.msra.mxu1 %v750_v35  ;;  %1169 = vmatprep.subr.bf16.mxu0 %v832_v34 }
  0xa2   : > { %1158 = vmatmul.mubr.msk.bf16.vlgmr.msra.gmra.mxu0 %vm211_vm0, %v1211_v36 }
  0xa3   : > { %1166 = vmatmul.mubr.msk.bf16.vlgmr.msra.gmra.mxu1 %vm211_vm0, %v1213_v37  ;;  %1170 = vmatpush3.bf16.msra.mxu0 %v832_v34 }
  0xa4   : > { %1171 = vmatprep.subr.bf16.mxu0 %v830_v39  ;;  %1173 = vmatprep.mubr.msk.bf16.mxu0 %vm211_vm0, %v1214_v38 }
  0xa7   : > { %1172 = vmatpush3.bf16.msra.mxu0 %v830_v39 }
  0xaa   : > { %1174 = vmatmul.mubr.msk.bf16.vlgmr.msra.gmra.mxu0 %vm211_vm0, %v1215_v40  ;;  %v906_v19 = vpop.permute.xlu1 %905  ;;  %v901_v32 = vpop.permute.xlu0 %900 }
  0xae   : > { %v911_v33 = vpop.permute.xlu1 %910 }
  0xd8   : > { %v1119_v41 = vpop.f32.mrf.mxu1 }
  0xda   : > { %v319_v42 = vpop.f32.mrf.mxu1 }
  0xdc   : > { %v1120_v44 = vpop.f32.mrf.mxu1 }
  0xde   : > { %v322_v47 = vpop.f32.mrf.mxu1 }
 0x14a   : > { %v1111_v43 = vpop.f32.mrf.mxu0 }
 0x14b   : > { %v328_v55 = vadd.f32 %v1119_v41, %v1111_v43 }
 0x14c   : > { %v252_v45 = vpop.f32.mrf.mxu0 }
 0x14d   : > { %v320_v58 = vadd.f32 %v319_v42, %v252_v45 }
 0x14e   : > { %v1112_v46 = vpop.f32.mrf.mxu0 }
 0x14f   : > { %v331_v61 = vadd.f32 %v1120_v44, %v1112_v46 }
 0x150   : > { %v255_v48 = vpop.f32.mrf.mxu0 }
 0x151   : > { %v323_v1 = vadd.f32 %v322_v47, %v255_v48 }
 0x152   : > { %v1127_v49 = vpop.f32.mrf.mxu0  ;;  %v1135_v50 = vpop.f32.mrf.mxu1 }
 0x153   : > { %v412_v59 = vadd.f32 %v1127_v49, %v328_v55  ;;  %v916_v49 = vpop.permute.xlu0 %915 }
 0x154   : > { %v395_v51 = vpop.f32.mrf.mxu0  ;;  %v475_v52 = vpop.f32.mrf.mxu1 }
 0x155   : > { %v410_v62 = vadd.f32 %v395_v51, %v320_v58  ;;  %v492_v2 = vadd.f32 %v1135_v50, %v412_v59 }
 0x156   : > { %v1128_v53 = vpop.f32.mrf.mxu0  ;;  %v1136_v54 = vpop.f32.mrf.mxu1 }
 0x157   : > { %v413_v3 = vadd.f32 %v1128_v53, %v331_v61  ;;  %v490_v6 = vadd.f32 %v475_v52, %v410_v62 }
 0x158   : > { %v398_v56 = vpop.f32.mrf.mxu0  ;;  %v478_v57 = vpop.f32.mrf.mxu1 }
 0x159   : > { %v411_v7 = vadd.f32 %v398_v56, %v323_v1  ;;  %v493_v11 = vadd.f32 %v1136_v54, %v413_v3 }
 0x15a   : > { %v1143_v60 = vpop.f32.mrf.mxu0 }
 0x15b   : > { %v1151_v63 = vpop.f32.mrf.mxu1  ;;  %v572_v8 = vadd.f32 %v1143_v60, %v492_v2  ;;  %v491_v15 = vadd.f32 %v478_v57, %v411_v7 }
 0x15c   : > { %v555_v0 = vpop.f32.mrf.mxu0 }
 0x15d   : > { %v635_v4 = vpop.f32.mrf.mxu1  ;;  %v570_v12 = vadd.f32 %v555_v0, %v490_v6  ;;  %v652_v16 = vadd.f32 %v1151_v63, %v572_v8 }
 0x15e   : > { %v1144_v5 = vpop.f32.mrf.mxu0 }
 0x15f   : > { %v1152_v9 = vpop.f32.mrf.mxu1  ;;  %v573_v17 = vadd.f32 %v1144_v5, %v493_v11  ;;  %v650_v21 = vadd.f32 %v635_v4, %v570_v12 }
 0x160   : > { %v558_v10 = vpop.f32.mrf.mxu0 }
 0x161   : > { %v638_v13 = vpop.f32.mrf.mxu1  ;;  %v571_v22 = vadd.f32 %v558_v10, %v491_v15  ;;  %v653_v26 = vadd.f32 %v1152_v9, %v573_v17 }
 0x162   : > { %v1159_v14 = vpop.f32.mrf.mxu0 }
 0x163   : > { %v1167_v18 = vpop.f32.mrf.mxu1  ;;  %v732_v23 = vadd.f32 %v1159_v14, %v652_v16  ;;  %v651_v29 = vadd.f32 %v638_v13, %v571_v22 }
 0x164   : > { %v715_v20 = vpop.f32.mrf.mxu0 }
 0x165   : > { %v795_v24 = vpop.f32.mrf.mxu1  ;;  %v730_v27 = vadd.f32 %v715_v20, %v650_v21  ;;  %v812_v30 = vadd.f32 %v1167_v18, %v732_v23 }
 0x166   : > { %v1160_v25 = vpop.f32.mrf.mxu0 }
 0x167   : > { %v733_v31 = vadd.f32 %v1160_v25, %v653_v26  ;;  %v1168_v34 = vpop.f32.mrf.mxu1  ;;  %v810_v36 = vadd.f32 %v795_v24, %v730_v27 }
 0x168   : > { %v718_v28 = vpop.f32.mrf.mxu0 }
 0x169   : > { %v731_v37 = vadd.f32 %v718_v28, %v651_v29  ;;  %v813_v40 = vadd.f32 %v1168_v34, %v733_v31  ;;  %v798_v43 = vpop.f32.mrf.mxu1 }
 0x16a   : > { %v1175_v35 = vpop.f32.mrf.mxu0 }
 0x16b   : > { %v892_v38 = vadd.f32 %v1175_v35, %v812_v30  ;;  %v811_v45 = vadd.f32 %v798_v43, %v731_v37 }
 0x16c   : > { %v875_v39 = vpop.f32.mrf.mxu0 }
 0x16d   : > { %v920_v41 = vadd.f32 %v911_v33, %v892_v38  ;;  %v890_v42 = vadd.f32 %v875_v39, %v810_v36 }
 0x16e   : > { %v1176_v44 = vpop.f32.mrf.mxu0 }
 0x16f   : > { %v924_v46 = vmax.f32 %v920_v41, 0.0  ;;  %v918_v47 = vadd.f32 %v901_v32, %v890_v42  ;;  %v893_v48 = vadd.f32 %v1176_v44, %v813_v40 }
 0x170   : > { %v878_v50 = vpop.f32.mrf.mxu0 }
 0x171   : > { %929 = vst.msk [vmem:[%s170_s23 + $0x10] sm:$0xff] %vm926_vm1, %v924_v46  ;;  %v922_v51 = vmax.f32 %v918_v47, 0.0  ;;  %v921_v52 = vadd.f32 %v916_v49, %v893_v48  ;;  %v891_v53 = vadd.f32 %v878_v50, %v811_v45 }
 0x173   : > { %927 = vst.msk [vmem:[%s170_s23] sm:$0xff] %vm926_vm1, %v922_v51  ;;  %v925_v54 = vmax.f32 %v921_v52, 0.0  ;;  %v919_v55 = vadd.f32 %v906_v19, %v891_v53 }
 0x175   : > { %930 = vst.msk [vmem:[%s170_s23 + $0x18] sm:$0xff] %vm926_vm1, %v925_v54  ;;  %v923_v56 = vmax.f32 %v919_v55, 0.0 }
 0x177   : > { %928 = vst.msk [vmem:[%s170_s23 + $0x8] sm:$0xff] %vm926_vm1, %v923_v56 }
 0x178 PF: > { %s13_s12 = sadd.s32 1, %s1222_s12  }
 0x179   : > { %p10_p4 = scmp.ge.s32.totalorder %s13_s12, 4  }
 0x17b   :  { %12 = sbr.rel (!%p10_p4) target bundleno = 1 (0x1), region = 70 }

// kernel: scan_only_net.32
= control target key start
LH: loop header
LB: loop body
LE: loop exit
PB: predicated region body
PF: predicated region fallthrough
CT: control target
= control target key end

     0   :  { %s950_s12 = smov 0   ;;  %s1040_s0 = inlined_call_operand.vmem [shape: bf16[2,16,38], index: 0, kind: input, shape index: {}]   ;;  %s1041_s1 = inlined_call_operand.vmem [shape: bf16[9,16,16], index: 1, kind: input, shape index: {}]   ;;  %s1042_s2 = inlined_call_operand.vmem [shape: f32[16,1], index: 2, kind: input, shape index: {}]   ;;  %s1043_s3 = inlined_call_operand.vmem [shape: f32[2,16,24], index: 3, kind: output, shape index: {}]  }
   0x1 LB: > { %s760_s13 = sadd.s32 4294967295, %s917_s12   ;;  %p764_p0 = scmp.ge.s32.totalorder %s917_s12, 1  ;;  %s917_s12 = sphi %s950_s12, %s13_s12  }
   0x2   : > { %p137_p1 = scmp.lt.s32.totalorder %s917_s12, 3 }
   0x4   : > { %p138_p2 = pnand %p764_p0, %p137_p1 }
   0x5   : > { %p161_p3 = scmp.lt.s32.totalorder (!%p138_p2), %s760_s13, 1  ;;  %s921_s20 = smov (!%p138_p2), 127  }
   0x6   : > { %141 = sbr.rel (%p138_p2) target bundleno = 369 (0x171), region = 32  ;;  %s922_s21 = smov (!%p138_p2), 122  }
   0x7   : > { %s923_s22 = smov (!%p138_p2), 126   ;;  %s924_s23 = smov (!%p138_p2), 121  }
   0x8   : > { %s925_s24 = smov (!%p138_p2), 120   ;;  %s926_s25 = smov (!%p138_p2), 116  }
   0x9   : > { %s927_s26 = smov (!%p138_p2), 115   ;;  %s928_s27 = smov (!%p138_p2), 114  }
   0xb   : > { %v919_v0 = vmov 0.0   ;;  %s1045_s13 = smov (!%p161_p3, %s760_s13), 1  ;;  %vm920_vm0 = vmmov 0   ;;  %v903_v2 = vld [vmem:[%s1041_s1] sm:$0xff]   ;;  %vm192_vm1 = vcmask 130048   ;;  %v687_v4 = vld [vmem:[%s1042_s2 + $0x8] sm:$0xff] }
   0xc   : > { %826 = vmatprep.subr.bf16.mxu0 %v919_v0  ;;  %832 = vmatprep.subr.bf16.mxu1 %v919_v0  ;;  %s806_s14 = sshll.u32 %s1045_s13, 3  ;;  %v686_v3 = vld [vmem:[%s1042_s2] sm:$0xff]  ;;  %v929_v5 = vmov 0   ;;  %v902_v7 = vld [vmem:[%s1041_s1 + $0x8] sm:$0xff]   ;;  %v905_v9 = vld [vmem:[%s1041_s1 + $0x18] sm:$0xff]   ;;  %vm702_vm2 = vcmask 195584  }
   0xd   : > { %828 = vmatprep.mubr.msk.bf16.mxu0 %vm920_vm0, %v919_v0  ;;  %834 = vmatprep.mubr.msk.bf16.mxu1 %vm920_vm0, %v919_v0  ;;  %s165_s17 = scalar_lea.vmem %s1040_s0, %s806_s14  ;;  %v904_v11 = vld [vmem:[%s1041_s1 + $0x10] sm:$0xff]   ;;  %v907_v13 = vld [vmem:[%s1041_s1 + $0x28] sm:$0xff]   ;;  %v906_v16 = vld [vmem:[%s1041_s1 + $0x20] sm:$0xff]  }
   0xe   : > { %v901_v1 = vld [vmem:[%s165_s17] sm:$0xff]   ;;  %899 = vset.pattern.permute.xlu0 %v929_v5  ;;  %900 = vset.pattern.permute.xlu1 %v929_v5  ;;  %v909_v17 = vld [vmem:[%s1041_s1 + $0x38] sm:$0xff]   ;;  %v908_v19 = vld [vmem:[%s1041_s1 + $0x30] sm:$0xff]  }
   0xf   : > { %189 = vrot.lane.b32.xlu0 %v901_v1, %s921_s20  ;;  %352 = vrot.lane.b32.xlu1 %v901_v1, %s922_s21  ;;  %v910_v21 = vld [vmem:[%s1041_s1 + $0x40] sm:$0xff]  }
  0x10   : > { %833 = vmatpush3.bf16.msra.mxu1 %v901_v1 }
  0x11   : > { %844 = vmatprep.subr.bf16.mxu1 %v919_v0 }
  0x13   : > { %295 = vrot.lane.b32.xlu0 %v901_v1, %s923_s22  ;;  %409 = vrot.lane.b32.xlu1 %v901_v1, %s924_s23  ;;  %s807_s23 = sshll.u32 %s1045_s13, 4 }
  0x14   : > { %835 = vmatmul.mubr.msk.bf16.vlgmr.msra.gmra.mxu1 %vm192_vm1, %v903_v2 }
  0x15   : > { %846 = vmatprep.mubr.msk.bf16.mxu1 %vm920_vm0, %v919_v0 }
  0x17   : > { %466 = vrot.lane.b32.xlu0 %v901_v1, %s925_s24  ;;  %523 = vrot.lane.b32.xlu1 %v901_v1, %s926_s25 }
  0x1b   : > { %580 = vrot.lane.b32.xlu0 %v901_v1, %s927_s26  ;;  %637 = vrot.lane.b32.xlu1 %v901_v1, %s928_s27  ;;  %s170_s26 = scalar_lea.vmem %s1043_s3, %s807_s23 }
  0x1f   : > { %690 = vperm.xlu0 %899, %v686_v3   ;;  %695 = vperm.xlu1 %900, %v687_v4  }
  0x81   : > { %v190_v6 = vpop.permute.xlu0 %189  ;;  %v353_v8 = vpop.permute.xlu1 %352 }
  0x82   : > { %827 = vmatpush3.bf16.msra.mxu0 %v190_v6  ;;  %845 = vmatpush3.bf16.msra.mxu1 %v353_v8 }
  0x83   : > { %838 = vmatprep.subr.bf16.mxu0 %v919_v0  ;;  %856 = vmatprep.subr.bf16.mxu1 %v919_v0 }
  0x85   : > { %829 = vmatmul.mubr.msk.bf16.vlgmr.msra.gmra.mxu0 %vm192_vm1, %v902_v7  ;;  %v296_v10 = vpop.permute.xlu0 %295  ;;  %847 = vmatmul.mubr.msk.bf16.vlgmr.msra.gmra.mxu1 %vm192_vm1, %v905_v9  ;;  %v410_v14 = vpop.permute.xlu1 %409 }
  0x86   : > { %839 = vmatpush3.bf16.msra.mxu0 %v296_v10  ;;  %840 = vmatprep.mubr.msk.bf16.mxu0 %vm920_vm0, %v919_v0 }
  0x87   : > { %850 = vmatprep.subr.bf16.mxu0 %v919_v0  ;;  %858 = vmatprep.mubr.msk.bf16.mxu1 %vm920_vm0, %v919_v0 }
  0x89   : > { %v467_v12 = vpop.permute.xlu0 %466  ;;  %v524_v18 = vpop.permute.xlu1 %523 }
  0x8a   : > { %857 = vmatpush3.bf16.msra.mxu1 %v467_v12 }
  0x8b   : > { %868 = vmatprep.subr.bf16.mxu1 %v919_v0 }
  0x8d   : > { %841 = vmatmul.mubr.msk.bf16.vlgmr.msra.gmra.mxu0 %vm192_vm1, %v904_v11  ;;  %859 = vmatmul.mubr.msk.bf16.vlgmr.msra.gmra.mxu1 %vm192_vm1, %v907_v13  ;;  %v581_v15 = vpop.permute.xlu0 %580  ;;  %v638_v20 = vpop.permute.xlu1 %637 }
  0x8e   : > { %851 = vmatpush3.bf16.msra.mxu0 %v410_v14  ;;  %852 = vmatprep.mubr.msk.bf16.mxu0 %vm920_vm0, %v919_v0 }
  0x8f   : > { %862 = vmatprep.subr.bf16.mxu0 %v919_v0  ;;  %869 = vmatpush3.bf16.msra.mxu1 %v581_v15 }
  0x90   : > { %870 = vmatprep.mubr.msk.bf16.mxu1 %vm920_vm0, %v919_v0 }
  0x95   : > { %853 = vmatmul.mubr.msk.bf16.vlgmr.msra.gmra.mxu0 %vm192_vm1, %v906_v16  ;;  %871 = vmatmul.mubr.msk.bf16.vlgmr.msra.gmra.mxu1 %vm192_vm1, %v909_v17 }
  0x96   : > { %863 = vmatpush3.bf16.msra.mxu0 %v524_v18  ;;  %864 = vmatprep.mubr.msk.bf16.mxu0 %vm920_vm0, %v919_v0 }
  0x97   : > { %874 = vmatprep.subr.bf16.mxu0 %v919_v0 }
  0x9a   : > { %v691_v4 = vpop.permute.xlu0 %690  ;;  %v696_v10 = vpop.permute.xlu1 %695 }
  0x9d   : > { %865 = vmatmul.mubr.msk.bf16.vlgmr.msra.gmra.mxu0 %vm192_vm1, %v908_v19 }
  0x9e   : > { %875 = vmatpush3.bf16.msra.mxu0 %v638_v20  ;;  %876 = vmatprep.mubr.msk.bf16.mxu0 %vm920_vm0, %v919_v0 }
  0xa5   : > { %877 = vmatmul.mubr.msk.bf16.vlgmr.msra.gmra.mxu0 %vm192_vm1, %v910_v21 }
  0xd4   : > { %v280_v22 = vpop.f32.mrf.mxu1 }
  0xd6   : > { %v836_v23 = vpop.f32.mrf.mxu1 }
  0xd8   : > { %v283_v24 = vpop.f32.mrf.mxu1 }
  0xda   : > { %v837_v25 = vpop.f32.mrf.mxu1 }
 0x145   : > { %v230_v26 = vpop.f32.mrf.mxu0  ;;  %v392_v27 = vpop.f32.mrf.mxu1 }
 0x146   : > { %v281_v40 = vadd.f32 %v280_v22, %v230_v26 }
 0x147   : > { %v830_v28 = vpop.f32.mrf.mxu0  ;;  %v848_v29 = vpop.f32.mrf.mxu1 }
 0x149   : > { %v233_v30 = vpop.f32.mrf.mxu0  ;;  %v395_v31 = vpop.f32.mrf.mxu1 }
 0x14a   : > { %v284_v46 = vadd.f32 %v283_v24, %v233_v30 }
 0x14b   : > { %v831_v32 = vpop.f32.mrf.mxu0  ;;  %v849_v33 = vpop.f32.mrf.mxu1 }
 0x14d   : > { %v335_v34 = vpop.f32.mrf.mxu0  ;;  %v506_v35 = vpop.f32.mrf.mxu1 }
 0x14e   : > { %v342_v43 = vadd.f32 %v335_v34, %v281_v40 }
 0x14f   : > { %v842_v36 = vpop.f32.mrf.mxu0  ;;  %v860_v37 = vpop.f32.mrf.mxu1 }
 0x150   : > { %v399_v49 = vadd.f32 %v392_v27, %v342_v43 }
 0x151   : > { %v338_v38 = vpop.f32.mrf.mxu0  ;;  %v509_v39 = vpop.f32.mrf.mxu1 }
 0x152   : > { %v343_v50 = vadd.f32 %v338_v38, %v284_v46 }
 0x153   : > { %v843_v41 = vpop.f32.mrf.mxu0  ;;  %v861_v42 = vpop.f32.mrf.mxu1 }
 0x154   : > { %v400_v56 = vadd.f32 %v395_v31, %v343_v50 }
 0x155   : > { %v449_v44 = vpop.f32.mrf.mxu0  ;;  %v620_v45 = vpop.f32.mrf.mxu1 }
 0x156   : > { %v456_v53 = vadd.f32 %v449_v44, %v399_v49 }
 0x157   : > { %v854_v47 = vpop.f32.mrf.mxu0  ;;  %v872_v48 = vpop.f32.mrf.mxu1 }
 0x158   : > { %v513_v58 = vadd.f32 %v506_v35, %v456_v53 }
 0x159   : > { %v452_v51 = vpop.f32.mrf.mxu0  ;;  %v623_v52 = vpop.f32.mrf.mxu1 }
 0x15a   : > { %v457_v59 = vadd.f32 %v452_v51, %v400_v56 }
 0x15b   : > { %v855_v54 = vpop.f32.mrf.mxu0  ;;  %v873_v55 = vpop.f32.mrf.mxu1 }
 0x15c   : > { %v514_v63 = vadd.f32 %v509_v39, %v457_v59 }
 0x15d   : > { %v563_v57 = vpop.f32.mrf.mxu0 }
 0x15e   : > { %v570_v61 = vadd.f32 %v563_v57, %v513_v58 }
 0x15f   : > { %v866_v60 = vpop.f32.mrf.mxu0 }
 0x160   : > { %v627_v1 = vadd.f32 %v620_v45, %v570_v61 }
 0x161   : > { %v566_v62 = vpop.f32.mrf.mxu0 }
 0x162   : > { %v571_v2 = vadd.f32 %v566_v62, %v514_v63 }
 0x163   : > { %v867_v0 = vpop.f32.mrf.mxu0 }
 0x164   : > { %v628_v7 = vadd.f32 %v623_v52, %v571_v2 }
 0x165   : > { %v677_v3 = vpop.f32.mrf.mxu0 }
 0x166   : > { %v684_v5 = vadd.f32 %v677_v3, %v627_v1 }
 0x167   : > { %v878_v6 = vpop.f32.mrf.mxu0 }
 0x168   : > { %v698_v8 = vadd.f32 %v691_v4, %v684_v5 }
 0x169   : > { %v680_v9 = vpop.f32.mrf.mxu0 }
 0x16a   : > { %v700_v11 = vmax.f32 %v698_v8, 0.0  ;;  %v685_v12 = vadd.f32 %v680_v9, %v628_v7 }
 0x16b   : > { %v879_v13 = vpop.f32.mrf.mxu0 }
 0x16c   : > { %703 = vst.msk [vmem:[%s170_s26] sm:$0xff] %vm702_vm2, %v700_v11  ;;  %v699_v14 = vadd.f32 %v696_v10, %v685_v12 }
 0x16e   : > { %v701_v15 = vmax.f32 %v699_v14, 0.0 }
 0x170   : > { %704 = vst.msk [vmem:[%s170_s26 + $0x8] sm:$0xff] %vm702_vm2, %v701_v15 }
 0x171 PF: > { %s13_s12 = sadd.s32 1, %s917_s12  }
 0x172   : > { %p10_p4 = scmp.ge.s32.totalorder %s13_s12, 4  }
 0x174   :  { %12 = sbr.rel (!%p10_p4) target bundleno = 1 (0x1), region = 70 }

// kernel: scan_only_net.31
= control target key start
LH: loop header
LB: loop body
LE: loop exit
PB: predicated region body
PF: predicated region fallthrough
CT: control target
= control target key end

     0   :  { %s1133_s12 = smov 0   ;;  %s1250_s0 = inlined_call_operand.vmem [shape: bf16[2,64,38], index: 0, kind: input, shape index: {}]   ;;  %s1251_s1 = inlined_call_operand.vmem [shape: bf16[9,16,64], index: 1, kind: input, shape index: {}]   ;;  %s1252_s2 = inlined_call_operand.vmem [shape: f32[16,1], index: 2, kind: input, shape index: {}]   ;;  %s1253_s3 = inlined_call_operand.vmem [shape: f32[2,16,24], index: 3, kind: output, shape index: {}]  }
   0x1 LB: > { %s856_s13 = sadd.s32 4294967295, %s1100_s12   ;;  %p860_p0 = scmp.ge.s32.totalorder %s1100_s12, 1  ;;  %s1100_s12 = sphi %s1133_s12, %s13_s12  }
   0x2   : > { %p137_p1 = scmp.lt.s32.totalorder %s1100_s12, 3 }
   0x4   : > { %p138_p2 = pnand %p860_p0, %p137_p1 }
   0x5   : > { %p161_p3 = scmp.lt.s32.totalorder (!%p138_p2), %s856_s13, 1  ;;  %s1103_s18 = smov (!%p138_p2), 127  }
   0x6   : > { %141 = sbr.rel (%p138_p2) target bundleno = 413 (0x19d), region = 32  ;;  %s1105_s19 = smov (!%p138_p2), 126  }
   0x7   : > { %s1106_s22 = smov (!%p138_p2), 122   ;;  %s1107_s23 = smov (!%p138_p2), 121  }
   0x8   : > { %s1108_s24 = smov (!%p138_p2), 120   ;;  %s1109_s25 = smov (!%p138_p2), 116  }
   0x9   : > { %s1110_s26 = smov (!%p138_p2), 115   ;;  %s1111_s27 = smov (!%p138_p2), 114  }
   0xb   : > { %v1102_v0 = vmov 0.0   ;;  %s1255_s13 = smov (!%p161_p3, %s856_s13), 1  ;;  %vm1104_vm0 = vmmov 0   ;;  %v1086_v5 = vld [vmem:[%s1251_s1] sm:$0xff]   ;;  %vm222_vm1 = vcmask 523264   ;;  %v783_v7 = vld [vmem:[%s1252_s2 + $0x8] sm:$0xff] }
   0xc   : > { %952 = vmatprep.subr.bf16.mxu0 %v1102_v0  ;;  %964 = vmatprep.subr.bf16.mxu1 %v1102_v0  ;;  %s905_s14 = sshll.u32 %s1255_s13, 5  ;;  %v782_v6 = vld [vmem:[%s1252_s2] sm:$0xff]  ;;  %v1112_v8 = vmov 0   ;;  %v1085_v16 = vld [vmem:[%s1251_s1 + $0x8] sm:$0xff]   ;;  %v1087_v25 = vld [vmem:[%s1251_s1 + $0x10] sm:$0xff]   ;;  %vm798_vm2 = vcmask 195584  }
   0xd   : > { %s165_s17 = scalar_lea.vmem %s1250_s0, %s905_s14  ;;  %960 = vmatprep.mubr.msk.bf16.mxu0 %vm1104_vm0, %v1102_v0  ;;  %972 = vmatprep.mubr.msk.bf16.mxu1 %vm1104_vm0, %v1102_v0  ;;  %v1088_v26 = vld [vmem:[%s1251_s1 + $0x18] sm:$0xff]   ;;  %v1089_v34 = vld [vmem:[%s1251_s1 + $0x20] sm:$0xff]   ;;  %v1090_v35 = vld [vmem:[%s1251_s1 + $0x28] sm:$0xff]  }
   0xe   : > { %v1081_v1 = vld [vmem:[%s165_s17 + $0x18] sm:$0xff]   ;;  %v1082_v2 = vld [vmem:[%s165_s17 + $0x10] sm:$0xff]   ;;  %v1083_v3 = vld [vmem:[%s165_s17 + $0x8] sm:$0xff]   ;;  %1079 = vset.pattern.permute.xlu0 %v1112_v8  ;;  %1080 = vset.pattern.permute.xlu1 %v1112_v8 }
   0xf   : > { %216 = vrot.lane.b32.xlu0 %v1081_v1, %s1103_s18  ;;  %965 = vmatpush3.bf16.msra.mxu1 %v1081_v1  ;;  %v1084_v4 = vld [vmem:[%s165_s17] sm:$0xff]   ;;  %v1091_v43 = vld [vmem:[%s1251_s1 + $0x30] sm:$0xff]   ;;  %v1092_v44 = vld [vmem:[%s1251_s1 + $0x38] sm:$0xff]  }
  0x10   : > { %966 = vmatprep.subr.bf16.mxu1 %v1102_v0  ;;  %212 = vrot.lane.b32.xlu1 %v1083_v3, %s1103_s18  ;;  %v1093_v48 = vld [vmem:[%s1251_s1 + $0x40] sm:$0xff]  }
  0x13   : > { %214 = vrot.lane.b32.xlu0 %v1082_v2, %s1103_s18  ;;  %967 = vmatpush3.bf16.msra.mxu1 %v1082_v2 }
  0x14   : > { %968 = vmatprep.subr.bf16.mxu1 %v1102_v0  ;;  %210 = vrot.lane.b32.xlu1 %v1084_v4, %s1103_s18 }
  0x17   : > { %334 = vrot.lane.b32.xlu0 %v1081_v1, %s1105_s19  ;;  %969 = vmatpush3.bf16.msra.mxu1 %v1083_v3 }
  0x18   : > { %970 = vmatprep.subr.bf16.mxu1 %v1102_v0  ;;  %332 = vrot.lane.b32.xlu1 %v1082_v2, %s1105_s19 }
  0x1b   : > { %330 = vrot.lane.b32.xlu0 %v1083_v3, %s1105_s19  ;;  %971 = vmatpush3.bf16.msra.mxu1 %v1084_v4 }
  0x1c   : > { %988 = vmatprep.subr.bf16.mxu1 %v1102_v0  ;;  %328 = vrot.lane.b32.xlu1 %v1084_v4, %s1105_s19 }
  0x1e   : > { %973 = vmatmul.mubr.msk.bf16.vlgmr.msra.gmra.mxu1 %vm222_vm1, %v1086_v5 }
  0x1f   : > { %400 = vrot.lane.b32.xlu0 %v1081_v1, %s1106_s22  ;;  %996 = vmatprep.mubr.msk.bf16.mxu1 %vm1104_vm0, %v1102_v0 }
  0x20   : > { %466 = vrot.lane.b32.xlu1 %v1081_v1, %s1107_s23 }
  0x23   : > { %398 = vrot.lane.b32.xlu0 %v1082_v2, %s1106_s22 }
  0x24   : > { %464 = vrot.lane.b32.xlu1 %v1082_v2, %s1107_s23 }
  0x27   : > { %396 = vrot.lane.b32.xlu0 %v1083_v3, %s1106_s22 }
  0x28   : > { %462 = vrot.lane.b32.xlu1 %v1083_v3, %s1107_s23 }
  0x2b   : > { %394 = vrot.lane.b32.xlu0 %v1084_v4, %s1106_s22 }
  0x2c   : > { %460 = vrot.lane.b32.xlu1 %v1084_v4, %s1107_s23  ;;  %s906_s23 = sshll.u32 %s1255_s13, 4 }
  0x2f   : > { %532 = vrot.lane.b32.xlu0 %v1081_v1, %s1108_s24 }
  0x30   : > { %598 = vrot.lane.b32.xlu1 %v1081_v1, %s1109_s25 }
  0x33   : > { %530 = vrot.lane.b32.xlu0 %v1082_v2, %s1108_s24 }
  0x34   : > { %596 = vrot.lane.b32.xlu1 %v1082_v2, %s1109_s25 }
  0x37   : > { %528 = vrot.lane.b32.xlu0 %v1083_v3, %s1108_s24 }
  0x38   : > { %594 = vrot.lane.b32.xlu1 %v1083_v3, %s1109_s25 }
  0x3b   : > { %526 = vrot.lane.b32.xlu0 %v1084_v4, %s1108_s24 }
  0x3c   : > { %592 = vrot.lane.b32.xlu1 %v1084_v4, %s1109_s25 }
  0x3f   : > { %664 = vrot.lane.b32.xlu0 %v1081_v1, %s1110_s26 }
  0x40   : > { %730 = vrot.lane.b32.xlu1 %v1081_v1, %s1111_s27 }
  0x43   : > { %662 = vrot.lane.b32.xlu0 %v1082_v2, %s1110_s26 }
  0x44   : > { %728 = vrot.lane.b32.xlu1 %v1082_v2, %s1111_s27 }
  0x47   : > { %660 = vrot.lane.b32.xlu0 %v1083_v3, %s1110_s26 }
  0x48   : > { %726 = vrot.lane.b32.xlu1 %v1083_v3, %s1111_s27 }
  0x4b   : > { %658 = vrot.lane.b32.xlu0 %v1084_v4, %s1110_s26  ;;  %s170_s26 = scalar_lea.vmem %s1253_s3, %s906_s23 }
  0x4c   : > { %724 = vrot.lane.b32.xlu1 %v1084_v4, %s1111_s27 }
  0x4f   : > { %786 = vperm.xlu0 %1079, %v782_v6  }
  0x50   : > { %791 = vperm.xlu1 %1080, %v783_v7  }
  0x81   : > { %v217_v9 = vpop.permute.xlu0 %216 }
  0x82   : > { %953 = vmatpush3.bf16.msra.mxu0 %v217_v9  ;;  %v213_v10 = vpop.permute.xlu1 %212 }
  0x83   : > { %954 = vmatprep.subr.bf16.mxu0 %v1102_v0 }
  0x85   : > { %v215_v11 = vpop.permute.xlu0 %214 }
  0x86   : > { %955 = vmatpush3.bf16.msra.mxu0 %v215_v11  ;;  %v211_v12 = vpop.permute.xlu1 %210 }
  0x87   : > { %956 = vmatprep.subr.bf16.mxu0 %v1102_v0 }
  0x89   : > { %v335_v13 = vpop.permute.xlu0 %334 }
  0x8a   : > { %957 = vmatpush3.bf16.msra.mxu0 %v213_v10  ;;  %v333_v14 = vpop.permute.xlu1 %332 }
  0x8b   : > { %958 = vmatprep.subr.bf16.mxu0 %v1102_v0 }
  0x8d   : > { %v331_v15 = vpop.permute.xlu0 %330 }
  0x8e   : > { %959 = vmatpush3.bf16.msra.mxu0 %v211_v12  ;;  %v329_v17 = vpop.permute.xlu1 %328 }
  0x8f   : > { %976 = vmatprep.subr.bf16.mxu0 %v1102_v0 }
  0x91   : > { %961 = vmatmul.mubr.msk.bf16.vlgmr.msra.gmra.mxu0 %vm222_vm1, %v1085_v16  ;;  %v401_v18 = vpop.permute.xlu0 %400 }
  0x92   : > { %977 = vmatpush3.bf16.msra.mxu0 %v335_v13  ;;  %989 = vmatpush3.bf16.msra.mxu1 %v401_v18  ;;  %v467_v19 = vpop.permute.xlu1 %466 }
  0x93   : > { %978 = vmatprep.subr.bf16.mxu0 %v1102_v0  ;;  %990 = vmatprep.subr.bf16.mxu1 %v1102_v0 }
  0x94   : > { %984 = vmatprep.mubr.msk.bf16.mxu0 %vm1104_vm0, %v1102_v0 }
  0x95   : > { %v399_v20 = vpop.permute.xlu0 %398 }
  0x96   : > { %979 = vmatpush3.bf16.msra.mxu0 %v333_v14  ;;  %991 = vmatpush3.bf16.msra.mxu1 %v399_v20  ;;  %v465_v21 = vpop.permute.xlu1 %464 }
  0x97   : > { %980 = vmatprep.subr.bf16.mxu0 %v1102_v0  ;;  %992 = vmatprep.subr.bf16.mxu1 %v1102_v0 }
  0x99   : > { %v397_v22 = vpop.permute.xlu0 %396 }
  0x9a   : > { %981 = vmatpush3.bf16.msra.mxu0 %v331_v15  ;;  %993 = vmatpush3.bf16.msra.mxu1 %v397_v22  ;;  %v463_v23 = vpop.permute.xlu1 %462 }
  0x9b   : > { %982 = vmatprep.subr.bf16.mxu0 %v1102_v0  ;;  %994 = vmatprep.subr.bf16.mxu1 %v1102_v0 }
  0x9d   : > { %v395_v24 = vpop.permute.xlu0 %394 }
  0x9e   : > { %983 = vmatpush3.bf16.msra.mxu0 %v329_v17  ;;  %995 = vmatpush3.bf16.msra.mxu1 %v395_v24  ;;  %v461_v27 = vpop.permute.xlu1 %460 }
  0x9f   : > { %1000 = vmatprep.subr.bf16.mxu0 %v1102_v0  ;;  %1012 = vmatprep.subr.bf16.mxu1 %v1102_v0 }
  0xa1   : > { %985 = vmatmul.mubr.msk.bf16.vlgmr.msra.gmra.mxu0 %vm222_vm1, %v1087_v25  ;;  %v533_v28 = vpop.permute.xlu0 %532  ;;  %997 = vmatmul.mubr.msk.bf16.vlgmr.msra.gmra.mxu1 %vm222_vm1, %v1088_v26 }
  0xa2   : > { %1001 = vmatpush3.bf16.msra.mxu0 %v467_v19  ;;  %1013 = vmatpush3.bf16.msra.mxu1 %v533_v28  ;;  %v599_v29 = vpop.permute.xlu1 %598 }
  0xa3   : > { %1002 = vmatprep.subr.bf16.mxu0 %v1102_v0  ;;  %1014 = vmatprep.subr.bf16.mxu1 %v1102_v0 }
  0xa4   : > { %1008 = vmatprep.mubr.msk.bf16.mxu0 %vm1104_vm0, %v1102_v0  ;;  %1020 = vmatprep.mubr.msk.bf16.mxu1 %vm1104_vm0, %v1102_v0 }
  0xa5   : > { %v531_v30 = vpop.permute.xlu0 %530 }
  0xa6   : > { %1003 = vmatpush3.bf16.msra.mxu0 %v465_v21  ;;  %1015 = vmatpush3.bf16.msra.mxu1 %v531_v30  ;;  %v597_v31 = vpop.permute.xlu1 %596 }
  0xa7   : > { %1004 = vmatprep.subr.bf16.mxu0 %v1102_v0  ;;  %1016 = vmatprep.subr.bf16.mxu1 %v1102_v0 }
  0xa9   : > { %v529_v32 = vpop.permute.xlu0 %528 }
  0xaa   : > { %1005 = vmatpush3.bf16.msra.mxu0 %v463_v23  ;;  %1017 = vmatpush3.bf16.msra.mxu1 %v529_v32  ;;  %v595_v36 = vpop.permute.xlu1 %594 }
  0xab   : > { %1006 = vmatprep.subr.bf16.mxu0 %v1102_v0  ;;  %1018 = vmatprep.subr.bf16.mxu1 %v1102_v0 }
  0xad   : > { %v527_v33 = vpop.permute.xlu0 %526 }
  0xae   : > { %1007 = vmatpush3.bf16.msra.mxu0 %v461_v27  ;;  %1019 = vmatpush3.bf16.msra.mxu1 %v527_v33  ;;  %v593_v38 = vpop.permute.xlu1 %592 }
  0xaf   : > { %1024 = vmatprep.subr.bf16.mxu0 %v1102_v0  ;;  %1036 = vmatprep.subr.bf16.mxu1 %v1102_v0 }
  0xb1   : > { %1009 = vmatmul.mubr.msk.bf16.vlgmr.msra.gmra.mxu0 %vm222_vm1, %v1089_v34  ;;  %v665_v37 = vpop.permute.xlu0 %664  ;;  %1021 = vmatmul.mubr.msk.bf16.vlgmr.msra.gmra.mxu1 %vm222_vm1, %v1090_v35 }
  0xb2   : > { %1025 = vmatpush3.bf16.msra.mxu0 %v599_v29  ;;  %1037 = vmatpush3.bf16.msra.mxu1 %v665_v37  ;;  %v731_v41 = vpop.permute.xlu1 %730 }
  0xb3   : > { %1026 = vmatprep.subr.bf16.mxu0 %v1102_v0  ;;  %1038 = vmatprep.subr.bf16.mxu1 %v1102_v0 }
  0xb4   : > { %1032 = vmatprep.mubr.msk.bf16.mxu0 %vm1104_vm0, %v1102_v0  ;;  %1044 = vmatprep.mubr.msk.bf16.mxu1 %vm1104_vm0, %v1102_v0 }
  0xb5   : > { %v663_v39 = vpop.permute.xlu0 %662 }
  0xb6   : > { %1027 = vmatpush3.bf16.msra.mxu0 %v597_v31  ;;  %1039 = vmatpush3.bf16.msra.mxu1 %v663_v39  ;;  %v729_v45 = vpop.permute.xlu1 %728 }
  0xb7   : > { %1028 = vmatprep.subr.bf16.mxu0 %v1102_v0  ;;  %1040 = vmatprep.subr.bf16.mxu1 %v1102_v0 }
  0xb9   : > { %v661_v40 = vpop.permute.xlu0 %660 }
  0xba   : > { %1029 = vmatpush3.bf16.msra.mxu0 %v595_v36  ;;  %1041 = vmatpush3.bf16.msra.mxu1 %v661_v40  ;;  %v727_v46 = vpop.permute.xlu1 %726 }
  0xbb   : > { %1030 = vmatprep.subr.bf16.mxu0 %v1102_v0  ;;  %1042 = vmatprep.subr.bf16.mxu1 %v1102_v0 }
  0xbd   : > { %v659_v42 = vpop.permute.xlu0 %658 }
  0xbe   : > { %1031 = vmatpush3.bf16.msra.mxu0 %v593_v38  ;;  %1043 = vmatpush3.bf16.msra.mxu1 %v659_v42  ;;  %v725_v47 = vpop.permute.xlu1 %724 }
  0xbf   : > { %1048 = vmatprep.subr.bf16.mxu0 %v1102_v0 }
  0xc1   : > { %1033 = vmatmul.mubr.msk.bf16.vlgmr.msra.gmra.mxu0 %vm222_vm1, %v1091_v43  ;;  %1045 = vmatmul.mubr.msk.bf16.vlgmr.msra.gmra.mxu1 %vm222_vm1, %v1092_v44 }
  0xc2   : > { %1049 = vmatpush3.bf16.msra.mxu0 %v731_v41  ;;  %1056 = vmatprep.mubr.msk.bf16.mxu0 %vm1104_vm0, %v1102_v0 }
  0xc3   : > { %1050 = vmatprep.subr.bf16.mxu0 %v1102_v0 }
  0xc6   : > { %1051 = vmatpush3.bf16.msra.mxu0 %v729_v45 }
  0xc7   : > { %1052 = vmatprep.subr.bf16.mxu0 %v1102_v0 }
  0xca   : > { %1053 = vmatpush3.bf16.msra.mxu0 %v727_v46  ;;  %v787_v31 = vpop.permute.xlu0 %786 }
  0xcb   : > { %1054 = vmatprep.subr.bf16.mxu0 %v1102_v0  ;;  %v792_v37 = vpop.permute.xlu1 %791 }
  0xce   : > { %1055 = vmatpush3.bf16.msra.mxu0 %v725_v47 }
  0xd1   : > { %1057 = vmatmul.mubr.msk.bf16.vlgmr.msra.gmra.mxu0 %vm222_vm1, %v1093_v48 }
  0xde   : > { %v313_v49 = vpop.f32.mrf.mxu1 }
  0xe0   : > { %v974_v50 = vpop.f32.mrf.mxu1 }
  0xe2   : > { %v316_v51 = vpop.f32.mrf.mxu1 }
  0xe4   : > { %v975_v52 = vpop.f32.mrf.mxu1 }
 0x151   : > { %v260_v53 = vpop.f32.mrf.mxu0 }
 0x152   : > { %v314_v9 = vadd.f32 %v313_v49, %v260_v53 }
 0x153   : > { %v962_v54 = vpop.f32.mrf.mxu0 }
 0x155   : > { %v263_v55 = vpop.f32.mrf.mxu0 }
 0x156   : > { %v317_v13 = vadd.f32 %v316_v51, %v263_v55 }
 0x157   : > { %v963_v56 = vpop.f32.mrf.mxu0 }
 0x161   : > { %v377_v57 = vpop.f32.mrf.mxu0  ;;  %v443_v58 = vpop.f32.mrf.mxu1 }
 0x162   : > { %v384_v10 = vadd.f32 %v377_v57, %v314_v9 }
 0x163   : > { %v986_v59 = vpop.f32.mrf.mxu0  ;;  %v998_v60 = vpop.f32.mrf.mxu1 }
 0x164   : > { %v450_v16 = vadd.f32 %v443_v58, %v384_v10 }
 0x165   : > { %v380_v61 = vpop.f32.mrf.mxu0  ;;  %v446_v62 = vpop.f32.mrf.mxu1 }
 0x166   : > { %v385_v17 = vadd.f32 %v380_v61, %v317_v13 }
 0x167   : > { %v987_v63 = vpop.f32.mrf.mxu0  ;;  %v999_v0 = vpop.f32.mrf.mxu1 }
 0x168   : > { %v451_v23 = vadd.f32 %v446_v62, %v385_v17 }
 0x171   : > { %v509_v1 = vpop.f32.mrf.mxu0  ;;  %v575_v2 = vpop.f32.mrf.mxu1 }
 0x172   : > { %v516_v20 = vadd.f32 %v509_v1, %v450_v16 }
 0x173   : > { %v1010_v3 = vpop.f32.mrf.mxu0  ;;  %v1022_v4 = vpop.f32.mrf.mxu1 }
 0x174   : > { %v582_v24 = vadd.f32 %v575_v2, %v516_v20 }
 0x175   : > { %v512_v5 = vpop.f32.mrf.mxu0  ;;  %v578_v6 = vpop.f32.mrf.mxu1 }
 0x176   : > { %v517_v25 = vadd.f32 %v512_v5, %v451_v23 }
 0x177   : > { %v1011_v7 = vpop.f32.mrf.mxu0  ;;  %v1023_v8 = vpop.f32.mrf.mxu1 }
 0x178   : > { %v583_v27 = vadd.f32 %v578_v6, %v517_v25 }
 0x181   : > { %v641_v11 = vpop.f32.mrf.mxu0  ;;  %v707_v12 = vpop.f32.mrf.mxu1 }
 0x182   : > { %v648_v26 = vadd.f32 %v641_v11, %v582_v24 }
 0x183   : > { %v1034_v14 = vpop.f32.mrf.mxu0  ;;  %v1046_v15 = vpop.f32.mrf.mxu1 }
 0x184   : > { %v714_v28 = vadd.f32 %v707_v12, %v648_v26 }
 0x185   : > { %v644_v18 = vpop.f32.mrf.mxu0  ;;  %v710_v19 = vpop.f32.mrf.mxu1 }
 0x186   : > { %v649_v29 = vadd.f32 %v644_v18, %v583_v27 }
 0x187   : > { %v1035_v21 = vpop.f32.mrf.mxu0  ;;  %v1047_v22 = vpop.f32.mrf.mxu1 }
 0x188   : > { %v715_v34 = vadd.f32 %v710_v19, %v649_v29 }
 0x191   : > { %v773_v30 = vpop.f32.mrf.mxu0 }
 0x192   : > { %v780_v32 = vadd.f32 %v773_v30, %v714_v28 }
 0x193   : > { %v1058_v33 = vpop.f32.mrf.mxu0 }
 0x194   : > { %v794_v35 = vadd.f32 %v787_v31, %v780_v32 }
 0x195   : > { %v776_v36 = vpop.f32.mrf.mxu0 }
 0x196   : > { %v796_v38 = vmax.f32 %v794_v35, 0.0  ;;  %v781_v39 = vadd.f32 %v776_v36, %v715_v34 }
 0x197   : > { %v1059_v40 = vpop.f32.mrf.mxu0 }
 0x198   : > { %799 = vst.msk [vmem:[%s170_s26] sm:$0xff] %vm798_vm2, %v796_v38  ;;  %v795_v41 = vadd.f32 %v792_v37, %v781_v39 }
 0x19a   : > { %v797_v42 = vmax.f32 %v795_v41, 0.0 }
 0x19c   : > { %800 = vst.msk [vmem:[%s170_s26 + $0x8] sm:$0xff] %vm798_vm2, %v797_v42 }
 0x19d PF: > { %s13_s12 = sadd.s32 1, %s1100_s12  }
 0x19e   : > { %p10_p4 = scmp.ge.s32.totalorder %s13_s12, 4  }
 0x1a0   :  { %12 = sbr.rel (!%p10_p4) target bundleno = 1 (0x1), region = 70 }

// kernel: scan_only_net.33
= control target key start
LH: loop header
LB: loop body
LE: loop exit
PB: predicated region body
PF: predicated region fallthrough
CT: control target
= control target key end

     0   :  { %s899_s12 = smov 0   ;;  %s995_s0 = inlined_call_operand.vmem [shape: bf16[2,32,102], index: 0, kind: input, shape index: {}]   ;;  %s996_s1 = inlined_call_operand.vmem [shape: bf16[9,8,32], index: 1, kind: input, shape index: {}]   ;;  %s997_s2 = inlined_call_operand.vmem [shape: f32[8,1], index: 2, kind: input, shape index: {}]   ;;  %s998_s3 = inlined_call_operand.vmem [shape: f32[2,8,80], index: 3, kind: output, shape index: {}]  }
   0x1 LB: > { %s709_s13 = sadd.s32 4294967295, %s866_s12   ;;  %p713_p0 = scmp.ge.s32.totalorder %s866_s12, 1  ;;  %s866_s12 = sphi %s899_s12, %s13_s12  }
   0x2   : > { %p137_p1 = scmp.lt.s32.totalorder %s866_s12, 3 }
   0x4   : > { %p138_p2 = pnand %p713_p0, %p137_p1 }
   0x5   : > { %p160_p3 = scmp.lt.s32.totalorder (!%p138_p2), %s709_s13, 1  ;;  %s870_s18 = smov (!%p138_p2), 127  }
   0x6   : > { %141 = sbr.rel (%p138_p2) target bundleno = 369 (0x171), region = 32  ;;  %s871_s19 = smov (!%p138_p2), 126  }
   0x7   : > { %s872_s22 = smov (!%p138_p2), 118   ;;  %s873_s23 = smov (!%p138_p2), 117  }
   0x8   : > { %s874_s24 = smov (!%p138_p2), 116   ;;  %s875_s25 = smov (!%p138_p2), 108  }
   0x9   : > { %s876_s26 = smov (!%p138_p2), 107   ;;  %s877_s27 = smov (!%p138_p2), 106  }
   0xb   : > { %v868_v0 = vmov 0.0   ;;  %s1000_s13 = smov (!%p160_p3, %s709_s13), 1  ;;  %vm869_vm0 = vmmov 0   ;;  %vm193_vm1 = vcmask 261120   ;;  %v174_v3 = vld [vmem:[%s996_s1] sm:$0xf] }
   0xc   : > { %766 = vmatprep.subr.bf16.mxu0 %v868_v0  ;;  %774 = vmatprep.subr.bf16.mxu1 %v868_v0  ;;  %s738_s14 = sshll.u32 %s1000_s13, 4  ;;  %v878_v4 = vmov 0   ;;  %v646_v5 = vld [vmem:[%s997_s2] sm:$0xff]  ;;  %v722_v15 = vld [vmem:[%s996_s1 + $0x8] sm:$0xf]  ;;  %s716_s21 = sshll.u32 %s1000_s13, 3 }
   0xd   : > { %770 = vmatprep.mubr.msk.bf16.mxu0 %vm869_vm0, %v868_v0  ;;  %778 = vmatprep.mubr.msk.bf16.mxu1 %vm869_vm0, %v868_v0  ;;  %s164_s17 = scalar_lea.vmem %s995_s0, %s738_s14  ;;  %v717_v10 = vld [vmem:[%s996_s1 + $0x4] sm:$0xf]  ;;  %v724_v16 = vld [vmem:[%s996_s1 + $0xc] sm:$0xf]  ;;  %v726_v20 = vld [vmem:[%s996_s1 + $0x10] sm:$0xf] }
   0xe   : > { %v858_v1 = vld [vmem:[%s164_s17 + $0x8] sm:$0xff]   ;;  %v859_v2 = vld [vmem:[%s164_s17] sm:$0xff]   ;;  %857 = vset.pattern.permute.xlu0 %v878_v4  ;;  %v728_v21 = vld [vmem:[%s996_s1 + $0x14] sm:$0xf]  ;;  %vm654_vm2 = vcmask 654336  }
   0xf   : > { %189 = vrot.lane.b32.xlu0 %v858_v1, %s870_s18  ;;  %286 = vrot.lane.b32.xlu1 %v858_v1, %s871_s19  ;;  %v730_v26 = vld [vmem:[%s996_s1 + $0x18] sm:$0xf]  ;;  %v732_v27 = vld [vmem:[%s996_s1 + $0x1c] sm:$0xf] }
  0x10   : > { %775 = vmatpush3.bf16.msra.mxu1 %v858_v1  ;;  %v734_v29 = vld [vmem:[%s996_s1 + $0x20] sm:$0xf] }
  0x11   : > { %776 = vmatprep.subr.bf16.mxu1 %v868_v0 }
  0x13   : > { %187 = vrot.lane.b32.xlu0 %v859_v2, %s870_s18  ;;  %284 = vrot.lane.b32.xlu1 %v859_v2, %s871_s19 }
  0x14   : > { %777 = vmatpush3.bf16.msra.mxu1 %v859_v2 }
  0x15   : > { %790 = vmatprep.subr.bf16.mxu1 %v868_v0 }
  0x17   : > { %338 = vrot.lane.b32.xlu0 %v858_v1, %s872_s22  ;;  %390 = vrot.lane.b32.xlu1 %v858_v1, %s873_s23 }
  0x18   : > { %779 = vmatmul.mubr.msk.bf16.vlgmr.msra.gmra.mxu1 %vm193_vm1, %v174_v3 }
  0x19   : > { %794 = vmatprep.mubr.msk.bf16.mxu1 %vm869_vm0, %v868_v0 }
  0x1b   : > { %336 = vrot.lane.b32.xlu0 %v859_v2, %s872_s22  ;;  %388 = vrot.lane.b32.xlu1 %v859_v2, %s873_s23 }
  0x1f   : > { %442 = vrot.lane.b32.xlu0 %v858_v1, %s874_s24  ;;  %494 = vrot.lane.b32.xlu1 %v858_v1, %s875_s25 }
  0x23   : > { %440 = vrot.lane.b32.xlu0 %v859_v2, %s874_s24  ;;  %492 = vrot.lane.b32.xlu1 %v859_v2, %s875_s25  ;;  %s168_s24 = scalar_lea.vmem %s998_s3, %s716_s21 }
  0x27   : > { %546 = vrot.lane.b32.xlu0 %v858_v1, %s876_s26  ;;  %598 = vrot.lane.b32.xlu1 %v858_v1, %s877_s27 }
  0x2b   : > { %544 = vrot.lane.b32.xlu0 %v859_v2, %s876_s26  ;;  %596 = vrot.lane.b32.xlu1 %v859_v2, %s877_s27 }
  0x2f   : > { %649 = vperm.xlu0 %857, %v646_v5  }
  0x81   : > { %v190_v6 = vpop.permute.xlu0 %189  ;;  %v287_v7 = vpop.permute.xlu1 %286 }
  0x82   : > { %767 = vmatpush3.bf16.msra.mxu0 %v190_v6 }
  0x83   : > { %768 = vmatprep.subr.bf16.mxu0 %v868_v0 }
  0x85   : > { %v188_v8 = vpop.permute.xlu0 %187  ;;  %v285_v9 = vpop.permute.xlu1 %284 }
  0x86   : > { %769 = vmatpush3.bf16.msra.mxu0 %v188_v8 }
  0x87   : > { %782 = vmatprep.subr.bf16.mxu0 %v868_v0 }
  0x89   : > { %771 = vmatmul.mubr.msk.bf16.vlgmr.msra.gmra.mxu0 %vm193_vm1, %v717_v10  ;;  %v339_v11 = vpop.permute.xlu0 %338  ;;  %v391_v12 = vpop.permute.xlu1 %390 }
  0x8a   : > { %783 = vmatpush3.bf16.msra.mxu0 %v287_v7  ;;  %791 = vmatpush3.bf16.msra.mxu1 %v339_v11 }
  0x8b   : > { %784 = vmatprep.subr.bf16.mxu0 %v868_v0  ;;  %792 = vmatprep.subr.bf16.mxu1 %v868_v0 }
  0x8c   : > { %786 = vmatprep.mubr.msk.bf16.mxu0 %vm869_vm0, %v868_v0 }
  0x8d   : > { %v337_v13 = vpop.permute.xlu0 %336  ;;  %v389_v14 = vpop.permute.xlu1 %388 }
  0x8e   : > { %785 = vmatpush3.bf16.msra.mxu0 %v285_v9  ;;  %793 = vmatpush3.bf16.msra.mxu1 %v337_v13 }
  0x8f   : > { %798 = vmatprep.subr.bf16.mxu0 %v868_v0  ;;  %806 = vmatprep.subr.bf16.mxu1 %v868_v0 }
  0x91   : > { %787 = vmatmul.mubr.msk.bf16.vlgmr.msra.gmra.mxu0 %vm193_vm1, %v722_v15  ;;  %v443_v17 = vpop.permute.xlu0 %442  ;;  %795 = vmatmul.mubr.msk.bf16.vlgmr.msra.gmra.mxu1 %vm193_vm1, %v724_v16  ;;  %v495_v18 = vpop.permute.xlu1 %494 }
  0x92   : > { %799 = vmatpush3.bf16.msra.mxu0 %v391_v12  ;;  %807 = vmatpush3.bf16.msra.mxu1 %v443_v17 }
  0x93   : > { %800 = vmatprep.subr.bf16.mxu0 %v868_v0  ;;  %808 = vmatprep.subr.bf16.mxu1 %v868_v0 }
  0x94   : > { %802 = vmatprep.mubr.msk.bf16.mxu0 %vm869_vm0, %v868_v0  ;;  %810 = vmatprep.mubr.msk.bf16.mxu1 %vm869_vm0, %v868_v0 }
  0x95   : > { %v441_v19 = vpop.permute.xlu0 %440  ;;  %v493_v22 = vpop.permute.xlu1 %492 }
  0x96   : > { %801 = vmatpush3.bf16.msra.mxu0 %v389_v14  ;;  %809 = vmatpush3.bf16.msra.mxu1 %v441_v19 }
  0x97   : > { %814 = vmatprep.subr.bf16.mxu0 %v868_v0  ;;  %822 = vmatprep.subr.bf16.mxu1 %v868_v0 }
  0x99   : > { %803 = vmatmul.mubr.msk.bf16.vlgmr.msra.gmra.mxu0 %vm193_vm1, %v726_v20  ;;  %v547_v23 = vpop.permute.xlu0 %546  ;;  %811 = vmatmul.mubr.msk.bf16.vlgmr.msra.gmra.mxu1 %vm193_vm1, %v728_v21  ;;  %v599_v25 = vpop.permute.xlu1 %598 }
  0x9a   : > { %815 = vmatpush3.bf16.msra.mxu0 %v495_v18  ;;  %823 = vmatpush3.bf16.msra.mxu1 %v547_v23 }
  0x9b   : > { %816 = vmatprep.subr.bf16.mxu0 %v868_v0  ;;  %824 = vmatprep.subr.bf16.mxu1 %v868_v0 }
  0x9c   : > { %818 = vmatprep.mubr.msk.bf16.mxu0 %vm869_vm0, %v868_v0  ;;  %826 = vmatprep.mubr.msk.bf16.mxu1 %vm869_vm0, %v868_v0 }
  0x9d   : > { %v545_v24 = vpop.permute.xlu0 %544  ;;  %v597_v28 = vpop.permute.xlu1 %596 }
  0x9e   : > { %817 = vmatpush3.bf16.msra.mxu0 %v493_v22  ;;  %825 = vmatpush3.bf16.msra.mxu1 %v545_v24 }
  0x9f   : > { %830 = vmatprep.subr.bf16.mxu0 %v868_v0 }
  0xa1   : > { %819 = vmatmul.mubr.msk.bf16.vlgmr.msra.gmra.mxu0 %vm193_vm1, %v730_v26  ;;  %827 = vmatmul.mubr.msk.bf16.vlgmr.msra.gmra.mxu1 %vm193_vm1, %v732_v27 }
  0xa2   : > { %831 = vmatpush3.bf16.msra.mxu0 %v599_v25  ;;  %834 = vmatprep.mubr.msk.bf16.mxu0 %vm869_vm0, %v868_v0 }
  0xa3   : > { %832 = vmatprep.subr.bf16.mxu0 %v868_v0 }
  0xa6   : > { %833 = vmatpush3.bf16.msra.mxu0 %v597_v28 }
  0xa9   : > { %835 = vmatmul.mubr.msk.bf16.vlgmr.msra.gmra.mxu0 %vm193_vm1, %v734_v29 }
  0xaa   : > { %v650_v6 = vpop.permute.xlu0 %649 }
  0xd8   : > { %v276_v30 = vpop.f32.mrf.mxu1 }
  0xda   : > { %v780_v31 = vpop.f32.mrf.mxu1 }
  0xdc   : > { %v279_v32 = vpop.f32.mrf.mxu1 }
  0xde   : > { %v781_v33 = vpop.f32.mrf.mxu1 }
 0x149   : > { %v231_v34 = vpop.f32.mrf.mxu0 }
 0x14a   : > { %v277_v44 = vadd.f32 %v276_v30, %v231_v34 }
 0x14b   : > { %v772_v35 = vpop.f32.mrf.mxu0 }
 0x14d   : > { %v234_v36 = vpop.f32.mrf.mxu0 }
 0x14f   : > { %v773_v37 = vpop.f32.mrf.mxu0 }
 0x151   : > { %v327_v38 = vpop.f32.mrf.mxu0  ;;  %v379_v39 = vpop.f32.mrf.mxu1 }
 0x152   : > { %v333_v47 = vadd.f32 %v327_v38, %v277_v44 }
 0x153   : > { %v788_v40 = vpop.f32.mrf.mxu0  ;;  %v796_v41 = vpop.f32.mrf.mxu1 }
 0x154   : > { %v385_v52 = vadd.f32 %v379_v39, %v333_v47 }
 0x155   : > { %v330_v42 = vpop.f32.mrf.mxu0  ;;  %v382_v43 = vpop.f32.mrf.mxu1 }
 0x157   : > { %v789_v45 = vpop.f32.mrf.mxu0  ;;  %v797_v46 = vpop.f32.mrf.mxu1 }
 0x159   : > { %v431_v48 = vpop.f32.mrf.mxu0  ;;  %v483_v49 = vpop.f32.mrf.mxu1 }
 0x15a   : > { %v437_v55 = vadd.f32 %v431_v48, %v385_v52 }
 0x15b   : > { %v804_v50 = vpop.f32.mrf.mxu0  ;;  %v812_v51 = vpop.f32.mrf.mxu1 }
 0x15c   : > { %v489_v60 = vadd.f32 %v483_v49, %v437_v55 }
 0x15d   : > { %v434_v53 = vpop.f32.mrf.mxu0  ;;  %v486_v54 = vpop.f32.mrf.mxu1 }
 0x15f   : > { %v805_v56 = vpop.f32.mrf.mxu0  ;;  %v813_v57 = vpop.f32.mrf.mxu1 }
 0x161   : > { %v535_v58 = vpop.f32.mrf.mxu0  ;;  %v587_v59 = vpop.f32.mrf.mxu1 }
 0x162   : > { %v541_v63 = vadd.f32 %v535_v58, %v489_v60 }
 0x163   : > { %v820_v61 = vpop.f32.mrf.mxu0  ;;  %v828_v62 = vpop.f32.mrf.mxu1 }
 0x164   : > { %v593_v4 = vadd.f32 %v587_v59, %v541_v63 }
 0x165   : > { %v538_v0 = vpop.f32.mrf.mxu0  ;;  %v590_v1 = vpop.f32.mrf.mxu1 }
 0x167   : > { %v821_v2 = vpop.f32.mrf.mxu0  ;;  %v829_v3 = vpop.f32.mrf.mxu1 }
 0x169   : > { %v639_v5 = vpop.f32.mrf.mxu0 }
 0x16a   : > { %v645_v7 = vadd.f32 %v639_v5, %v593_v4 }
 0x16b   : > { %v836_v8 = vpop.f32.mrf.mxu0 }
 0x16c   : > { %v652_v9 = vadd.f32 %v650_v6, %v645_v7 }
 0x16d   : > { %v642_v10 = vpop.f32.mrf.mxu0 }
 0x16e   : > { %v653_v11 = vmax.f32 %v652_v9, 0.0 }
 0x16f   : > { %v837_v12 = vpop.f32.mrf.mxu0 }
 0x170   : > { %655 = vst.msk [vmem:[%s168_s24] sm:$0xff] %vm654_vm2, %v653_v11 }
 0x171 PF: > { %s13_s12 = sadd.s32 1, %s866_s12  }
 0x172   : > { %p10_p4 = scmp.ge.s32.totalorder %s13_s12, 4  }
 0x174   :  { %12 = sbr.rel (!%p10_p4) target bundleno = 1 (0x1), region = 70 }

// kernel: scan_only_net.34
= control target key start
LH: loop header
LB: loop body
LE: loop exit
PB: predicated region body
PF: predicated region fallthrough
CT: control target
= control target key end

     0   :  { %s849_s12 = smov 0   ;;  %s945_s0 = inlined_call_operand.vmem [shape: bf16[2,8,102], index: 0, kind: input, shape index: {}]   ;;  %s946_s1 = inlined_call_operand.vmem [shape: bf16[9,8,8], index: 1, kind: input, shape index: {}]   ;;  %s947_s2 = inlined_call_operand.vmem [shape: f32[8,1], index: 2, kind: input, shape index: {}]   ;;  %s948_s3 = inlined_call_operand.vmem [shape: f32[2,8,80], index: 3, kind: output, shape index: {}]  }
   0x1 LB: > { %s690_s13 = sadd.s32 4294967295, %s816_s12   ;;  %p694_p0 = scmp.ge.s32.totalorder %s816_s12, 1  ;;  %s816_s12 = sphi %s849_s12, %s13_s12  }
   0x2   : > { %p136_p1 = scmp.lt.s32.totalorder %s816_s12, 3 }
   0x4   : > { %p137_p2 = pnand %p694_p0, %p136_p1 }
   0x5   : > { %p158_p3 = scmp.lt.s32.totalorder (!%p137_p2), %s690_s13, 1  ;;  %s820_s20 = smov (!%p137_p2), 127  }
   0x6   : > { %140 = sbr.rel (%p137_p2) target bundleno = 368 (0x170), region = 32  ;;  %s821_s21 = smov (!%p137_p2), 118  }
   0x7   : > { %s822_s22 = smov (!%p137_p2), 126   ;;  %s823_s23 = smov (!%p137_p2), 117  }
   0x8   : > { %s824_s24 = smov (!%p137_p2), 116   ;;  %s825_s25 = smov (!%p137_p2), 108  }
   0x9   : > { %s826_s26 = smov (!%p137_p2), 107   ;;  %s827_s27 = smov (!%p137_p2), 106  }
   0xb   : > { %v818_v0 = vmov 0.0   ;;  %s950_s13 = smov (!%p158_p3, %s690_s13), 1  ;;  %vm819_vm0 = vmmov 0   ;;  %vm180_vm1 = vcmask 1043456   ;;  %vm176_vm2 = vcmask 64512   ;;  %v627_v5 = vld [vmem:[%s947_s2] sm:$0xff] }
   0xc   : > { %735 = vmatprep.subr.bf16.mxu0 %v818_v0  ;;  %741 = vmatprep.subr.bf16.mxu1 %v818_v0  ;;  %s695_s14 = sshll.u32 %s950_s13, 2  ;;  %v168_v4 = vld [vmem:[%s946_s1] sm:$0xf]  ;;  %v828_v6 = vmov 0   ;;  %v697_v11 = vld [vmem:[%s946_s1 + $0x4] sm:$0xf] }
   0xd   : > { %737 = vmatprep.mubr.msk.bf16.mxu0 %vm819_vm0, %v818_v0  ;;  %743 = vmatprep.mubr.msk.bf16.mxu1 %vm819_vm0, %v818_v0  ;;  %s161_s17 = scalar_lea.vmem %s945_s0, %s695_s14  ;;  %v703_v12 = vld [vmem:[%s946_s1 + $0xc] sm:$0xf]  ;;  %v701_v18 = vld [vmem:[%s946_s1 + $0x8] sm:$0xf]  ;;  %v707_v19 = vld [vmem:[%s946_s1 + $0x14] sm:$0xf] }
   0xe   : > { %v167_v1 = vld [vmem:[%s161_s17] sm:$0xf]  ;;  %808 = vset.pattern.permute.xlu0 %v828_v6  ;;  %v705_v24 = vld [vmem:[%s946_s1 + $0x10] sm:$0xf]  ;;  %v711_v25 = vld [vmem:[%s946_s1 + $0x1c] sm:$0xf] }
   0xf   : > { %v698_v2 = vcombine.low %v167_v1, %v167_v1  ;;  %v228_v3 = vsel %vm180_vm1, %v167_v1, 0  ;;  %v709_v28 = vld [vmem:[%s946_s1 + $0x18] sm:$0xf]  ;;  %v713_v30 = vld [vmem:[%s946_s1 + $0x20] sm:$0xf]  ;;  %vm635_vm3 = vcmask 654336  }
  0x10   : > { %742 = vmatpush3.bf16.msra.mxu1 %v228_v3 }
  0x11   : > { %174 = vrot.lane.b32.xlu0 %v698_v2, %s820_s20  ;;  %323 = vrot.lane.b32.xlu1 %v698_v2, %s821_s21  ;;  %s696_s21 = sshll.u32 %s950_s13, 3 }
  0x12   : > { %753 = vmatprep.subr.bf16.mxu1 %v818_v0 }
  0x13   : > { %744 = vmatmul.mubr.msk.bf16.vlgmr.msra.gmra.mxu1 %vm176_vm2, %v168_v4 }
  0x14   : > { %755 = vmatprep.mubr.msk.bf16.mxu1 %vm819_vm0, %v818_v0 }
  0x15   : > { %272 = vrot.lane.b32.xlu0 %v698_v2, %s822_s22  ;;  %374 = vrot.lane.b32.xlu1 %v698_v2, %s823_s23 }
  0x19   : > { %425 = vrot.lane.b32.xlu0 %v698_v2, %s824_s24  ;;  %476 = vrot.lane.b32.xlu1 %v698_v2, %s825_s25  ;;  %s165_s24 = scalar_lea.vmem %s948_s3, %s696_s21 }
  0x1d   : > { %527 = vrot.lane.b32.xlu0 %v698_v2, %s826_s26  ;;  %578 = vrot.lane.b32.xlu1 %v698_v2, %s827_s27 }
  0x21   : > { %630 = vperm.xlu0 %808, %v627_v5  }
  0x83   : > { %v175_v7 = vpop.permute.xlu0 %174  ;;  %v324_v8 = vpop.permute.xlu1 %323 }
  0x84   : > { %v182_v9 = vsel %vm180_vm1, %v175_v7, 0  ;;  %v329_v10 = vsel %vm180_vm1, %v324_v8, 0 }
  0x85   : > { %736 = vmatpush3.bf16.msra.mxu0 %v182_v9  ;;  %754 = vmatpush3.bf16.msra.mxu1 %v329_v10 }
  0x86   : > { %747 = vmatprep.subr.bf16.mxu0 %v818_v0  ;;  %765 = vmatprep.subr.bf16.mxu1 %v818_v0 }
  0x87   : > { %v273_v13 = vpop.permute.xlu0 %272  ;;  %v375_v15 = vpop.permute.xlu1 %374 }
  0x88   : > { %v278_v14 = vsel %vm180_vm1, %v273_v13, 0  ;;  %738 = vmatmul.mubr.msk.bf16.vlgmr.msra.gmra.mxu0 %vm176_vm2, %v697_v11  ;;  %756 = vmatmul.mubr.msk.bf16.vlgmr.msra.gmra.mxu1 %vm176_vm2, %v703_v12  ;;  %v380_v20 = vsel %vm180_vm1, %v375_v15, 0 }
  0x89   : > { %748 = vmatpush3.bf16.msra.mxu0 %v278_v14  ;;  %749 = vmatprep.mubr.msk.bf16.mxu0 %vm819_vm0, %v818_v0 }
  0x8a   : > { %759 = vmatprep.subr.bf16.mxu0 %v818_v0  ;;  %767 = vmatprep.mubr.msk.bf16.mxu1 %vm819_vm0, %v818_v0 }
  0x8b   : > { %v426_v16 = vpop.permute.xlu0 %425  ;;  %v477_v23 = vpop.permute.xlu1 %476 }
  0x8c   : > { %v431_v17 = vsel %vm180_vm1, %v426_v16, 0  ;;  %v482_v26 = vsel %vm180_vm1, %v477_v23, 0 }
  0x8d   : > { %766 = vmatpush3.bf16.msra.mxu1 %v431_v17 }
  0x8e   : > { %777 = vmatprep.subr.bf16.mxu1 %v818_v0 }
  0x8f   : > { %v528_v21 = vpop.permute.xlu0 %527  ;;  %v579_v27 = vpop.permute.xlu1 %578 }
  0x90   : > { %750 = vmatmul.mubr.msk.bf16.vlgmr.msra.gmra.mxu0 %vm176_vm2, %v701_v18  ;;  %768 = vmatmul.mubr.msk.bf16.vlgmr.msra.gmra.mxu1 %vm176_vm2, %v707_v19  ;;  %v533_v22 = vsel %vm180_vm1, %v528_v21, 0  ;;  %v584_v29 = vsel %vm180_vm1, %v579_v27, 0 }
  0x91   : > { %760 = vmatpush3.bf16.msra.mxu0 %v380_v20  ;;  %761 = vmatprep.mubr.msk.bf16.mxu0 %vm819_vm0, %v818_v0 }
  0x92   : > { %771 = vmatprep.subr.bf16.mxu0 %v818_v0  ;;  %778 = vmatpush3.bf16.msra.mxu1 %v533_v22 }
  0x93   : > { %779 = vmatprep.mubr.msk.bf16.mxu1 %vm819_vm0, %v818_v0 }
  0x98   : > { %762 = vmatmul.mubr.msk.bf16.vlgmr.msra.gmra.mxu0 %vm176_vm2, %v705_v24  ;;  %780 = vmatmul.mubr.msk.bf16.vlgmr.msra.gmra.mxu1 %vm176_vm2, %v711_v25 }
  0x99   : > { %772 = vmatpush3.bf16.msra.mxu0 %v482_v26  ;;  %773 = vmatprep.mubr.msk.bf16.mxu0 %vm819_vm0, %v818_v0 }
  0x9a   : > { %783 = vmatprep.subr.bf16.mxu0 %v818_v0 }
  0x9c   : > { %v631_v7 = vpop.permute.xlu0 %630 }
  0xa0   : > { %774 = vmatmul.mubr.msk.bf16.vlgmr.msra.gmra.mxu0 %vm176_vm2, %v709_v28 }
  0xa1   : > { %784 = vmatpush3.bf16.msra.mxu0 %v584_v29  ;;  %785 = vmatprep.mubr.msk.bf16.mxu0 %vm819_vm0, %v818_v0 }
  0xa8   : > { %786 = vmatmul.mubr.msk.bf16.vlgmr.msra.gmra.mxu0 %vm176_vm2, %v713_v30 }
  0xd3   : > { %v264_v31 = vpop.f32.mrf.mxu1 }
  0xd5   : > { %v745_v32 = vpop.f32.mrf.mxu1 }
  0xd7   : > { %v267_v33 = vpop.f32.mrf.mxu1 }
  0xd9   : > { %v746_v34 = vpop.f32.mrf.mxu1 }
 0x148   : > { %v218_v35 = vpop.f32.mrf.mxu0  ;;  %v365_v36 = vpop.f32.mrf.mxu1 }
 0x149   : > { %v265_v49 = vadd.f32 %v264_v31, %v218_v35 }
 0x14a   : > { %v739_v37 = vpop.f32.mrf.mxu0  ;;  %v757_v38 = vpop.f32.mrf.mxu1 }
 0x14c   : > { %v221_v39 = vpop.f32.mrf.mxu0  ;;  %v368_v40 = vpop.f32.mrf.mxu1 }
 0x14e   : > { %v740_v41 = vpop.f32.mrf.mxu0  ;;  %v758_v42 = vpop.f32.mrf.mxu1 }
 0x150   : > { %v314_v43 = vpop.f32.mrf.mxu0  ;;  %v467_v44 = vpop.f32.mrf.mxu1 }
 0x151   : > { %v320_v52 = vadd.f32 %v314_v43, %v265_v49 }
 0x152   : > { %v751_v45 = vpop.f32.mrf.mxu0  ;;  %v769_v46 = vpop.f32.mrf.mxu1 }
 0x153   : > { %v371_v57 = vadd.f32 %v365_v36, %v320_v52 }
 0x154   : > { %v317_v47 = vpop.f32.mrf.mxu0  ;;  %v470_v48 = vpop.f32.mrf.mxu1 }
 0x156   : > { %v752_v50 = vpop.f32.mrf.mxu0  ;;  %v770_v51 = vpop.f32.mrf.mxu1 }
 0x158   : > { %v416_v53 = vpop.f32.mrf.mxu0  ;;  %v569_v54 = vpop.f32.mrf.mxu1 }
 0x159   : > { %v422_v60 = vadd.f32 %v416_v53, %v371_v57 }
 0x15a   : > { %v763_v55 = vpop.f32.mrf.mxu0  ;;  %v781_v56 = vpop.f32.mrf.mxu1 }
 0x15b   : > { %v473_v0 = vadd.f32 %v467_v44, %v422_v60 }
 0x15c   : > { %v419_v58 = vpop.f32.mrf.mxu0  ;;  %v572_v59 = vpop.f32.mrf.mxu1 }
 0x15e   : > { %v764_v61 = vpop.f32.mrf.mxu0  ;;  %v782_v62 = vpop.f32.mrf.mxu1 }
 0x160   : > { %v518_v63 = vpop.f32.mrf.mxu0 }
 0x161   : > { %v524_v2 = vadd.f32 %v518_v63, %v473_v0 }
 0x162   : > { %v775_v1 = vpop.f32.mrf.mxu0 }
 0x163   : > { %v575_v5 = vadd.f32 %v569_v54, %v524_v2 }
 0x164   : > { %v521_v3 = vpop.f32.mrf.mxu0 }
 0x166   : > { %v776_v4 = vpop.f32.mrf.mxu0 }
 0x168   : > { %v620_v6 = vpop.f32.mrf.mxu0 }
 0x169   : > { %v626_v8 = vadd.f32 %v620_v6, %v575_v5 }
 0x16a   : > { %v787_v9 = vpop.f32.mrf.mxu0 }
 0x16b   : > { %v633_v10 = vadd.f32 %v631_v7, %v626_v8 }
 0x16c   : > { %v623_v11 = vpop.f32.mrf.mxu0 }
 0x16d   : > { %v634_v12 = vmax.f32 %v633_v10, 0.0 }
 0x16e   : > { %v788_v13 = vpop.f32.mrf.mxu0 }
 0x16f   : > { %636 = vst.msk [vmem:[%s165_s24] sm:$0xff] %vm635_vm3, %v634_v12 }
 0x170 PF: > { %s13_s12 = sadd.s32 1, %s816_s12  }
 0x171   : > { %p10_p4 = scmp.ge.s32.totalorder %s13_s12, 4  }
 0x173   :  { %12 = sbr.rel (!%p10_p4) target bundleno = 1 (0x1), region = 70 }

// kernel: scan_only_net.35
= control target key start
LH: loop header
LB: loop body
LE: loop exit
PB: predicated region body
PF: predicated region fallthrough
CT: control target
= control target key end

     0   :  { %s1328_s12 = smov 0   ;;  %s1449_s0 = inlined_call_operand.vmem [shape: bf16[2,16,326], index: 0, kind: input, shape index: {}]   ;;  %s1450_s1 = inlined_call_operand.vmem [shape: bf16[9,8,16], index: 1, kind: input, shape index: {}]   ;;  %s1451_s2 = inlined_call_operand.vmem [shape: f32[8,1], index: 2, kind: input, shape index: {}]   ;;  %s1452_s3 = inlined_call_operand.vmem [shape: f32[2,8,288], index: 3, kind: output, shape index: {}]  }
   0x1 LB: > { %s1154_s13 = sadd.s32 4294967295, %s1295_s12   ;;  %p1158_p0 = scmp.ge.s32.totalorder %s1295_s12, 1  ;;  %s1295_s12 = sphi %s1328_s12, %s13_s12  }
   0x2   : > { %p137_p1 = scmp.lt.s32.totalorder %s1295_s12, 3 }
   0x4   : > { %p138_p2 = pnand %p1158_p0, %p137_p1 }
   0x5   : > { %p161_p3 = scmp.lt.s32.totalorder (!%p138_p2), %s1154_s13, 1  ;;  %s1300_s18 = smov (!%p138_p2), 127  }
   0x6   : > { %141 = sbr.rel (%p138_p2) target bundleno = 406 (0x196), region = 32  ;;  %s1301_s19 = smov (!%p138_p2), 126  }
   0x7   : > { %s1302_s20 = smov (!%p138_p2), 110   ;;  %s1303_s21 = smov (!%p138_p2), 109  }
   0x8   : > { %s1304_s22 = smov (!%p138_p2), 108   ;;  %s1305_s23 = smov (!%p138_p2), 92  }
   0x9   : > { %s1306_s24 = smov (!%p138_p2), 91   ;;  %s1307_s25 = smov (!%p138_p2), 90  }
   0xb   : > { %v1297_v0 = vmov 0.0   ;;  %s1454_s13 = smov (!%p161_p3, %s1154_s13), 1  ;;  %vm1298_vm0 = vmmov 0   ;;  %v1299_v1 = vmov 0   ;;  %v1083_v5 = vld [vmem:[%s1451_s2] sm:$0xff]  ;;  %vm198_vm1 = vcmask 1039360  }
   0xc   : > { %1210 = vmatprep.subr.bf16.mxu1 %v1297_v0  ;;  %1212 = vmatprep.mubr.msk.bf16.mxu1 %vm1298_vm0, %v1297_v0  ;;  %s1264_s14 = smul.u32 24, %s1454_s13  ;;  %v1161_v10 = vld [vmem:[%s1450_s1 + $0x4] sm:$0xf]  ;;  %vm204_vm2 = vcmask 130048   ;;  %vm384_vm3 = vcmask 1031168   ;;  %vm485_vm4 = vcmask 900096  }
   0xd   : > { %240 = vmatprep.mubr.bf16.mxu0 %v1299_v1  ;;  %1284 = vset.pattern.permute.xlu0 %v1299_v1  ;;  %v176_v17 = vld [vmem:[%s1450_s1] sm:$0xf]  ;;  %v1169_v23 = vld [vmem:[%s1450_s1 + $0x8] sm:$0xf]  ;;  %vm586_vm5 = vcmask 891904   ;;  %vm687_vm6 = vcmask 883712  }
   0xe   : > { %s165_s17 = scalar_lea.vmem %s1449_s0, %s1264_s14  ;;  %v1172_v29 = vld [vmem:[%s1450_s1 + $0xc] sm:$0xf]  ;;  %v1175_v35 = vld [vmem:[%s1450_s1 + $0x10] sm:$0xf]  ;;  %vm788_vm7 = vcmask 752640   ;;  %vm889_vm8 = vcmask 744448  }
   0xf   : > { %v1285_v2 = vld [vmem:[%s165_s17 + $0x4] ss:$12 sps:$4 sm:$0xff]   ;;  %v1287_v3 = vld [vmem:[%s165_s17] ss:$12 sps:$4 sm:$0xff]   ;;  %v1288_v4 = vld [vmem:[%s165_s17 + $0x8] ss:$12 sps:$4 sm:$0xff]  }
  0x10   : > { %194 = vrot.lane.b32.xlu0 %v1285_v2, %s1300_s18  ;;  %192 = vrot.lane.b32.xlu1 %v1287_v3, %s1300_s18  ;;  %v1178_v41 = vld [vmem:[%s1450_s1 + $0x14] sm:$0xf]  ;;  %v1181_v46 = vld [vmem:[%s1450_s1 + $0x18] sm:$0xf]  ;;  %vm990_vm9 = vcmask 736256   ;;  %vm1097_vm10 = vcmask 261120  }
  0x11   : > { %v1184_v52 = vld [vmem:[%s1450_s1 + $0x1c] sm:$0xf]  ;;  %v1187_v54 = vld [vmem:[%s1450_s1 + $0x20] sm:$0xf] }
  0x14   : > { %196 = vrot.lane.b32.xlu0 %v1288_v4, %s1300_s18  ;;  %380 = vrot.lane.b32.xlu1 %v1285_v2, %s1301_s19 }
  0x18   : > { %382 = vrot.lane.b32.xlu0 %v1288_v4, %s1301_s19  ;;  %378 = vrot.lane.b32.xlu1 %v1287_v3, %s1301_s19 }
  0x1c   : > { %481 = vrot.lane.b32.xlu0 %v1285_v2, %s1302_s20  ;;  %483 = vrot.lane.b32.xlu1 %v1288_v4, %s1302_s20 }
  0x20   : > { %479 = vrot.lane.b32.xlu0 %v1287_v3, %s1302_s20  ;;  %582 = vrot.lane.b32.xlu1 %v1285_v2, %s1303_s21 }
  0x24   : > { %584 = vrot.lane.b32.xlu0 %v1288_v4, %s1303_s21  ;;  %580 = vrot.lane.b32.xlu1 %v1287_v3, %s1303_s21 }
  0x28   : > { %683 = vrot.lane.b32.xlu0 %v1285_v2, %s1304_s22  ;;  %685 = vrot.lane.b32.xlu1 %v1288_v4, %s1304_s22 }
  0x2c   : > { %681 = vrot.lane.b32.xlu0 %v1287_v3, %s1304_s22  ;;  %784 = vrot.lane.b32.xlu1 %v1285_v2, %s1305_s23 }
  0x30   : > { %786 = vrot.lane.b32.xlu0 %v1288_v4, %s1305_s23  ;;  %782 = vrot.lane.b32.xlu1 %v1287_v3, %s1305_s23 }
  0x34   : > { %885 = vrot.lane.b32.xlu0 %v1285_v2, %s1306_s24  ;;  %887 = vrot.lane.b32.xlu1 %v1288_v4, %s1306_s24 }
  0x38   : > { %883 = vrot.lane.b32.xlu0 %v1287_v3, %s1306_s24  ;;  %986 = vrot.lane.b32.xlu1 %v1285_v2, %s1307_s25  ;;  %s170_s24 = scalar_lea.vmem %s1452_s3, %s1264_s14 }
  0x3c   : > { %988 = vrot.lane.b32.xlu0 %v1288_v4, %s1307_s25  ;;  %984 = vrot.lane.b32.xlu1 %v1287_v3, %s1307_s25 }
  0x40   : > { %1086 = vperm.xlu0 %1284, %v1083_v5  }
  0x82   : > { %v195_v6 = vpop.permute.xlu0 %194  ;;  %v193_v7 = vpop.permute.xlu1 %192 }
  0x83   : > { %v199_v12 = vsel %vm198_vm1, %v193_v7, %v195_v6 }
  0x86   : > { %v197_v8 = vpop.permute.xlu0 %196  ;;  %v381_v11 = vpop.permute.xlu1 %380 }
  0x87   : > { %1211 = vmatpush3.bf16.msra.mxu1 %v197_v8  ;;  %v200_v9 = vsel %vm198_vm1, %v195_v6, %v197_v8 }
  0x88   : > { %222 = vmatprep.subr.bf16.mxu0 %v200_v9  ;;  %1216 = vmatprep.subr.bf16.mxu1 %v1297_v0 }
  0x89   : > { %223 = vmatpush1.bf16.msra.mxu0 %v199_v12 }
  0x8a   : > { %1213 = vmatmul.mubr.msk.bf16.vlgmr.msra.gmra.mxu1 %vm204_vm2, %v1161_v10  ;;  %309 = vmatprep.subr.bf16.mxu0 %v1285_v2  ;;  %v383_v13 = vpop.permute.xlu0 %382  ;;  %v379_v15 = vpop.permute.xlu1 %378 }
  0x8b   : > { %1217 = vmatpush3.bf16.msra.mxu1 %v1288_v4  ;;  %1218 = vmatprep.mubr.msk.bf16.mxu1 %vm1298_vm0, %v1297_v0  ;;  %v386_v14 = vsel %vm384_vm3, %v381_v11, %v383_v13  ;;  %v385_v19 = vsel %vm384_vm3, %v379_v15, %v381_v11 }
  0x8c   : > { %1165 = vmatmul.mubr.msk.bf16.vlgmr.msra.gmra.mxu0 %vm204_vm2, %v1161_v10  ;;  %1222 = vmatprep.subr.bf16.mxu1 %v1297_v0 }
  0x8d   : > { %310 = vmatpush1.bf16.msra.mxu0 %v1287_v3  ;;  %327 = vmatprep.mubr.bf16.mxu0 %v1299_v1 }
  0x8e   : > { %407 = vmatprep.subr.bf16.mxu0 %v386_v14  ;;  %v482_v16 = vpop.permute.xlu0 %481  ;;  %v484_v18 = vpop.permute.xlu1 %483 }
  0x8f   : > { %v487_v20 = vsel %vm485_vm4, %v482_v16, %v484_v18 }
  0x92   : > { %1219 = vmatmul.mubr.msk.bf16.vlgmr.msra.gmra.mxu1 %vm204_vm2, %v176_v17  ;;  %v480_v21 = vpop.permute.xlu0 %479  ;;  %v583_v22 = vpop.permute.xlu1 %582 }
  0x93   : > { %1223 = vmatpush3.bf16.msra.mxu1 %v383_v13  ;;  %1224 = vmatprep.mubr.msk.bf16.mxu1 %vm1298_vm0, %v1297_v0  ;;  %v486_v25 = vsel %vm485_vm4, %v480_v21, %v482_v16 }
  0x94   : > { %1167 = vmatmul.mubr.msk.bf16.vlgmr.msra.gmra.mxu0 %vm204_vm2, %v176_v17  ;;  %1228 = vmatprep.subr.bf16.mxu1 %v1297_v0 }
  0x95   : > { %408 = vmatpush1.bf16.msra.mxu0 %v385_v19  ;;  %425 = vmatprep.mubr.bf16.mxu0 %v1299_v1 }
  0x96   : > { %508 = vmatprep.subr.bf16.mxu0 %v487_v20  ;;  %v585_v24 = vpop.permute.xlu0 %584  ;;  %v581_v27 = vpop.permute.xlu1 %580 }
  0x97   : > { %v588_v26 = vsel %vm586_vm5, %v583_v22, %v585_v24  ;;  %v587_v31 = vsel %vm586_vm5, %v581_v27, %v583_v22 }
  0x9a   : > { %1225 = vmatmul.mubr.msk.bf16.vlgmr.msra.gmra.mxu1 %vm204_vm2, %v1169_v23  ;;  %v684_v28 = vpop.permute.xlu0 %683  ;;  %v686_v30 = vpop.permute.xlu1 %685 }
  0x9b   : > { %1229 = vmatpush3.bf16.msra.mxu1 %v484_v18  ;;  %1230 = vmatprep.mubr.msk.bf16.mxu1 %vm1298_vm0, %v1297_v0  ;;  %v689_v32 = vsel %vm687_vm6, %v684_v28, %v686_v30 }
  0x9c   : > { %1170 = vmatmul.mubr.msk.bf16.vlgmr.msra.gmra.mxu0 %vm204_vm2, %v1169_v23  ;;  %1234 = vmatprep.subr.bf16.mxu1 %v1297_v0 }
  0x9d   : > { %509 = vmatpush1.bf16.msra.mxu0 %v486_v25  ;;  %526 = vmatprep.mubr.bf16.mxu0 %v1299_v1 }
  0x9e   : > { %609 = vmatprep.subr.bf16.mxu0 %v588_v26  ;;  %v682_v33 = vpop.permute.xlu0 %681  ;;  %v785_v34 = vpop.permute.xlu1 %784 }
  0x9f   : > { %v688_v37 = vsel %vm687_vm6, %v682_v33, %v684_v28 }
  0xa2   : > { %1231 = vmatmul.mubr.msk.bf16.vlgmr.msra.gmra.mxu1 %vm204_vm2, %v1172_v29  ;;  %v787_v36 = vpop.permute.xlu0 %786  ;;  %v783_v39 = vpop.permute.xlu1 %782 }
  0xa3   : > { %1235 = vmatpush3.bf16.msra.mxu1 %v585_v24  ;;  %1236 = vmatprep.mubr.msk.bf16.mxu1 %vm1298_vm0, %v1297_v0  ;;  %v790_v38 = vsel %vm788_vm7, %v785_v34, %v787_v36  ;;  %v789_v43 = vsel %vm788_vm7, %v783_v39, %v785_v34 }
  0xa4   : > { %1173 = vmatmul.mubr.msk.bf16.vlgmr.msra.gmra.mxu0 %vm204_vm2, %v1172_v29  ;;  %1240 = vmatprep.subr.bf16.mxu1 %v1297_v0 }
  0xa5   : > { %610 = vmatpush1.bf16.msra.mxu0 %v587_v31  ;;  %627 = vmatprep.mubr.bf16.mxu0 %v1299_v1 }
  0xa6   : > { %710 = vmatprep.subr.bf16.mxu0 %v689_v32  ;;  %v886_v40 = vpop.permute.xlu0 %885  ;;  %v888_v42 = vpop.permute.xlu1 %887 }
  0xa7   : > { %v891_v44 = vsel %vm889_vm8, %v886_v40, %v888_v42 }
  0xaa   : > { %1237 = vmatmul.mubr.msk.bf16.vlgmr.msra.gmra.mxu1 %vm204_vm2, %v1175_v35  ;;  %v884_v45 = vpop.permute.xlu0 %883  ;;  %v987_v48 = vpop.permute.xlu1 %986 }
  0xab   : > { %1241 = vmatpush3.bf16.msra.mxu1 %v686_v30  ;;  %1242 = vmatprep.mubr.msk.bf16.mxu1 %vm1298_vm0, %v1297_v0  ;;  %v890_v49 = vsel %vm889_vm8, %v884_v45, %v886_v40 }
  0xac   : > { %1176 = vmatmul.mubr.msk.bf16.vlgmr.msra.gmra.mxu0 %vm204_vm2, %v1175_v35  ;;  %1246 = vmatprep.subr.bf16.mxu1 %v1297_v0 }
  0xad   : > { %711 = vmatpush1.bf16.msra.mxu0 %v688_v37  ;;  %728 = vmatprep.mubr.bf16.mxu0 %v1299_v1 }
  0xae   : > { %811 = vmatprep.subr.bf16.mxu0 %v790_v38  ;;  %v989_v47 = vpop.permute.xlu0 %988  ;;  %v985_v51 = vpop.permute.xlu1 %984 }
  0xaf   : > { %v992_v50 = vsel %vm990_vm9, %v987_v48, %v989_v47  ;;  %v991_v53 = vsel %vm990_vm9, %v985_v51, %v987_v48 }
  0xb2   : > { %1243 = vmatmul.mubr.msk.bf16.vlgmr.msra.gmra.mxu1 %vm204_vm2, %v1178_v41 }
  0xb3   : > { %1247 = vmatpush3.bf16.msra.mxu1 %v787_v36  ;;  %1248 = vmatprep.mubr.msk.bf16.mxu1 %vm1298_vm0, %v1297_v0 }
  0xb4   : > { %1179 = vmatmul.mubr.msk.bf16.vlgmr.msra.gmra.mxu0 %vm204_vm2, %v1178_v41  ;;  %1252 = vmatprep.subr.bf16.mxu1 %v1297_v0 }
  0xb5   : > { %812 = vmatpush1.bf16.msra.mxu0 %v789_v43  ;;  %829 = vmatprep.mubr.bf16.mxu0 %v1299_v1 }
  0xb6   : > { %912 = vmatprep.subr.bf16.mxu0 %v891_v44 }
  0xba   : > { %1249 = vmatmul.mubr.msk.bf16.vlgmr.msra.gmra.mxu1 %vm204_vm2, %v1181_v46 }
  0xbb   : > { %1253 = vmatpush3.bf16.msra.mxu1 %v888_v42  ;;  %1254 = vmatprep.mubr.msk.bf16.mxu1 %vm1298_vm0, %v1297_v0 }
  0xbc   : > { %1182 = vmatmul.mubr.msk.bf16.vlgmr.msra.gmra.mxu0 %vm204_vm2, %v1181_v46  ;;  %1258 = vmatprep.subr.bf16.mxu1 %v1297_v0 }
  0xbd   : > { %913 = vmatpush1.bf16.msra.mxu0 %v890_v49  ;;  %930 = vmatprep.mubr.bf16.mxu0 %v1299_v1 }
  0xbe   : > { %1013 = vmatprep.subr.bf16.mxu0 %v992_v50 }
  0xc2   : > { %1255 = vmatmul.mubr.msk.bf16.vlgmr.msra.gmra.mxu1 %vm204_vm2, %v1184_v52 }
  0xc3   : > { %1259 = vmatpush3.bf16.msra.mxu1 %v989_v47  ;;  %1260 = vmatprep.mubr.msk.bf16.mxu1 %vm1298_vm0, %v1297_v0 }
  0xc4   : > { %1185 = vmatmul.mubr.msk.bf16.vlgmr.msra.gmra.mxu0 %vm204_vm2, %v1184_v52 }
  0xc5   : > { %1014 = vmatpush1.bf16.msra.mxu0 %v991_v53  ;;  %1031 = vmatprep.mubr.bf16.mxu0 %v1299_v1 }
  0xca   : > { %1261 = vmatmul.mubr.msk.bf16.vlgmr.msra.gmra.mxu1 %vm204_vm2, %v1187_v54 }
  0xcc   : > { %1188 = vmatmul.mubr.msk.bf16.vlgmr.msra.gmra.mxu0 %vm204_vm2, %v1187_v54 }
 0x14a   : > { %v283_v55 = vpop.f32.mrf.mxu1 }
 0x14c   : > { %v242_v56 = vpop.f32.mrf.mxu0  ;;  %v1214_v57 = vpop.f32.mrf.mxu1 }
 0x14e   : > { %v244_v58 = vpop.f32.mrf.mxu0  ;;  %v286_v59 = vpop.f32.mrf.mxu1 }
 0x150   : > { %v246_v60 = vpop.f32.mrf.mxu0  ;;  %v1215_v61 = vpop.f32.mrf.mxu1 }
 0x152   : > { %v247_v62 = vpop.f32.mrf.mxu0  ;;  %v370_v63 = vpop.f32.mrf.mxu1 }
 0x153   : > { %v371_v42 = vadd.f32 %v370_v63, %v283_v55 }
 0x154   : > { %v329_v0 = vpop.f32.mrf.mxu0  ;;  %v1220_v2 = vpop.f32.mrf.mxu1 }
 0x155   : > { %v330_v45 = vadd.f32 %v329_v0, %v242_v56 }
 0x156   : > { %v331_v1 = vpop.f32.mrf.mxu0  ;;  %v373_v3 = vpop.f32.mrf.mxu1 }
 0x157   : > { %v332_v49 = vadd.f32 %v331_v1, %v244_v58 }
 0x158   : > { %v333_v4 = vpop.f32.mrf.mxu0  ;;  %v1221_v5 = vpop.f32.mrf.mxu1 }
 0x15a   : > { %v334_v6 = vpop.f32.mrf.mxu0  ;;  %v468_v7 = vpop.f32.mrf.mxu1 }
 0x15b   : > { %v476_v46 = vadd.f32 %v468_v7, %v371_v42 }
 0x15c   : > { %v427_v8 = vpop.f32.mrf.mxu0  ;;  %v1226_v9 = vpop.f32.mrf.mxu1 }
 0x15d   : > { %v474_v50 = vadd.f32 %v427_v8, %v330_v45  ;;  %v1087_v8 = vpop.permute.xlu0 %1086 }
 0x15e   : > { %v429_v10 = vpop.f32.mrf.mxu0  ;;  %v471_v11 = vpop.f32.mrf.mxu1 }
 0x15f   : > { %v475_v54 = vadd.f32 %v429_v10, %v332_v49 }
 0x160   : > { %v431_v12 = vpop.f32.mrf.mxu0  ;;  %v1227_v13 = vpop.f32.mrf.mxu1 }
 0x162   : > { %v432_v14 = vpop.f32.mrf.mxu0  ;;  %v569_v15 = vpop.f32.mrf.mxu1 }
 0x163   : > { %v577_v51 = vadd.f32 %v569_v15, %v476_v46 }
 0x164   : > { %v528_v16 = vpop.f32.mrf.mxu0  ;;  %v1232_v17 = vpop.f32.mrf.mxu1 }
 0x165   : > { %v575_v57 = vadd.f32 %v528_v16, %v474_v50 }
 0x166   : > { %v530_v18 = vpop.f32.mrf.mxu0  ;;  %v572_v19 = vpop.f32.mrf.mxu1 }
 0x167   : > { %v576_v62 = vadd.f32 %v530_v18, %v475_v54 }
 0x168   : > { %v532_v20 = vpop.f32.mrf.mxu0  ;;  %v1233_v21 = vpop.f32.mrf.mxu1 }
 0x16a   : > { %v533_v22 = vpop.f32.mrf.mxu0  ;;  %v670_v23 = vpop.f32.mrf.mxu1 }
 0x16b   : > { %v678_v59 = vadd.f32 %v670_v23, %v577_v51 }
 0x16c   : > { %v629_v24 = vpop.f32.mrf.mxu0  ;;  %v1238_v25 = vpop.f32.mrf.mxu1 }
 0x16d   : > { %v676_v2 = vadd.f32 %v629_v24, %v575_v57 }
 0x16e   : > { %v631_v26 = vpop.f32.mrf.mxu0  ;;  %v673_v27 = vpop.f32.mrf.mxu1 }
 0x16f   : > { %v677_v4 = vadd.f32 %v631_v26, %v576_v62 }
 0x170   : > { %v633_v28 = vpop.f32.mrf.mxu0  ;;  %v1239_v29 = vpop.f32.mrf.mxu1 }
 0x172   : > { %v634_v30 = vpop.f32.mrf.mxu0  ;;  %v771_v31 = vpop.f32.mrf.mxu1 }
 0x173   : > { %v779_v3 = vadd.f32 %v771_v31, %v678_v59 }
 0x174   : > { %v730_v32 = vpop.f32.mrf.mxu0  ;;  %v1244_v33 = vpop.f32.mrf.mxu1 }
 0x175   : > { %v777_v56 = vadd.f32 %v730_v32, %v676_v2 }
 0x176   : > { %v732_v34 = vpop.f32.mrf.mxu0  ;;  %v774_v35 = vpop.f32.mrf.mxu1 }
 0x177   : > { %v778_v1 = vadd.f32 %v732_v34, %v677_v4 }
 0x178   : > { %v734_v36 = vpop.f32.mrf.mxu0  ;;  %v1245_v37 = vpop.f32.mrf.mxu1 }
 0x17a   : > { %v735_v38 = vpop.f32.mrf.mxu0  ;;  %v872_v39 = vpop.f32.mrf.mxu1 }
 0x17b   : > { %v880_v0 = vadd.f32 %v872_v39, %v779_v3 }
 0x17c   : > { %v831_v40 = vpop.f32.mrf.mxu0  ;;  %v1250_v41 = vpop.f32.mrf.mxu1 }
 0x17d   : > { %v878_v6 = vadd.f32 %v831_v40, %v777_v56 }
 0x17e   : > { %v833_v43 = vpop.f32.mrf.mxu0  ;;  %v875_v44 = vpop.f32.mrf.mxu1 }
 0x17f   : > { %v879_v11 = vadd.f32 %v833_v43, %v778_v1 }
 0x180   : > { %v835_v47 = vpop.f32.mrf.mxu0  ;;  %v1251_v48 = vpop.f32.mrf.mxu1 }
 0x182   : > { %v836_v52 = vpop.f32.mrf.mxu0  ;;  %v973_v53 = vpop.f32.mrf.mxu1 }
 0x183   : > { %v981_v7 = vadd.f32 %v973_v53, %v880_v0 }
 0x184   : > { %v932_v60 = vpop.f32.mrf.mxu0  ;;  %v1256_v61 = vpop.f32.mrf.mxu1 }
 0x185   : > { %v979_v12 = vadd.f32 %v932_v60, %v878_v6 }
 0x186   : > { %v934_v55 = vpop.f32.mrf.mxu0  ;;  %v976_v63 = vpop.f32.mrf.mxu1 }
 0x187   : > { %v980_v16 = vadd.f32 %v934_v55, %v879_v11 }
 0x188   : > { %v936_v5 = vpop.f32.mrf.mxu0  ;;  %v1257_v58 = vpop.f32.mrf.mxu1 }
 0x18a   : > { %v937_v9 = vpop.f32.mrf.mxu0  ;;  %v1074_v10 = vpop.f32.mrf.mxu1 }
 0x18b   : > { %v1082_v13 = vadd.f32 %v1074_v10, %v981_v7 }
 0x18c   : > { %v1033_v14 = vpop.f32.mrf.mxu0  ;;  %v1262_v15 = vpop.f32.mrf.mxu1 }
 0x18d   : > { %v1091_v17 = vadd.f32 %v1087_v8, %v1082_v13  ;;  %v1080_v18 = vadd.f32 %v1033_v14, %v979_v12 }
 0x18e   : > { %v1035_v19 = vpop.f32.mrf.mxu0  ;;  %v1077_v20 = vpop.f32.mrf.mxu1 }
 0x18f   : > { %v1094_v21 = vmax.f32 %v1091_v17, 0.0  ;;  %v1089_v22 = vadd.f32 %v1087_v8, %v1080_v18  ;;  %v1081_v23 = vadd.f32 %v1035_v19, %v980_v16 }
 0x190   : > { %v1037_v24 = vpop.f32.mrf.mxu0  ;;  %v1263_v25 = vpop.f32.mrf.mxu1 }
 0x191   : > { %1098 = vst.msk [vmem:[%s170_s24 + $0x10] sm:$0xff] %vm1097_vm10, %v1094_v21  ;;  %v1092_v26 = vmax.f32 %v1089_v22, 0.0  ;;  %v1090_v27 = vadd.f32 %v1087_v8, %v1081_v23 }
 0x192   : > { %v1038_v28 = vpop.f32.mrf.mxu0 }
 0x193   : > { %1095 = vst [vmem:[%s170_s24] sm:$0xff] %v1092_v26  ;;  %v1093_v29 = vmax.f32 %v1090_v27, 0.0 }
 0x195   : > { %1096 = vst [vmem:[%s170_s24 + $0x8] sm:$0xff] %v1093_v29 }
 0x196 PF: > { %s13_s12 = sadd.s32 1, %s1295_s12  }
 0x197   : > { %p10_p4 = scmp.ge.s32.totalorder %s13_s12, 4  }
 0x199   :  { %12 = sbr.rel (!%p10_p4) target bundleno = 1 (0x1), region = 70 }

// kernel: scan_only_net.37
= control target key start
LH: loop header
LB: loop body
LE: loop exit
PB: predicated region body
PF: predicated region fallthrough
CT: control target
= control target key end

     0   :  { %s355_s12 = smov 0   ;;  %s378_s0 = inlined_call_operand.vmem [shape: bf16[2,8,256], index: 0, kind: input, shape index: {}]   ;;  %s379_s1 = inlined_call_operand.vmem [shape: bf16[1,3,8], index: 1, kind: input, shape index: {}]   ;;  %s380_s2 = inlined_call_operand.vmem [shape: f32[3,1], index: 2, kind: input, shape index: {}]   ;;  %s381_s3 = inlined_call_operand.vmem [shape: f32[2,3,256], index: 3, kind: output, shape index: {}]  }
   0x1 LB: > { %s297_s13 = sadd.s32 4294967295, %s332_s12   ;;  %p301_p0 = scmp.ge.s32.totalorder %s332_s12, 1  ;;  %s332_s12 = sphi %s355_s12, %s13_s12  }
   0x2   : > { %p137_p1 = scmp.lt.s32.totalorder %s332_s12, 3 }
   0x4   : > { %p138_p2 = pnand %p301_p0, %p137_p1 }
   0x5   : > { %p161_p3 = scmp.lt.s32.totalorder (!%p138_p2), %s297_s13, 1 }
   0x6   : > { %141 = sbr.rel (%p138_p2) target bundleno = 221 (0xdd), region = 32 }
   0xb   : > { %v334_v0 = vmov 0   ;;  %v174_v1 = vld [vmem:[%s380_s2] sm:$0x7]  ;;  %s383_s13 = smov (!%p161_p3, %s297_s13), 1  ;;  %vm189_vm0 = vcmask 1043456   ;;  %vm185_vm1 = vcmask 64512  }
   0xc   : > { %228 = vmatprep.mubr.bf16.mxu0 %v334_v0  ;;  %323 = vset.pattern.permute.xlu0 %v334_v0  ;;  %s312_s16 = sshll.u32 %s383_s13, 3  ;;  %v173_v6 = vld [vmem:[%s379_s1] sm:$0x3] }
   0xd   : > { %177 = vperm.xlu0 %323, %v174_v1   ;;  %s165_s19 = scalar_lea.vmem %s378_s0, %s312_s16  ;;  %s170_s24 = scalar_lea.vmem %s381_s3, %s312_s16 }
   0xe   : > { %v172_v2 = vld [vmem:[%s165_s19] sm:$0xff] }
   0xf   : > { %v307_v3 = vcombine.high %v172_v2, %v172_v2  ;;  %v306_v4 = vcombine.low %v172_v2, %v172_v2 }
  0x11   : > { %308 = vmatprep.subr.msk.bf16.mxu0 %vm189_vm0, %v307_v3  ;;  %v191_v5 = vsel %vm189_vm0, %v306_v4, 0 }
  0x12   : > { %211 = vmatpush1.bf16.msra.mxu0 %v191_v5 }
  0x15   : > { %309 = vmatmul.mubr.msk.bf16.vlgmr.msra.gmra.mxu0 %vm185_vm1, %v173_v6 }
  0x88   : > { %v178_v7 = vpop.permute.xlu0 %177 }
  0xd5   : > { %v230_v8 = vpop.f32.mrf.mxu0 }
  0xd6   : > { %v231_v10 = vadd.f32 %v230_v8, %v178_v7 }
  0xd7   : > { %v232_v9 = vpop.f32.mrf.mxu0 }
  0xd8   : > { %v233_v11 = vadd.f32 %v232_v9, %v178_v7 }
  0xd9   : > { %v234_v12 = vpop.f32.mrf.mxu0 }
  0xda   : > { %v239_v13 = vcombine.low %v231_v10, %v233_v11 }
  0xdb   : > { %v235_v14 = vpop.f32.mrf.mxu0 }
  0xdc   : > { %241 = vst [vmem:[%s170_s24] sm:$0x77] %v239_v13 }
  0xdd PF: > { %s13_s12 = sadd.s32 1, %s332_s12  }
  0xde   : > { %p10_p4 = scmp.ge.s32.totalorder %s13_s12, 4  }
  0xe0   :  { %12 = sbr.rel (!%p10_p4) target bundleno = 1 (0x1), region = 62 }

</bundles_post_ra>
